<compile_context>
chip_gen: v7x
topology: tpu7x:2x2x1
jax: 0.10.0
libtpu: 0.0.40
codegen_flags: <defaults>
</compile_context>

<pallas_src>
import functools

import jax
import jax.numpy as jnp
from jax import lax
from jax.experimental import pallas as pl
from jax.experimental.pallas import tpu as pltpu

LEAK = 0.2
BN_EPS = 1e-5
KSIZE = 4
KK = KSIZE * KSIZE
# 48 MiB scoped VMEM works on v5e/v6e (128 MiB) and v7x (64 MiB per TC).
VMEM_LIMIT = 48 * 1024 * 1024


# ----------------------------- Pallas kernels ------------------------------

def _conv_bias_lrelu_kernel(p_ref, w_ref, b_ref, o_ref):
    acc = jnp.dot(p_ref[...], w_ref[...], preferred_element_type=jnp.float32)
    acc = acc + b_ref[...]
    o_ref[...] = jnp.where(acc > 0, acc, LEAK * acc).astype(o_ref.dtype)


def _conv_stats_kernel(p_ref, csc_ref, csh_ref, w_ref, z_ref, s_ref, q_ref,
                       *, fuse_prologue, valid_m, tm, mpad):
    # One pass per BN block: (optional) previous block's BN affine + LeakyReLU
    # applied per patch column, conv (as matmul), then per-channel sum and
    # sum-of-squares accumulated across the M grid (resident stats outputs).
    if fuse_prologue:
        x = p_ref[...].astype(jnp.float32) * csc_ref[...] + csh_ref[...]
        x = jnp.where(x > 0, x, LEAK * x).astype(jnp.bfloat16)
    else:
        x = p_ref[...]
    z = jnp.dot(x, w_ref[...], preferred_element_type=jnp.float32)
    z_ref[...] = z.astype(z_ref.dtype)

    if mpad > valid_m:
        # Padded rows are no longer exactly zero once the prologue adds a
        # shift; mask them so the batch statistics stay exact.
        row = lax.broadcasted_iota(jnp.int32, z.shape, 0) + pl.program_id(0) * tm
        z = jnp.where(row < valid_m, z, 0.0)

    s = jnp.sum(z, axis=0, keepdims=True)
    q = jnp.sum(z * z, axis=0, keepdims=True)

    @pl.when(pl.program_id(0) == 0)
    def _():
        s_ref[...] = s
        q_ref[...] = q

    @pl.when(pl.program_id(0) > 0)
    def _():
        s_ref[...] = s_ref[...] + s
        q_ref[...] = q_ref[...] + q


def _bn_lrelu_head_kernel(z_ref, sc_ref, sh_ref, wf_ref, bf_ref, o_ref):
    # Last BN block fused with the final 1x1 conv + sigmoid.  The 1-channel
    # output is zero-padded to 128 lanes so stores are unmasked.
    y = z_ref[...].astype(jnp.float32) * sc_ref[...] + sh_ref[...]
    h = jnp.where(y > 0, y, LEAK * y)
    acc = jnp.dot(h.astype(jnp.bfloat16), wf_ref[...],
                  preferred_element_type=jnp.float32)
    acc = acc + bf_ref[...]
    o_ref[...] = pl.reciprocal(1.0 + jnp.exp(-acc), approx=True)


# ----------------------------- kernel wrappers ------------------------------

def _cparams(semantics):
    return pltpu.CompilerParams(dimension_semantics=semantics,
                                vmem_limit_bytes=VMEM_LIMIT)


def _conv_bias_lrelu(p, w, b, tm):
    mpad, k = p.shape
    cout = w.shape[1]
    return pl.pallas_call(
        _conv_bias_lrelu_kernel,
        out_shape=jax.ShapeDtypeStruct((mpad, cout), jnp.bfloat16),
        grid=(mpad // tm,),
        in_specs=[pl.BlockSpec((tm, k), lambda i: (i, 0)),
                  pl.BlockSpec((k, cout), lambda i: (0, 0)),
                  pl.BlockSpec((1, cout), lambda i: (0, 0))],
        out_specs=pl.BlockSpec((tm, cout), lambda i: (i, 0)),
        compiler_params=_cparams(("parallel",)),
    )(p, w, b)


def _conv_stats(p, col_scale, col_shift, w, tm, valid_m, fuse_prologue):
    mpad, k = p.shape
    cout = w.shape[1]
    kernel = functools.partial(_conv_stats_kernel,
                               fuse_prologue=fuse_prologue,
                               valid_m=valid_m, tm=tm, mpad=mpad)
    return pl.pallas_call(
        kernel,
        out_shape=(jax.ShapeDtypeStruct((mpad, cout), jnp.bfloat16),
                   jax.ShapeDtypeStruct((1, cout), jnp.float32),
                   jax.ShapeDtypeStruct((1, cout), jnp.float32)),
        grid=(mpad // tm,),
        in_specs=[pl.BlockSpec((tm, k), lambda i: (i, 0)),
                  pl.BlockSpec((1, k), lambda i: (0, 0)),
                  pl.BlockSpec((1, k), lambda i: (0, 0)),
                  pl.BlockSpec((k, cout), lambda i: (0, 0))],
        out_specs=(pl.BlockSpec((tm, cout), lambda i: (i, 0)),
                   pl.BlockSpec((1, cout), lambda i: (0, 0)),
                   pl.BlockSpec((1, cout), lambda i: (0, 0))),
        compiler_params=_cparams(("arbitrary",)),
    )(p, col_scale, col_shift, w)


def _bn_lrelu_head(z, scale, shift, wf, bf, tm):
    mpad, cout = z.shape
    npad = wf.shape[1]
    return pl.pallas_call(
        _bn_lrelu_head_kernel,
        out_shape=jax.ShapeDtypeStruct((mpad, npad), jnp.float32),
        grid=(mpad // tm,),
        in_specs=[pl.BlockSpec((tm, cout), lambda i: (i, 0)),
                  pl.BlockSpec((1, cout), lambda i: (0, 0)),
                  pl.BlockSpec((1, cout), lambda i: (0, 0)),
                  pl.BlockSpec((cout, npad), lambda i: (0, 0)),
                  pl.BlockSpec((1, npad), lambda i: (0, 0))],
        out_specs=pl.BlockSpec((tm, npad), lambda i: (i, 0)),
        compiler_params=_cparams(("parallel",)),
    )(z, scale, shift, wf, bf)


# ------------------------------- JAX glue ----------------------------------

def _round_up(x, m):
    return ((x + m - 1) // m) * m


def _tile_m(m, block_m):
    if m <= block_m:
        return m, m
    return block_m, _round_up(m, block_m)


def _pad2(a, rows, cols):
    r, c = a.shape
    if r == rows and c == cols:
        return a
    return jnp.pad(a, ((0, rows - r), (0, cols - c)))


def _extract_patches(h_nhwc, ksize=KSIZE, stride=2, pad=1):
    """Reflect-pad + patch extraction.  Rows = N*Ho*Wo, cols = Cin*Kh*Kw
    (channel-major, then (kh, kw)) — matches _w_to_mat's row ordering."""
    n, hh, ww, c = h_nhwc.shape
    xp = jnp.pad(h_nhwc, ((0, 0), (pad, pad), (pad, pad), (0, 0)),
                 mode="reflect")
    ho = (hh + 2 * pad - ksize) // stride + 1
    wo = (ww + 2 * pad - ksize) // stride + 1
    p = lax.conv_general_dilated_patches(
        xp, (ksize, ksize), (stride, stride), padding="VALID",
        dimension_numbers=("NHWC", "HWIO", "NHWC"))
    return p.reshape(n * ho * wo, c * ksize * ksize), (n, ho, wo)


def _w_to_mat(w):
    # PyTorch conv weight (Cout, Cin, Kh, Kw) -> (Cin*Kh*Kw, Cout) with
    # row index = cin*Kh*Kw + kh*Kw + kw (matches _extract_patches columns).
    cout = w.shape[0]
    return jnp.transpose(w.reshape(cout, -1))


def discriminator_forward(params, x_nchw, y_nchw, *, block_m=1024):
    # torch.cat([x, y], dim=1), NCHW -> NHWC
    h = jnp.transpose(jnp.concatenate([x_nchw, y_nchw], axis=1), (0, 2, 3, 1))

    # initial: Conv(2C -> f0, k4 s2 p1 reflect) + bias + LeakyReLU(0.2).
    # Cout is zero-padded to a multiple of 128 for lane-dense (unmasked)
    # stores; the extra channels are sliced off in the glue.
    p, (n, ho, wo) = _extract_patches(h)
    m, k = p.shape
    w0 = _w_to_mat(params["w0"])
    cout0 = w0.shape[1]
    kpad = _round_up(k, 128)
    cpad = _round_up(cout0, 128)
    tm, mpad = _tile_m(m, block_m)
    pp = _pad2(p, mpad, kpad).astype(jnp.bfloat16)
    wp = _pad2(w0, kpad, cpad).astype(jnp.bfloat16)
    bp = _pad2(params["b0"].reshape(1, -1).astype(jnp.float32), 1, cpad)
    hflat = _conv_bias_lrelu(pp, wp, bp, tm)
    src = hflat[:m, :cout0].reshape(n, ho, wo, cout0)

    # BN blocks: Conv(k4 s2 p1 reflect, no bias) + BatchNorm + LeakyReLU(0.2).
    # The BN affine + LeakyReLU of block i is fused into block i+1's conv
    # prologue (per-column scale/shift on the patch matrix), so intermediate
    # activations are never materialized separately in HBM.
    blocks = params["blocks"]
    prev_scale_ch = None
    prev_shift_ch = None
    out = None
    for bi, (w, gamma, beta) in enumerate(blocks):
        p, (n, ho, wo) = _extract_patches(src)
        m, k = p.shape
        wmat = _w_to_mat(w)
        cout = wmat.shape[1]
        kpad = _round_up(k, 128)
        tm, mpad = _tile_m(m, block_m)
        pp = _pad2(p, mpad, kpad).astype(jnp.bfloat16)
        wp = _pad2(wmat, kpad, cout).astype(jnp.bfloat16)

        fuse = prev_scale_ch is not None
        if fuse:
            # patch column j (< k) maps to input channel j // (Kh*Kw)
            csc = jnp.repeat(prev_scale_ch, KK)
            csh = jnp.repeat(prev_shift_ch, KK)
            csc = jnp.concatenate(
                [csc, jnp.ones((kpad - k,), jnp.float32)]).reshape(1, kpad)
            csh = jnp.concatenate(
                [csh, jnp.zeros((kpad - k,), jnp.float32)]).reshape(1, kpad)
        else:
            csc = jnp.ones((1, kpad), jnp.float32)
            csh = jnp.zeros((1, kpad), jnp.float32)

        z, zsum, zsq = _conv_stats(pp, csc, csh, wp, tm, m, fuse)

        # exact batch statistics over the true (unpadded) M rows; padded rows
        # are masked inside the kernel.
        mean = zsum / m
        var = jnp.maximum(zsq / m - mean * mean, 0.0)
        scale = gamma.reshape(1, -1) * lax.rsqrt(var + BN_EPS)
        shift = beta.reshape(1, -1) - mean * scale

        if bi + 1 < len(blocks):
            # defer BN + LeakyReLU to the next block's conv prologue
            src = z[:m].reshape(n, ho, wo, cout)
            prev_scale_ch = scale.reshape(-1)
            prev_shift_ch = shift.reshape(-1)
        else:
            # last block: fuse BN + LeakyReLU + Conv(C -> 1, k1 s1) + Sigmoid
            wf = params["wf"].reshape(-1).astype(jnp.bfloat16)
            wf_mat = jnp.zeros((cout, 128), jnp.bfloat16).at[:, 0].set(wf)
            bf_vec = jnp.zeros((1, 128), jnp.float32).at[0, 0].set(
                params["bf"][0])
            oflat = _bn_lrelu_head(z, scale, shift, wf_mat, bf_vec, tm)
            out = oflat[:m, :1].reshape(n, ho, wo, 1)

    return jnp.transpose(out, (0, 3, 1, 2))      # NCHW (N, 1, Hf, Wf)


# ---------------------- pure-JAX reference (for checking) -------------------

def _reference_forward(params, x_nchw, y_nchw):
    h = jnp.transpose(jnp.concatenate([x_nchw, y_nchw], axis=1), (0, 2, 3, 1))

    def conv(hh, w, stride):
        hp = jnp.pad(hh, ((0, 0), (1, 1), (1, 1), (0, 0)), mode="reflect")
        return lax.conv_general_dilated(
            hp, jnp.transpose(w, (2, 3, 1, 0)), (stride, stride), "VALID",
            dimension_numbers=("NHWC", "HWIO", "NHWC"))

    z = conv(h, params["w0"], 2) + params["b0"]
    h = jnp.where(z > 0, z, LEAK * z)
    for (w, gamma, beta) in params["blocks"]:
        z = conv(h, w, 2)
        mean = jnp.mean(z, axis=(0, 1, 2), keepdims=True)
        var = jnp.mean((z - mean) ** 2, axis=(0, 1, 2), keepdims=True)
        zn = (z - mean) * lax.rsqrt(var + BN_EPS) * gamma + beta
        h = jnp.where(zn > 0, zn, LEAK * zn)
    logits = jnp.einsum("nhwc,c->nhw", h, params["wf"].reshape(-1))
    out = jax.nn.sigmoid(logits + params["bf"][0])[..., None]
    return jnp.transpose(out, (0, 3, 1, 2))


# --------------------------------- params -----------------------------------

def init_params(key, in_channels=3, features=(64, 128, 256, 512)):
    keys = iter(jax.random.split(key, 4 + 3 * len(features)))
    params = {}
    params["w0"] = 0.05 * jax.random.normal(
        next(keys), (features[0], in_channels * 2, 4, 4), jnp.float32)
    params["b0"] = 0.05 * jax.random.normal(
        next(keys), (features[0],), jnp.float32)
    blocks = []
    c = features[0]
    for f in features[1:]:
        w = 0.05 * jax.random.normal(next(keys), (f, c, 4, 4), jnp.float32)
        gamma = 1.0 + 0.1 * jax.random.normal(next(keys), (f,), jnp.float32)
        beta = 0.1 * jax.random.normal(next(keys), (f,), jnp.float32)
        blocks.append((w, gamma, beta))
        c = f
    params["blocks"] = blocks
    params["wf"] = 0.05 * jax.random.normal(next(keys), (1, c, 1, 1),
                                            jnp.float32)
    params["bf"] = 0.1 * jax.random.normal(next(keys), (1,), jnp.float32)
    return params


if __name__ == "__main__":
    key = jax.random.PRNGKey(0)
    kx, ky, kp = jax.random.split(key, 3)
    in_channels = 3
    x = jax.random.normal(kx, (2, in_channels, 32, 32), jnp.float32)
    y = jax.random.normal(ky, (2, in_channels, 32, 32), jnp.float32)
    params = init_params(kp, in_channels=in_channels)

    # block_m=64 keeps the demo tiny while still exercising the multi-tile
    # grid, cross-tile BatchNorm statistics, and the padded-row masking.
    fwd = jax.jit(functools.partial(discriminator_forward, params,
                                    block_m=64))
    out = fwd(x, y)
    jax.block_until_ready(out)

    assert out.shape == (2, 1, 2, 2), out.shape
    assert bool(jnp.all(jnp.isfinite(out)))
    assert bool(jnp.all((out >= 0.0) & (out <= 1.0)))

    # numerical check against a pure-JAX f32 reference of the same module
    ref = _reference_forward(params, x, y)
    err = float(jnp.max(jnp.abs(out - ref)))
    assert err < 0.1, f"max abs diff vs reference: {err}"

    print("KERNEL_OK")
</pallas_src>

<mosaic_0001>
module attributes {stable_mosaic.version = 11 : i64} {
  func.func @_conv_bias_lrelu_kernel(%arg0: i32, %arg1: memref<64x128xbf16, #tpu.memory_space<vmem>>, %arg2: memref<128x128xbf16, #tpu.memory_space<vmem>>, %arg3: memref<1x128xf32, #tpu.memory_space<vmem>>, %arg4: memref<64x128xbf16, #tpu.memory_space<vmem>>) attributes {dimension_semantics = [#tpu.dimension_semantics<parallel>], iteration_bounds = array<i64: 8>, scalar_prefetch = 0 : i64, scratch_operands = 0 : i64, tpu.core_type = #tpu.core_type<tc>, window_params = [{transform_indices = @transform_0, window_bounds = array<i64: 64, 128>}, {pipeline_mode = #tpu.pipeline_mode<synchronous>, transform_indices = @transform_1, window_bounds = array<i64: 128, 128>}, {pipeline_mode = #tpu.pipeline_mode<synchronous>, transform_indices = @transform_2, window_bounds = array<i64: 1, 128>}, {transform_indices = @transform_3, window_bounds = array<i64: 64, 128>}]} {
    %c0 = arith.constant 0 : index
    %c0_0 = arith.constant 0 : index
    %0 = vector.load %arg1[%c0, %c0_0] : memref<64x128xbf16, #tpu.memory_space<vmem>>, vector<64x128xbf16>
    %c0_1 = arith.constant 0 : index
    %c0_2 = arith.constant 0 : index
    %1 = vector.load %arg2[%c0_1, %c0_2] : memref<128x128xbf16, #tpu.memory_space<vmem>>, vector<128x128xbf16>
    %cst = arith.constant dense<0.000000e+00> : vector<64x128xf32>
    %2 = tpu.matmul %0, %1, %cst {dimension_numbers = #tpu.dot_dimension_numbers<[1], [0], [0], [1], [0, 0, 1, 1], [], []>} : vector<64x128xbf16>, vector<128x128xbf16>, vector<64x128xf32> -> vector<64x128xf32>
    %c0_3 = arith.constant 0 : index
    %c0_4 = arith.constant 0 : index
    %3 = vector.load %arg3[%c0_3, %c0_4] : memref<1x128xf32, #tpu.memory_space<vmem>>, vector<1x128xf32>
    %4 = vector.broadcast %3 : vector<1x128xf32> to vector<64x128xf32>
    %5 = arith.addf %2, %4 : vector<64x128xf32>
    %cst_5 = arith.constant 0.000000e+00 : f32
    %6 = vector.broadcast %cst_5 : f32 to vector<64x128xf32>
    %7 = arith.cmpf ogt, %5, %6 : vector<64x128xf32>
    %cst_6 = arith.constant 2.000000e-01 : f32
    %8 = vector.broadcast %cst_6 : f32 to vector<64x128xf32>
    %9 = arith.mulf %8, %5 : vector<64x128xf32>
    %10 = arith.select %7, %5, %9 : vector<64x128xi1>, vector<64x128xf32>
    %11 = arith.truncf %10 : vector<64x128xf32> to vector<64x128xbf16>
    %c0_7 = arith.constant 0 : index
    %c0_8 = arith.constant 0 : index
    %12 = vector.load %arg4[%c0_7, %c0_8] : memref<64x128xbf16, #tpu.memory_space<vmem>>, vector<64x128xbf16>
    tpu.vector_store %arg4[%c0_7, %c0_8], %11 {strides = array<i32>} : memref<64x128xbf16, #tpu.memory_space<vmem>>, vector<64x128xbf16>,
    return
  }
  func.func @transform_0(%arg0: i32) -> (i32, i32) {
    %c0_i32 = arith.constant 0 : i32
    %c0_i32_0 = arith.constant 0 : i32
    return %arg0, %c0_i32 : i32, i32
  }
  func.func @transform_1(%arg0: i32) -> (i32, i32) {
    %c0_i32 = arith.constant 0 : i32
    %c0_i32_0 = arith.constant 0 : i32
    %c0_i32_1 = arith.constant 0 : i32
    return %c0_i32, %c0_i32_0 : i32, i32
  }
  func.func @transform_2(%arg0: i32) -> (i32, i32) {
    %c0_i32 = arith.constant 0 : i32
    %c0_i32_0 = arith.constant 0 : i32
    %c0_i32_1 = arith.constant 0 : i32
    return %c0_i32, %c0_i32_0 : i32, i32
  }
  func.func @transform_3(%arg0: i32) -> (i32, i32) {
    %c0_i32 = arith.constant 0 : i32
    %c0_i32_0 = arith.constant 0 : i32
    return %arg0, %c0_i32 : i32, i32
  }
}

module attributes {stable_mosaic.version = 11 : i64} {
  func.func @_conv_stats_kernel(%arg0: i32, %arg1: memref<64x1024xbf16, #tpu.memory_space<vmem>>, %arg2: memref<1x1024xf32, #tpu.memory_space<vmem>>, %arg3: memref<1x1024xf32, #tpu.memory_space<vmem>>, %arg4: memref<1024x128xbf16, #tpu.memory_space<vmem>>, %arg5: memref<64x128xbf16, #tpu.memory_space<vmem>>, %arg6: memref<1x128xf32, #tpu.memory_space<vmem>>, %arg7: memref<1x128xf32, #tpu.memory_space<vmem>>) attributes {dimension_semantics = [#tpu.dimension_semantics<arbitrary>], iteration_bounds = array<i64: 2>, scalar_prefetch = 0 : i64, scratch_operands = 0 : i64, tpu.core_type = #tpu.core_type<tc>, window_params = [{transform_indices = @transform_0, window_bounds = array<i64: 64, 1024>}, {pipeline_mode = #tpu.pipeline_mode<synchronous>, transform_indices = @transform_1, window_bounds = array<i64: 1, 1024>}, {pipeline_mode = #tpu.pipeline_mode<synchronous>, transform_indices = @transform_2, window_bounds = array<i64: 1, 1024>}, {pipeline_mode = #tpu.pipeline_mode<synchronous>, transform_indices = @transform_3, window_bounds = array<i64: 1024, 128>}, {transform_indices = @transform_4, window_bounds = array<i64: 64, 128>}, {pipeline_mode = #tpu.pipeline_mode<synchronous>, transform_indices = @transform_5, window_bounds = array<i64: 1, 128>}, {pipeline_mode = #tpu.pipeline_mode<synchronous>, transform_indices = @transform_6, window_bounds = array<i64: 1, 128>}]} {
    %c0 = arith.constant 0 : index
    %c0_0 = arith.constant 0 : index
    %0 = vector.load %arg1[%c0, %c0_0] : memref<64x1024xbf16, #tpu.memory_space<vmem>>, vector<64x1024xbf16>
    %c0_1 = arith.constant 0 : index
    %c0_2 = arith.constant 0 : index
    %1 = vector.load %arg4[%c0_1, %c0_2] : memref<1024x128xbf16, #tpu.memory_space<vmem>>, vector<1024x128xbf16>
    %cst = arith.constant dense<0.000000e+00> : vector<64x128xf32>
    %2 = tpu.matmul %0, %1, %cst {dimension_numbers = #tpu.dot_dimension_numbers<[1], [0], [0], [1], [0, 0, 1, 1], [], []>} : vector<64x1024xbf16>, vector<1024x128xbf16>, vector<64x128xf32> -> vector<64x128xf32>
    %3 = arith.truncf %2 : vector<64x128xf32> to vector<64x128xbf16>
    %c0_3 = arith.constant 0 : index
    %c0_4 = arith.constant 0 : index
    %4 = vector.load %arg5[%c0_3, %c0_4] : memref<64x128xbf16, #tpu.memory_space<vmem>>, vector<64x128xbf16>
    tpu.vector_store %arg5[%c0_3, %c0_4], %3 {strides = array<i32>} : memref<64x128xbf16, #tpu.memory_space<vmem>>, vector<64x128xbf16>,
    %cst_5 = arith.constant dense<0.000000e+00> : vector<128xf32>
    %5 = vector.multi_reduction <add>, %2, %cst_5 [0] : vector<64x128xf32> to vector<128xf32>
    %6 = vector.shape_cast %5 : vector<128xf32> to vector<1x128xf32>
    %7 = arith.mulf %2, %2 : vector<64x128xf32>
    %cst_6 = arith.constant dense<0.000000e+00> : vector<128xf32>
    %8 = vector.multi_reduction <add>, %7, %cst_6 [0] : vector<64x128xf32> to vector<128xf32>
    %9 = vector.shape_cast %8 : vector<128xf32> to vector<1x128xf32>
    %c0_i32 = arith.constant 0 : i32
    %10 = arith.cmpi eq, %arg0, %c0_i32 : i32
    %11 = arith.extui %10 : i1 to i32
    %c0_i32_7 = arith.constant 0 : i32
    %12 = arith.cmpi ne, %11, %c0_i32_7 : i32
    scf.if %12 {
      %c0_10 = arith.constant 0 : index
      %c0_11 = arith.constant 0 : index
      %16 = vector.load %arg6[%c0_10, %c0_11] : memref<1x128xf32, #tpu.memory_space<vmem>>, vector<1x128xf32>
      tpu.vector_store %arg6[%c0_10, %c0_11], %6 {strides = array<i32>} : memref<1x128xf32, #tpu.memory_space<vmem>>, vector<1x128xf32>,
      %c0_12 = arith.constant 0 : index
      %c0_13 = arith.constant 0 : index
      %17 = vector.load %arg7[%c0_12, %c0_13] : memref<1x128xf32, #tpu.memory_space<vmem>>, vector<1x128xf32>
      tpu.vector_store %arg7[%c0_12, %c0_13], %9 {strides = array<i32>} : memref<1x128xf32, #tpu.memory_space<vmem>>, vector<1x128xf32>,
    } else {
    }
    %c0_i32_8 = arith.constant 0 : i32
    %13 = arith.cmpi sgt, %arg0, %c0_i32_8 : i32
    %14 = arith.extui %13 : i1 to i32
    %c0_i32_9 = arith.constant 0 : i32
    %15 = arith.cmpi ne, %14, %c0_i32_9 : i32
    scf.if %15 {
      %c0_10 = arith.constant 0 : index
      %c0_11 = arith.constant 0 : index
      %16 = vector.load %arg6[%c0_10, %c0_11] : memref<1x128xf32, #tpu.memory_space<vmem>>, vector<1x128xf32>
      %17 = arith.addf %16, %6 : vector<1x128xf32>
      %c0_12 = arith.constant 0 : index
      %c0_13 = arith.constant 0 : index
      %18 = vector.load %arg6[%c0_12, %c0_13] : memref<1x128xf32, #tpu.memory_space<vmem>>, vector<1x128xf32>
      tpu.vector_store %arg6[%c0_12, %c0_13], %17 {strides = array<i32>} : memref<1x128xf32, #tpu.memory_space<vmem>>, vector<1x128xf32>,
      %c0_14 = arith.constant 0 : index
      %c0_15 = arith.constant 0 : index
      %19 = vector.load %arg7[%c0_14, %c0_15] : memref<1x128xf32, #tpu.memory_space<vmem>>, vector<1x128xf32>
      %20 = arith.addf %19, %9 : vector<1x128xf32>
      %c0_16 = arith.constant 0 : index
      %c0_17 = arith.constant 0 : index
      %21 = vector.load %arg7[%c0_16, %c0_17] : memref<1x128xf32, #tpu.memory_space<vmem>>, vector<1x128xf32>
      tpu.vector_store %arg7[%c0_16, %c0_17], %20 {strides = array<i32>} : memref<1x128xf32, #tpu.memory_space<vmem>>, vector<1x128xf32>,
    } else {
    }
    return
  }
  func.func @transform_0(%arg0: i32) -> (i32, i32) {
    %c0_i32 = arith.constant 0 : i32
    %c0_i32_0 = arith.constant 0 : i32
    return %arg0, %c0_i32 : i32, i32
  }
  func.func @transform_1(%arg0: i32) -> (i32, i32) {
    %c0_i32 = arith.constant 0 : i32
    %c0_i32_0 = arith.constant 0 : i32
    %c0_i32_1 = arith.constant 0 : i32
    return %c0_i32, %c0_i32_0 : i32, i32
  }
  func.func @transform_2(%arg0: i32) -> (i32, i32) {
    %c0_i32 = arith.constant 0 : i32
    %c0_i32_0 = arith.constant 0 : i32
    %c0_i32_1 = arith.constant 0 : i32
    return %c0_i32, %c0_i32_0 : i32, i32
  }
  func.func @transform_3(%arg0: i32) -> (i32, i32) {
    %c0_i32 = arith.constant 0 : i32
    %c0_i32_0 = arith.constant 0 : i32
    %c0_i32_1 = arith.constant 0 : i32
    return %c0_i32, %c0_i32_0 : i32, i32
  }
  func.func @transform_4(%arg0: i32) -> (i32, i32) {
    %c0_i32 = arith.constant 0 : i32
    %c0_i32_0 = arith.constant 0 : i32
    return %arg0, %c0_i32 : i32, i32
  }
  func.func @transform_5(%arg0: i32) -> (i32, i32) {
    %c0_i32 = arith.constant 0 : i32
    %c0_i32_0 = arith.constant 0 : i32
    %c0_i32_1 = arith.constant 0 : i32
    return %c0_i32, %c0_i32_0 : i32, i32
  }
  func.func @transform_6(%arg0: i32) -> (i32, i32) {
    %c0_i32 = arith.constant 0 : i32
    %c0_i32_0 = arith.constant 0 : i32
    %c0_i32_1 = arith.constant 0 : i32
    return %c0_i32, %c0_i32_0 : i32, i32
  }
}

module attributes {stable_mosaic.version = 11 : i64} {
  func.func @_conv_stats_kernel(%arg0: i32, %arg1: memref<32x2048xbf16, #tpu.memory_space<vmem>>, %arg2: memref<1x2048xf32, #tpu.memory_space<vmem>>, %arg3: memref<1x2048xf32, #tpu.memory_space<vmem>>, %arg4: memref<2048x256xbf16, #tpu.memory_space<vmem>>, %arg5: memref<32x256xbf16, #tpu.memory_space<vmem>>, %arg6: memref<1x256xf32, #tpu.memory_space<vmem>>, %arg7: memref<1x256xf32, #tpu.memory_space<vmem>>) attributes {dimension_semantics = [#tpu.dimension_semantics<arbitrary>], iteration_bounds = array<i64: 1>, scalar_prefetch = 0 : i64, scratch_operands = 0 : i64, tpu.core_type = #tpu.core_type<tc>, window_params = [{transform_indices = @transform_0, window_bounds = array<i64: 32, 2048>}, {pipeline_mode = #tpu.pipeline_mode<synchronous>, transform_indices = @transform_1, window_bounds = array<i64: 1, 2048>}, {pipeline_mode = #tpu.pipeline_mode<synchronous>, transform_indices = @transform_2, window_bounds = array<i64: 1, 2048>}, {pipeline_mode = #tpu.pipeline_mode<synchronous>, transform_indices = @transform_3, window_bounds = array<i64: 2048, 256>}, {transform_indices = @transform_4, window_bounds = array<i64: 32, 256>}, {pipeline_mode = #tpu.pipeline_mode<synchronous>, transform_indices = @transform_5, window_bounds = array<i64: 1, 256>}, {pipeline_mode = #tpu.pipeline_mode<synchronous>, transform_indices = @transform_6, window_bounds = array<i64: 1, 256>}]} {
    %c0 = arith.constant 0 : index
    %c0_0 = arith.constant 0 : index
    %0 = vector.load %arg1[%c0, %c0_0] : memref<32x2048xbf16, #tpu.memory_space<vmem>>, vector<32x2048xbf16>
    %1 = arith.extf %0 : vector<32x2048xbf16> to vector<32x2048xf32>
    %c0_1 = arith.constant 0 : index
    %c0_2 = arith.constant 0 : index
    %2 = vector.load %arg2[%c0_1, %c0_2] : memref<1x2048xf32, #tpu.memory_space<vmem>>, vector<1x2048xf32>
    %3 = vector.broadcast %2 : vector<1x2048xf32> to vector<32x2048xf32>
    %4 = arith.mulf %1, %3 : vector<32x2048xf32>
    %c0_3 = arith.constant 0 : index
    %c0_4 = arith.constant 0 : index
    %5 = vector.load %arg3[%c0_3, %c0_4] : memref<1x2048xf32, #tpu.memory_space<vmem>>, vector<1x2048xf32>
    %6 = vector.broadcast %5 : vector<1x2048xf32> to vector<32x2048xf32>
    %7 = arith.addf %4, %6 : vector<32x2048xf32>
    %cst = arith.constant 0.000000e+00 : f32
    %8 = vector.broadcast %cst : f32 to vector<32x2048xf32>
    %9 = arith.cmpf ogt, %7, %8 : vector<32x2048xf32>
    %cst_5 = arith.constant 2.000000e-01 : f32
    %10 = vector.broadcast %cst_5 : f32 to vector<32x2048xf32>
    %11 = arith.mulf %10, %7 : vector<32x2048xf32>
    %12 = arith.select %9, %7, %11 : vector<32x2048xi1>, vector<32x2048xf32>
    %13 = arith.truncf %12 : vector<32x2048xf32> to vector<32x2048xbf16>
    %c0_6 = arith.constant 0 : index
    %c0_7 = arith.constant 0 : index
    %14 = vector.load %arg4[%c0_6, %c0_7] : memref<2048x256xbf16, #tpu.memory_space<vmem>>, vector<2048x256xbf16>
    %cst_8 = arith.constant dense<0.000000e+00> : vector<32x256xf32>
    %15 = tpu.matmul %13, %14, %cst_8 {dimension_numbers = #tpu.dot_dimension_numbers<[1], [0], [0], [1], [0, 0, 1, 1], [], []>} : vector<32x2048xbf16>, vector<2048x256xbf16>, vector<32x256xf32> -> vector<32x256xf32>
    %16 = arith.truncf %15 : vector<32x256xf32> to vector<32x256xbf16>
    %c0_9 = arith.constant 0 : index
    %c0_10 = arith.constant 0 : index
    %17 = vector.load %arg5[%c0_9, %c0_10] : memref<32x256xbf16, #tpu.memory_space<vmem>>, vector<32x256xbf16>
    tpu.vector_store %arg5[%c0_9, %c0_10], %16 {strides = array<i32>} : memref<32x256xbf16, #tpu.memory_space<vmem>>, vector<32x256xbf16>,
    %cst_11 = arith.constant dense<0.000000e+00> : vector<256xf32>
    %18 = vector.multi_reduction <add>, %15, %cst_11 [0] : vector<32x256xf32> to vector<256xf32>
    %19 = vector.shape_cast %18 : vector<256xf32> to vector<1x256xf32>
    %20 = arith.mulf %15, %15 : vector<32x256xf32>
    %cst_12 = arith.constant dense<0.000000e+00> : vector<256xf32>
    %21 = vector.multi_reduction <add>, %20, %cst_12 [0] : vector<32x256xf32> to vector<256xf32>
    %22 = vector.shape_cast %21 : vector<256xf32> to vector<1x256xf32>
    %c0_i32 = arith.constant 0 : i32
    %23 = arith.cmpi eq, %arg0, %c0_i32 : i32
    %24 = arith.extui %23 : i1 to i32
    %c0_i32_13 = arith.constant 0 : i32
    %25 = arith.cmpi ne, %24, %c0_i32_13 : i32
    scf.if %25 {
      %c0_16 = arith.constant 0 : index
      %c0_17 = arith.constant 0 : index
      %29 = vector.load %arg6[%c0_16, %c0_17] : memref<1x256xf32, #tpu.memory_space<vmem>>, vector<1x256xf32>
      tpu.vector_store %arg6[%c0_16, %c0_17], %19 {strides = array<i32>} : memref<1x256xf32, #tpu.memory_space<vmem>>, vector<1x256xf32>,
      %c0_18 = arith.constant 0 : index
      %c0_19 = arith.constant 0 : index
      %30 = vector.load %arg7[%c0_18, %c0_19] : memref<1x256xf32, #tpu.memory_space<vmem>>, vector<1x256xf32>
      tpu.vector_store %arg7[%c0_18, %c0_19], %22 {strides = array<i32>} : memref<1x256xf32, #tpu.memory_space<vmem>>, vector<1x256xf32>,
    } else {
    }
    %c0_i32_14 = arith.constant 0 : i32
    %26 = arith.cmpi sgt, %arg0, %c0_i32_14 : i32
    %27 = arith.extui %26 : i1 to i32
    %c0_i32_15 = arith.constant 0 : i32
    %28 = arith.cmpi ne, %27, %c0_i32_15 : i32
    scf.if %28 {
      %c0_16 = arith.constant 0 : index
      %c0_17 = arith.constant 0 : index
      %29 = vector.load %arg6[%c0_16, %c0_17] : memref<1x256xf32, #tpu.memory_space<vmem>>, vector<1x256xf32>
      %30 = arith.addf %29, %19 : vector<1x256xf32>
      %c0_18 = arith.constant 0 : index
      %c0_19 = arith.constant 0 : index
      %31 = vector.load %arg6[%c0_18, %c0_19] : memref<1x256xf32, #tpu.memory_space<vmem>>, vector<1x256xf32>
      tpu.vector_store %arg6[%c0_18, %c0_19], %30 {strides = array<i32>} : memref<1x256xf32, #tpu.memory_space<vmem>>, vector<1x256xf32>,
      %c0_20 = arith.constant 0 : index
      %c0_21 = arith.constant 0 : index
      %32 = vector.load %arg7[%c0_20, %c0_21] : memref<1x256xf32, #tpu.memory_space<vmem>>, vector<1x256xf32>
      %33 = arith.addf %32, %22 : vector<1x256xf32>
      %c0_22 = arith.constant 0 : index
      %c0_23 = arith.constant 0 : index
      %34 = vector.load %arg7[%c0_22, %c0_23] : memref<1x256xf32, #tpu.memory_space<vmem>>, vector<1x256xf32>
      tpu.vector_store %arg7[%c0_22, %c0_23], %33 {strides = array<i32>} : memref<1x256xf32, #tpu.memory_space<vmem>>, vector<1x256xf32>,
    } else {
    }
    return
  }
  func.func @transform_0(%arg0: i32) -> (i32, i32) {
    %c0_i32 = arith.constant 0 : i32
    %c0_i32_0 = arith.constant 0 : i32
    return %arg0, %c0_i32 : i32, i32
  }
  func.func @transform_1(%arg0: i32) -> (i32, i32) {
    %c0_i32 = arith.constant 0 : i32
    %c0_i32_0 = arith.constant 0 : i32
    %c0_i32_1 = arith.constant 0 : i32
    return %c0_i32, %c0_i32_0 : i32, i32
  }
  func.func @transform_2(%arg0: i32) -> (i32, i32) {
    %c0_i32 = arith.constant 0 : i32
    %c0_i32_0 = arith.constant 0 : i32
    %c0_i32_1 = arith.constant 0 : i32
    return %c0_i32, %c0_i32_0 : i32, i32
  }
  func.func @transform_3(%arg0: i32) -> (i32, i32) {
    %c0_i32 = arith.constant 0 : i32
    %c0_i32_0 = arith.constant 0 : i32
    %c0_i32_1 = arith.constant 0 : i32
    return %c0_i32, %c0_i32_0 : i32, i32
  }
  func.func @transform_4(%arg0: i32) -> (i32, i32) {
    %c0_i32 = arith.constant 0 : i32
    %c0_i32_0 = arith.constant 0 : i32
    return %arg0, %c0_i32 : i32, i32
  }
  func.func @transform_5(%arg0: i32) -> (i32, i32) {
    %c0_i32 = arith.constant 0 : i32
    %c0_i32_0 = arith.constant 0 : i32
    %c0_i32_1 = arith.constant 0 : i32
    return %c0_i32, %c0_i32_0 : i32, i32
  }
  func.func @transform_6(%arg0: i32) -> (i32, i32) {
    %c0_i32 = arith.constant 0 : i32
    %c0_i32_0 = arith.constant 0 : i32
    %c0_i32_1 = arith.constant 0 : i32
    return %c0_i32, %c0_i32_0 : i32, i32
  }
}

module attributes {stable_mosaic.version = 11 : i64} {
  func.func @_conv_stats_kernel(%arg0: i32, %arg1: memref<8x4096xbf16, #tpu.memory_space<vmem>>, %arg2: memref<1x4096xf32, #tpu.memory_space<vmem>>, %arg3: memref<1x4096xf32, #tpu.memory_space<vmem>>, %arg4: memref<4096x512xbf16, #tpu.memory_space<vmem>>, %arg5: memref<8x512xbf16, #tpu.memory_space<vmem>>, %arg6: memref<1x512xf32, #tpu.memory_space<vmem>>, %arg7: memref<1x512xf32, #tpu.memory_space<vmem>>) attributes {dimension_semantics = [#tpu.dimension_semantics<arbitrary>], iteration_bounds = array<i64: 1>, scalar_prefetch = 0 : i64, scratch_operands = 0 : i64, tpu.core_type = #tpu.core_type<tc>, window_params = [{transform_indices = @transform_0, window_bounds = array<i64: 8, 4096>}, {pipeline_mode = #tpu.pipeline_mode<synchronous>, transform_indices = @transform_1, window_bounds = array<i64: 1, 4096>}, {pipeline_mode = #tpu.pipeline_mode<synchronous>, transform_indices = @transform_2, window_bounds = array<i64: 1, 4096>}, {pipeline_mode = #tpu.pipeline_mode<synchronous>, transform_indices = @transform_3, window_bounds = array<i64: 4096, 512>}, {transform_indices = @transform_4, window_bounds = array<i64: 8, 512>}, {pipeline_mode = #tpu.pipeline_mode<synchronous>, transform_indices = @transform_5, window_bounds = array<i64: 1, 512>}, {pipeline_mode = #tpu.pipeline_mode<synchronous>, transform_indices = @transform_6, window_bounds = array<i64: 1, 512>}]} {
    %c0 = arith.constant 0 : index
    %c0_0 = arith.constant 0 : index
    %0 = vector.load %arg1[%c0, %c0_0] : memref<8x4096xbf16, #tpu.memory_space<vmem>>, vector<8x4096xbf16>
    %1 = arith.extf %0 : vector<8x4096xbf16> to vector<8x4096xf32>
    %c0_1 = arith.constant 0 : index
    %c0_2 = arith.constant 0 : index
    %2 = vector.load %arg2[%c0_1, %c0_2] : memref<1x4096xf32, #tpu.memory_space<vmem>>, vector<1x4096xf32>
    %3 = vector.broadcast %2 : vector<1x4096xf32> to vector<8x4096xf32>
    %4 = arith.mulf %1, %3 : vector<8x4096xf32>
    %c0_3 = arith.constant 0 : index
    %c0_4 = arith.constant 0 : index
    %5 = vector.load %arg3[%c0_3, %c0_4] : memref<1x4096xf32, #tpu.memory_space<vmem>>, vector<1x4096xf32>
    %6 = vector.broadcast %5 : vector<1x4096xf32> to vector<8x4096xf32>
    %7 = arith.addf %4, %6 : vector<8x4096xf32>
    %cst = arith.constant 0.000000e+00 : f32
    %8 = vector.broadcast %cst : f32 to vector<8x4096xf32>
    %9 = arith.cmpf ogt, %7, %8 : vector<8x4096xf32>
    %cst_5 = arith.constant 2.000000e-01 : f32
    %10 = vector.broadcast %cst_5 : f32 to vector<8x4096xf32>
    %11 = arith.mulf %10, %7 : vector<8x4096xf32>
    %12 = arith.select %9, %7, %11 : vector<8x4096xi1>, vector<8x4096xf32>
    %13 = arith.truncf %12 : vector<8x4096xf32> to vector<8x4096xbf16>
    %c0_6 = arith.constant 0 : index
    %c0_7 = arith.constant 0 : index
    %14 = vector.load %arg4[%c0_6, %c0_7] : memref<4096x512xbf16, #tpu.memory_space<vmem>>, vector<4096x512xbf16>
    %cst_8 = arith.constant dense<0.000000e+00> : vector<8x512xf32>
    %15 = tpu.matmul %13, %14, %cst_8 {dimension_numbers = #tpu.dot_dimension_numbers<[1], [0], [0], [1], [0, 0, 1, 1], [], []>} : vector<8x4096xbf16>, vector<4096x512xbf16>, vector<8x512xf32> -> vector<8x512xf32>
    %16 = arith.truncf %15 : vector<8x512xf32> to vector<8x512xbf16>
    %c0_9 = arith.constant 0 : index
    %c0_10 = arith.constant 0 : index
    %17 = vector.load %arg5[%c0_9, %c0_10] : memref<8x512xbf16, #tpu.memory_space<vmem>>, vector<8x512xbf16>
    tpu.vector_store %arg5[%c0_9, %c0_10], %16 {strides = array<i32>} : memref<8x512xbf16, #tpu.memory_space<vmem>>, vector<8x512xbf16>,
    %cst_11 = arith.constant dense<0.000000e+00> : vector<512xf32>
    %18 = vector.multi_reduction <add>, %15, %cst_11 [0] : vector<8x512xf32> to vector<512xf32>
    %19 = vector.shape_cast %18 : vector<512xf32> to vector<1x512xf32>
    %20 = arith.mulf %15, %15 : vector<8x512xf32>
    %cst_12 = arith.constant dense<0.000000e+00> : vector<512xf32>
    %21 = vector.multi_reduction <add>, %20, %cst_12 [0] : vector<8x512xf32> to vector<512xf32>
    %22 = vector.shape_cast %21 : vector<512xf32> to vector<1x512xf32>
    %c0_i32 = arith.constant 0 : i32
    %23 = arith.cmpi eq, %arg0, %c0_i32 : i32
    %24 = arith.extui %23 : i1 to i32
    %c0_i32_13 = arith.constant 0 : i32
    %25 = arith.cmpi ne, %24, %c0_i32_13 : i32
    scf.if %25 {
      %c0_16 = arith.constant 0 : index
      %c0_17 = arith.constant 0 : index
      %29 = vector.load %arg6[%c0_16, %c0_17] : memref<1x512xf32, #tpu.memory_space<vmem>>, vector<1x512xf32>
      tpu.vector_store %arg6[%c0_16, %c0_17], %19 {strides = array<i32>} : memref<1x512xf32, #tpu.memory_space<vmem>>, vector<1x512xf32>,
      %c0_18 = arith.constant 0 : index
      %c0_19 = arith.constant 0 : index
      %30 = vector.load %arg7[%c0_18, %c0_19] : memref<1x512xf32, #tpu.memory_space<vmem>>, vector<1x512xf32>
      tpu.vector_store %arg7[%c0_18, %c0_19], %22 {strides = array<i32>} : memref<1x512xf32, #tpu.memory_space<vmem>>, vector<1x512xf32>,
    } else {
    }
    %c0_i32_14 = arith.constant 0 : i32
    %26 = arith.cmpi sgt, %arg0, %c0_i32_14 : i32
    %27 = arith.extui %26 : i1 to i32
    %c0_i32_15 = arith.constant 0 : i32
    %28 = arith.cmpi ne, %27, %c0_i32_15 : i32
    scf.if %28 {
      %c0_16 = arith.constant 0 : index
      %c0_17 = arith.constant 0 : index
      %29 = vector.load %arg6[%c0_16, %c0_17] : memref<1x512xf32, #tpu.memory_space<vmem>>, vector<1x512xf32>
      %30 = arith.addf %29, %19 : vector<1x512xf32>
      %c0_18 = arith.constant 0 : index
      %c0_19 = arith.constant 0 : index
      %31 = vector.load %arg6[%c0_18, %c0_19] : memref<1x512xf32, #tpu.memory_space<vmem>>, vector<1x512xf32>
      tpu.vector_store %arg6[%c0_18, %c0_19], %30 {strides = array<i32>} : memref<1x512xf32, #tpu.memory_space<vmem>>, vector<1x512xf32>,
      %c0_20 = arith.constant 0 : index
      %c0_21 = arith.constant 0 : index
      %32 = vector.load %arg7[%c0_20, %c0_21] : memref<1x512xf32, #tpu.memory_space<vmem>>, vector<1x512xf32>
      %33 = arith.addf %32, %22 : vector<1x512xf32>
      %c0_22 = arith.constant 0 : index
      %c0_23 = arith.constant 0 : index
      %34 = vector.load %arg7[%c0_22, %c0_23] : memref<1x512xf32, #tpu.memory_space<vmem>>, vector<1x512xf32>
      tpu.vector_store %arg7[%c0_22, %c0_23], %33 {strides = array<i32>} : memref<1x512xf32, #tpu.memory_space<vmem>>, vector<1x512xf32>,
    } else {
    }
    return
  }
  func.func @transform_0(%arg0: i32) -> (i32, i32) {
    %c0_i32 = arith.constant 0 : i32
    %c0_i32_0 = arith.constant 0 : i32
    return %arg0, %c0_i32 : i32, i32
  }
  func.func @transform_1(%arg0: i32) -> (i32, i32) {
    %c0_i32 = arith.constant 0 : i32
    %c0_i32_0 = arith.constant 0 : i32
    %c0_i32_1 = arith.constant 0 : i32
    return %c0_i32, %c0_i32_0 : i32, i32
  }
  func.func @transform_2(%arg0: i32) -> (i32, i32) {
    %c0_i32 = arith.constant 0 : i32
    %c0_i32_0 = arith.constant 0 : i32
    %c0_i32_1 = arith.constant 0 : i32
    return %c0_i32, %c0_i32_0 : i32, i32
  }
  func.func @transform_3(%arg0: i32) -> (i32, i32) {
    %c0_i32 = arith.constant 0 : i32
    %c0_i32_0 = arith.constant 0 : i32
    %c0_i32_1 = arith.constant 0 : i32
    return %c0_i32, %c0_i32_0 : i32, i32
  }
  func.func @transform_4(%arg0: i32) -> (i32, i32) {
    %c0_i32 = arith.constant 0 : i32
    %c0_i32_0 = arith.constant 0 : i32
    return %arg0, %c0_i32 : i32, i32
  }
  func.func @transform_5(%arg0: i32) -> (i32, i32) {
    %c0_i32 = arith.constant 0 : i32
    %c0_i32_0 = arith.constant 0 : i32
    %c0_i32_1 = arith.constant 0 : i32
    return %c0_i32, %c0_i32_0 : i32, i32
  }
  func.func @transform_6(%arg0: i32) -> (i32, i32) {
    %c0_i32 = arith.constant 0 : i32
    %c0_i32_0 = arith.constant 0 : i32
    %c0_i32_1 = arith.constant 0 : i32
    return %c0_i32, %c0_i32_0 : i32, i32
  }
}

module attributes {stable_mosaic.version = 11 : i64} {
  func.func @_bn_lrelu_head_kernel(%arg0: i32, %arg1: memref<8x512xbf16, #tpu.memory_space<vmem>>, %arg2: memref<1x512xf32, #tpu.memory_space<vmem>>, %arg3: memref<1x512xf32, #tpu.memory_space<vmem>>, %arg4: memref<512x128xbf16, #tpu.memory_space<vmem>>, %arg5: memref<1x128xf32, #tpu.memory_space<vmem>>, %arg6: memref<8x128xf32, #tpu.memory_space<vmem>>) attributes {dimension_semantics = [#tpu.dimension_semantics<parallel>], iteration_bounds = array<i64: 1>, scalar_prefetch = 0 : i64, scratch_operands = 0 : i64, tpu.core_type = #tpu.core_type<tc>, window_params = [{transform_indices = @transform_0, window_bounds = array<i64: 8, 512>}, {pipeline_mode = #tpu.pipeline_mode<synchronous>, transform_indices = @transform_1, window_bounds = array<i64: 1, 512>}, {pipeline_mode = #tpu.pipeline_mode<synchronous>, transform_indices = @transform_2, window_bounds = array<i64: 1, 512>}, {pipeline_mode = #tpu.pipeline_mode<synchronous>, transform_indices = @transform_3, window_bounds = array<i64: 512, 128>}, {pipeline_mode = #tpu.pipeline_mode<synchronous>, transform_indices = @transform_4, window_bounds = array<i64: 1, 128>}, {transform_indices = @transform_5, window_bounds = array<i64: 8, 128>}]} {
    %c0 = arith.constant 0 : index
    %c0_0 = arith.constant 0 : index
    %0 = vector.load %arg1[%c0, %c0_0] : memref<8x512xbf16, #tpu.memory_space<vmem>>, vector<8x512xbf16>
    %1 = arith.extf %0 : vector<8x512xbf16> to vector<8x512xf32>
    %c0_1 = arith.constant 0 : index
    %c0_2 = arith.constant 0 : index
    %2 = vector.load %arg2[%c0_1, %c0_2] : memref<1x512xf32, #tpu.memory_space<vmem>>, vector<1x512xf32>
    %3 = vector.broadcast %2 : vector<1x512xf32> to vector<8x512xf32>
    %4 = arith.mulf %1, %3 : vector<8x512xf32>
    %c0_3 = arith.constant 0 : index
    %c0_4 = arith.constant 0 : index
    %5 = vector.load %arg3[%c0_3, %c0_4] : memref<1x512xf32, #tpu.memory_space<vmem>>, vector<1x512xf32>
    %6 = vector.broadcast %5 : vector<1x512xf32> to vector<8x512xf32>
    %7 = arith.addf %4, %6 : vector<8x512xf32>
    %cst = arith.constant 0.000000e+00 : f32
    %8 = vector.broadcast %cst : f32 to vector<8x512xf32>
    %9 = arith.cmpf ogt, %7, %8 : vector<8x512xf32>
    %cst_5 = arith.constant 2.000000e-01 : f32
    %10 = vector.broadcast %cst_5 : f32 to vector<8x512xf32>
    %11 = arith.mulf %10, %7 : vector<8x512xf32>
    %12 = arith.select %9, %7, %11 : vector<8x512xi1>, vector<8x512xf32>
    %13 = arith.truncf %12 : vector<8x512xf32> to vector<8x512xbf16>
    %c0_6 = arith.constant 0 : index
    %c0_7 = arith.constant 0 : index
    %14 = vector.load %arg4[%c0_6, %c0_7] : memref<512x128xbf16, #tpu.memory_space<vmem>>, vector<512x128xbf16>
    %cst_8 = arith.constant dense<0.000000e+00> : vector<8x128xf32>
    %15 = tpu.matmul %13, %14, %cst_8 {dimension_numbers = #tpu.dot_dimension_numbers<[1], [0], [0], [1], [0, 0, 1, 1], [], []>} : vector<8x512xbf16>, vector<512x128xbf16>, vector<8x128xf32> -> vector<8x128xf32>
    %c0_9 = arith.constant 0 : index
    %c0_10 = arith.constant 0 : index
    %16 = vector.load %arg5[%c0_9, %c0_10] : memref<1x128xf32, #tpu.memory_space<vmem>>, vector<1x128xf32>
    %17 = vector.broadcast %16 : vector<1x128xf32> to vector<8x128xf32>
    %18 = arith.addf %15, %17 : vector<8x128xf32>
    %cst_11 = arith.constant 0.000000e+00 : f32
    %19 = vector.broadcast %cst_11 : f32 to vector<8x128xf32>
    %20 = arith.subf %19, %18 : vector<8x128xf32>
    %21 = math.exp %20 : vector<8x128xf32>
    %cst_12 = arith.constant 1.000000e+00 : f32
    %22 = vector.broadcast %cst_12 : f32 to vector<8x128xf32>
    %23 = arith.addf %22, %21 : vector<8x128xf32>
    %24 = tpu.reciprocal %23 {approx = true} : vector<8x128xf32> -> vector<8x128xf32>
    %c0_13 = arith.constant 0 : index
    %c0_14 = arith.constant 0 : index
    %25 = vector.load %arg6[%c0_13, %c0_14] : memref<8x128xf32, #tpu.memory_space<vmem>>, vector<8x128xf32>
    tpu.vector_store %arg6[%c0_13, %c0_14], %24 {strides = array<i32>} : memref<8x128xf32, #tpu.memory_space<vmem>>, vector<8x128xf32>,
    return
  }
  func.func @transform_0(%arg0: i32) -> (i32, i32) {
    %c0_i32 = arith.constant 0 : i32
    %c0_i32_0 = arith.constant 0 : i32
    return %arg0, %c0_i32 : i32, i32
  }
  func.func @transform_1(%arg0: i32) -> (i32, i32) {
    %c0_i32 = arith.constant 0 : i32
    %c0_i32_0 = arith.constant 0 : i32
    %c0_i32_1 = arith.constant 0 : i32
    return %c0_i32, %c0_i32_0 : i32, i32
  }
  func.func @transform_2(%arg0: i32) -> (i32, i32) {
    %c0_i32 = arith.constant 0 : i32
    %c0_i32_0 = arith.constant 0 : i32
    %c0_i32_1 = arith.constant 0 : i32
    return %c0_i32, %c0_i32_0 : i32, i32
  }
  func.func @transform_3(%arg0: i32) -> (i32, i32) {
    %c0_i32 = arith.constant 0 : i32
    %c0_i32_0 = arith.constant 0 : i32
    %c0_i32_1 = arith.constant 0 : i32
    return %c0_i32, %c0_i32_0 : i32, i32
  }
  func.func @transform_4(%arg0: i32) -> (i32, i32) {
    %c0_i32 = arith.constant 0 : i32
    %c0_i32_0 = arith.constant 0 : i32
    %c0_i32_1 = arith.constant 0 : i32
    return %c0_i32, %c0_i32_0 : i32, i32
  }
  func.func @transform_5(%arg0: i32) -> (i32, i32) {
    %c0_i32 = arith.constant 0 : i32
    %c0_i32_0 = arith.constant 0 : i32
    return %arg0, %c0_i32 : i32, i32
  }
}

</mosaic_0001>

<bundles_post_ra>
// kernel: discriminator_forward.5
= control target key start
LH: loop header
LB: loop body
LE: loop exit
PB: predicated region body
PF: predicated region fallthrough
CT: control target
= control target key end

     0   :  { %s626_s12 = smov 0   ;;  %s685_s0 = inlined_call_operand.vmem [shape: bf16[512,128], index: 0, kind: input, shape index: {}]   ;;  %s686_s1 = inlined_call_operand.vmem [shape: bf16[128,128], index: 1, kind: input, shape index: {}]   ;;  %s687_s2 = inlined_call_operand.vmem [shape: f32[1,128], index: 2, kind: input, shape index: {}]   ;;  %s688_s3 = inlined_call_operand.vmem [shape: bf16[512,128], index: 3, kind: output, shape index: {}]  }
   0x1 LB: > { %s463_s13 = sadd.s32 4294967295, %s604_s12   ;;  %p467_p0 = scmp.ge.s32.totalorder %s604_s12, 1  ;;  %s604_s12 = sphi %s626_s12, %s13_s12  }
   0x2   : > { %p138_p1 = scmp.lt.s32.totalorder %s604_s12, 9 }
   0x4   : > { %p139_p2 = pnand %p467_p0, %p138_p1 }
   0x5   : > { %v586_v0 = vld [vmem:[%s686_s1] sm:$0xff] (!%p139_p2)   ;;  %s468_s16 = sshll.u32 (!%p139_p2), %s463_s13, 3  ;;  %v587_v1 = vld [vmem:[%s686_s1 + $0x8] sm:$0xff] (!%p139_p2)   ;;  %v588_v2 = vld [vmem:[%s686_s1 + $0x10] sm:$0xff] (!%p139_p2)  }
   0x6   : > { %142 = sbr.rel (%p139_p2) target bundleno = 263 (0x107), region = 32  ;;  %p163_p3 = scmp.lt.s32.totalorder (!%p139_p2), %s468_s16, 63  ;;  %538 = vmatprep.subr.bf16.mxu0 (!%p139_p2), %v586_v0  ;;  %562 = vmatprep.subr.bf16.mxu1 (!%p139_p2), %v586_v0  ;;  %v589_v3 = vld [vmem:[%s686_s1 + $0x18] sm:$0xff] (!%p139_p2)   ;;  %v590_v6 = vld [vmem:[%s686_s1 + $0x20] sm:$0xff] (!%p139_p2)   ;;  %v591_v7 = vld [vmem:[%s686_s1 + $0x28] sm:$0xff] (!%p139_p2)  }
   0x7   : > { %539 = vmatpush3.bf16.msra.mxu0 (!%p139_p2), %v586_v0  ;;  %570 = vmatpush3.bf16.msra.mxu1 (!%p139_p2), %v586_v0  ;;  %v592_v8 = vld [vmem:[%s686_s1 + $0x30] sm:$0xff] (!%p139_p2)   ;;  %v593_v9 = vld [vmem:[%s686_s1 + $0x38] sm:$0xff] (!%p139_p2)   ;;  %v472_v12 = vld [vmem:[%s687_s2] ss:$0 sm:$0xff] (!%p139_p2) }
   0x8   : > { %540 = vmatprep.subr.bf16.mxu0 (!%p139_p2), %v587_v1  ;;  %563 = vmatprep.subr.bf16.mxu1 (!%p139_p2), %v587_v1 }
   0xb   : > { %541 = vmatpush3.bf16.msra.mxu0 (!%p139_p2), %v587_v1  ;;  %571 = vmatpush3.bf16.msra.mxu1 (!%p139_p2), %v587_v1 }
   0xc   : > { %542 = vmatprep.subr.bf16.mxu0 (!%p139_p2), %v588_v2  ;;  %564 = vmatprep.subr.bf16.mxu1 (!%p139_p2), %v588_v2 }
   0xd   : > { %s690_s16 = smov (!%p163_p3, %s468_s16), 63 }
   0xe   : > { %s469_s21 = sshll.u32 %s690_s16, 2 }
   0xf   : > { %s651_s24 = scalar_lea.vmem %s685_s0, %s469_s21  ;;  %543 = vmatpush3.bf16.msra.mxu0 %v588_v2  ;;  %572 = vmatpush3.bf16.msra.mxu1 %v588_v2  ;;  %s172_s13 = scalar_lea.vmem %s688_s3, %s469_s21 }
  0x10   : > { %v594_v4 = vld [vmem:[%s651_s24] sm:$0xff]   ;;  %v595_v5 = vld [vmem:[%s651_s24 + $0x10] sm:$0xff]   ;;  %544 = vmatprep.subr.bf16.mxu0 %v589_v3  ;;  %565 = vmatprep.subr.bf16.mxu1 %v589_v3  ;;  %v596_v10 = vld [vmem:[%s651_s24 + $0x8] sm:$0xff]  }
  0x11   : > { %554 = vmatprep.mubr.bf16.mxu0 %v594_v4  ;;  %558 = vmatprep.mubr.bf16.mxu1 %v595_v5  ;;  %v597_v11 = vld [vmem:[%s651_s24 + $0x18] sm:$0xff]  }
  0x13   : > { %545 = vmatpush3.bf16.msra.mxu0 %v589_v3  ;;  %573 = vmatpush3.bf16.msra.mxu1 %v589_v3 }
  0x14   : > { %546 = vmatprep.subr.bf16.mxu0 %v590_v6  ;;  %566 = vmatprep.subr.bf16.mxu1 %v590_v6 }
  0x17   : > { %547 = vmatpush3.bf16.msra.mxu0 %v590_v6  ;;  %574 = vmatpush3.bf16.msra.mxu1 %v590_v6 }
  0x18   : > { %548 = vmatprep.subr.bf16.mxu0 %v591_v7  ;;  %567 = vmatprep.subr.bf16.mxu1 %v591_v7 }
  0x1b   : > { %549 = vmatpush3.bf16.msra.mxu0 %v591_v7  ;;  %575 = vmatpush3.bf16.msra.mxu1 %v591_v7 }
  0x1c   : > { %550 = vmatprep.subr.bf16.mxu0 %v592_v8  ;;  %568 = vmatprep.subr.bf16.mxu1 %v592_v8 }
  0x1f   : > { %551 = vmatpush3.bf16.msra.mxu0 %v592_v8  ;;  %576 = vmatpush3.bf16.msra.mxu1 %v592_v8 }
  0x20   : > { %552 = vmatprep.subr.bf16.mxu0 %v593_v9  ;;  %569 = vmatprep.subr.bf16.mxu1 %v593_v9 }
  0x23   : > { %553 = vmatpush3.bf16.msra.mxu0 %v593_v9  ;;  %577 = vmatpush3.bf16.msra.mxu1 %v593_v9 }
  0x26   : > { %555 = vmatmul.mubr.bf16.vlgmr.msra.gmra.mrb[0].mxu0 %v596_v10  ;;  %559 = vmatmul.mubr.bf16.vlgmr.msra.gmra.mrb[0].mxu1 %v597_v11 }
  0xf9   : > { %v556_v13 = vpop.f32.mrb[0].mxu0  ;;  %v560_v14 = vpop.f32.mrb[0].mxu1 }
  0xfa   : > { %v321_v15 = vadd.f32 %v556_v13, %v472_v12  ;;  %v337_v16 = vadd.f32 %v560_v14, %v472_v12  ;;  %v312_v17 = vpop.f32.mrb[1].mxu0  ;;  %v328_v18 = vpop.f32.mrb[1].mxu1 }
  0xfb   : > { %v313_v19 = vadd.f32 %v472_v12, %v312_v17  ;;  %v329_v20 = vadd.f32 %v472_v12, %v328_v18  ;;  %v557_v21 = vpop.f32.mrb[2].mxu0  ;;  %v561_v22 = vpop.f32.mrb[2].mxu1 }
  0xfc   : > { %vm345_vm0 = vcmp.gt.f32.partialorder %v321_v15, 0.0  ;;  %v353_v23 = vmul.f32 0.2, %v321_v15  ;;  %vm349_vm1 = vcmp.gt.f32.partialorder %v337_v16, 0.0  ;;  %v357_v24 = vmul.f32 0.2, %v337_v16 }
  0xfd   : > { %vm343_vm2 = vcmp.gt.f32.partialorder %v313_v19, 0.0  ;;  %v351_v25 = vmul.f32 0.2, %v313_v19  ;;  %vm347_vm3 = vcmp.gt.f32.partialorder %v329_v20, 0.0  ;;  %v355_v26 = vmul.f32 0.2, %v329_v20 }
  0xfe   : > { %v324_v27 = vadd.f32 %v557_v21, %v472_v12  ;;  %v340_v28 = vadd.f32 %v561_v22, %v472_v12  ;;  %v315_v29 = vpop.f32.mrb[3].mxu0  ;;  %v331_v30 = vpop.f32.mrb[3].mxu1  ;;  %v361_v31 = vsel %vm345_vm0, %v321_v15, %v353_v23  ;;  %v365_v32 = vsel %vm349_vm1, %v337_v16, %v357_v24 }
  0xff   : > { %v316_v33 = vadd.f32 %v472_v12, %v315_v29  ;;  %v332_v34 = vadd.f32 %v472_v12, %v331_v30  ;;  %v359_v39 = vsel %vm343_vm2, %v313_v19, %v351_v25  ;;  %v363_v40 = vsel %vm347_vm3, %v329_v20, %v355_v26 }
 0x100   : > { %vm346_vm4 = vcmp.gt.f32.partialorder %v324_v27, 0.0  ;;  %v354_v35 = vmul.f32 0.2, %v324_v27  ;;  %vm350_vm5 = vcmp.gt.f32.partialorder %v340_v28, 0.0  ;;  %v358_v36 = vmul.f32 0.2, %v340_v28 }
 0x101   : > { %vm344_vm6 = vcmp.gt.f32.partialorder %v316_v33, 0.0  ;;  %v352_v37 = vmul.f32 0.2, %v316_v33  ;;  %vm348_vm7 = vcmp.gt.f32.partialorder %v332_v34, 0.0  ;;  %v356_v38 = vmul.f32 0.2, %v332_v34 }
 0x102   : > { %v362_v41 = vsel %vm346_vm4, %v324_v27, %v354_v35  ;;  %v366_v42 = vsel %vm350_vm5, %v340_v28, %v358_v36 }
 0x103   : > { %v511_v43 = vpack.c.bf16 %v362_v41, %v361_v31  ;;  %v521_v44 = vpack.c.bf16 %v366_v42, %v365_v32  ;;  %v360_v45 = vsel %vm344_vm6, %v316_v33, %v352_v37  ;;  %v364_v46 = vsel %vm348_vm7, %v332_v34, %v356_v38 }
 0x104   : > { %v506_v47 = vpack.c.bf16 %v360_v45, %v359_v39  ;;  %v516_v48 = vpack.c.bf16 %v364_v46, %v363_v40 }
 0x105   : > { %523 = vst [vmem:[%s172_s13 + $0x8] sm:$0xff] %v511_v43   ;;  %525 = vst [vmem:[%s172_s13 + $0x18] sm:$0xff] %v521_v44  }
 0x106   : > { %507 = vst [vmem:[%s172_s13] sm:$0xff] %v506_v47   ;;  %524 = vst [vmem:[%s172_s13 + $0x10] sm:$0xff] %v516_v48  }
 0x107 PF: > { %s13_s12 = sadd.s32 1, %s604_s12  }
 0x108   : > { %p10_p4 = scmp.ge.s32.totalorder %s13_s12, 10  }
 0x10a   :  { %12 = sbr.rel (!%p10_p4) target bundleno = 1 (0x1), region = 62 }

// kernel: discriminator_forward.6
= control target key start
LH: loop header
LB: loop body
LE: loop exit
PB: predicated region body
PF: predicated region fallthrough
CT: control target
= control target key end

     0   :  { %s1801_s21 = smov 0   ;;  %s2095_s0 = inlined_call_operand.vmem [shape: bf16[128,1024], index: 0, kind: input, shape index: {}]   ;;  %s2096_s1 = inlined_call_operand.vmem [shape: f32[1,1024], index: 1, kind: input, shape index: {}]   ;;  %s2097_s2 = inlined_call_operand.vmem [shape: f32[1,1024], index: 2, kind: input, shape index: {}]   ;;  %s2098_s3 = inlined_call_operand.vmem [shape: bf16[1024,128], index: 3, kind: input, shape index: {}]   ;;  %s2099_s4 = inlined_call_operand.vmem [shape: bf16[128,128], index: 4, kind: output, shape index: {0}]   ;;  %s2100_s5 = inlined_call_operand.vmem [shape: f32[1,128], index: 5, kind: output, shape index: {1}]   ;;  %s2101_s6 = inlined_call_operand.vmem [shape: f32[1,128], index: 6, kind: output, shape index: {2}]  }
   0x1 LB: > { %s1807_s1 = sadd.s32 4294967295, %s1764_s21   ;;  %p1380_p0 = scmp.ge.s32.totalorder %s1764_s21, 1  ;;  %s1764_s21 = sphi %s1801_s21, %s17_s21  }
   0x2   : > { %p209_p1 = scmp.lt.s32.totalorder %s1764_s21, 3 }
   0x4   : > { %p210_p2 = pnand %p1380_p0, %p209_p1 }
   0x5   : > { %v1694_v0 = vld [vmem:[%s2098_s3 + $0x40] sm:$0xff] (!%p210_p2)   ;;  %v1698_v4 = vld [vmem:[%s2098_s3 + $0x48] sm:$0xff] (!%p210_p2)   ;;  %v1702_v8 = vld [vmem:[%s2098_s3 + $0x50] sm:$0xff] (!%p210_p2)   ;;  %s1381_s29 = sshll.u32 (!%p210_p2), %s1807_s1, 3  ;;  %p1490_p4 = scmp.ne.s32.totalorder (!%p210_p2), %s1807_s1, 0 }
   0x6   : > { %213 = sbr.rel (%p210_p2) target bundleno = 344 (0x158), region = 36  ;;  %v1695_v1 = vld [vmem:[%s2098_s3 + $0xc0] sm:$0xff] (!%p210_p2)   ;;  %1526 = vmatprep.subr.bf16.mxu0 (!%p210_p2), %v1694_v0  ;;  %v1699_v5 = vld [vmem:[%s2098_s3 + $0xc8] sm:$0xff] (!%p210_p2)   ;;  %v1703_v9 = vld [vmem:[%s2098_s3 + $0xd0] sm:$0xff] (!%p210_p2)   ;;  %p241_p3 = scmp.lt.s32.totalorder (!%p210_p2), %s1381_s29, 15 }
   0x7   : > { %v1696_v2 = vld [vmem:[%s2098_s3] sm:$0xff] (!%p210_p2)   ;;  %1566 = vmatprep.subr.bf16.mxu1 (!%p210_p2), %v1695_v1  ;;  %v1700_v6 = vld [vmem:[%s2098_s3 + $0x8] sm:$0xff] (!%p210_p2)   ;;  %v1704_v10 = vld [vmem:[%s2098_s3 + $0x10] sm:$0xff] (!%p210_p2)  }
   0x8   : > { %v1697_v3 = vld [vmem:[%s2098_s3 + $0x80] sm:$0xff] (!%p210_p2)   ;;  %1527 = vmatpush3.bf16.msra.mxu0 (!%p210_p2), %v1696_v2  ;;  %v1701_v7 = vld [vmem:[%s2098_s3 + $0x88] sm:$0xff] (!%p210_p2)   ;;  %v1705_v11 = vld [vmem:[%s2098_s3 + $0x90] sm:$0xff] (!%p210_p2)  }
   0x9   : > { %1567 = vmatpush3.bf16.msra.mxu1 (!%p210_p2), %v1697_v3  ;;  %1528 = vmatprep.subr.bf16.mxu0 (!%p210_p2), %v1698_v4  ;;  %v1706_v12 = vld [vmem:[%s2098_s3 + $0x58] sm:$0xff] (!%p210_p2)   ;;  %v1710_v16 = vld [vmem:[%s2098_s3 + $0x60] sm:$0xff] (!%p210_p2)   ;;  %v1714_v20 = vld [vmem:[%s2098_s3 + $0x68] sm:$0xff] (!%p210_p2)  }
   0xa   : > { %1568 = vmatprep.subr.bf16.mxu1 (!%p210_p2), %v1699_v5  ;;  %v1707_v13 = vld [vmem:[%s2098_s3 + $0xd8] sm:$0xff] (!%p210_p2)   ;;  %v1711_v17 = vld [vmem:[%s2098_s3 + $0xe0] sm:$0xff] (!%p210_p2)   ;;  %v1715_v21 = vld [vmem:[%s2098_s3 + $0xe8] sm:$0xff] (!%p210_p2)  }
   0xb   : > { %v1708_v14 = vld [vmem:[%s2098_s3 + $0x18] sm:$0xff] (!%p210_p2)   ;;  %v1712_v18 = vld [vmem:[%s2098_s3 + $0x20] sm:$0xff] (!%p210_p2)   ;;  %v1716_v22 = vld [vmem:[%s2098_s3 + $0x28] sm:$0xff] (!%p210_p2)  }
   0xc   : > { %1529 = vmatpush3.bf16.msra.mxu0 (!%p210_p2), %v1700_v6  ;;  %v1709_v15 = vld [vmem:[%s2098_s3 + $0x98] sm:$0xff] (!%p210_p2)   ;;  %v1713_v19 = vld [vmem:[%s2098_s3 + $0xa0] sm:$0xff] (!%p210_p2)   ;;  %v1717_v23 = vld [vmem:[%s2098_s3 + $0xa8] sm:$0xff] (!%p210_p2)  }
   0xd   : > { %1569 = vmatpush3.bf16.msra.mxu1 %v1701_v7  ;;  %1530 = vmatprep.subr.bf16.mxu0 %v1702_v8  ;;  %s2103_s29 = smov (!%p241_p3, %s1381_s29), 15  ;;  %v1718_v24 = vld [vmem:[%s2098_s3 + $0x70] sm:$0xff]   ;;  %v1722_v28 = vld [vmem:[%s2098_s3 + $0x78] sm:$0xff]   ;;  %v1726_v40 = vld [vmem:[%s2098_s3 + $0x140] sm:$0xff]  }
   0xe   : > { %1570 = vmatprep.subr.bf16.mxu1 %v1703_v9  ;;  %v1719_v25 = vld [vmem:[%s2098_s3 + $0xf0] sm:$0xff]   ;;  %s1494_s28 = sshll.u32 %s2103_s29, 5  ;;  %v1723_v29 = vld [vmem:[%s2098_s3 + $0xf8] sm:$0xff]   ;;  %v1727_v41 = vld [vmem:[%s2098_s3 + $0x1c0] sm:$0xff]  }
   0xf   : > { %v1720_v26 = vld [vmem:[%s2098_s3 + $0x30] sm:$0xff]   ;;  %s1908_s14 = scalar_lea.vmem %s2095_s0, %s1494_s28  ;;  %v1724_v30 = vld [vmem:[%s2098_s3 + $0x38] sm:$0xff]   ;;  %v1728_v42 = vld [vmem:[%s2098_s3 + $0x100] sm:$0xff]  }
  0x10   : > { %1531 = vmatpush3.bf16.msra.mxu0 %v1704_v10  ;;  %v1721_v27 = vld [vmem:[%s2098_s3 + $0xb0] sm:$0xff]   ;;  %v1725_v31 = vld [vmem:[%s2098_s3 + $0xb8] sm:$0xff]   ;;  %v254_v32 = vld [vmem:[%s1908_s14] sm:$0xff] }
  0x11   : > { %1571 = vmatpush3.bf16.msra.mxu1 %v1705_v11  ;;  %1532 = vmatprep.subr.bf16.mxu0 %v1706_v12  ;;  %v258_v33 = vld [vmem:[%s1908_s14 + $0x20] sm:$0xff]  ;;  %v255_v34 = vld [vmem:[%s1908_s14 + $0x8] sm:$0xff]  ;;  %v1734_v56 = vld [vmem:[%s2098_s3 + $0x150] sm:$0xff]  }
  0x12   : > { %1572 = vmatprep.subr.bf16.mxu1 %v1707_v13  ;;  %v1386_v35 = vcombine.low %v254_v32, %v258_v33  ;;  %v1387_v36 = vcombine.high %v254_v32, %v258_v33  ;;  %v259_v37 = vld [vmem:[%s1908_s14 + $0x28] sm:$0xff]  ;;  %v1729_v43 = vld [vmem:[%s2098_s3 + $0x180] sm:$0xff]   ;;  %v1735_v57 = vld [vmem:[%s2098_s3 + $0x1d0] sm:$0xff]  }
  0x13   : > { %v1388_v38 = vcombine.low %v255_v34, %v259_v37  ;;  %v1389_v39 = vcombine.high %v255_v34, %v259_v37  ;;  %v1730_v44 = vld [vmem:[%s2098_s3 + $0x148] sm:$0xff]   ;;  %v262_v48 = vld [vmem:[%s1908_s14 + $0x40] sm:$0xff]  ;;  %v1736_v58 = vld [vmem:[%s2098_s3 + $0x110] sm:$0xff]  }
  0x14   : > { %1533 = vmatpush3.bf16.msra.mxu0 %v1708_v14  ;;  %990 = vmatprep.mubr.bf16.mxu0 %v1387_v36  ;;  %v1731_v45 = vld [vmem:[%s2098_s3 + $0x1c8] sm:$0xff]   ;;  %v266_v49 = vld [vmem:[%s1908_s14 + $0x60] sm:$0xff]  ;;  %v1737_v59 = vld [vmem:[%s2098_s3 + $0x190] sm:$0xff]  }
  0x15   : > { %1573 = vmatpush3.bf16.msra.mxu1 %v1709_v15  ;;  %1534 = vmatprep.subr.bf16.mxu0 %v1710_v16  ;;  %v1732_v46 = vld [vmem:[%s2098_s3 + $0x108] sm:$0xff]   ;;  %v1395_v50 = vcombine.high %v262_v48, %v266_v49  ;;  %v1394_v53 = vcombine.low %v262_v48, %v266_v49  ;;  %v1738_v60 = vld [vmem:[%s2098_s3 + $0x158] sm:$0xff]   ;;  %v270_v0 = vld [vmem:[%s1908_s14 + $0x80] sm:$0xff] }
  0x16   : > { %1574 = vmatprep.subr.bf16.mxu1 %v1711_v17  ;;  %1055 = vmatprep.mubr.bf16.mxu1 %v1389_v39  ;;  %v1733_v47 = vld [vmem:[%s2098_s3 + $0x188] sm:$0xff]   ;;  %v1739_v61 = vld [vmem:[%s2098_s3 + $0x1d8] sm:$0xff]   ;;  %v274_v1 = vld [vmem:[%s1908_s14 + $0xa0] sm:$0xff] }
  0x17   : > { %v263_v51 = vld [vmem:[%s1908_s14 + $0x48] sm:$0xff]  ;;  %v1740_v62 = vld [vmem:[%s2098_s3 + $0x118] sm:$0xff]   ;;  %v1403_v4 = vcombine.high %v270_v0, %v274_v1  ;;  %v1402_v6 = vcombine.low %v270_v0, %v274_v1  ;;  %v1742_v8 = vld [vmem:[%s2098_s3 + $0x160] sm:$0xff]  }
  0x18   : > { %1535 = vmatpush3.bf16.msra.mxu0 %v1712_v18  ;;  %v267_v52 = vld [vmem:[%s1908_s14 + $0x68] sm:$0xff]  ;;  %v1741_v63 = vld [vmem:[%s2098_s3 + $0x198] sm:$0xff]   ;;  %v1743_v9 = vld [vmem:[%s2098_s3 + $0x1e0] sm:$0xff]  }
  0x19   : > { %1575 = vmatpush3.bf16.msra.mxu1 %v1713_v19  ;;  %1536 = vmatprep.subr.bf16.mxu0 %v1714_v20  ;;  %v1397_v54 = vcombine.high %v263_v51, %v267_v52  ;;  %v1396_v55 = vcombine.low %v263_v51, %v267_v52  ;;  %v271_v2 = vld [vmem:[%s1908_s14 + $0x88] sm:$0xff]  ;;  %v1744_v10 = vld [vmem:[%s2098_s3 + $0x120] sm:$0xff]   ;;  %v256_v32 = vld [vmem:[%s1908_s14 + $0x10] sm:$0xff] }
  0x1a   : > { %1576 = vmatprep.subr.bf16.mxu1 %v1715_v21  ;;  %v275_v3 = vld [vmem:[%s1908_s14 + $0xa8] sm:$0xff]  ;;  %v1745_v11 = vld [vmem:[%s2098_s3 + $0x1a0] sm:$0xff]   ;;  %v260_v33 = vld [vmem:[%s1908_s14 + $0x30] sm:$0xff] }
  0x1b   : > { %v1405_v5 = vcombine.high %v271_v2, %v275_v3  ;;  %v1404_v7 = vcombine.low %v271_v2, %v275_v3  ;;  %v1746_v12 = vld [vmem:[%s2098_s3 + $0x168] sm:$0xff]   ;;  %v278_v16 = vld [vmem:[%s1908_s14 + $0xc0] sm:$0xff]  ;;  %v1390_v34 = vcombine.low %v256_v32, %v260_v33  ;;  %v257_v36 = vld [vmem:[%s1908_s14 + $0x18] sm:$0xff] }
  0x1c   : > { %1537 = vmatpush3.bf16.msra.mxu0 %v1716_v22  ;;  %v1747_v13 = vld [vmem:[%s2098_s3 + $0x1e8] sm:$0xff]   ;;  %v282_v17 = vld [vmem:[%s1908_s14 + $0xe0] sm:$0xff]  ;;  %v261_v37 = vld [vmem:[%s1908_s14 + $0x38] sm:$0xff] }
  0x1d   : > { %1577 = vmatpush3.bf16.msra.mxu1 %v1717_v23  ;;  %1538 = vmatprep.subr.bf16.mxu0 %v1718_v24  ;;  %v1748_v14 = vld [vmem:[%s2098_s3 + $0x128] sm:$0xff]   ;;  %v1411_v19 = vcombine.high %v278_v16, %v282_v17  ;;  %v1410_v21 = vcombine.low %v278_v16, %v282_v17  ;;  %v1750_v24 = vld [vmem:[%s2098_s3 + $0x170] sm:$0xff]   ;;  %v1392_v39 = vcombine.low %v257_v36, %v261_v37  ;;  %v273_v48 = vld [vmem:[%s1908_s14 + $0x98] sm:$0xff] }
  0x1e   : > { %1578 = vmatprep.subr.bf16.mxu1 %v1719_v25  ;;  %v1749_v15 = vld [vmem:[%s2098_s3 + $0x1a8] sm:$0xff]   ;;  %v1751_v25 = vld [vmem:[%s2098_s3 + $0x1f0] sm:$0xff]   ;;  %v277_v49 = vld [vmem:[%s1908_s14 + $0xb8] sm:$0xff] }
  0x1f   : > { %v279_v18 = vld [vmem:[%s1908_s14 + $0xc8] sm:$0xff] }
  0x20   : > { %1539 = vmatpush3.bf16.msra.mxu0 %v1720_v26  ;;  %v283_v20 = vld [vmem:[%s1908_s14 + $0xe8] sm:$0xff]  ;;  %v1752_v26 = vld [vmem:[%s2098_s3 + $0x130] sm:$0xff]  }
  0x21   : > { %1579 = vmatpush3.bf16.msra.mxu1 %v1721_v27  ;;  %1540 = vmatprep.subr.bf16.mxu0 %v1722_v28  ;;  %v1413_v22 = vcombine.high %v279_v18, %v283_v20  ;;  %v1412_v23 = vcombine.low %v279_v18, %v283_v20  ;;  %v1753_v27 = vld [vmem:[%s2098_s3 + $0x1b0] sm:$0xff]   ;;  %v1754_v28 = vld [vmem:[%s2098_s3 + $0x178] sm:$0xff]  }
  0x22   : > { %1580 = vmatprep.subr.bf16.mxu1 %v1723_v29  ;;  %v1755_v29 = vld [vmem:[%s2098_s3 + $0x1f8] sm:$0xff]  }
  0x24   : > { %1541 = vmatpush3.bf16.msra.mxu0 %v1724_v30  ;;  %v1756_v30 = vld [vmem:[%s2098_s3 + $0x138] sm:$0xff]  }
  0x25   : > { %1581 = vmatpush3.bf16.msra.mxu1 %v1725_v31  ;;  %1606 = vmatprep.subr.bf16.mxu0 %v1726_v40  ;;  %v1757_v31 = vld [vmem:[%s2098_s3 + $0x1b8] sm:$0xff]   ;;  %v1393_v40 = vcombine.high %v257_v36, %v261_v37 }
  0x26   : > { %1646 = vmatprep.subr.bf16.mxu1 %v1727_v41  ;;  %v268_v41 = vld [vmem:[%s1908_s14 + $0x70] sm:$0xff] }
  0x27   : > { %991 = vmatmul.mubr.bf16.vlgmr.msra.gmra.mrb[0].mxu0 %v1386_v35  ;;  %v1391_v35 = vcombine.high %v256_v32, %v260_v33 }
  0x28   : > { %1056 = vmatmul.mubr.bf16.vlgmr.msra.gmra.mrb[0].mxu1 %v1388_v38  ;;  %1607 = vmatpush3.bf16.msra.mxu0 %v1728_v42  ;;  %v264_v38 = vld [vmem:[%s1908_s14 + $0x50] sm:$0xff]  ;;  %v265_v42 = vld [vmem:[%s1908_s14 + $0x58] sm:$0xff] }
  0x29   : > { %1647 = vmatpush3.bf16.msra.mxu1 %v1729_v43  ;;  %1608 = vmatprep.subr.bf16.mxu0 %v1730_v44  ;;  %v269_v43 = vld [vmem:[%s1908_s14 + $0x78] sm:$0xff]  ;;  %v1399_v44 = vcombine.high %v264_v38, %v268_v41 }
  0x2a   : > { %1648 = vmatprep.subr.bf16.mxu1 %v1731_v45  ;;  %998 = vmatprep.mubr.bf16.mxu0 %v1395_v50  ;;  %v1401_v45 = vcombine.high %v265_v42, %v269_v43  ;;  %v1398_v50 = vcombine.low %v264_v38, %v268_v41  ;;  %v1400_v51 = vcombine.low %v265_v42, %v269_v43 }
  0x2b   : > { %1063 = vmatprep.mubr.bf16.mxu1 %v1397_v54  ;;  %v280_v54 = vld [vmem:[%s1908_s14 + $0xd0] sm:$0xff] }
  0x2c   : > { %1609 = vmatpush3.bf16.msra.mxu0 %v1732_v46  ;;  %v272_v46 = vld [vmem:[%s1908_s14 + $0x90] sm:$0xff] }
  0x2d   : > { %1649 = vmatpush3.bf16.msra.mxu1 %v1733_v47  ;;  %1610 = vmatprep.subr.bf16.mxu0 %v1734_v56  ;;  %v276_v47 = vld [vmem:[%s1908_s14 + $0xb0] sm:$0xff]  ;;  %v281_v56 = vld [vmem:[%s1908_s14 + $0xd8] sm:$0xff] }
  0x2e   : > { %1650 = vmatprep.subr.bf16.mxu1 %v1735_v57  ;;  %v1407_v52 = vcombine.high %v272_v46, %v276_v47  ;;  %v285_v57 = vld [vmem:[%s1908_s14 + $0xf8] sm:$0xff] }
  0x2f   : > { %999 = vmatmul.mubr.bf16.gmra.mrb[4].mxu0 %v1394_v53  ;;  %v1409_v53 = vcombine.high %v273_v48, %v277_v49 }
  0x30   : > { %1064 = vmatmul.mubr.bf16.gmra.mrb[4].mxu1 %v1396_v55  ;;  %1611 = vmatpush3.bf16.msra.mxu0 %v1736_v58  ;;  %v284_v55 = vld [vmem:[%s1908_s14 + $0xf0] sm:$0xff]  ;;  %v1406_v58 = vcombine.low %v272_v46, %v276_v47  ;;  %s1385_s14 = sshll.u32 %s2103_s29, 2 }
  0x31   : > { %1651 = vmatpush3.bf16.msra.mxu1 %v1737_v59  ;;  %1612 = vmatprep.subr.bf16.mxu0 %v1738_v60  ;;  %v1408_v59 = vcombine.low %v273_v48, %v277_v49  ;;  %v1415_v60 = vcombine.high %v280_v54, %v284_v55  ;;  %s2060_s19 = scalar_lea.vmem %s2099_s4, %s1385_s14 }
  0x32   : > { %1652 = vmatprep.subr.bf16.mxu1 %v1739_v61  ;;  %1006 = vmatprep.mubr.bf16.mxu0 %v1403_v4  ;;  %v1417_v61 = vcombine.high %v281_v56, %v285_v57 }
  0x33   : > { %1071 = vmatprep.mubr.bf16.mxu1 %v1405_v5 }
  0x34   : > { %1613 = vmatpush3.bf16.msra.mxu0 %v1740_v62  ;;  %v1414_v62 = vcombine.low %v280_v54, %v284_v55 }
  0x35   : > { %1653 = vmatpush3.bf16.msra.mxu1 %v1741_v63  ;;  %1614 = vmatprep.subr.bf16.mxu0 %v1742_v8  ;;  %v1416_v63 = vcombine.low %v281_v56, %v285_v57 }
  0x36   : > { %1654 = vmatprep.subr.bf16.mxu1 %v1743_v9 }
  0x37   : > { %1007 = vmatmul.mubr.bf16.gmra.mrb[8].mxu0 %v1402_v6 }
  0x38   : > { %1072 = vmatmul.mubr.bf16.gmra.mrb[8].mxu1 %v1404_v7  ;;  %1615 = vmatpush3.bf16.msra.mxu0 %v1744_v10 }
  0x39   : > { %1655 = vmatpush3.bf16.msra.mxu1 %v1745_v11  ;;  %1616 = vmatprep.subr.bf16.mxu0 %v1746_v12 }
  0x3a   : > { %1656 = vmatprep.subr.bf16.mxu1 %v1747_v13  ;;  %1014 = vmatprep.mubr.bf16.mxu0 %v1411_v19 }
  0x3b   : > { %1079 = vmatprep.mubr.bf16.mxu1 %v1413_v22 }
  0x3c   : > { %1617 = vmatpush3.bf16.msra.mxu0 %v1748_v14 }
  0x3d   : > { %1657 = vmatpush3.bf16.msra.mxu1 %v1749_v15  ;;  %1618 = vmatprep.subr.bf16.mxu0 %v1750_v24 }
  0x3e   : > { %1658 = vmatprep.subr.bf16.mxu1 %v1751_v25 }
  0x3f   : > { %1015 = vmatmul.mubr.bf16.gmra.mrb[12].mxu0 %v1410_v21 }
  0x40   : > { %1080 = vmatmul.mubr.bf16.gmra.mrb[12].mxu1 %v1412_v23  ;;  %1619 = vmatpush3.bf16.msra.mxu0 %v1752_v26 }
  0x41   : > { %1659 = vmatpush3.bf16.msra.mxu1 %v1753_v27  ;;  %1620 = vmatprep.subr.bf16.mxu0 %v1754_v28 }
  0x42   : > { %1660 = vmatprep.subr.bf16.mxu1 %v1755_v29  ;;  %1120 = vmatprep.mubr.bf16.mxu0 %v1391_v35 }
  0x43   : > { %1185 = vmatprep.mubr.bf16.mxu1 %v1393_v40 }
  0x44   : > { %1621 = vmatpush3.bf16.msra.mxu0 %v1756_v30 }
  0x45   : > { %1661 = vmatpush3.bf16.msra.mxu1 %v1757_v31 }
  0x47   : > { %1121 = vmatmul.mubr.bf16.vlgmr.msra.gmra.mrb[16].mxu0 %v1390_v34 }
  0x48   : > { %1186 = vmatmul.mubr.bf16.vlgmr.msra.gmra.mrb[16].mxu1 %v1392_v39  ;;  %1128 = vmatprep.mubr.bf16.mxu0 %v1399_v44 }
  0x49   : > { %1193 = vmatprep.mubr.bf16.mxu1 %v1401_v45 }
  0x4f   : > { %1129 = vmatmul.mubr.bf16.gmra.mrb[20].mxu0 %v1398_v50 }
  0x50   : > { %1194 = vmatmul.mubr.bf16.gmra.mrb[20].mxu1 %v1400_v51  ;;  %1136 = vmatprep.mubr.bf16.mxu0 %v1407_v52 }
  0x51   : > { %1201 = vmatprep.mubr.bf16.mxu1 %v1409_v53 }
  0x57   : > { %1137 = vmatmul.mubr.bf16.gmra.mrb[24].mxu0 %v1406_v58 }
  0x58   : > { %1202 = vmatmul.mubr.bf16.gmra.mrb[24].mxu1 %v1408_v59  ;;  %1144 = vmatprep.mubr.bf16.mxu0 %v1415_v60 }
  0x59   : > { %1209 = vmatprep.mubr.bf16.mxu1 %v1417_v61 }
  0x5f   : > { %1145 = vmatmul.mubr.bf16.gmra.mrb[28].mxu0 %v1414_v62 }
  0x60   : > { %1210 = vmatmul.mubr.bf16.gmra.mrb[28].mxu1 %v1416_v63 }
  0xfa   : > { %v1542_v0 = vpop.f32.mrb[0].mxu0 }
  0xfb   : > { %v1582_v1 = vpop.f32.mrb[0].mxu1  ;;  %v1543_v2 = vpop.f32.mrb[1].mxu0 }
  0xfc   : > { %v1544_v3 = vadd.f32 %v1543_v2, %v1542_v0  ;;  %v1583_v4 = vpop.f32.mrb[1].mxu1  ;;  %v1545_v5 = vpop.f32.mrb[2].mxu0 }
  0xfd   : > { %v1584_v6 = vadd.f32 %v1583_v4, %v1582_v1  ;;  %v1585_v7 = vpop.f32.mrb[2].mxu1  ;;  %v1546_v8 = vpop.f32.mrb[3].mxu0 }
  0xfe   : > { %v1547_v9 = vadd.f32 %v1546_v8, %v1545_v5  ;;  %v1586_v10 = vpop.f32.mrb[3].mxu1 }
  0xff   : > { %v1058_v11 = vadd.f32 %v1584_v6, %v1544_v3  ;;  %v1587_v12 = vadd.f32 %v1586_v10, %v1585_v7 }
 0x101   : > { %v1061_v13 = vadd.f32 %v1587_v12, %v1547_v9 }
 0x102   : > { %v1548_v14 = vpop.f32.mrb[4].mxu0 }
 0x103   : > { %v1588_v15 = vpop.f32.mrb[4].mxu1  ;;  %v1549_v16 = vpop.f32.mrb[5].mxu0 }
 0x104   : > { %v1550_v17 = vadd.f32 %v1549_v16, %v1548_v14  ;;  %v1589_v18 = vpop.f32.mrb[5].mxu1  ;;  %v1551_v19 = vpop.f32.mrb[6].mxu0 }
 0x105   : > { %v1590_v20 = vadd.f32 %v1589_v18, %v1588_v15  ;;  %v1591_v21 = vpop.f32.mrb[6].mxu1  ;;  %v1552_v22 = vpop.f32.mrb[7].mxu0 }
 0x106   : > { %v1553_v23 = vadd.f32 %v1552_v22, %v1551_v19  ;;  %v1592_v24 = vpop.f32.mrb[7].mxu1 }
 0x107   : > { %v2044_v25 = vadd.f32 %v1590_v20, %v1550_v17  ;;  %v1593_v26 = vadd.f32 %v1592_v24, %v1591_v21 }
 0x109   : > { %v2046_v27 = vadd.f32 %v1593_v26, %v1553_v23 }
 0x10a   : > { %v1554_v28 = vpop.f32.mrb[8].mxu0 }
 0x10b   : > { %v1594_v29 = vpop.f32.mrb[8].mxu1  ;;  %v1555_v30 = vpop.f32.mrb[9].mxu0 }
 0x10c   : > { %v1595_v31 = vpop.f32.mrb[9].mxu1  ;;  %v1556_v32 = vadd.f32 %v1555_v30, %v1554_v28  ;;  %v1557_v34 = vpop.f32.mrb[10].mxu0 }
 0x10d   : > { %v1596_v33 = vadd.f32 %v1595_v31, %v1594_v29  ;;  %v1597_v35 = vpop.f32.mrb[10].mxu1  ;;  %v1558_v36 = vpop.f32.mrb[11].mxu0 }
 0x10e   : > { %v1598_v37 = vpop.f32.mrb[11].mxu1  ;;  %v1559_v39 = vadd.f32 %v1558_v36, %v1557_v34 }
 0x10f   : > { %v2048_v38 = vadd.f32 %v1596_v33, %v1556_v32  ;;  %v1599_v40 = vadd.f32 %v1598_v37, %v1597_v35 }
 0x111   : > { %v2050_v41 = vadd.f32 %v1599_v40, %v1559_v39 }
 0x112   : > { %v1560_v42 = vpop.f32.mrb[12].mxu0 }
 0x113   : > { %v1600_v43 = vpop.f32.mrb[12].mxu1  ;;  %v1561_v44 = vpop.f32.mrb[13].mxu0 }
 0x114   : > { %v1562_v45 = vadd.f32 %v1561_v44, %v1560_v42  ;;  %v1601_v46 = vpop.f32.mrb[13].mxu1  ;;  %v1563_v47 = vpop.f32.mrb[14].mxu0 }
 0x115   : > { %v1602_v48 = vadd.f32 %v1601_v46, %v1600_v43  ;;  %v1603_v49 = vpop.f32.mrb[14].mxu1  ;;  %v1564_v50 = vpop.f32.mrb[15].mxu0 }
 0x116   : > { %v1565_v51 = vadd.f32 %v1564_v50, %v1563_v47  ;;  %v1604_v52 = vpop.f32.mrb[15].mxu1 }
 0x117   : > { %v2052_v53 = vadd.f32 %v1602_v48, %v1562_v45  ;;  %v1605_v54 = vadd.f32 %v1604_v52, %v1603_v49 }
 0x119   : > { %v2054_v55 = vadd.f32 %v1605_v54, %v1565_v51 }
 0x11a   : > { %v1622_v56 = vpop.f32.mrb[16].mxu0 }
 0x11b   : > { %v1662_v57 = vpop.f32.mrb[16].mxu1  ;;  %v1623_v58 = vpop.f32.mrb[17].mxu0 }
 0x11c   : > { %v1624_v59 = vadd.f32 %v1623_v58, %v1622_v56  ;;  %v1663_v60 = vpop.f32.mrb[17].mxu1  ;;  %v1625_v61 = vpop.f32.mrb[18].mxu0 }
 0x11d   : > { %v1664_v62 = vadd.f32 %v1663_v60, %v1662_v57  ;;  %v1665_v63 = vpop.f32.mrb[18].mxu1  ;;  %v1626_v0 = vpop.f32.mrb[19].mxu0 }
 0x11e   : > { %v1123_v1 = vadd.f32 %v1624_v59, %v1058_v11  ;;  %v1627_v2 = vadd.f32 %v1626_v0, %v1625_v61  ;;  %v1666_v3 = vpop.f32.mrb[19].mxu1 }
 0x11f   : > { %v1667_v4 = vadd.f32 %v1666_v3, %v1665_v63 }
 0x120   : > { %v1188_v5 = vadd.f32 %v1664_v62, %v1123_v1  ;;  %v1126_v6 = vadd.f32 %v1627_v2, %v1061_v13 }
 0x122   : > { %v1191_v7 = vadd.f32 %v1667_v4, %v1126_v6  ;;  %v1628_v8 = vpop.f32.mrb[20].mxu0  ;;  %v1271_v9 = vmul.f32 %v1188_v5, %v1188_v5 }
 0x123   : > { %v1668_v10 = vpop.f32.mrb[20].mxu1  ;;  %v1629_v12 = vpop.f32.mrb[21].mxu0 }
 0x124   : > { %v1506_v14 = vpack.c.bf16 %v1191_v7, %v1188_v5  ;;  %v1258_v15 = vadd.f32 %v1191_v7, %v1188_v5  ;;  %v1272_v11 = vmul.f32 %v1191_v7, %v1191_v7  ;;  %v1630_v16 = vadd.f32 %v1629_v12, %v1628_v8  ;;  %v1669_v17 = vpop.f32.mrb[21].mxu1  ;;  %v1631_v18 = vpop.f32.mrb[22].mxu0 }
 0x125   : > { %v1670_v19 = vadd.f32 %v1669_v17, %v1668_v10  ;;  %v1671_v13 = vpop.f32.mrb[22].mxu1  ;;  %v1632_v20 = vpop.f32.mrb[23].mxu0 }
 0x126   : > { %1507 = vst [vmem:[%s2060_s19] sm:$0xff] %v1506_v14   ;;  %v1279_v21 = vadd.f32 %v1272_v11, %v1271_v9  ;;  %v1131_v22 = vadd.f32 %v1630_v16, %v2044_v25  ;;  %v1633_v23 = vadd.f32 %v1632_v20, %v1631_v18  ;;  %v1672_v24 = vpop.f32.mrb[23].mxu1 }
 0x127   : > { %v1673_v26 = vadd.f32 %v1672_v24, %v1671_v13 }
 0x128   : > { %v1196_v28 = vadd.f32 %v1670_v19, %v1131_v22  ;;  %v1134_v29 = vadd.f32 %v1633_v23, %v2046_v27 }
 0x12a   : > { %v1259_v30 = vadd.f32 %v1258_v15, %v1196_v28  ;;  %v1273_v31 = vmul.f32 %v1196_v28, %v1196_v28  ;;  %v1199_v32 = vadd.f32 %v1673_v26, %v1134_v29  ;;  %v1634_v33 = vpop.f32.mrb[24].mxu0 }
 0x12b   : > { %v1674_v34 = vpop.f32.mrb[24].mxu1  ;;  %v1635_v35 = vpop.f32.mrb[25].mxu0 }
 0x12c   : > { %v1280_v36 = vadd.f32 %v1279_v21, %v1273_v31  ;;  %v1511_v37 = vpack.c.bf16 %v1199_v32, %v1196_v28  ;;  %v1260_v39 = vadd.f32 %v1259_v30, %v1199_v32  ;;  %v1274_v40 = vmul.f32 %v1199_v32, %v1199_v32  ;;  %v1675_v42 = vpop.f32.mrb[25].mxu1  ;;  %v1637_v43 = vpop.f32.mrb[26].mxu0 }
 0x12d   : > { %v1636_v25 = vadd.f32 %v1635_v35, %v1634_v33  ;;  %v1676_v44 = vadd.f32 %v1675_v42, %v1674_v34  ;;  %v1677_v45 = vpop.f32.mrb[26].mxu1  ;;  %v1638_v46 = vpop.f32.mrb[27].mxu0 }
 0x12e   : > { %1523 = vst [vmem:[%s2060_s19 + $0x8] sm:$0xff] %v1511_v37   ;;  %v1281_v47 = vadd.f32 %v1280_v36, %v1274_v40  ;;  %v1639_v27 = vadd.f32 %v1638_v46, %v1637_v43  ;;  %v1678_v48 = vpop.f32.mrb[27].mxu1 }
 0x12f   : > { %v1139_v49 = vadd.f32 %v1636_v25, %v2048_v38  ;;  %v1679_v50 = vadd.f32 %v1678_v48, %v1677_v45 }
 0x130   : > { %v1142_v51 = vadd.f32 %v1639_v27, %v2050_v41 }
 0x131   : > { %v1204_v52 = vadd.f32 %v1676_v44, %v1139_v49 }
 0x132   : > { %v1207_v54 = vadd.f32 %v1679_v50, %v1142_v51  ;;  %v1640_v56 = vpop.f32.mrb[28].mxu0 }
 0x133   : > { %v1261_v57 = vadd.f32 %v1260_v39, %v1204_v52  ;;  %v1275_v58 = vmul.f32 %v1204_v52, %v1204_v52  ;;  %v1680_v59 = vpop.f32.mrb[28].mxu1  ;;  %v1641_v60 = vpop.f32.mrb[29].mxu0 }
 0x134   : > { %v1516_v61 = vpack.c.bf16 %v1207_v54, %v1204_v52  ;;  %v1276_v62 = vmul.f32 %v1207_v54, %v1207_v54  ;;  %v1642_v63 = vadd.f32 %v1641_v60, %v1640_v56  ;;  %v1681_v0 = vpop.f32.mrb[29].mxu1  ;;  %v1643_v1 = vpop.f32.mrb[30].mxu0 }
 0x135   : > { %v1282_v2 = vadd.f32 %v1281_v47, %v1275_v58  ;;  %v1262_v3 = vadd.f32 %v1261_v57, %v1207_v54  ;;  %v1682_v4 = vadd.f32 %v1681_v0, %v1680_v59  ;;  %v1683_v38 = vpop.f32.mrb[30].mxu1  ;;  %v1644_v5 = vpop.f32.mrb[31].mxu0 }
 0x136   : > { %1524 = vst [vmem:[%s2060_s19 + $0x10] sm:$0xff] %v1516_v61   ;;  %v1147_v41 = vadd.f32 %v1642_v63, %v2052_v53  ;;  %v1645_v6 = vadd.f32 %v1644_v5, %v1643_v1  ;;  %v1684_v7 = vpop.f32.mrb[31].mxu1 }
 0x137   : > { %v1283_v8 = vadd.f32 %v1282_v2, %v1276_v62  ;;  %v1685_v9 = vadd.f32 %v1684_v7, %v1683_v38 }
 0x138   : > { %v1212_v10 = vadd.f32 %v1682_v4, %v1147_v41  ;;  %v1150_v12 = vadd.f32 %v1645_v6, %v2054_v55 }
 0x13a   : > { %v1263_v14 = vadd.f32 %v1262_v3, %v1212_v10  ;;  %v1277_v15 = vmul.f32 %v1212_v10, %v1212_v10  ;;  %v1215_v11 = vadd.f32 %v1685_v9, %v1150_v12 }
 0x13c   : > { %v1284_v16 = vadd.f32 %v1283_v8, %v1277_v15  ;;  %v1521_v17 = vpack.c.bf16 %v1215_v11, %v1212_v10  ;;  %v1264_v18 = vadd.f32 %v1263_v14, %v1215_v11  ;;  %v1278_v19 = vmul.f32 %v1215_v11, %v1215_v11 }
 0x13e   : > { %1525 = vst [vmem:[%s2060_s19 + $0x18] sm:$0xff] %v1521_v17   ;;  %v1265_v13 = vrot.slane %v1264_v18, 4  ;;  %v1285_v20 = vadd.f32 %v1284_v16, %v1278_v19 }
 0x140   : > { %v1266_v21 = vadd.f32 %v1265_v13, %v1264_v18  ;;  %v1286_v22 = vrot.slane %v1285_v20, 4 }
 0x142   : > { %v1267_v53 = vrot.slane %v1266_v21, 2  ;;  %v1287_v23 = vadd.f32 %v1286_v22, %v1285_v20 }
 0x144   : > { %v1268_v24 = vadd.f32 %v1267_v53, %v1266_v21  ;;  %v1288_v26 = vrot.slane %v1287_v23, 2  ;;  %1295 = sbr.rel (%p1490_p4) target bundleno = 333 (0x14d), region = 40 }
 0x146   : > { %v1269_v28 = vrot.slane %v1268_v24, 1  ;;  %v1289_v29 = vadd.f32 %v1288_v26, %v1287_v23 }
 0x148   : > { %v1270_v30 = vadd.f32 %v1269_v28, %v1268_v24  ;;  %v1290_v55 = vrot.slane %v1289_v29, 1 }
 0x14a   : > { %v1291_v31 = vadd.f32 %v1290_v55, %v1289_v29  ;;  %1296 = vst [vmem:[%s2100_s5] sm:$0x1] (!%p1490_p4), %v1270_v30 }
 0x14c   : > { %1297 = vst [vmem:[%s2101_s6] sm:$0x1] %v1291_v31 }
 0x14d PF: > { %p1491_p5 = scmp.le.s32.totalorder %s1807_s1, 0 }
 0x14f   : > { %1301 = sbr.rel (%p1491_p5) target bundleno = 344 (0x158), region = 44 }
 0x153   : > { %v1302_v32 = vld [vmem:[%s2100_s5] sm:$0x1] (!%p1491_p5) }
 0x154   : > { %v1305_v33 = vld [vmem:[%s2101_s6] sm:$0x1] (!%p1491_p5)  ;;  %v1303_v34 = vadd.f32 (!%p1491_p5), %v1302_v32, %v1270_v30 }
 0x155   : > { %v1306_v35 = vadd.f32 (!%p1491_p5), %v1305_v33, %v1291_v31 }
 0x156   : > { %1304 = vst [vmem:[%s2100_s5] sm:$0x1] %v1303_v34 }
 0x157   : > { %1307 = vst [vmem:[%s2101_s6] sm:$0x1] %v1306_v35 }
 0x158 PF: > { %s17_s21 = sadd.s32 1, %s1764_s21  }
 0x159   : > { %p14_p6 = scmp.ge.s32.totalorder %s17_s21, 4  }
 0x15b   :  { %16 = sbr.rel (!%p14_p6) target bundleno = 1 (0x1), region = 90 }

// kernel: discriminator_forward.7
= control target key start
LH: loop header
LB: loop body
LE: loop exit
PB: predicated region body
PF: predicated region fallthrough
CT: control target
= control target key end

     0   :  { %v120_v37 = vlaneseq  ;;  %s4790_s3 = inlined_call_operand.vmem [shape: bf16[2048,256], index: 3, kind: input, shape index: {}]   ;;  %s4791_s0 = inlined_call_operand.vmem [shape: bf16[32,2048], index: 0, kind: input, shape index: {}]   ;;  %s4792_s1 = inlined_call_operand.vmem [shape: f32[1,2048], index: 1, kind: input, shape index: {}]   ;;  %s4793_s2 = inlined_call_operand.vmem [shape: f32[1,2048], index: 2, kind: input, shape index: {}]   ;;  %s4794_s4 = inlined_call_operand.vmem [shape: bf16[32,256], index: 4, kind: output, shape index: {0}]   ;;  %s4795_s5 = inlined_call_operand.vmem [shape: f32[1,256], index: 5, kind: output, shape index: {1}]   ;;  %s4796_s6 = inlined_call_operand.vmem [shape: f32[1,256], index: 6, kind: output, shape index: {2}]  }
   0x1   :  { %v3097_v0 = vld [vmem:[%s4790_s3 + $0x4] ss:$8 sps:$4 sm:$0xff]   ;;  %v3101_v2 = vld [vmem:[%s4790_s3] ss:$8 sps:$4 sm:$0xff]   ;;  %v3103_v4 = vld [vmem:[%s4790_s3 + $0x14] ss:$8 sps:$4 sm:$0xff]  }
   0x2   :  { %v3099_v1 = vld [vmem:[%s4790_s3 + $0x404] ss:$8 sps:$4 sm:$0xff]   ;;  %2172 = vmatprep.subr.bf16.mxu1 %v3097_v0  ;;  %v3102_v3 = vld [vmem:[%s4790_s3 + $0x400] ss:$8 sps:$4 sm:$0xff]   ;;  %v3105_v5 = vld [vmem:[%s4790_s3 + $0x414] ss:$8 sps:$4 sm:$0xff]  }
   0x3   :  { %2384 = vmatprep.subr.bf16.mxu0 %v3099_v1  ;;  %2173 = vmatpush1.bf16.msra.mxu1 %v3101_v2  ;;  %v3107_v6 = vld [vmem:[%s4790_s3 + $0x10] ss:$8 sps:$4 sm:$0xff]   ;;  %v3109_v8 = vld [vmem:[%s4790_s3 + $0x24] ss:$8 sps:$4 sm:$0xff]   ;;  %v3113_v10 = vld [vmem:[%s4790_s3 + $0x20] ss:$8 sps:$4 sm:$0xff]  }
   0x4   :  { %2385 = vmatpush1.bf16.msra.mxu0 %v3102_v3  ;;  %2174 = vmatprep.subr.bf16.mxu1 %v3103_v4  ;;  %v3108_v7 = vld [vmem:[%s4790_s3 + $0x410] ss:$8 sps:$4 sm:$0xff]   ;;  %v3111_v9 = vld [vmem:[%s4790_s3 + $0x424] ss:$8 sps:$4 sm:$0xff]   ;;  %v3114_v11 = vld [vmem:[%s4790_s3 + $0x420] ss:$8 sps:$4 sm:$0xff]  }
   0x5   :  { %2386 = vmatprep.subr.bf16.mxu0 %v3105_v5  ;;  %v3115_v12 = vld [vmem:[%s4790_s3 + $0x34] ss:$8 sps:$4 sm:$0xff]   ;;  %v3119_v14 = vld [vmem:[%s4790_s3 + $0x30] ss:$8 sps:$4 sm:$0xff]   ;;  %v3121_v16 = vld [vmem:[%s4790_s3 + $0x44] ss:$8 sps:$4 sm:$0xff]  }
   0x6   :  { %v3117_v13 = vld [vmem:[%s4790_s3 + $0x434] ss:$8 sps:$4 sm:$0xff]   ;;  %v3120_v15 = vld [vmem:[%s4790_s3 + $0x430] ss:$8 sps:$4 sm:$0xff]   ;;  %v3123_v17 = vld [vmem:[%s4790_s3 + $0x444] ss:$8 sps:$4 sm:$0xff]  }
   0x7   :  { %2175 = vmatpush1.bf16.msra.mxu1 %v3107_v6  ;;  %v3125_v18 = vld [vmem:[%s4790_s3 + $0x40] ss:$8 sps:$4 sm:$0xff]   ;;  %v3127_v20 = vld [vmem:[%s4790_s3 + $0x54] ss:$8 sps:$4 sm:$0xff]   ;;  %v3131_v22 = vld [vmem:[%s4790_s3 + $0x50] ss:$8 sps:$4 sm:$0xff]  }
   0x8   :  { %2387 = vmatpush1.bf16.msra.mxu0 %v3108_v7  ;;  %2176 = vmatprep.subr.bf16.mxu1 %v3109_v8  ;;  %v3126_v19 = vld [vmem:[%s4790_s3 + $0x440] ss:$8 sps:$4 sm:$0xff]   ;;  %v3129_v21 = vld [vmem:[%s4790_s3 + $0x454] ss:$8 sps:$4 sm:$0xff]   ;;  %v3132_v23 = vld [vmem:[%s4790_s3 + $0x450] ss:$8 sps:$4 sm:$0xff]  }
   0x9   :  { %2388 = vmatprep.subr.bf16.mxu0 %v3111_v9  ;;  %v3133_v24 = vld [vmem:[%s4790_s3 + $0x64] ss:$8 sps:$4 sm:$0xff]   ;;  %v3137_v26 = vld [vmem:[%s4790_s3 + $0x60] ss:$8 sps:$4 sm:$0xff]   ;;  %v3139_v28 = vld [vmem:[%s4790_s3 + $0x74] ss:$8 sps:$4 sm:$0xff]  }
   0xa   :  { %v3135_v25 = vld [vmem:[%s4790_s3 + $0x464] ss:$8 sps:$4 sm:$0xff]   ;;  %v3138_v27 = vld [vmem:[%s4790_s3 + $0x460] ss:$8 sps:$4 sm:$0xff]   ;;  %v3141_v29 = vld [vmem:[%s4790_s3 + $0x474] ss:$8 sps:$4 sm:$0xff]  }
   0xb   :  { %2177 = vmatpush1.bf16.msra.mxu1 %v3113_v10  ;;  %v3143_v30 = vld [vmem:[%s4790_s3 + $0x70] ss:$8 sps:$4 sm:$0xff]   ;;  %v3145_v32 = vld [vmem:[%s4790_s3 + $0x84] ss:$8 sps:$4 sm:$0xff]   ;;  %v3149_v34 = vld [vmem:[%s4790_s3 + $0x80] ss:$8 sps:$4 sm:$0xff]  }
   0xc   :  { %2389 = vmatpush1.bf16.msra.mxu0 %v3114_v11  ;;  %2178 = vmatprep.subr.bf16.mxu1 %v3115_v12  ;;  %v3144_v31 = vld [vmem:[%s4790_s3 + $0x470] ss:$8 sps:$4 sm:$0xff]   ;;  %v3147_v33 = vld [vmem:[%s4790_s3 + $0x484] ss:$8 sps:$4 sm:$0xff]   ;;  %v3150_v35 = vld [vmem:[%s4790_s3 + $0x480] ss:$8 sps:$4 sm:$0xff]  }
   0xd   :  { %2390 = vmatprep.subr.bf16.mxu0 %v3117_v13  ;;  %v3151_v36 = vld [vmem:[%s4790_s3 + $0x94] ss:$8 sps:$4 sm:$0xff]   ;;  %v3155_v39 = vld [vmem:[%s4790_s3 + $0x90] ss:$8 sps:$4 sm:$0xff]   ;;  %v3157_v41 = vld [vmem:[%s4790_s3 + $0xa4] ss:$8 sps:$4 sm:$0xff]  }
   0xe   :  { %v3153_v38 = vld [vmem:[%s4790_s3 + $0x494] ss:$8 sps:$4 sm:$0xff]   ;;  %v3156_v40 = vld [vmem:[%s4790_s3 + $0x490] ss:$8 sps:$4 sm:$0xff]   ;;  %v3645_v42 = vshrl.u32 %v120_v37, 7  ;;  %v20_v52 = vld [vmem:[%s4791_s0] sm:$0xff] }
   0xf   :  { %2179 = vmatpush1.bf16.msra.mxu1 %v3119_v14  ;;  %v3159_v43 = vld [vmem:[%s4790_s3 + $0x4a4] ss:$8 sps:$4 sm:$0xff]   ;;  %v3161_v44 = vld [vmem:[%s4790_s3 + $0xa0] ss:$8 sps:$4 sm:$0xff]   ;;  %v3163_v46 = vld [vmem:[%s4790_s3 + $0xb4] ss:$8 sps:$4 sm:$0xff]   ;;  %v53_v54 = vunpack.c.h.bf16 %v20_v52  ;;  %v52_v58 = vunpack.c.l.bf16 %v20_v52 }
  0x10   :  { %2391 = vmatpush1.bf16.msra.mxu0 %v3120_v15  ;;  %2180 = vmatprep.subr.bf16.mxu1 %v3121_v16  ;;  %v3162_v45 = vld [vmem:[%s4790_s3 + $0x4a0] ss:$8 sps:$4 sm:$0xff]   ;;  %v126_v47 = vsub.s32 1, %v3645_v42  ;;  %v3165_v48 = vld [vmem:[%s4790_s3 + $0x4b4] ss:$8 sps:$4 sm:$0xff]   ;;  %v3664_v49 = vsub.s32 0, %v3645_v42 }
  0x11   :  { %2392 = vmatprep.subr.bf16.mxu0 %v3123_v17  ;;  %v3167_v50 = vld [vmem:[%s4790_s3 + $0xb0] ss:$8 sps:$4 sm:$0xff]   ;;  %v28_v53 = vld [vmem:[%s4791_s0 + $0x40] sm:$0xff]  ;;  %v3715_v6 = vld [vmem:[%s4792_s1 + $0x8] sm:$0xff] }
  0x12   :  { %v3168_v51 = vld [vmem:[%s4790_s3 + $0x4b0] ss:$8 sps:$4 sm:$0xff]   ;;  %v3681_v55 = vld [vmem:[%s4792_s1] sm:$0xff]  ;;  %v69_v59 = vunpack.c.h.bf16 %v28_v53  ;;  %v68_v63 = vunpack.c.l.bf16 %v28_v53  ;;  %v3720_v7 = vld [vmem:[%s4793_s2 + $0x8] sm:$0xff]  ;;  %v3729_v11 = vrot.slane %v3715_v6, %v126_v47 }
  0x13   :  { %2181 = vmatpush1.bf16.msra.mxu1 %v3125_v18  ;;  %v3686_v56 = vld [vmem:[%s4793_s2] sm:$0xff]  ;;  %v3692_v60 = vrot.slane %v3681_v55, %v126_v47  ;;  %v3708_v2 = vrot.slane %v3681_v55, %v3664_v49  ;;  %v3732_v12 = vrot.slane %v3720_v7, %v126_v47  ;;  %v3175_v14 = vld [vmem:[%s4790_s3 + $0xd4] ss:$8 sps:$4 sm:$0xff]   ;;  %v3783_v52 = vrot.slane %v3720_v7, %v3664_v49 }
  0x14   :  { %2393 = vmatpush1.bf16.msra.mxu0 %v3126_v19  ;;  %2182 = vmatprep.subr.bf16.mxu1 %v3127_v20  ;;  %v3169_v57 = vld [vmem:[%s4790_s3 + $0xc4] ss:$8 sps:$4 sm:$0xff]   ;;  %v3695_v61 = vrot.slane %v3686_v56, %v126_v47  ;;  %v3173_v8 = vld [vmem:[%s4790_s3 + $0xc0] ss:$8 sps:$4 sm:$0xff]   ;;  %v3736_v13 = vrot.slane %v3686_v56, %v3664_v49  ;;  %v3177_v19 = vld [vmem:[%s4790_s3 + $0x4d4] ss:$8 sps:$4 sm:$0xff]  }
  0x15   :  { %2394 = vmatprep.subr.bf16.mxu0 %v3129_v21  ;;  %v3171_v62 = vld [vmem:[%s4790_s3 + $0x4c4] ss:$8 sps:$4 sm:$0xff]   ;;  %v201_v3 = vmul.f32 %v3692_v60, %v53_v54  ;;  %v217_v4 = vmul.f32 %v3692_v60, %v69_v59  ;;  %v3174_v9 = vld [vmem:[%s4790_s3 + $0x4c0] ss:$8 sps:$4 sm:$0xff]   ;;  %v200_v18 = vmul.f32 %v3708_v2, %v52_v58  ;;  %v3189_v53 = vld [vmem:[%s4790_s3 + $0x4f4] ss:$8 sps:$4 sm:$0xff]  }
  0x16   :  { %v24_v0 = vld [vmem:[%s4791_s0 + $0x20] sm:$0xff] }
  0x17   :  { %2183 = vmatpush1.bf16.msra.mxu1 %v3131_v22  ;;  %v32_v1 = vld [vmem:[%s4791_s0 + $0x60] sm:$0xff]  ;;  %v61_v5 = vunpack.c.h.bf16 %v24_v0  ;;  %v349_v15 = vadd.f32 %v3695_v61, %v201_v3  ;;  %v365_v16 = vadd.f32 %v3695_v61, %v217_v4  ;;  %v60_v17 = vunpack.c.l.bf16 %v24_v0 }
  0x18   :  { %2395 = vmatpush1.bf16.msra.mxu0 %v3132_v23  ;;  %2184 = vmatprep.subr.bf16.mxu1 %v3133_v24  ;;  %v77_v10 = vunpack.c.h.bf16 %v32_v1  ;;  %v76_v20 = vunpack.c.l.bf16 %v32_v1  ;;  %v216_v23 = vmul.f32 %v3708_v2, %v68_v63  ;;  %v3198_v4 = vld [vmem:[%s4790_s3 + $0x504] ss:$8 sps:$4 sm:$0xff]  }
  0x19   :  { %2396 = vmatprep.subr.bf16.mxu0 %v3135_v25  ;;  %v209_v21 = vmul.f32 %v3729_v11, %v61_v5  ;;  %vm413_vm0 = vcmp.gt.f32.partialorder %v349_v15, 0.0  ;;  %vm429_vm1 = vcmp.gt.f32.partialorder %v365_v16, 0.0  ;;  %v477_v24 = vmul.f32 0.2, %v349_v15 }
  0x1a   :  { %v225_v22 = vmul.f32 %v3729_v11, %v77_v10  ;;  %v493_v25 = vmul.f32 0.2, %v365_v16 }
  0x1b   :  { %2185 = vmatpush1.bf16.msra.mxu1 %v3137_v26  ;;  %v3179_v26 = vld [vmem:[%s4790_s3 + $0xd0] ss:$8 sps:$4 sm:$0xff]  }
  0x1c   :  { %2397 = vmatpush1.bf16.msra.mxu0 %v3138_v27  ;;  %2186 = vmatprep.subr.bf16.mxu1 %v3139_v28  ;;  %v3180_v27 = vld [vmem:[%s4790_s3 + $0x4d0] ss:$8 sps:$4 sm:$0xff]   ;;  %v357_v28 = vadd.f32 %v3732_v12, %v209_v21  ;;  %v3210_v21 = vld [vmem:[%s4790_s3 + $0x524] ss:$8 sps:$4 sm:$0xff]  }
  0x1d   :  { %2398 = vmatprep.subr.bf16.mxu0 %v3141_v29  ;;  %v373_v29 = vadd.f32 %v3732_v12, %v225_v22  ;;  %v3205_v22 = vld [vmem:[%s4790_s3 + $0x120] ss:$8 sps:$4 sm:$0xff]  }
  0x1e   :  { %vm421_vm2 = vcmp.gt.f32.partialorder %v357_v28, 0.0 }
  0x1f   :  { %2187 = vmatpush1.bf16.msra.mxu1 %v3143_v30  ;;  %v348_v30 = vadd.f32 %v3736_v13, %v200_v18  ;;  %vm437_vm3 = vcmp.gt.f32.partialorder %v373_v29, 0.0  ;;  %v3199_v18 = vld [vmem:[%s4790_s3 + $0x110] ss:$8 sps:$4 sm:$0xff]  }
  0x20   :  { %2399 = vmatpush1.bf16.msra.mxu0 %v3144_v31  ;;  %2188 = vmatprep.subr.bf16.mxu1 %v3145_v32  ;;  %v364_v31 = vadd.f32 %v3736_v13, %v216_v23  ;;  %v3181_v32 = vld [vmem:[%s4790_s3 + $0xe4] ss:$8 sps:$4 sm:$0xff]   ;;  %v3208_v23 = vld [vmem:[%s4790_s3 + $0x520] ss:$8 sps:$4 sm:$0xff]  }
  0x21   :  { %2400 = vmatprep.subr.bf16.mxu0 %v3147_v33  ;;  %v3183_v33 = vld [vmem:[%s4790_s3 + $0x4e4] ss:$8 sps:$4 sm:$0xff]   ;;  %vm412_vm4 = vcmp.gt.f32.partialorder %v348_v30, 0.0 }
  0x22   :  { %vm428_vm5 = vcmp.gt.f32.partialorder %v364_v31, 0.0 }
  0x23   :  { %2189 = vmatpush1.bf16.msra.mxu1 %v3149_v34  ;;  %v541_v34 = vsel %vm413_vm0, %v349_v15, %v477_v24  ;;  %v3196_v15 = vld [vmem:[%s4790_s3 + $0x500] ss:$8 sps:$4 sm:$0xff]   ;;  %v3213_v24 = vld [vmem:[%s4790_s3 + $0x134] ss:$8 sps:$4 sm:$0xff]  }
  0x24   :  { %2401 = vmatpush1.bf16.msra.mxu0 %v3150_v35  ;;  %2190 = vmatprep.subr.bf16.mxu1 %v3151_v36  ;;  %v557_v35 = vsel %vm429_vm1, %v365_v16, %v493_v25  ;;  %v3768_v36 = vrot.slane %v3715_v6, %v3664_v49  ;;  %v3192_v49 = vld [vmem:[%s4790_s3 + $0x4f0] ss:$8 sps:$4 sm:$0xff]   ;;  %v3201_v16 = vld [vmem:[%s4790_s3 + $0x114] ss:$8 sps:$4 sm:$0xff]  }
  0x25   :  { %2402 = vmatprep.subr.bf16.mxu0 %v3153_v38  ;;  %v605_v38 = vpack.c.bf16 %v557_v35, %v541_v34  ;;  %v3216_v25 = vld [vmem:[%s4790_s3 + $0x534] ss:$8 sps:$4 sm:$0xff]   ;;  %v3223_v34 = vld [vmem:[%s4790_s3 + $0x150] ss:$8 sps:$4 sm:$0xff]  }
  0x26   :  { %v208_v47 = vmul.f32 %v3768_v36, %v60_v17  ;;  %v3204_v17 = vld [vmem:[%s4790_s3 + $0x514] ss:$8 sps:$4 sm:$0xff]   ;;  %v3226_v35 = vld [vmem:[%s4790_s3 + $0x550] ss:$8 sps:$4 sm:$0xff]  }
  0x27   :  { %2191 = vmatpush1.bf16.msra.mxu1 %v3155_v39  ;;  %v485_v39 = vmul.f32 0.2, %v357_v28  ;;  %2204 = vmatprep.mubr.bf16.mxu1 %v605_v38  ;;  %v3231_v38 = vld [vmem:[%s4790_s3 + $0x164] ss:$8 sps:$4 sm:$0xff]  }
  0x28   :  { %2403 = vmatpush1.bf16.msra.mxu0 %v3156_v40  ;;  %2192 = vmatprep.subr.bf16.mxu1 %v3157_v41  ;;  %v501_v40 = vmul.f32 0.2, %v373_v29  ;;  %v476_v41 = vmul.f32 0.2, %v348_v30  ;;  %v356_v58 = vadd.f32 %v3783_v52, %v208_v47 }
  0x29   :  { %2404 = vmatprep.subr.bf16.mxu0 %v3159_v43  ;;  %v3185_v43 = vld [vmem:[%s4790_s3 + $0xe0] ss:$8 sps:$4 sm:$0xff]  }
  0x2a   :  { %v540_v63 = vsel %vm412_vm4, %v348_v30, %v476_v41  ;;  %vm420_vm6 = vcmp.gt.f32.partialorder %v356_v58, 0.0  ;;  %v484_v1 = vmul.f32 0.2, %v356_v58  ;;  %v3217_v30 = vld [vmem:[%s4790_s3 + $0x140] ss:$8 sps:$4 sm:$0xff]  }
  0x2b   :  { %2193 = vmatpush1.bf16.msra.mxu1 %v3161_v44  ;;  %v3186_v44 = vld [vmem:[%s4790_s3 + $0x4e0] ss:$8 sps:$4 sm:$0xff]  }
  0x2c   :  { %2405 = vmatpush1.bf16.msra.mxu0 %v3162_v45  ;;  %2194 = vmatprep.subr.bf16.mxu1 %v3163_v46  ;;  %v549_v45 = vsel %vm421_vm2, %v357_v28, %v485_v39  ;;  %v492_v46 = vmul.f32 0.2, %v364_v31  ;;  %v548_v5 = vsel %vm420_vm6, %v356_v58, %v484_v1  ;;  %v3219_v28 = vld [vmem:[%s4790_s3 + $0x144] ss:$8 sps:$4 sm:$0xff]  }
  0x2d   :  { %2406 = vmatprep.subr.bf16.mxu0 %v3165_v48  ;;  %v224_v48 = vmul.f32 %v3768_v36, %v76_v20  ;;  %v3207_v20 = vld [vmem:[%s4790_s3 + $0x124] ss:$8 sps:$4 sm:$0xff]  }
  0x2e   :  { %v556_v0 = vsel %vm428_vm5, %v364_v31, %v492_v46  ;;  %v3220_v31 = vld [vmem:[%s4790_s3 + $0x540] ss:$8 sps:$4 sm:$0xff]   ;;  %v3234_v39 = vld [vmem:[%s4790_s3 + $0x564] ss:$8 sps:$4 sm:$0xff]  }
  0x2f   :  { %2195 = vmatpush1.bf16.msra.mxu1 %v3167_v50  ;;  %v3187_v50 = vld [vmem:[%s4790_s3 + $0xf4] ss:$8 sps:$4 sm:$0xff]   ;;  %v372_v59 = vadd.f32 %v3783_v52, %v224_v48  ;;  %v604_v10 = vpack.c.bf16 %v556_v0, %v540_v63  ;;  %v36_v41 = vld [vmem:[%s4791_s0 + $0x80] sm:$0xff] }
  0x30   :  { %2407 = vmatpush1.bf16.msra.mxu0 %v3168_v51  ;;  %2196 = vmatprep.subr.bf16.mxu1 %v3169_v57  ;;  %v565_v51 = vsel %vm437_vm3, %v373_v29, %v501_v40  ;;  %v3191_v57 = vld [vmem:[%s4790_s3 + $0xf0] ss:$8 sps:$4 sm:$0xff]   ;;  %v3222_v29 = vld [vmem:[%s4790_s3 + $0x544] ss:$8 sps:$4 sm:$0xff]   ;;  %v3229_v40 = vld [vmem:[%s4790_s3 + $0x160] ss:$8 sps:$4 sm:$0xff]   ;;  %v85_v46 = vunpack.c.h.bf16 %v36_v41  ;;  %v84_v48 = vunpack.c.l.bf16 %v36_v41 }
  0x31   :  { %2408 = vmatprep.subr.bf16.mxu0 %v3171_v62  ;;  %v613_v54 = vpack.c.bf16 %v565_v51, %v549_v45  ;;  %v3195_v62 = vld [vmem:[%s4790_s3 + $0x104] ss:$8 sps:$4 sm:$0xff]   ;;  %vm436_vm7 = vcmp.gt.f32.partialorder %v372_v59, 0.0  ;;  %v500_v3 = vmul.f32 0.2, %v372_v59 }
  0x32   :  { %v3232_v45 = vld [vmem:[%s4790_s3 + $0x560] ss:$8 sps:$4 sm:$0xff]   ;;  %v3237_v51 = vld [vmem:[%s4790_s3 + $0x174] ss:$8 sps:$4 sm:$0xff]   ;;  %v233_v58 = vmul.f32 %v3692_v60, %v85_v46  ;;  %v232_v63 = vmul.f32 %v3708_v2, %v84_v48 }
  0x33   :  { %2197 = vmatpush1.bf16.msra.mxu1 %v3173_v8  ;;  %2416 = vmatprep.mubr.bf16.mxu0 %v613_v54  ;;  %v564_v8 = vsel %vm436_vm7, %v372_v59, %v500_v3  ;;  %v48_v54 = vld [vmem:[%s4791_s0 + $0xe0] sm:$0xff] }
  0x34   :  { %2409 = vmatpush1.bf16.msra.mxu0 %v3174_v9  ;;  %2198 = vmatprep.subr.bf16.mxu1 %v3175_v14  ;;  %v3193_v9 = vld [vmem:[%s4790_s3 + $0x100] ss:$8 sps:$4 sm:$0xff]   ;;  %v612_v14 = vpack.c.bf16 %v564_v8, %v548_v5  ;;  %v3238_v5 = vld [vmem:[%s4790_s3 + $0x570] ss:$8 sps:$4 sm:$0xff]  }
  0x35   :  { %2410 = vmatprep.subr.bf16.mxu0 %v3177_v19  ;;  %v3202_v19 = vld [vmem:[%s4790_s3 + $0x510] ss:$8 sps:$4 sm:$0xff]  }
  0x37   :  { %2199 = vmatpush1.bf16.msra.mxu1 %v3179_v26  ;;  %v3211_v26 = vld [vmem:[%s4790_s3 + $0x130] ss:$8 sps:$4 sm:$0xff]  }
  0x38   :  { %2411 = vmatpush1.bf16.msra.mxu0 %v3180_v27  ;;  %2200 = vmatprep.subr.bf16.mxu1 %v3181_v32  ;;  %v3214_v27 = vld [vmem:[%s4790_s3 + $0x530] ss:$8 sps:$4 sm:$0xff]   ;;  %v3225_v32 = vld [vmem:[%s4790_s3 + $0x154] ss:$8 sps:$4 sm:$0xff]  }
  0x39   :  { %2412 = vmatprep.subr.bf16.mxu0 %v3183_v33  ;;  %v3228_v33 = vld [vmem:[%s4790_s3 + $0x554] ss:$8 sps:$4 sm:$0xff]  }
  0x3b   :  { %2201 = vmatpush1.bf16.msra.mxu1 %v3185_v43  ;;  %v44_v43 = vld [vmem:[%s4791_s0 + $0xc0] sm:$0xff] }
  0x3c   :  { %2413 = vmatpush1.bf16.msra.mxu0 %v3186_v44  ;;  %2202 = vmatprep.subr.bf16.mxu1 %v3187_v50  ;;  %v3884_v44 = vsub.s32 3, %v3645_v42  ;;  %v101_v47 = vunpack.c.h.bf16 %v44_v43  ;;  %v100_v50 = vunpack.c.l.bf16 %v44_v43  ;;  %v3255_v43 = vld [vmem:[%s4790_s3 + $0x1a4] ss:$8 sps:$4 sm:$0xff]  }
  0x3d   :  { %2414 = vmatprep.subr.bf16.mxu0 %v3189_v53  ;;  %v40_v53 = vld [vmem:[%s4791_s0 + $0xa0] sm:$0xff] }
  0x3e   :  { %v249_v59 = vmul.f32 %v3692_v60, %v101_v47  ;;  %v248_v0 = vmul.f32 %v3708_v2, %v100_v50  ;;  %v92_v1 = vunpack.c.l.bf16 %v40_v53  ;;  %v3907_v3 = vrot.slane %v3681_v55, %v3884_v44 }
  0x3f   :  { %2203 = vmatpush1.bf16.msra.mxu1 %v3191_v57  ;;  %v3240_v57 = vld [vmem:[%s4790_s3 + $0x574] ss:$8 sps:$4 sm:$0xff]   ;;  %v381_v60 = vadd.f32 %v3695_v61, %v233_v58  ;;  %v3976_v50 = vrot.slane %v3686_v56, %v3884_v44 }
  0x40   :  { %2415 = vmatpush1.bf16.msra.mxu0 %v3192_v49  ;;  %2225 = vmatprep.subr.bf16.mxu1 %v3195_v62  ;;  %v93_v49 = vunpack.c.h.bf16 %v40_v53  ;;  %v109_v62 = vunpack.c.h.bf16 %v48_v54  ;;  %v397_v8 = vadd.f32 %v3695_v61, %v249_v59  ;;  %v240_v61 = vmul.f32 %v3768_v36, %v92_v1  ;;  %v3988_v59 = vld [vmem:[%s4791_s0 + $0x68] sm:$0xff] }
  0x41   :  { %2437 = vmatprep.subr.bf16.mxu0 %v3198_v4  ;;  %v3235_v4 = vld [vmem:[%s4790_s3 + $0x170] ss:$8 sps:$4 sm:$0xff]   ;;  %vm445_vm8 = vcmp.gt.f32.partialorder %v381_v60, 0.0  ;;  %v3256_v1 = vld [vmem:[%s4790_s3 + $0x5a0] ss:$8 sps:$4 sm:$0xff]  }
  0x42   :  { %2205 = vmatmul.mubr.bf16.vlgmr.msra.gmra.mrb[0].mxu1 %v604_v10  ;;  %v257_v2 = vmul.f32 %v3729_v11, %v109_v62  ;;  %v3243_v10 = vld [vmem:[%s4790_s3 + $0x184] ss:$8 sps:$4 sm:$0xff]   ;;  %vm461_vm9 = vcmp.gt.f32.partialorder %v397_v8, 0.0  ;;  %v388_v41 = vadd.f32 %v3783_v52, %v240_v61 }
  0x43   :  { %2417 = vmatmul.mubr.bf16.vlgmr.msra.gmra.mrb[0].mxu0 %v612_v14  ;;  %2226 = vmatpush1.bf16.msra.mxu1 %v3193_v9  ;;  %v241_v9 = vmul.f32 %v3729_v11, %v93_v49  ;;  %v3246_v14 = vld [vmem:[%s4790_s3 + $0x584] ss:$8 sps:$4 sm:$0xff]   ;;  %v509_v11 = vmul.f32 0.2, %v381_v60  ;;  %v3992_v49 = vrot.slane %v3715_v6, %v3884_v44 }
  0x44   :  { %2438 = vmatpush1.bf16.msra.mxu0 %v3196_v15  ;;  %2227 = vmatprep.subr.bf16.mxu1 %v3201_v16  ;;  %v380_v15 = vadd.f32 %v3736_v13, %v232_v63  ;;  %v396_v16 = vadd.f32 %v3736_v13, %v248_v0  ;;  %v405_v13 = vadd.f32 %v3732_v12, %v257_v2  ;;  %vm452_vm14 = vcmp.gt.f32.partialorder %v388_v41, 0.0  ;;  %v3253_v0 = vld [vmem:[%s4790_s3 + $0x1a0] ss:$8 sps:$4 sm:$0xff]   ;;  %v3264_v2 = vld [vmem:[%s4790_s3 + $0x5b4] ss:$8 sps:$4 sm:$0xff]  }
  0x45   :  { %2439 = vmatprep.subr.bf16.mxu0 %v3204_v17  ;;  %v108_v17 = vunpack.c.l.bf16 %v48_v54  ;;  %v516_v53 = vmul.f32 0.2, %v388_v41 }
  0x46   :  { %vm444_vm10 = vcmp.gt.f32.partialorder %v380_v15, 0.0  ;;  %vm460_vm11 = vcmp.gt.f32.partialorder %v396_v16, 0.0  ;;  %vm469_vm13 = vcmp.gt.f32.partialorder %v405_v13, 0.0 }
  0x47   :  { %2228 = vmatpush1.bf16.msra.mxu1 %v3199_v18  ;;  %v525_v18 = vmul.f32 0.2, %v397_v8  ;;  %v580_v62 = vsel %vm452_vm14, %v388_v41, %v516_v53  ;;  %v3276_v41 = vld [vmem:[%s4790_s3 + $0x5d4] ss:$8 sps:$4 sm:$0xff]   ;;  %v3279_v53 = vld [vmem:[%s4790_s3 + $0x1e4] ss:$8 sps:$4 sm:$0xff]  }
  0x48   :  { %2440 = vmatpush1.bf16.msra.mxu0 %v3202_v19  ;;  %2229 = vmatprep.subr.bf16.mxu1 %v3207_v20  ;;  %v3241_v19 = vld [vmem:[%s4790_s3 + $0x180] ss:$8 sps:$4 sm:$0xff]  }
  0x49   :  { %2441 = vmatprep.subr.bf16.mxu0 %v3210_v21  ;;  %v3244_v20 = vld [vmem:[%s4790_s3 + $0x580] ss:$8 sps:$4 sm:$0xff]   ;;  %v389_v21 = vadd.f32 %v3732_v12, %v241_v9  ;;  %v3261_v9 = vld [vmem:[%s4790_s3 + $0x1b4] ss:$8 sps:$4 sm:$0xff]  }
  0x4a   :  { %v3942_v12 = vld [vmem:[%s4791_s0 + $0x8] sm:$0xff] }
  0x4b   :  { %2230 = vmatpush1.bf16.msra.mxu1 %v3205_v22  ;;  %v3249_v22 = vld [vmem:[%s4790_s3 + $0x194] ss:$8 sps:$4 sm:$0xff]   ;;  %vm453_vm12 = vcmp.gt.f32.partialorder %v389_v21, 0.0  ;;  %v55_v48 = vunpack.c.h.bf16 %v3942_v12 }
  0x4c   :  { %2442 = vmatpush1.bf16.msra.mxu0 %v3208_v23  ;;  %2231 = vmatprep.subr.bf16.mxu1 %v3213_v24  ;;  %v573_v23 = vsel %vm445_vm8, %v381_v60, %v509_v11  ;;  %v589_v24 = vsel %vm461_vm9, %v397_v8, %v525_v18  ;;  %v4005_v8 = vrot.slane %v3720_v7, %v3884_v44 }
  0x4d   :  { %2443 = vmatprep.subr.bf16.mxu0 %v3216_v25  ;;  %v508_v25 = vmul.f32 0.2, %v380_v15  ;;  %v203_v58 = vmul.f32 %v3907_v3, %v55_v48 }
  0x4f   :  { %2232 = vmatpush1.bf16.msra.mxu1 %v3211_v26  ;;  %v524_v26 = vmul.f32 0.2, %v396_v16 }
  0x50   :  { %2444 = vmatpush1.bf16.msra.mxu0 %v3214_v27  ;;  %2233 = vmatprep.subr.bf16.mxu1 %v3219_v28  ;;  %v621_v27 = vpack.c.bf16 %v589_v24, %v573_v23  ;;  %v517_v28 = vmul.f32 0.2, %v389_v21 }
  0x51   :  { %2445 = vmatprep.subr.bf16.mxu0 %v3222_v29  ;;  %v3252_v29 = vld [vmem:[%s4790_s3 + $0x594] ss:$8 sps:$4 sm:$0xff]  }
  0x52   :  { %2214 = vmatprep.mubr.bf16.mxu1 %v621_v27  ;;  %v3270_v27 = vld [vmem:[%s4790_s3 + $0x5c4] ss:$8 sps:$4 sm:$0xff]  }
  0x53   :  { %2234 = vmatpush1.bf16.msra.mxu1 %v3217_v30  ;;  %v533_v30 = vmul.f32 0.2, %v405_v13 }
  0x54   :  { %2446 = vmatpush1.bf16.msra.mxu0 %v3220_v31  ;;  %2235 = vmatprep.subr.bf16.mxu1 %v3225_v32  ;;  %v572_v31 = vsel %vm444_vm10, %v380_v15, %v508_v25  ;;  %v588_v32 = vsel %vm460_vm11, %v396_v16, %v524_v26  ;;  %v79_v15 = vunpack.c.h.bf16 %v3988_v59  ;;  %v78_v25 = vunpack.c.l.bf16 %v3988_v59 }
  0x55   :  { %2447 = vmatprep.subr.bf16.mxu0 %v3228_v33  ;;  %v256_v33 = vmul.f32 %v3768_v36, %v108_v17  ;;  %v3963_v36 = vsub.s32 2, %v3645_v42  ;;  %v597_v46 = vsel %vm469_vm13, %v405_v13, %v533_v30 }
  0x56   :  { %v227_v18 = vmul.f32 %v3992_v49, %v79_v15  ;;  %v3294_v15 = vld [vmem:[%s4790_s3 + $0x604] ss:$8 sps:$4 sm:$0xff]  }
  0x57   :  { %2236 = vmatpush1.bf16.msra.mxu1 %v3223_v34  ;;  %v3953_v34 = vld [vmem:[%s4791_s0 + $0x48] sm:$0xff]  ;;  %v404_v47 = vadd.f32 %v3783_v52, %v256_v33  ;;  %v4017_v44 = vrot.slane %v3681_v55, %v3963_v36  ;;  %v4022_v11 = vrot.slane %v3715_v6, %v3963_v36  ;;  %v3262_v55 = vld [vmem:[%s4790_s3 + $0x5b0] ss:$8 sps:$4 sm:$0xff]   ;;  %v4045_v30 = vrot.slane %v3686_v56, %v3963_v36 }
  0x58   :  { %2448 = vmatpush1.bf16.msra.mxu0 %v3226_v35  ;;  %2237 = vmatprep.subr.bf16.mxu1 %v3231_v38  ;;  %v3247_v35 = vld [vmem:[%s4790_s3 + $0x190] ss:$8 sps:$4 sm:$0xff]   ;;  %v71_v54 = vunpack.c.h.bf16 %v3953_v34  ;;  %v70_v13 = vunpack.c.l.bf16 %v3953_v34  ;;  %v375_v26 = vadd.f32 %v4005_v8, %v227_v18  ;;  %v4051_v34 = vrot.slane %v3720_v7, %v3963_v36  ;;  %v3268_v56 = vld [vmem:[%s4790_s3 + $0x5c0] ss:$8 sps:$4 sm:$0xff]   ;;  %v3273_v7 = vld [vmem:[%s4790_s3 + $0x1d4] ss:$8 sps:$4 sm:$0xff]  }
  0x59   :  { %2449 = vmatprep.subr.bf16.mxu0 %v3234_v39  ;;  %v3250_v38 = vld [vmem:[%s4790_s3 + $0x590] ss:$8 sps:$4 sm:$0xff]   ;;  %v581_v39 = vsel %vm453_vm12, %v389_v21, %v517_v28  ;;  %vm468_vm15 = vcmp.gt.f32.partialorder %v404_v47, 0.0  ;;  %v532_v52 = vmul.f32 0.2, %v404_v47  ;;  %v54_v21 = vunpack.c.l.bf16 %v3942_v12 }
  0x5a   :  { %v219_v63 = vmul.f32 %v3907_v3, %v71_v54  ;;  %vm439_vm3 = vcmp.gt.f32.partialorder %v375_v26, 0.0  ;;  %v3282_v54 = vld [vmem:[%s4790_s3 + $0x5e4] ss:$8 sps:$4 sm:$0xff]   ;;  %v3292_v18 = vld [vmem:[%s4790_s3 + $0x600] ss:$8 sps:$4 sm:$0xff]  }
  0x5b   :  { %2238 = vmatpush1.bf16.msra.mxu1 %v3229_v40  ;;  %v620_v40 = vpack.c.bf16 %v588_v32, %v572_v31  ;;  %v202_v31 = vmul.f32 %v4017_v44, %v54_v21  ;;  %v218_v32 = vmul.f32 %v4017_v44, %v70_v13  ;;  %v3298_v21 = vld [vmem:[%s4790_s3 + $0x610] ss:$8 sps:$4 sm:$0xff]   ;;  %v3303_v13 = vld [vmem:[%s4790_s3 + $0x224] ss:$8 sps:$4 sm:$0xff]  }
  0x5c   :  { %2450 = vmatpush1.bf16.msra.mxu0 %v3232_v45  ;;  %2239 = vmatprep.subr.bf16.mxu1 %v3237_v51  ;;  %v3258_v45 = vld [vmem:[%s4790_s3 + $0x5a4] ss:$8 sps:$4 sm:$0xff]   ;;  %v629_v51 = vpack.c.bf16 %v597_v46, %v581_v39  ;;  %v226_v39 = vmul.f32 %v4022_v11, %v78_v25  ;;  %v3271_v46 = vld [vmem:[%s4790_s3 + $0x1d0] ss:$8 sps:$4 sm:$0xff]   ;;  %v3309_v25 = vld [vmem:[%s4790_s3 + $0x234] ss:$8 sps:$4 sm:$0xff]  }
  0x5d   :  { %2451 = vmatprep.subr.bf16.mxu0 %v3240_v57  ;;  %v3982_v57 = vld [vmem:[%s4791_s0 + $0x28] sm:$0xff]  ;;  %2215 = vmatmul.mubr.bf16.gmra.mrb[4].mxu1 %v620_v40 }
  0x5e   :  { %2426 = vmatprep.mubr.bf16.mxu0 %v629_v51  ;;  %v63_v60 = vunpack.c.h.bf16 %v3982_v57  ;;  %v62_v24 = vunpack.c.l.bf16 %v3982_v57  ;;  %v374_v51 = vadd.f32 %v4051_v34, %v226_v39  ;;  %v3277_v57 = vld [vmem:[%s4790_s3 + $0x1e0] ss:$8 sps:$4 sm:$0xff]  }
  0x5f   :  { %2240 = vmatpush1.bf16.msra.mxu1 %v3235_v4  ;;  %v596_v4 = vsel %vm468_vm15, %v404_v47, %v532_v52  ;;  %v3274_v47 = vld [vmem:[%s4790_s3 + $0x5d0] ss:$8 sps:$4 sm:$0xff]   ;;  %v3280_v52 = vld [vmem:[%s4790_s3 + $0x5e0] ss:$8 sps:$4 sm:$0xff]  }
  0x60   :  { %2452 = vmatpush1.bf16.msra.mxu0 %v3238_v5  ;;  %2241 = vmatprep.subr.bf16.mxu1 %v3243_v10  ;;  %v351_v5 = vadd.f32 %v3976_v50, %v203_v58  ;;  %v628_v10 = vpack.c.bf16 %v596_v4, %v580_v62  ;;  %v211_v17 = vmul.f32 %v3992_v49, %v63_v60  ;;  %v3285_v58 = vld [vmem:[%s4790_s3 + $0x1f4] ss:$8 sps:$4 sm:$0xff]   ;;  %vm438_vm7 = vcmp.gt.f32.partialorder %v374_v51, 0.0  ;;  %v3286_v60 = vld [vmem:[%s4790_s3 + $0x5f0] ss:$8 sps:$4 sm:$0xff]   ;;  %v49_v39 = vld [vmem:[%s4791_s0 + $0xe8] sm:$0xff] }
  0x61   :  { %2453 = vmatprep.subr.bf16.mxu0 %v3246_v14  ;;  %v367_v14 = vadd.f32 %v3976_v50, %v219_v63 }
  0x62   :  { %vm415_vm0 = vcmp.gt.f32.partialorder %v351_v5, 0.0  ;;  %v479_v16 = vmul.f32 0.2, %v351_v5  ;;  %2427 = vmatmul.mubr.bf16.gmra.mrb[4].mxu0 %v628_v10 }
  0x63   :  { %2242 = vmatpush1.bf16.msra.mxu1 %v3241_v19  ;;  %vm431_vm1 = vcmp.gt.f32.partialorder %v367_v14, 0.0  ;;  %v495_v61 = vmul.f32 0.2, %v367_v14  ;;  %v3259_v19 = vld [vmem:[%s4790_s3 + $0x1b0] ss:$8 sps:$4 sm:$0xff]  }
  0x64   :  { %2454 = vmatpush1.bf16.msra.mxu0 %v3244_v20  ;;  %2243 = vmatprep.subr.bf16.mxu1 %v3249_v22  ;;  %v3267_v20 = vld [vmem:[%s4790_s3 + $0x1c4] ss:$8 sps:$4 sm:$0xff]   ;;  %v543_v6 = vsel %vm415_vm0, %v351_v5, %v479_v16  ;;  %v359_v22 = vadd.f32 %v4005_v8, %v211_v17  ;;  %v3283_v5 = vld [vmem:[%s4790_s3 + $0x1f0] ss:$8 sps:$4 sm:$0xff]  }
  0x65   :  { %2455 = vmatprep.subr.bf16.mxu0 %v3252_v29  ;;  %v559_v23 = vsel %vm431_vm1, %v367_v14, %v495_v61  ;;  %v503_v29 = vmul.f32 0.2, %v375_v26  ;;  %v3291_v14 = vld [vmem:[%s4790_s3 + $0x204] ss:$8 sps:$4 sm:$0xff]   ;;  %v3289_v61 = vld [vmem:[%s4790_s3 + $0x200] ss:$8 sps:$4 sm:$0xff]  }
  0x66   :  { %v607_v28 = vpack.c.bf16 %v559_v23, %v543_v6  ;;  %vm423_vm2 = vcmp.gt.f32.partialorder %v359_v22, 0.0  ;;  %v487_v12 = vmul.f32 0.2, %v359_v22  ;;  %v3306_v6 = vld [vmem:[%s4790_s3 + $0x624] ss:$8 sps:$4 sm:$0xff]   ;;  %v4135_v23 = vsub.s32 5, %v3645_v42 }
  0x67   :  { %2244 = vmatpush1.bf16.msra.mxu1 %v3247_v35  ;;  %v3265_v35 = vld [vmem:[%s4790_s3 + $0x1c0] ss:$8 sps:$4 sm:$0xff]   ;;  %v567_v40 = vsel %vm439_vm3, %v375_v26, %v503_v29  ;;  %v3312_v26 = vld [vmem:[%s4790_s3 + $0x634] ss:$8 sps:$4 sm:$0xff]  }
  0x68   :  { %2456 = vmatpush1.bf16.msra.mxu0 %v3250_v38  ;;  %2245 = vmatprep.subr.bf16.mxu1 %v3255_v43  ;;  %v551_v33 = vsel %vm423_vm2, %v359_v22, %v487_v12  ;;  %v210_v38 = vmul.f32 %v4022_v11, %v62_v24  ;;  %v350_v43 = vadd.f32 %v4045_v30, %v202_v31  ;;  %v3301_v22 = vld [vmem:[%s4790_s3 + $0x220] ss:$8 sps:$4 sm:$0xff]  }
  0x69   :  { %2457 = vmatprep.subr.bf16.mxu0 %v3258_v45  ;;  %2257 = vmatprep.mubr.bf16.mxu1 %v607_v28  ;;  %v615_v36 = vpack.c.bf16 %v567_v40, %v551_v33  ;;  %v366_v45 = vadd.f32 %v4045_v30, %v218_v32  ;;  %v3304_v24 = vld [vmem:[%s4790_s3 + $0x620] ss:$8 sps:$4 sm:$0xff]  }
  0x6a   :  { %v358_v48 = vadd.f32 %v4051_v34, %v210_v38  ;;  %v478_v59 = vmul.f32 0.2, %v350_v43  ;;  %vm414_vm4 = vcmp.gt.f32.partialorder %v350_v43, 0.0  ;;  %v45_v28 = vld [vmem:[%s4791_s0 + $0xc8] sm:$0xff] }
  0x6b   :  { %2246 = vmatpush1.bf16.msra.mxu1 %v3253_v0  ;;  %2469 = vmatprep.mubr.bf16.mxu0 %v615_v36  ;;  %v494_v62 = vmul.f32 0.2, %v366_v45  ;;  %v502_v0 = vmul.f32 0.2, %v374_v51  ;;  %vm430_vm5 = vcmp.gt.f32.partialorder %v366_v45, 0.0  ;;  %v103_v31 = vunpack.c.h.bf16 %v45_v28  ;;  %v41_v32 = vld [vmem:[%s4791_s0 + $0xa8] sm:$0xff] }
  0x6c   :  { %2458 = vmatpush1.bf16.msra.mxu0 %v3256_v1  ;;  %2247 = vmatprep.subr.bf16.mxu1 %v3261_v9  ;;  %v486_v63 = vmul.f32 0.2, %v358_v48  ;;  %v3288_v1 = vld [vmem:[%s4790_s3 + $0x5f4] ss:$8 sps:$4 sm:$0xff]   ;;  %vm422_vm6 = vcmp.gt.f32.partialorder %v358_v48, 0.0  ;;  %v542_v4 = vsel %vm414_vm4, %v350_v43, %v478_v59  ;;  %v102_v33 = vunpack.c.l.bf16 %v45_v28 }
  0x6d   :  { %2459 = vmatprep.subr.bf16.mxu0 %v3264_v2  ;;  %v558_v9 = vsel %vm430_vm5, %v366_v45, %v494_v62  ;;  %v566_v10 = vsel %vm438_vm7, %v374_v51, %v502_v0  ;;  %v95_v40 = vunpack.c.h.bf16 %v41_v32  ;;  %v3307_v36 = vld [vmem:[%s4790_s3 + $0x230] ss:$8 sps:$4 sm:$0xff]   ;;  %v251_v45 = vmul.f32 %v3907_v3, %v103_v31  ;;  %v3316_v59 = vld [vmem:[%s4790_s3 + $0x640] ss:$8 sps:$4 sm:$0xff]  }
  0x6e   :  { %v550_v2 = vsel %vm422_vm6, %v358_v48, %v486_v63  ;;  %v606_v16 = vpack.c.bf16 %v558_v9, %v542_v4  ;;  %v3310_v43 = vld [vmem:[%s4790_s3 + $0x630] ss:$8 sps:$4 sm:$0xff]   ;;  %v4180_v48 = vld [vmem:[%s4793_s2] sm:$0xff]  ;;  %v3321_v4 = vld [vmem:[%s4790_s3 + $0x254] ss:$8 sps:$4 sm:$0xff]  }
  0x6f   :  { %2248 = vmatpush1.bf16.msra.mxu1 %v3259_v19  ;;  %v614_v17 = vpack.c.bf16 %v566_v10, %v550_v2  ;;  %v3297_v19 = vld [vmem:[%s4790_s3 + $0x214] ss:$8 sps:$4 sm:$0xff]   ;;  %v4184_v51 = vrot.slane %v4180_v48, %v4135_v23  ;;  %v399_v62 = vadd.f32 %v3976_v50, %v251_v45 }
  0x70   :  { %2460 = vmatpush1.bf16.msra.mxu0 %v3262_v55  ;;  %2249 = vmatprep.subr.bf16.mxu1 %v3267_v20  ;;  %v3300_v55 = vld [vmem:[%s4790_s3 + $0x614] ss:$8 sps:$4 sm:$0xff]   ;;  %v3295_v20 = vld [vmem:[%s4790_s3 + $0x210] ss:$8 sps:$4 sm:$0xff]  }
  0x71   :  { %2461 = vmatprep.subr.bf16.mxu0 %v3270_v27  ;;  %v37_v27 = vld [vmem:[%s4791_s0 + $0x88] sm:$0xff]  ;;  %vm463_vm10 = vcmp.gt.f32.partialorder %v399_v62, 0.0  ;;  %v3336_v45 = vld [vmem:[%s4790_s3 + $0x674] ss:$8 sps:$4 sm:$0xff]  }
  0x72   :  { %v87_v12 = vunpack.c.h.bf16 %v37_v27  ;;  %v86_v29 = vunpack.c.l.bf16 %v37_v27 }
  0x73   :  { %2250 = vmatpush1.bf16.msra.mxu1 %v3265_v35  ;;  %v4158_v35 = vld [vmem:[%s4792_s1] sm:$0xff] }
  0x74   :  { %2462 = vmatpush1.bf16.msra.mxu0 %v3268_v56  ;;  %2251 = vmatprep.subr.bf16.mxu1 %v3273_v7  ;;  %v4162_v56 = vrot.slane %v4158_v35, %v4135_v23  ;;  %v235_v38 = vmul.f32 %v3907_v3, %v87_v12  ;;  %v234_v7 = vmul.f32 %v4017_v44, %v86_v29  ;;  %v3318_v3 = vld [vmem:[%s4790_s3 + $0x644] ss:$8 sps:$4 sm:$0xff]   ;;  %v3325_v12 = vld [vmem:[%s4790_s3 + $0x260] ss:$8 sps:$4 sm:$0xff]  }
  0x75   :  { %2463 = vmatprep.subr.bf16.mxu0 %v3276_v41  ;;  %v94_v41 = vunpack.c.l.bf16 %v41_v32  ;;  %v4248_v32 = vld [vmem:[%s4791_s0 + $0x30] sm:$0xff] }
  0x77   :  { %2252 = vmatpush1.bf16.msra.mxu1 %v3271_v46  ;;  %v111_v46 = vunpack.c.h.bf16 %v49_v39 }
  0x78   :  { %2464 = vmatpush1.bf16.msra.mxu0 %v3274_v47  ;;  %2253 = vmatprep.subr.bf16.mxu1 %v3279_v53  ;;  %v250_v47 = vmul.f32 %v4017_v44, %v102_v33  ;;  %v3315_v53 = vld [vmem:[%s4790_s3 + $0x244] ss:$8 sps:$4 sm:$0xff]   ;;  %v383_v44 = vadd.f32 %v3976_v50, %v235_v38  ;;  %v527_v50 = vmul.f32 0.2, %v399_v62  ;;  %v4254_v38 = vld [vmem:[%s4791_s0 + $0x70] sm:$0xff] }
  0x79   :  { %2465 = vmatprep.subr.bf16.mxu0 %v3282_v54  ;;  %v243_v54 = vmul.f32 %v3992_v49, %v95_v40  ;;  %v259_v63 = vmul.f32 %v3992_v49, %v111_v46 }
  0x7a   :  { %v398_v0 = vadd.f32 %v4045_v30, %v250_v47  ;;  %vm447_vm8 = vcmp.gt.f32.partialorder %v383_v44, 0.0 }
  0x7b   :  { %2254 = vmatpush1.bf16.msra.mxu1 %v3277_v57  ;;  %v382_v57 = vadd.f32 %v4045_v30, %v234_v7  ;;  %v391_v9 = vadd.f32 %v4005_v8, %v243_v54  ;;  %v407_v49 = vadd.f32 %v4005_v8, %v259_v63  ;;  %v4216_v30 = vld [vmem:[%s4791_s0 + $0x10] sm:$0xff]  ;;  %v3328_v7 = vld [vmem:[%s4790_s3 + $0x660] ss:$8 sps:$4 sm:$0xff]  }
  0x7c   :  { %2466 = vmatpush1.bf16.msra.mxu0 %v3280_v52  ;;  %2255 = vmatprep.subr.bf16.mxu1 %v3285_v58  ;;  %v110_v52 = vunpack.c.l.bf16 %v49_v39  ;;  %v3313_v58 = vld [vmem:[%s4790_s3 + $0x240] ss:$8 sps:$4 sm:$0xff]   ;;  %vm462_vm11 = vcmp.gt.f32.partialorder %v398_v0, 0.0  ;;  %v3319_v8 = vld [vmem:[%s4790_s3 + $0x250] ss:$8 sps:$4 sm:$0xff]   ;;  %v57_v28 = vunpack.c.h.bf16 %v4216_v30 }
  0x7d   :  { %2467 = vmatprep.subr.bf16.mxu0 %v3288_v1  ;;  %v242_v1 = vmul.f32 %v4022_v11, %v94_v41  ;;  %vm446_vm9 = vcmp.gt.f32.partialorder %v382_v57, 0.0  ;;  %vm455_vm12 = vcmp.gt.f32.partialorder %v391_v9, 0.0  ;;  %v519_v10 = vmul.f32 0.2, %v391_v9  ;;  %v4259_v39 = vld [vmem:[%s4792_s1 + $0x8] sm:$0xff] }
  0x7e   :  { %vm471_vm13 = vcmp.gt.f32.partialorder %v407_v49, 0.0  ;;  %v205_v33 = vmul.f32 %v4162_v56, %v57_v28  ;;  %v4263_v40 = vrot.slane %v4259_v39, %v4135_v23  ;;  %v3333_v41 = vld [vmem:[%s4790_s3 + $0x274] ss:$8 sps:$4 sm:$0xff]  }
  0x7f   :  { %2256 = vmatpush1.bf16.msra.mxu1 %v3283_v5  ;;  %v3324_v5 = vld [vmem:[%s4790_s3 + $0x654] ss:$8 sps:$4 sm:$0xff]  }
  0x80   :  { %2468 = vmatpush1.bf16.msra.mxu0 %v3286_v60  ;;  %2278 = vmatprep.subr.bf16.mxu1 %v3291_v14  ;;  %v511_v60 = vmul.f32 0.2, %v383_v44  ;;  %v510_v14 = vmul.f32 0.2, %v382_v57  ;;  %v353_v47 = vadd.f32 %v4184_v51, %v205_v33  ;;  %v3360_v28 = vld [vmem:[%s4790_s3 + $0x6b4] ss:$8 sps:$4 sm:$0xff]  }
  0x81   :  { %2490 = vmatprep.subr.bf16.mxu0 %v3294_v15  ;;  %v591_v15 = vsel %vm463_vm10, %v399_v62, %v527_v50 }
  0x82   :  { %2258 = vmatmul.mubr.bf16.vlgmr.msra.gmra.mrb[0].mxu1 %v606_v16  ;;  %v575_v2 = vsel %vm447_vm8, %v383_v44, %v511_v60  ;;  %v535_v16 = vmul.f32 0.2, %v407_v49  ;;  %vm417_vm0 = vcmp.gt.f32.partialorder %v353_v47, 0.0 }
  0x83   :  { %2470 = vmatmul.mubr.bf16.vlgmr.msra.gmra.mrb[0].mxu0 %v614_v17  ;;  %2279 = vmatpush1.bf16.msra.mxu1 %v3289_v61  ;;  %v526_v17 = vmul.f32 0.2, %v398_v0  ;;  %v623_v61 = vpack.c.bf16 %v591_v15, %v575_v2 }
  0x84   :  { %2491 = vmatpush1.bf16.msra.mxu0 %v3292_v18  ;;  %2280 = vmatprep.subr.bf16.mxu1 %v3297_v19  ;;  %v583_v18 = vsel %vm455_vm12, %v391_v9, %v519_v10  ;;  %v574_v19 = vsel %vm446_vm9, %v382_v57, %v510_v14  ;;  %v3340_v14 = vld [vmem:[%s4790_s3 + $0x680] ss:$8 sps:$4 sm:$0xff]  }
  0x85   :  { %2492 = vmatprep.subr.bf16.mxu0 %v3300_v55  ;;  %v258_v55 = vmul.f32 %v4022_v11, %v110_v52  ;;  %v3327_v11 = vld [vmem:[%s4790_s3 + $0x264] ss:$8 sps:$4 sm:$0xff]   ;;  %2267 = vmatprep.mubr.bf16.mxu1 %v623_v61  ;;  %v81_v52 = vunpack.c.h.bf16 %v4254_v38 }
  0x87   :  { %2281 = vmatpush1.bf16.msra.mxu1 %v3295_v20  ;;  %v4226_v20 = vld [vmem:[%s4791_s0 + $0x50] sm:$0xff]  ;;  %v406_v27 = vadd.f32 %v4051_v34, %v258_v55 }
  0x88   :  { %2493 = vmatpush1.bf16.msra.mxu0 %v3298_v21  ;;  %2282 = vmatprep.subr.bf16.mxu1 %v3303_v13  ;;  %v3322_v21 = vld [vmem:[%s4790_s3 + $0x650] ss:$8 sps:$4 sm:$0xff]   ;;  %v599_v13 = vsel %vm471_vm13, %v407_v49, %v535_v16  ;;  %v73_v31 = vunpack.c.h.bf16 %v4226_v20  ;;  %v3337_v49 = vld [vmem:[%s4790_s3 + $0x280] ss:$8 sps:$4 sm:$0xff]   ;;  %v3345_v16 = vld [vmem:[%s4790_s3 + $0x294] ss:$8 sps:$4 sm:$0xff]  }
  0x89   :  { %2494 = vmatprep.subr.bf16.mxu0 %v3306_v6  ;;  %v590_v6 = vsel %vm462_vm11, %v398_v0, %v526_v17  ;;  %vm470_vm15 = vcmp.gt.f32.partialorder %v406_v27, 0.0  ;;  %v229_v0 = vmul.f32 %v4263_v40, %v81_v52  ;;  %v3348_v17 = vld [vmem:[%s4790_s3 + $0x694] ss:$8 sps:$4 sm:$0xff]   ;;  %v3343_v55 = vld [vmem:[%s4790_s3 + $0x290] ss:$8 sps:$4 sm:$0xff]  }
  0x8b   :  { %2283 = vmatpush1.bf16.msra.mxu1 %v3301_v22  ;;  %v390_v22 = vadd.f32 %v4051_v34, %v242_v1  ;;  %v534_v34 = vmul.f32 0.2, %v406_v27  ;;  %v3339_v1 = vld [vmem:[%s4790_s3 + $0x284] ss:$8 sps:$4 sm:$0xff]  }
  0x8c   :  { %2495 = vmatpush1.bf16.msra.mxu0 %v3304_v24  ;;  %2284 = vmatprep.subr.bf16.mxu1 %v3309_v25  ;;  %v3330_v24 = vld [vmem:[%s4790_s3 + $0x664] ss:$8 sps:$4 sm:$0xff]   ;;  %v631_v25 = vpack.c.bf16 %v599_v13, %v583_v18  ;;  %v138_v18 = vsub.s32 4, %v3645_v42 }
  0x8d   :  { %2496 = vmatprep.subr.bf16.mxu0 %v3312_v26  ;;  %v622_v26 = vpack.c.bf16 %v590_v6, %v574_v19  ;;  %vm454_vm14 = vcmp.gt.f32.partialorder %v390_v22, 0.0  ;;  %v518_v29 = vmul.f32 0.2, %v390_v22  ;;  %v598_v46 = vsel %vm470_vm15, %v406_v27, %v534_v34  ;;  %v3351_v13 = vld [vmem:[%s4790_s3 + $0x2a4] ss:$8 sps:$4 sm:$0xff]  }
  0x8e   :  { %2479 = vmatprep.mubr.bf16.mxu0 %v631_v25  ;;  %v3354_v6 = vld [vmem:[%s4790_s3 + $0x6a4] ss:$8 sps:$4 sm:$0xff]   ;;  %v4338_v25 = vrot.slane %v4158_v35, %v138_v18  ;;  %v72_v27 = vunpack.c.l.bf16 %v4226_v20  ;;  %v3358_v20 = vld [vmem:[%s4790_s3 + $0x6b0] ss:$8 sps:$4 sm:$0xff]   ;;  %v4360_v33 = vrot.slane %v4180_v48, %v138_v18 }
  0x8f   :  { %2285 = vmatpush1.bf16.msra.mxu1 %v3307_v36  ;;  %v582_v36 = vsel %vm454_vm14, %v390_v22, %v518_v29  ;;  %v3349_v22 = vld [vmem:[%s4790_s3 + $0x2a0] ss:$8 sps:$4 sm:$0xff]   ;;  %v4350_v29 = vrot.slane %v4259_v39, %v138_v18 }
  0x90   :  { %2497 = vmatpush1.bf16.msra.mxu0 %v3310_v43  ;;  %2286 = vmatprep.subr.bf16.mxu1 %v3315_v53  ;;  %v221_v43 = vmul.f32 %v4162_v56, %v73_v31  ;;  %v65_v53 = vunpack.c.h.bf16 %v4248_v32  ;;  %v630_v54 = vpack.c.bf16 %v598_v46, %v582_v36  ;;  %v3355_v31 = vld [vmem:[%s4790_s3 + $0x2b0] ss:$8 sps:$4 sm:$0xff]   ;;  %v3364_v46 = vld [vmem:[%s4790_s3 + $0x6c0] ss:$8 sps:$4 sm:$0xff]  }
  0x91   :  { %2498 = vmatprep.subr.bf16.mxu0 %v3318_v3  ;;  %2268 = vmatmul.mubr.bf16.gmra.mrb[4].mxu1 %v622_v26  ;;  %v4281_v3 = vld [vmem:[%s4793_s2 + $0x8] sm:$0xff]  ;;  %v3357_v26 = vld [vmem:[%s4790_s3 + $0x2b4] ss:$8 sps:$4 sm:$0xff]  }
  0x92   :  { %v4285_v44 = vrot.slane %v4281_v3, %v4135_v23  ;;  %v369_v57 = vadd.f32 %v4184_v51, %v221_v43  ;;  %v213_v62 = vmul.f32 %v4263_v40, %v65_v53  ;;  %v3334_v23 = vld [vmem:[%s4790_s3 + $0x670] ss:$8 sps:$4 sm:$0xff]   ;;  %2480 = vmatmul.mubr.bf16.gmra.mrb[4].mxu0 %v630_v54  ;;  %v4372_v43 = vrot.slane %v4281_v3, %v138_v18  ;;  %v3369_v53 = vld [vmem:[%s4790_s3 + $0x2d4] ss:$8 sps:$4 sm:$0xff]   ;;  %v3390_v18 = vld [vmem:[%s4790_s3 + $0x704] ss:$8 sps:$4 sm:$0xff]  }
  0x93   :  { %2287 = vmatpush1.bf16.msra.mxu1 %v3313_v58  ;;  %v3331_v58 = vld [vmem:[%s4790_s3 + $0x270] ss:$8 sps:$4 sm:$0xff]  }
  0x94   :  { %2499 = vmatpush1.bf16.msra.mxu0 %v3316_v59  ;;  %2288 = vmatprep.subr.bf16.mxu1 %v3321_v4  ;;  %v481_v59 = vmul.f32 0.2, %v353_v47  ;;  %vm433_vm1 = vcmp.gt.f32.partialorder %v369_v57, 0.0  ;;  %v497_v63 = vmul.f32 0.2, %v369_v57  ;;  %v361_v60 = vadd.f32 %v4285_v44, %v213_v62 }
  0x95   :  { %2500 = vmatprep.subr.bf16.mxu0 %v3324_v5  ;;  %v3342_v4 = vld [vmem:[%s4790_s3 + $0x684] ss:$8 sps:$4 sm:$0xff]   ;;  %v377_v50 = vadd.f32 %v4285_v44, %v229_v0  ;;  %v3370_v62 = vld [vmem:[%s4790_s3 + $0x6d0] ss:$8 sps:$4 sm:$0xff]  }
  0x96   :  { %v545_v5 = vsel %vm417_vm0, %v353_v47, %v481_v59  ;;  %v561_v9 = vsel %vm433_vm1, %v369_v57, %v497_v63  ;;  %vm425_vm2 = vcmp.gt.f32.partialorder %v361_v60, 0.0  ;;  %v489_v10 = vmul.f32 0.2, %v361_v60  ;;  %v3372_v57 = vld [vmem:[%s4790_s3 + $0x6d4] ss:$8 sps:$4 sm:$0xff]  }
  0x97   :  { %2289 = vmatpush1.bf16.msra.mxu1 %v3319_v8  ;;  %v609_v2 = vpack.c.bf16 %v561_v9, %v545_v5  ;;  %vm441_vm3 = vcmp.gt.f32.partialorder %v377_v50, 0.0  ;;  %v505_v15 = vmul.f32 0.2, %v377_v50  ;;  %v3367_v59 = vld [vmem:[%s4790_s3 + $0x2d0] ss:$8 sps:$4 sm:$0xff]  }
  0x98   :  { %2501 = vmatpush1.bf16.msra.mxu0 %v3322_v21  ;;  %2290 = vmatprep.subr.bf16.mxu1 %v3327_v11  ;;  %v553_v8 = vsel %vm425_vm2, %v361_v60, %v489_v10  ;;  %v3346_v21 = vld [vmem:[%s4790_s3 + $0x690] ss:$8 sps:$4 sm:$0xff]   ;;  %v3352_v11 = vld [vmem:[%s4790_s3 + $0x6a0] ss:$8 sps:$4 sm:$0xff]   ;;  %v3378_v63 = vld [vmem:[%s4790_s3 + $0x6e4] ss:$8 sps:$4 sm:$0xff]  }
  0x99   :  { %2502 = vmatprep.subr.bf16.mxu0 %v3330_v24  ;;  %2310 = vmatprep.mubr.bf16.mxu1 %v609_v2  ;;  %v569_v61 = vsel %vm441_vm3, %v377_v50, %v505_v15  ;;  %v56_v24 = vunpack.c.l.bf16 %v4216_v30  ;;  %v80_v30 = vunpack.c.l.bf16 %v4254_v38  ;;  %v220_v38 = vmul.f32 %v4338_v25, %v72_v27  ;;  %v3373_v60 = vld [vmem:[%s4790_s3 + $0x2e0] ss:$8 sps:$4 sm:$0xff]   ;;  %v3381_v50 = vld [vmem:[%s4790_s3 + $0x2f4] ss:$8 sps:$4 sm:$0xff]  }
  0x9a   :  { %v617_v19 = vpack.c.bf16 %v569_v61, %v553_v8  ;;  %v3376_v9 = vld [vmem:[%s4790_s3 + $0x6e0] ss:$8 sps:$4 sm:$0xff]   ;;  %v4413_v2 = vsub.s32 7, %v3645_v42  ;;  %v3384_v10 = vld [vmem:[%s4790_s3 + $0x6f4] ss:$8 sps:$4 sm:$0xff]  }
  0x9b   :  { %2291 = vmatpush1.bf16.msra.mxu1 %v3325_v12  ;;  %v64_v12 = vunpack.c.l.bf16 %v4248_v32  ;;  %v204_v34 = vmul.f32 %v4338_v25, %v56_v24  ;;  %v3363_v32 = vld [vmem:[%s4790_s3 + $0x2c4] ss:$8 sps:$4 sm:$0xff]   ;;  %v228_v36 = vmul.f32 %v4350_v29, %v80_v30  ;;  %v368_v54 = vadd.f32 %v4360_v33, %v220_v38  ;;  %v3382_v8 = vld [vmem:[%s4790_s3 + $0x6f0] ss:$8 sps:$4 sm:$0xff]  }
  0x9c   :  { %2503 = vmatpush1.bf16.msra.mxu0 %v3328_v7  ;;  %2292 = vmatprep.subr.bf16.mxu1 %v3333_v41  ;;  %v3366_v7 = vld [vmem:[%s4790_s3 + $0x6c4] ss:$8 sps:$4 sm:$0xff]  }
  0x9d   :  { %2504 = vmatprep.subr.bf16.mxu0 %v3336_v45  ;;  %2522 = vmatprep.mubr.bf16.mxu0 %v617_v19  ;;  %v212_v41 = vmul.f32 %v4350_v29, %v64_v12  ;;  %v3361_v45 = vld [vmem:[%s4790_s3 + $0x2c0] ss:$8 sps:$4 sm:$0xff]   ;;  %v352_v47 = vadd.f32 %v4360_v33, %v204_v34  ;;  %vm432_vm5 = vcmp.gt.f32.partialorder %v368_v54, 0.0  ;;  %v3387_v61 = vld [vmem:[%s4790_s3 + $0x304] ss:$8 sps:$4 sm:$0xff]  }
  0x9e   :  { %v3385_v34 = vld [vmem:[%s4790_s3 + $0x300] ss:$8 sps:$4 sm:$0xff]  }
  0x9f   :  { %2293 = vmatpush1.bf16.msra.mxu1 %v3331_v58  ;;  %v360_v52 = vadd.f32 %v4372_v43, %v212_v41  ;;  %v376_v58 = vadd.f32 %v4372_v43, %v228_v36  ;;  %vm416_vm4 = vcmp.gt.f32.partialorder %v352_v47, 0.0  ;;  %v480_v0 = vmul.f32 0.2, %v352_v47 }
  0xa0   :  { %2505 = vmatpush1.bf16.msra.mxu0 %v3334_v23  ;;  %2294 = vmatprep.subr.bf16.mxu1 %v3339_v1  ;;  %v3375_v23 = vld [vmem:[%s4790_s3 + $0x2e4] ss:$8 sps:$4 sm:$0xff]   ;;  %v496_v1 = vmul.f32 0.2, %v368_v54 }
  0xa1   :  { %2506 = vmatprep.subr.bf16.mxu0 %v3342_v4  ;;  %v488_v4 = vmul.f32 0.2, %v360_v52  ;;  %v504_v5 = vmul.f32 0.2, %v376_v58  ;;  %vm424_vm6 = vcmp.gt.f32.partialorder %v360_v52, 0.0  ;;  %vm440_vm7 = vcmp.gt.f32.partialorder %v376_v58, 0.0 }
  0xa3   :  { %2295 = vmatpush1.bf16.msra.mxu1 %v3337_v49  ;;  %v544_v49 = vsel %vm416_vm4, %v352_v47, %v480_v0  ;;  %v552_v15 = vsel %vm424_vm6, %v360_v52, %v488_v4 }
  0xa4   :  { %2507 = vmatpush1.bf16.msra.mxu0 %v3340_v14  ;;  %2296 = vmatprep.subr.bf16.mxu1 %v3345_v16  ;;  %v560_v14 = vsel %vm432_vm5, %v368_v54, %v496_v1  ;;  %v568_v16 = vsel %vm440_vm7, %v376_v58, %v504_v5  ;;  %v4487_v5 = vld [vmem:[%s4791_s0 + $0x18] sm:$0xff] }
  0xa5   :  { %2508 = vmatprep.subr.bf16.mxu0 %v3348_v17  ;;  %v3379_v17 = vld [vmem:[%s4790_s3 + $0x2f0] ss:$8 sps:$4 sm:$0xff]   ;;  %v608_v19 = vpack.c.bf16 %v560_v14, %v544_v49 }
  0xa7   :  { %2297 = vmatpush1.bf16.msra.mxu1 %v3343_v55  ;;  %v616_v55 = vpack.c.bf16 %v568_v16, %v552_v15 }
  0xa8   :  { %2509 = vmatpush1.bf16.msra.mxu0 %v3346_v21  ;;  %2298 = vmatprep.subr.bf16.mxu1 %v3351_v13  ;;  %v38_v21 = vld [vmem:[%s4791_s0 + $0x90] sm:$0xff] }
  0xa9   :  { %2510 = vmatprep.subr.bf16.mxu0 %v3354_v6  ;;  %v46_v13 = vld [vmem:[%s4791_s0 + $0xd0] sm:$0xff] }
  0xaa   :  { %v42_v6 = vld [vmem:[%s4791_s0 + $0xb0] sm:$0xff]  ;;  %v105_v24 = vunpack.c.h.bf16 %v46_v13  ;;  %v104_v30 = vunpack.c.l.bf16 %v46_v13 }
  0xab   :  { %2299 = vmatpush1.bf16.msra.mxu1 %v3349_v22  ;;  %v4441_v22 = vrot.slane %v4158_v35, %v4413_v2  ;;  %v97_v27 = vunpack.c.h.bf16 %v42_v6 }
  0xac   :  { %2511 = vmatpush1.bf16.msra.mxu0 %v3352_v11  ;;  %2300 = vmatprep.subr.bf16.mxu1 %v3357_v26  ;;  %v89_v11 = vunpack.c.h.bf16 %v38_v21  ;;  %v50_v26 = vld [vmem:[%s4791_s0 + $0xf0] sm:$0xff]  ;;  %v252_v47 = vmul.f32 %v4338_v25, %v104_v30 }
  0xad   :  { %2512 = vmatprep.subr.bf16.mxu0 %v3360_v28  ;;  %v88_v28 = vunpack.c.l.bf16 %v38_v21  ;;  %v113_v12 = vunpack.c.h.bf16 %v50_v26  ;;  %v245_v41 = vmul.f32 %v4263_v40, %v97_v27  ;;  %v4512_v21 = vrot.slane %v4180_v48, %v4413_v2 }
  0xae   :  { %v237_v38 = vmul.f32 %v4162_v56, %v89_v11  ;;  %v4518_v11 = vld [vmem:[%s4791_s0 + $0x38] sm:$0xff] }
  0xaf   :  { %2301 = vmatpush1.bf16.msra.mxu1 %v3355_v31  ;;  %v96_v31 = vunpack.c.l.bf16 %v42_v6  ;;  %v236_v36 = vmul.f32 %v4338_v25, %v88_v28  ;;  %v393_v52 = vadd.f32 %v4285_v44, %v245_v41  ;;  %v3394_v25 = vld [vmem:[%s4790_s3 + $0x710] ss:$8 sps:$4 sm:$0xff]   ;;  %v4542_v41 = vrot.slane %v4281_v3, %v4413_v2 }
  0xb0   :  { %2513 = vmatpush1.bf16.msra.mxu0 %v3358_v20  ;;  %2302 = vmatprep.subr.bf16.mxu1 %v3363_v32  ;;  %v112_v20 = vunpack.c.l.bf16 %v50_v26  ;;  %v3388_v32 = vld [vmem:[%s4790_s3 + $0x700] ss:$8 sps:$4 sm:$0xff]   ;;  %v385_v54 = vadd.f32 %v4184_v51, %v237_v38  ;;  %v4524_v28 = vld [vmem:[%s4791_s0 + $0x78] sm:$0xff] }
  0xb1   :  { %2514 = vmatprep.subr.bf16.mxu0 %v3366_v7  ;;  %v253_v7 = vmul.f32 %v4162_v56, %v105_v24  ;;  %v3396_v56 = vld [vmem:[%s4790_s3 + $0x714] ss:$8 sps:$4 sm:$0xff]   ;;  %vm457_vm10 = vcmp.gt.f32.partialorder %v393_v52, 0.0 }
  0xb2   :  { %vm449_vm8 = vcmp.gt.f32.partialorder %v385_v54, 0.0 }
  0xb3   :  { %2303 = vmatpush1.bf16.msra.mxu1 %v3361_v45  ;;  %v3393_v45 = vld [vmem:[%s4790_s3 + $0x314] ss:$8 sps:$4 sm:$0xff]  }
  0xb4   :  { %2515 = vmatpush1.bf16.msra.mxu0 %v3364_v46  ;;  %2304 = vmatprep.subr.bf16.mxu1 %v3369_v53  ;;  %v261_v46 = vmul.f32 %v4263_v40, %v113_v12  ;;  %v244_v53 = vmul.f32 %v4350_v29, %v96_v31  ;;  %v3391_v40 = vld [vmem:[%s4790_s3 + $0x310] ss:$8 sps:$4 sm:$0xff]   ;;  %v4528_v12 = vrot.slane %v4259_v39, %v4413_v2 }
  0xb5   :  { %2516 = vmatprep.subr.bf16.mxu0 %v3372_v57  ;;  %v401_v57 = vadd.f32 %v4184_v51, %v253_v7  ;;  %v3399_v51 = vld [vmem:[%s4790_s3 + $0x324] ss:$8 sps:$4 sm:$0xff]   ;;  %v67_v7 = vunpack.c.h.bf16 %v4518_v11 }
  0xb6   :  { %v409_v58 = vadd.f32 %v4285_v44, %v261_v46  ;;  %v521_v44 = vmul.f32 0.2, %v393_v52  ;;  %v392_v16 = vadd.f32 %v4372_v43, %v244_v53  ;;  %v83_v53 = vunpack.c.h.bf16 %v4524_v28 }
  0xb7   :  { %2305 = vmatpush1.bf16.msra.mxu1 %v3367_v59  ;;  %v384_v59 = vadd.f32 %v4360_v33, %v236_v36  ;;  %vm465_vm9 = vcmp.gt.f32.partialorder %v401_v57, 0.0  ;;  %v529_v0 = vmul.f32 0.2, %v401_v57  ;;  %v3411_v36 = vld [vmem:[%s4790_s3 + $0x344] ss:$8 sps:$4 sm:$0xff]   ;;  %v215_v2 = vmul.f32 %v4528_v12, %v67_v7 }
  0xb8   :  { %2517 = vmatpush1.bf16.msra.mxu0 %v3370_v62  ;;  %2306 = vmatprep.subr.bf16.mxu1 %v3375_v23  ;;  %v400_v62 = vadd.f32 %v4360_v33, %v252_v47  ;;  %v260_v23 = vmul.f32 %v4350_v29, %v112_v20  ;;  %vm473_vm11 = vcmp.gt.f32.partialorder %v409_v58, 0.0  ;;  %v537_v1 = vmul.f32 0.2, %v409_v58  ;;  %v3402_v29 = vld [vmem:[%s4790_s3 + $0x724] ss:$8 sps:$4 sm:$0xff]  }
  0xb9   :  { %2518 = vmatprep.subr.bf16.mxu0 %v3378_v63  ;;  %v513_v63 = vmul.f32 0.2, %v385_v54  ;;  %v593_v4 = vsel %vm465_vm9, %v401_v57, %v529_v0  ;;  %vm448_vm12 = vcmp.gt.f32.partialorder %v384_v59, 0.0  ;;  %v512_v49 = vmul.f32 0.2, %v384_v59 }
  0xba   :  { %vm464_vm13 = vcmp.gt.f32.partialorder %v400_v62, 0.0  ;;  %v528_v15 = vmul.f32 0.2, %v400_v62  ;;  %vm456_vm14 = vcmp.gt.f32.partialorder %v392_v16, 0.0  ;;  %v520_v6 = vmul.f32 0.2, %v392_v16 }
  0xbb   :  { %2307 = vmatpush1.bf16.msra.mxu1 %v3373_v60  ;;  %v577_v33 = vsel %vm449_vm8, %v385_v54, %v513_v63  ;;  %v3403_v20 = vld [vmem:[%s4790_s3 + $0x330] ss:$8 sps:$4 sm:$0xff]   ;;  %v3409_v54 = vld [vmem:[%s4790_s3 + $0x340] ss:$8 sps:$4 sm:$0xff]  }
  0xbc   :  { %2519 = vmatpush1.bf16.msra.mxu0 %v3376_v9  ;;  %2308 = vmatprep.subr.bf16.mxu1 %v3381_v50  ;;  %v625_v60 = vpack.c.bf16 %v593_v4, %v577_v33  ;;  %v585_v9 = vsel %vm457_vm10, %v393_v52, %v521_v44  ;;  %v601_v50 = vsel %vm473_vm11, %v409_v58, %v537_v1  ;;  %v3418_v33 = vld [vmem:[%s4790_s3 + $0x750] ss:$8 sps:$4 sm:$0xff]  }
  0xbd   :  { %2520 = vmatprep.subr.bf16.mxu0 %v3384_v10  ;;  %v3397_v10 = vld [vmem:[%s4790_s3 + $0x320] ss:$8 sps:$4 sm:$0xff]   ;;  %v633_v14 = vpack.c.bf16 %v601_v50, %v585_v9  ;;  %v592_v13 = vsel %vm464_vm13, %v400_v62, %v528_v15  ;;  %v584_v30 = vsel %vm456_vm14, %v392_v16, %v520_v6  ;;  %v231_v52 = vmul.f32 %v4528_v12, %v83_v53  ;;  %v3420_v62 = vld [vmem:[%s4790_s3 + $0x754] ss:$8 sps:$4 sm:$0xff]   ;;  %v3426_v9 = vld [vmem:[%s4790_s3 + $0x764] ss:$8 sps:$4 sm:$0xff]  }
  0xbe   :  { %v363_v58 = vadd.f32 %v4542_v41, %v215_v2  ;;  %v3429_v15 = vld [vmem:[%s4790_s3 + $0x374] ss:$8 sps:$4 sm:$0xff]  }
  0xbf   :  { %2309 = vmatpush1.bf16.msra.mxu1 %v3379_v17  ;;  %v408_v17 = vadd.f32 %v4372_v43, %v260_v23  ;;  %v576_v43 = vsel %vm448_vm12, %v384_v59, %v512_v49  ;;  %v3417_v59 = vld [vmem:[%s4790_s3 + $0x354] ss:$8 sps:$4 sm:$0xff]  }
  0xc0   :  { %2521 = vmatpush1.bf16.msra.mxu0 %v3382_v8  ;;  %2331 = vmatprep.subr.bf16.mxu1 %v3387_v61  ;;  %v4497_v8 = vld [vmem:[%s4791_s0 + $0x58] sm:$0xff]  ;;  %v3400_v61 = vld [vmem:[%s4790_s3 + $0x720] ss:$8 sps:$4 sm:$0xff]   ;;  %v624_v24 = vpack.c.bf16 %v592_v13, %v576_v43  ;;  %vm427_vm2 = vcmp.gt.f32.partialorder %v363_v58, 0.0  ;;  %v491_v0 = vmul.f32 0.2, %v363_v58 }
  0xc1   :  { %2543 = vmatprep.subr.bf16.mxu0 %v3390_v18  ;;  %v3405_v18 = vld [vmem:[%s4790_s3 + $0x334] ss:$8 sps:$4 sm:$0xff]   ;;  %vm472_vm15 = vcmp.gt.f32.partialorder %v408_v17, 0.0  ;;  %v536_v26 = vmul.f32 0.2, %v408_v17  ;;  %v75_v27 = vunpack.c.h.bf16 %v4497_v8  ;;  %v74_v7 = vunpack.c.l.bf16 %v4497_v8 }
  0xc2   :  { %2311 = vmatmul.mubr.bf16.vlgmr.msra.gmra.mrb[0].mxu1 %v608_v19  ;;  %v3408_v19 = vld [vmem:[%s4790_s3 + $0x734] ss:$8 sps:$4 sm:$0xff]   ;;  %v555_v4 = vsel %vm427_vm2, %v363_v58, %v491_v0  ;;  %v3433_v43 = vld [vmem:[%s4790_s3 + $0x380] ss:$8 sps:$4 sm:$0xff]  }
  0xc3   :  { %2523 = vmatmul.mubr.bf16.vlgmr.msra.gmra.mrb[0].mxu0 %v616_v55  ;;  %2332 = vmatpush1.bf16.msra.mxu1 %v3385_v34  ;;  %v59_v55 = vunpack.c.h.bf16 %v4487_v5  ;;  %v3406_v34 = vld [vmem:[%s4790_s3 + $0x730] ss:$8 sps:$4 sm:$0xff]   ;;  %v223_v38 = vmul.f32 %v4441_v22, %v75_v27  ;;  %v3432_v16 = vld [vmem:[%s4790_s3 + $0x774] ss:$8 sps:$4 sm:$0xff]  }
  0xc4   :  { %2544 = vmatpush1.bf16.msra.mxu0 %v3388_v32  ;;  %2333 = vmatprep.subr.bf16.mxu1 %v3393_v45  ;;  %v600_v32 = vsel %vm472_vm15, %v408_v17, %v536_v26  ;;  %v3414_v45 = vld [vmem:[%s4790_s3 + $0x744] ss:$8 sps:$4 sm:$0xff]   ;;  %v3427_v17 = vld [vmem:[%s4790_s3 + $0x370] ss:$8 sps:$4 sm:$0xff]   ;;  %v3441_v13 = vld [vmem:[%s4790_s3 + $0x394] ss:$8 sps:$4 sm:$0xff]  }
  0xc5   :  { %2545 = vmatprep.subr.bf16.mxu0 %v3396_v56  ;;  %2320 = vmatprep.mubr.bf16.mxu1 %v625_v60  ;;  %v207_v31 = vmul.f32 %v4441_v22, %v59_v55  ;;  %v632_v46 = vpack.c.bf16 %v600_v32, %v584_v30  ;;  %v371_v56 = vadd.f32 %v4512_v21, %v223_v38  ;;  %v3423_v60 = vld [vmem:[%s4790_s3 + $0x364] ss:$8 sps:$4 sm:$0xff]   ;;  %v3436_v55 = vld [vmem:[%s4790_s3 + $0x780] ss:$8 sps:$4 sm:$0xff]   ;;  %v3444_v6 = vld [vmem:[%s4790_s3 + $0x794] ss:$8 sps:$4 sm:$0xff]  }
  0xc6   :  { %2532 = vmatprep.mubr.bf16.mxu0 %v633_v14  ;;  %v3424_v14 = vld [vmem:[%s4790_s3 + $0x760] ss:$8 sps:$4 sm:$0xff]   ;;  %v3439_v26 = vld [vmem:[%s4790_s3 + $0x390] ss:$8 sps:$4 sm:$0xff]   ;;  %v3447_v30 = vld [vmem:[%s4790_s3 + $0x3a4] ss:$8 sps:$4 sm:$0xff]  }
  0xc7   :  { %2334 = vmatpush1.bf16.msra.mxu1 %v3391_v40  ;;  %v355_v47 = vadd.f32 %v4512_v21, %v207_v31  ;;  %v3412_v40 = vld [vmem:[%s4790_s3 + $0x740] ss:$8 sps:$4 sm:$0xff]   ;;  %vm435_vm1 = vcmp.gt.f32.partialorder %v371_v56, 0.0  ;;  %v3442_v27 = vld [vmem:[%s4790_s3 + $0x790] ss:$8 sps:$4 sm:$0xff]  }
  0xc8   :  { %2546 = vmatpush1.bf16.msra.mxu0 %v3394_v25  ;;  %2335 = vmatprep.subr.bf16.mxu1 %v3399_v51  ;;  %v499_v25 = vmul.f32 0.2, %v371_v56  ;;  %v379_v51 = vadd.f32 %v4542_v41, %v231_v52  ;;  %v3450_v31 = vld [vmem:[%s4790_s3 + $0x7a4] ss:$8 sps:$4 sm:$0xff]   ;;  %v3448_v38 = vld [vmem:[%s4790_s3 + $0x7a0] ss:$8 sps:$4 sm:$0xff]  }
  0xc9   :  { %2547 = vmatprep.subr.bf16.mxu0 %v3402_v29  ;;  %vm419_vm0 = vcmp.gt.f32.partialorder %v355_v47, 0.0  ;;  %v483_v57 = vmul.f32 0.2, %v355_v47  ;;  %v3415_v29 = vld [vmem:[%s4790_s3 + $0x350] ss:$8 sps:$4 sm:$0xff]  }
  0xca   :  { %2321 = vmatmul.mubr.bf16.gmra.mrb[4].mxu1 %v624_v24  ;;  %v563_v63 = vsel %vm435_vm1, %v371_v56, %v499_v25  ;;  %vm443_vm3 = vcmp.gt.f32.partialorder %v379_v51, 0.0  ;;  %v507_v1 = vmul.f32 0.2, %v379_v51  ;;  %v146_v24 = vsub.s32 6, %v3645_v42  ;;  %v3456_v8 = vld [vmem:[%s4790_s3 + $0x7b4] ss:$8 sps:$4 sm:$0xff]  }
  0xcb   :  { %2336 = vmatpush1.bf16.msra.mxu1 %v3397_v10  ;;  %2533 = vmatmul.mubr.bf16.gmra.mrb[4].mxu0 %v632_v46  ;;  %v547_v23 = vsel %vm419_vm0, %v355_v47, %v483_v57  ;;  %v3421_v10 = vld [vmem:[%s4790_s3 + $0x360] ss:$8 sps:$4 sm:$0xff]   ;;  %v82_v46 = vunpack.c.l.bf16 %v4524_v28  ;;  %v4665_v53 = vld [vmem:[%s4791_s0 + $0xb8] sm:$0xff]  ;;  %vm2692_vm0 = vcmp.lt.s32.totalorder %v120_v37, 256 }
  0xcc   :  { %2548 = vmatpush1.bf16.msra.mxu0 %v3400_v61  ;;  %2337 = vmatprep.subr.bf16.mxu1 %v3405_v18  ;;  %v611_v44 = vpack.c.bf16 %v563_v63, %v547_v23  ;;  %v571_v50 = vsel %vm443_vm3, %v379_v51, %v507_v1  ;;  %v3430_v61 = vld [vmem:[%s4790_s3 + $0x770] ss:$8 sps:$4 sm:$0xff]   ;;  %v3435_v18 = vld [vmem:[%s4790_s3 + $0x384] ss:$8 sps:$4 sm:$0xff]   ;;  %v4635_v32 = vrot.slane %v4158_v35, %v146_v24  ;;  %v3453_v35 = vld [vmem:[%s4790_s3 + $0x3b4] ss:$8 sps:$4 sm:$0xff]   ;;  %v99_v25 = vunpack.c.h.bf16 %v4665_v53 }
  0xcd   :  { %2549 = vmatprep.subr.bf16.mxu0 %v3408_v19  ;;  %v619_v49 = vpack.c.bf16 %v571_v50, %v555_v4  ;;  %v3438_v19 = vld [vmem:[%s4790_s3 + $0x784] ss:$8 sps:$4 sm:$0xff]   ;;  %v4660_v47 = vrot.slane %v4259_v39, %v146_v24  ;;  %v4670_v56 = vld [vmem:[%s4791_s0 + $0xf8] sm:$0xff]  ;;  %v4696_v23 = vrot.slane %v4281_v3, %v146_v24  ;;  %v3460_v1 = vld [vmem:[%s4790_s3 + $0x7c0] ss:$8 sps:$4 sm:$0xff]  }
  0xce   :  { %2363 = vmatprep.mubr.bf16.mxu1 %v611_v44  ;;  %v3451_v28 = vld [vmem:[%s4790_s3 + $0x3b0] ss:$8 sps:$4 sm:$0xff]   ;;  %v222_v52 = vmul.f32 %v4635_v32, %v74_v7  ;;  %v115_v58 = vunpack.c.h.bf16 %v4670_v56  ;;  %v3457_v44 = vld [vmem:[%s4790_s3 + $0x3c0] ss:$8 sps:$4 sm:$0xff]   ;;  %v3465_v3 = vld [vmem:[%s4790_s3 + $0x3d4] ss:$8 sps:$4 sm:$0xff]  }
  0xcf   :  { %2338 = vmatpush1.bf16.msra.mxu1 %v3403_v20  ;;  %2575 = vmatprep.mubr.bf16.mxu0 %v619_v49  ;;  %v3445_v20 = vld [vmem:[%s4790_s3 + $0x3a0] ss:$8 sps:$4 sm:$0xff]   ;;  %v3454_v57 = vld [vmem:[%s4790_s3 + $0x7b0] ss:$8 sps:$4 sm:$0xff]   ;;  %v3480_v7 = vld [vmem:[%s4790_s3 + $0x7f4] ss:$8 sps:$4 sm:$0xff]  }
  0xd0   :  { %2550 = vmatpush1.bf16.msra.mxu0 %v3406_v34  ;;  %2339 = vmatprep.subr.bf16.mxu1 %v3411_v36  ;;  %v58_v34 = vunpack.c.l.bf16 %v4487_v5  ;;  %v4644_v36 = vld [vmem:[%s4791_s0 + $0x98] sm:$0xff]  ;;  %v263_v4 = vmul.f32 %v4528_v12, %v115_v58 }
  0xd1   :  { %2551 = vmatprep.subr.bf16.mxu0 %v3414_v45  ;;  %v4649_v5 = vld [vmem:[%s4791_s0 + $0xd8] sm:$0xff]  ;;  %v66_v45 = vunpack.c.l.bf16 %v4518_v11  ;;  %v91_v11 = vunpack.c.h.bf16 %v4644_v36 }
  0xd2   :  { %v206_v2 = vmul.f32 %v4635_v32, %v58_v34  ;;  %v107_v39 = vunpack.c.h.bf16 %v4649_v5  ;;  %v3463_v50 = vld [vmem:[%s4790_s3 + $0x3d0] ss:$8 sps:$4 sm:$0xff]  }
  0xd3   :  { %2340 = vmatpush1.bf16.msra.mxu1 %v3409_v54  ;;  %v4674_v54 = vrot.slane %v4180_v48, %v146_v24  ;;  %v3459_v48 = vld [vmem:[%s4790_s3 + $0x3c4] ss:$8 sps:$4 sm:$0xff]   ;;  %v239_v63 = vmul.f32 %v4441_v22, %v91_v11 }
  0xd4   :  { %2552 = vmatpush1.bf16.msra.mxu0 %v3412_v40  ;;  %2341 = vmatprep.subr.bf16.mxu1 %v3417_v59  ;;  %v3462_v40 = vld [vmem:[%s4790_s3 + $0x7c4] ss:$8 sps:$4 sm:$0xff]   ;;  %v214_v59 = vmul.f32 %v4660_v47, %v66_v45  ;;  %v255_v0 = vmul.f32 %v4441_v22, %v107_v39  ;;  %v3468_v22 = vld [vmem:[%s4790_s3 + $0x7d4] ss:$8 sps:$4 sm:$0xff]  }
  0xd5   :  { %2553 = vmatprep.subr.bf16.mxu0 %v3420_v62  ;;  %v230_v62 = vmul.f32 %v4660_v47, %v82_v46  ;;  %v354_v51 = vadd.f32 %v4674_v54, %v206_v2  ;;  %v387_v49 = vadd.f32 %v4512_v21, %v239_v63  ;;  %v3478_v2 = vld [vmem:[%s4790_s3 + $0x7f0] ss:$8 sps:$4 sm:$0xff]  }
  0xd7   :  { %2342 = vmatpush1.bf16.msra.mxu1 %v3415_v29  ;;  %v370_v29 = vadd.f32 %v4674_v54, %v222_v52  ;;  %vm418_vm4 = vcmp.gt.f32.partialorder %v354_v51, 0.0  ;;  %vm451_vm8 = vcmp.gt.f32.partialorder %v387_v49, 0.0 }
  0xd8   :  { %2554 = vmatpush1.bf16.msra.mxu0 %v3418_v33  ;;  %2343 = vmatprep.subr.bf16.mxu1 %v3423_v60  ;;  %v247_v33 = vmul.f32 %v4528_v12, %v99_v25  ;;  %v362_v60 = vadd.f32 %v4696_v23, %v214_v59  ;;  %v3466_v12 = vld [vmem:[%s4790_s3 + $0x7d0] ss:$8 sps:$4 sm:$0xff]  }
  0xd9   :  { %2555 = vmatprep.subr.bf16.mxu0 %v3426_v9  ;;  %v378_v9 = vadd.f32 %v4696_v23, %v230_v62  ;;  %vm434_vm5 = vcmp.gt.f32.partialorder %v370_v29, 0.0 }
  0xda   :  { %vm426_vm6 = vcmp.gt.f32.partialorder %v362_v60, 0.0 }
  0xdb   :  { %2344 = vmatpush1.bf16.msra.mxu1 %v3421_v10  ;;  %v403_v10 = vadd.f32 %v4512_v21, %v255_v0  ;;  %v3474_v21 = vld [vmem:[%s4790_s3 + $0x7e4] ss:$8 sps:$4 sm:$0xff]   ;;  %vm442_vm7 = vcmp.gt.f32.partialorder %v378_v9, 0.0  ;;  %v506_v24 = vmul.f32 0.2, %v378_v9 }
  0xdc   :  { %2556 = vmatpush1.bf16.msra.mxu0 %v3424_v14  ;;  %2345 = vmatprep.subr.bf16.mxu1 %v3429_v15  ;;  %v90_v14 = vunpack.c.l.bf16 %v4644_v36  ;;  %v3471_v15 = vld [vmem:[%s4790_s3 + $0x3e4] ss:$8 sps:$4 sm:$0xff]  }
  0xdd   :  { %2557 = vmatprep.subr.bf16.mxu0 %v3432_v16  ;;  %v106_v16 = vunpack.c.l.bf16 %v4649_v5  ;;  %vm467_vm9 = vcmp.gt.f32.partialorder %v403_v10, 0.0 }
  0xdf   :  { %2346 = vmatpush1.bf16.msra.mxu1 %v3427_v17  ;;  %v98_v17 = vunpack.c.l.bf16 %v4665_v53 }
  0xe0   :  { %2558 = vmatpush1.bf16.msra.mxu0 %v3430_v61  ;;  %2347 = vmatprep.subr.bf16.mxu1 %v3435_v18  ;;  %v114_v61 = vunpack.c.l.bf16 %v4670_v56  ;;  %v482_v18 = vmul.f32 0.2, %v354_v51  ;;  %v3475_v56 = vld [vmem:[%s4790_s3 + $0x3f0] ss:$8 sps:$4 sm:$0xff]  }
  0xe1   :  { %2559 = vmatprep.subr.bf16.mxu0 %v3438_v19  ;;  %v498_v19 = vmul.f32 0.2, %v370_v29  ;;  %v246_v34 = vmul.f32 %v4660_v47, %v98_v17 }
  0xe2   :  { %v546_v36 = vsel %vm418_vm4, %v354_v51, %v482_v18 }
  0xe3   :  { %2348 = vmatpush1.bf16.msra.mxu1 %v3433_v43  ;;  %v395_v43 = vadd.f32 %v4542_v41, %v247_v33  ;;  %v394_v39 = vadd.f32 %v4696_v23, %v246_v34 }
  0xe4   :  { %2560 = vmatpush1.bf16.msra.mxu0 %v3436_v55  ;;  %2349 = vmatprep.subr.bf16.mxu1 %v3441_v13  ;;  %v411_v55 = vadd.f32 %v4542_v41, %v263_v4  ;;  %v3469_v13 = vld [vmem:[%s4790_s3 + $0x3e0] ss:$8 sps:$4 sm:$0xff]   ;;  %v3477_v41 = vld [vmem:[%s4790_s3 + $0x3f4] ss:$8 sps:$4 sm:$0xff]  }
  0xe5   :  { %2561 = vmatprep.subr.bf16.mxu0 %v3444_v6  ;;  %v490_v6 = vmul.f32 0.2, %v362_v60  ;;  %v523_v5 = vmul.f32 0.2, %v395_v43  ;;  %vm459_vm10 = vcmp.gt.f32.partialorder %v395_v43, 0.0  ;;  %vm458_vm14 = vcmp.gt.f32.partialorder %v394_v39, 0.0 }
  0xe6   :  { %vm475_vm11 = vcmp.gt.f32.partialorder %v411_v55, 0.0  ;;  %v522_v51 = vmul.f32 0.2, %v394_v39 }
  0xe7   :  { %2350 = vmatpush1.bf16.msra.mxu1 %v3439_v26  ;;  %v515_v26 = vmul.f32 0.2, %v387_v49  ;;  %v554_v45 = vsel %vm426_vm6, %v362_v60, %v490_v6 }
  0xe8   :  { %2562 = vmatpush1.bf16.msra.mxu0 %v3442_v27  ;;  %2351 = vmatprep.subr.bf16.mxu1 %v3447_v30  ;;  %v531_v27 = vmul.f32 0.2, %v403_v10  ;;  %v238_v30 = vmul.f32 %v4635_v32, %v90_v14  ;;  %v586_v0 = vsel %vm458_vm14, %v394_v39, %v522_v51  ;;  %v3485_v51 = vmov 1966171168  }
  0xe9   :  { %2563 = vmatprep.subr.bf16.mxu0 %v3450_v31  ;;  %v3472_v31 = vld [vmem:[%s4790_s3 + $0x7e0] ss:$8 sps:$4 sm:$0xff]   ;;  %v579_v46 = vsel %vm451_vm8, %v387_v49, %v515_v26 }
  0xea   :  { %v386_v53 = vadd.f32 %v4674_v54, %v238_v30 }
  0xeb   :  { %2352 = vmatpush1.bf16.msra.mxu1 %v3445_v20  ;;  %v254_v20 = vmul.f32 %v4635_v32, %v106_v16  ;;  %v570_v32 = vsel %vm442_vm7, %v378_v9, %v506_v24 }
  0xec   :  { %2564 = vmatpush1.bf16.msra.mxu0 %v3448_v38  ;;  %2353 = vmatprep.subr.bf16.mxu1 %v3453_v35  ;;  %v262_v38 = vmul.f32 %v4660_v47, %v114_v61  ;;  %v539_v35 = vmul.f32 0.2, %v411_v55  ;;  %v595_v47 = vsel %vm467_vm9, %v403_v10, %v531_v27  ;;  %vm450_vm12 = vcmp.gt.f32.partialorder %v386_v53, 0.0 }
  0xed   :  { %2565 = vmatprep.subr.bf16.mxu0 %v3456_v8  ;;  %v562_v8 = vsel %vm434_vm5, %v370_v29, %v498_v19  ;;  %v402_v11 = vadd.f32 %v4674_v54, %v254_v20  ;;  %v627_v25 = vpack.c.bf16 %v595_v47, %v579_v46  ;;  %v514_v58 = vmul.f32 0.2, %v386_v53 }
  0xee   :  { %v603_v52 = vsel %vm475_vm11, %v411_v55, %v539_v35 }
  0xef   :  { %2354 = vmatpush1.bf16.msra.mxu1 %v3451_v28  ;;  %v410_v28 = vadd.f32 %v4696_v23, %v262_v38  ;;  %v530_v62 = vmul.f32 0.2, %v402_v11  ;;  %vm466_vm13 = vcmp.gt.f32.partialorder %v402_v11, 0.0  ;;  %v578_v54 = vsel %vm450_vm12, %v386_v53, %v514_v58 }
  0xf0   :  { %2566 = vmatpush1.bf16.msra.mxu0 %v3454_v57  ;;  %2355 = vmatprep.subr.bf16.mxu1 %v3459_v48  ;;  %v587_v57 = vsel %vm459_vm10, %v395_v43, %v523_v5  ;;  %v610_v48 = vpack.c.bf16 %v562_v8, %v546_v36 }
  0xf1   :  { %2567 = vmatprep.subr.bf16.mxu0 %v3462_v40  ;;  %v618_v40 = vpack.c.bf16 %v570_v32, %v554_v45  ;;  %v635_v59 = vpack.c.bf16 %v603_v52, %v587_v57  ;;  %v538_v63 = vmul.f32 0.2, %v410_v28  ;;  %vm474_vm15 = vcmp.gt.f32.partialorder %v410_v28, 0.0 }
  0xf2   :  { %v594_v23 = vsel %vm466_vm13, %v402_v11, %v530_v62 }
  0xf3   :  { %2356 = vmatpush1.bf16.msra.mxu1 %v3457_v44  ;;  %v602_v44 = vsel %vm474_vm15, %v410_v28, %v538_v63  ;;  %v2676_v63 = vunpack.c.l.s4 %v3485_v51 }
  0xf4   :  { %2568 = vmatpush1.bf16.msra.mxu0 %v3460_v1  ;;  %2357 = vmatprep.subr.bf16.mxu1 %v3465_v3  ;;  %v626_v1 = vpack.c.bf16 %v594_v23, %v578_v54  ;;  %v634_v29 = vpack.c.bf16 %v602_v44, %v586_v0 }
  0xf5   :  { %2569 = vmatprep.subr.bf16.mxu0 %v3468_v22 }
  0xf7   :  { %2358 = vmatpush1.bf16.msra.mxu1 %v3463_v50 }
  0xf8   :  { %2570 = vmatpush1.bf16.msra.mxu0 %v3466_v12  ;;  %2359 = vmatprep.subr.bf16.mxu1 %v3471_v15 }
  0xf9   :  { %2571 = vmatprep.subr.bf16.mxu0 %v3474_v21 }
  0xfb   :  { %2360 = vmatpush1.bf16.msra.mxu1 %v3469_v13 }
  0xfc   :  { %2572 = vmatpush1.bf16.msra.mxu0 %v3472_v31  ;;  %2361 = vmatprep.subr.bf16.mxu1 %v3477_v41 }
  0xfd   :  { %2573 = vmatprep.subr.bf16.mxu0 %v3480_v7 }
  0xff   :  { %2362 = vmatpush1.bf16.msra.mxu1 %v3475_v56 }
 0x100   :  { %2574 = vmatpush1.bf16.msra.mxu0 %v3478_v2 }
 0x102   :  { %2364 = vmatmul.mubr.bf16.vlgmr.msra.gmra.mrb[0].mxu1 %v610_v48 }
 0x103   :  { %2576 = vmatmul.mubr.bf16.vlgmr.msra.gmra.mrb[0].mxu0 %v618_v40  ;;  %2373 = vmatprep.mubr.bf16.mxu1 %v627_v25 }
 0x104   :  { %2585 = vmatprep.mubr.bf16.mxu0 %v635_v59 }
 0x10a   :  { %2374 = vmatmul.mubr.bf16.gmra.mrb[4].mxu1 %v626_v1 }
 0x10b   :  { %2586 = vmatmul.mubr.bf16.gmra.mrb[4].mxu0 %v634_v29 }
 0x1d5   :  { %v2365_v3 = vpop.f32.mrb[0].mxu1 }
 0x1d6   :  { %v2577_v22 = vpop.f32.mrb[0].mxu0  ;;  %v2367_v4 = vpop.f32.mrb[1].mxu1 }
 0x1d7   :  { %v3040_v33 = vadd.f32 %v2577_v22, %v2365_v3  ;;  %v2579_v60 = vpop.f32.mrb[1].mxu0  ;;  %v2369_v50 = vpop.f32.mrb[2].mxu1 }
 0x1d8   :  { %v3041_v9 = vadd.f32 %v2579_v60, %v2367_v4  ;;  %v2581_v49 = vpop.f32.mrb[2].mxu0  ;;  %v2371_v14 = vpop.f32.mrb[3].mxu1 }
 0x1d9   :  { %v3042_v10 = vadd.f32 %v2581_v49, %v2369_v50  ;;  %v2583_v12 = vpop.f32.mrb[3].mxu0  ;;  %v2642_v17 = vmul.f32 %v3040_v33, %v3040_v33 }
 0x1da   :  { %v3036_v15 = vpack.c.bf16 %v3041_v9, %v3040_v33  ;;  %v3043_v16 = vadd.f32 %v2583_v12, %v2371_v14  ;;  %v2643_v18 = vmul.f32 %v3041_v9, %v3041_v9 }
 0x1db   :  { %v2624_v61 = vadd.f32 %v3042_v10, %v3040_v33  ;;  %v2644_v21 = vmul.f32 %v3042_v10, %v3042_v10  ;;  %v2677_v33 = vunpack.c.0.s8 %v2676_v63 }
 0x1dc   :  { %2620 = vst [vmem:[%s4794_s4] sm:$0xff] %v3036_v15  ;;  %v3037_v19 = vpack.c.bf16 %v3043_v16, %v3042_v10  ;;  %v2633_v43 = vadd.f32 %v3043_v16, %v3041_v9  ;;  %v2645_v55 = vmul.f32 %v3043_v16, %v3043_v16 }
 0x1dd   :  { %v2650_v13 = vadd.f32 %v2644_v21, %v2642_v17  ;;  %v2375_v24 = vpop.f32.mrb[4].mxu1  ;;  %v2680_v15 = vsub.s32 %v2677_v33, %v3645_v42 }
 0x1de   :  { %2621 = vst [vmem:[%s4794_s4 + $0x8] sm:$0xff] %v3037_v19  ;;  %v2659_v6 = vadd.f32 %v2645_v55, %v2643_v18  ;;  %v2587_v26 = vpop.f32.mrb[4].mxu0  ;;  %v2377_v30 = vpop.f32.mrb[5].mxu1 }
 0x1df   :  { %v3044_v27 = vadd.f32 %v2587_v26, %v2375_v24  ;;  %v2589_v31 = vpop.f32.mrb[5].mxu0  ;;  %v2379_v20 = vpop.f32.mrb[6].mxu1 }
 0x1e0   :  { %v3045_v41 = vadd.f32 %v2589_v31, %v2377_v30  ;;  %v2591_v34 = vpop.f32.mrb[6].mxu0  ;;  %v2381_v5 = vpop.f32.mrb[7].mxu1 }
 0x1e1   :  { %v2625_v38 = vadd.f32 %v3044_v27, %v2624_v61  ;;  %v2646_v7 = vmul.f32 %v3044_v27, %v3044_v27  ;;  %v3046_v36 = vadd.f32 %v2591_v34, %v2379_v20  ;;  %v2593_v35 = vpop.f32.mrb[7].mxu0 }
 0x1e2   :  { %v3038_v8 = vpack.c.bf16 %v3045_v41, %v3044_v27  ;;  %v2634_v45 = vadd.f32 %v3045_v41, %v2633_v43  ;;  %v2647_v32 = vmul.f32 %v3045_v41, %v3045_v41  ;;  %v3047_v46 = vadd.f32 %v2593_v35, %v2381_v5 }
 0x1e3   :  { %v2651_v47 = vadd.f32 %v2650_v13, %v2646_v7  ;;  %v2626_v53 = vadd.f32 %v3046_v36, %v2625_v38  ;;  %v2648_v56 = vmul.f32 %v3046_v36, %v3046_v36 }
 0x1e4   :  { %2622 = vst [vmem:[%s4794_s4 + $0x10] sm:$0xff] %v3038_v8  ;;  %v2660_v2 = vadd.f32 %v2659_v6, %v2647_v32  ;;  %v3039_v11 = vpack.c.bf16 %v3047_v46, %v3046_v36  ;;  %v2635_v39 = vadd.f32 %v3047_v46, %v2634_v45  ;;  %v2649_v28 = vmul.f32 %v3047_v46, %v3047_v46 }
 0x1e5   :  { %v2627_v57 = vrot.slane %v2626_v53, 4  ;;  %v2652_v52 = vadd.f32 %v2651_v47, %v2648_v56 }
 0x1e6   :  { %2623 = vst [vmem:[%s4794_s4 + $0x18] sm:$0xff] %v3039_v11  ;;  %v2636_v48 = vrot.slane %v2635_v39, 4  ;;  %v2661_v40 = vadd.f32 %v2660_v2, %v2649_v28 }
 0x1e7   :  { %v2628_v25 = vadd.f32 %v2627_v57, %v2626_v53  ;;  %v2653_v58 = vrot.slane %v2652_v52, 4 }
 0x1e8   :  { %v2637_v59 = vadd.f32 %v2636_v48, %v2635_v39  ;;  %v2662_v62 = vrot.slane %v2661_v40, 4 }
 0x1e9   :  { %v2629_v54 = vrot.slane %v2628_v25, 2  ;;  %v2654_v23 = vadd.f32 %v2653_v58, %v2652_v52 }
 0x1ea   :  { %v2638_v0 = vrot.slane %v2637_v59, 2  ;;  %v2663_v44 = vadd.f32 %v2662_v62, %v2661_v40 }
 0x1eb   :  { %v2630_v1 = vadd.f32 %v2629_v54, %v2628_v25  ;;  %v2655_v29 = vrot.slane %v2654_v23, 2 }
 0x1ec   :  { %v2639_v3 = vadd.f32 %v2638_v0, %v2637_v59  ;;  %v2664_v22 = vrot.slane %v2663_v44, 2 }
 0x1ed   :  { %v2631_v4 = vrot.slane %v2630_v1, 1  ;;  %v2656_v60 = vadd.f32 %v2655_v29, %v2654_v23 }
 0x1ee   :  { %v2640_v9 = vrot.slane %v2639_v3, 1  ;;  %v2665_v50 = vadd.f32 %v2664_v22, %v2663_v44 }
 0x1ef   :  { %v2632_v49 = vadd.f32 %v2631_v4, %v2630_v1  ;;  %v2657_v10 = vrot.slane %v2656_v60, 1 }
 0x1f0   :  { %v2641_v14 = vadd.f32 %v2640_v9, %v2639_v3  ;;  %v2666_v12 = vrot.slane %v2665_v50, 1 }
 0x1f1   :  { %v2658_v16 = vadd.f32 %v2657_v10, %v2656_v60 }
 0x1f2   :  { %v2667_v17 = vadd.f32 %v2666_v12, %v2665_v50  ;;  %v2674_v61 = vcombine.low %v2632_v49, %v2641_v14 }
 0x1f4   :  { %v2681_v21 = vrot.slane %v2674_v61, %v2680_v15  ;;  %v2697_v18 = vcombine.low %v2658_v16, %v2667_v17 }
 0x1f6   :  { %v2688_v19 = vrot.slane %v2681_v21, %v2680_v15  ;;  %v2704_v43 = vrot.slane %v2697_v18, %v2680_v15 }
 0x1f8   :  { %2694 = vst.msk [vmem:[%s4795_s5] sm:$0x3] %vm2692_vm0, %v2688_v19  ;;  %v2711_v55 = vrot.slane %v2704_v43, %v2680_v15 }
 0x1fa   :  { %2713 = vst.msk [vmem:[%s4796_s6] sm:$0x3] %vm2692_vm0, %v2711_v55 }

// kernel: discriminator_forward.9
= control target key start
LH: loop header
LB: loop body
LE: loop exit
PB: predicated region body
PF: predicated region fallthrough
CT: control target
= control target key end

     0   :  { %v29_v21 = vlaneseq  ;;  %s705_s3 = inlined_call_operand.vmem [shape: bf16[512,128], index: 3, kind: input, shape index: {}]   ;;  %s706_s0 = inlined_call_operand.vmem [shape: bf16[8,512], index: 0, kind: input, shape index: {}]   ;;  %s707_s1 = inlined_call_operand.vmem [shape: f32[1,512], index: 1, kind: input, shape index: {}]   ;;  %s708_s2 = inlined_call_operand.vmem [shape: f32[1,512], index: 2, kind: input, shape index: {}]   ;;  %s709_s4 = inlined_call_operand.vmem [shape: f32[1,128], index: 4, kind: input, shape index: {}]   ;;  %s710_s5 = inlined_call_operand.vmem [shape: f32[8,128], index: 5, kind: output, shape index: {}]  }
   0x1   :  { %v525_v0 = vld [vmem:[%s705_s3 + $0x40] sm:$0xff]   ;;  %v529_v4 = vld [vmem:[%s705_s3 + $0x48] sm:$0xff]   ;;  %v533_v8 = vld [vmem:[%s705_s3 + $0x50] sm:$0xff]  }
   0x2   :  { %v526_v1 = vld [vmem:[%s705_s3 + $0xc0] sm:$0xff]   ;;  %481 = vmatprep.subr.bf16.mxu0 %v525_v0  ;;  %v530_v5 = vld [vmem:[%s705_s3 + $0xc8] sm:$0xff]   ;;  %v534_v9 = vld [vmem:[%s705_s3 + $0xd0] sm:$0xff]   ;;  %v30_v26 = vshrl.u32 %v29_v21, 7 }
   0x3   :  { %v527_v2 = vld [vmem:[%s705_s3] sm:$0xff]   ;;  %503 = vmatprep.subr.bf16.mxu1 %v526_v1  ;;  %v531_v6 = vld [vmem:[%s705_s3 + $0x8] sm:$0xff]   ;;  %v535_v10 = vld [vmem:[%s705_s3 + $0x10] sm:$0xff]  }
   0x4   :  { %v528_v3 = vld [vmem:[%s705_s3 + $0x80] sm:$0xff]   ;;  %482 = vmatpush3.bf16.msra.mxu0 %v527_v2  ;;  %v532_v7 = vld [vmem:[%s705_s3 + $0x88] sm:$0xff]   ;;  %v536_v11 = vld [vmem:[%s705_s3 + $0x90] sm:$0xff]   ;;  %v35_v31 = vsub.s32 1, %v30_v26  ;;  %v43_v33 = vsub.s32 3, %v30_v26  ;;  %v31_v35 = vsub.s32 0, %v30_v26 }
   0x5   :  { %504 = vmatpush3.bf16.msra.mxu1 %v528_v3  ;;  %483 = vmatprep.subr.bf16.mxu0 %v529_v4  ;;  %v537_v12 = vld [vmem:[%s705_s3 + $0x58] sm:$0xff]   ;;  %v541_v16 = vld [vmem:[%s705_s3 + $0x60] sm:$0xff]   ;;  %v545_v20 = vld [vmem:[%s705_s3 + $0x68] sm:$0xff]   ;;  %v39_v37 = vsub.s32 2, %v30_v26 }
   0x6   :  { %505 = vmatprep.subr.bf16.mxu1 %v530_v5  ;;  %v538_v13 = vld [vmem:[%s705_s3 + $0xd8] sm:$0xff]   ;;  %v542_v17 = vld [vmem:[%s705_s3 + $0xe0] sm:$0xff]   ;;  %v546_v22 = vld [vmem:[%s705_s3 + $0xe8] sm:$0xff]  }
   0x7   :  { %v539_v14 = vld [vmem:[%s705_s3 + $0x18] sm:$0xff]   ;;  %v543_v18 = vld [vmem:[%s705_s3 + $0x20] sm:$0xff]   ;;  %v547_v23 = vld [vmem:[%s705_s3 + $0x28] sm:$0xff]  }
   0x8   :  { %484 = vmatpush3.bf16.msra.mxu0 %v531_v6  ;;  %v540_v15 = vld [vmem:[%s705_s3 + $0x98] sm:$0xff]   ;;  %v544_v19 = vld [vmem:[%s705_s3 + $0xa0] sm:$0xff]   ;;  %v548_v24 = vld [vmem:[%s705_s3 + $0xa8] sm:$0xff]  }
   0x9   :  { %506 = vmatpush3.bf16.msra.mxu1 %v532_v7  ;;  %485 = vmatprep.subr.bf16.mxu0 %v533_v8  ;;  %v549_v25 = vld [vmem:[%s705_s3 + $0x70] sm:$0xff]   ;;  %v553_v30 = vld [vmem:[%s705_s3 + $0x78] sm:$0xff]   ;;  %v21_v38 = vld [vmem:[%s706_s0] sm:$0xff] }
   0xa   :  { %507 = vmatprep.subr.bf16.mxu1 %v534_v9  ;;  %v550_v27 = vld [vmem:[%s705_s3 + $0xf0] sm:$0xff]   ;;  %v554_v32 = vld [vmem:[%s705_s3 + $0xf8] sm:$0xff]   ;;  %v27_v39 = vld [vmem:[%s707_s1] sm:$0xf]  ;;  %v23_v41 = vunpack.c.l.bf16 %v21_v38  ;;  %v24_v42 = vunpack.c.h.bf16 %v21_v38 }
   0xb   :  { %v551_v28 = vld [vmem:[%s705_s3 + $0x30] sm:$0xff]   ;;  %v555_v34 = vld [vmem:[%s705_s3 + $0x38] sm:$0xff]   ;;  %v53_v40 = vld [vmem:[%s708_s2] sm:$0xf]  ;;  %v36_v43 = vrot.slane %v27_v39, %v35_v31  ;;  %v44_v48 = vrot.slane %v27_v39, %v43_v33  ;;  %v32_v51 = vrot.slane %v27_v39, %v31_v35  ;;  %v40_v53 = vrot.slane %v27_v39, %v39_v37 }
   0xc   :  { %486 = vmatpush3.bf16.msra.mxu0 %v535_v10  ;;  %v552_v29 = vld [vmem:[%s705_s3 + $0xb0] sm:$0xff]   ;;  %v556_v36 = vld [vmem:[%s705_s3 + $0xb8] sm:$0xff]   ;;  %v62_v44 = vrot.slane %v53_v40, %v35_v31  ;;  %v22_v45 = vld [vmem:[%s706_s0 + $0x8] sm:$0xff]  ;;  %v70_v49 = vrot.slane %v53_v40, %v43_v33  ;;  %v58_v52 = vrot.slane %v53_v40, %v31_v35  ;;  %v66_v55 = vrot.slane %v53_v40, %v39_v37 }
   0xd   :  { %508 = vmatpush3.bf16.msra.mxu1 %v536_v11  ;;  %487 = vmatprep.subr.bf16.mxu0 %v537_v12  ;;  %v25_v46 = vunpack.c.l.bf16 %v22_v45  ;;  %v26_v47 = vunpack.c.h.bf16 %v22_v45  ;;  %v50_v50 = vmul.f32 %v36_v43, %v24_v42  ;;  %v49_v57 = vmul.f32 %v32_v51, %v23_v41  ;;  %v448_v12 = vld [vmem:[%s709_s4] ss:$0 sm:$0xff] }
   0xe   :  { %509 = vmatprep.subr.bf16.mxu1 %v538_v13 }
   0xf   :  { %v52_v54 = vmul.f32 %v44_v48, %v26_v47  ;;  %v76_v56 = vadd.f32 %v62_v44, %v50_v50  ;;  %v51_v58 = vmul.f32 %v40_v53, %v25_v46  ;;  %v75_v61 = vadd.f32 %v58_v52, %v49_v57 }
  0x10   :  { %488 = vmatpush3.bf16.msra.mxu0 %v539_v14 }
  0x11   :  { %510 = vmatpush3.bf16.msra.mxu1 %v540_v15  ;;  %489 = vmatprep.subr.bf16.mxu0 %v541_v16  ;;  %v78_v59 = vadd.f32 %v70_v49, %v52_v54  ;;  %vm80_vm0 = vcmp.gt.f32.partialorder %v76_v56, 0.0  ;;  %v84_v60 = vmul.f32 0.2, %v76_v56  ;;  %v77_v62 = vadd.f32 %v66_v55, %v51_v58 }
  0x12   :  { %511 = vmatprep.subr.bf16.mxu1 %v542_v17  ;;  %vm79_vm2 = vcmp.gt.f32.partialorder %v75_v61, 0.0  ;;  %v83_v1 = vmul.f32 0.2, %v75_v61 }
  0x13   :  { %vm82_vm1 = vcmp.gt.f32.partialorder %v78_v59, 0.0  ;;  %v86_v63 = vmul.f32 0.2, %v78_v59  ;;  %v88_v0 = vsel %vm80_vm0, %v76_v56, %v84_v60  ;;  %vm81_vm3 = vcmp.gt.f32.partialorder %v77_v62, 0.0 }
  0x14   :  { %490 = vmatpush3.bf16.msra.mxu0 %v543_v18  ;;  %v92_v2 = vpack.c.bf16 %v88_v0, %v88_v0  ;;  %v85_v4 = vmul.f32 0.2, %v77_v62  ;;  %v87_v6 = vsel %vm79_vm2, %v75_v61, %v83_v1 }
  0x15   :  { %512 = vmatpush3.bf16.msra.mxu1 %v544_v19  ;;  %491 = vmatprep.subr.bf16.mxu0 %v545_v20  ;;  %v90_v3 = vsel %vm82_vm1, %v78_v59, %v86_v63  ;;  %v91_v7 = vpack.c.bf16 %v87_v6, %v87_v6 }
  0x16   :  { %513 = vmatprep.subr.bf16.mxu1 %v546_v22  ;;  %v94_v5 = vpack.c.bf16 %v90_v3, %v90_v3  ;;  %390 = vmatprep.mubr.bf16.mxu0 %v92_v2  ;;  %v89_v8 = vsel %vm81_vm3, %v77_v62, %v85_v4 }
  0x17   :  { %v93_v9 = vpack.c.bf16 %v89_v8, %v89_v8 }
  0x18   :  { %492 = vmatpush3.bf16.msra.mxu0 %v547_v23  ;;  %430 = vmatprep.mubr.bf16.mxu1 %v94_v5 }
  0x19   :  { %514 = vmatpush3.bf16.msra.mxu1 %v548_v24  ;;  %493 = vmatprep.subr.bf16.mxu0 %v549_v25 }
  0x1a   :  { %515 = vmatprep.subr.bf16.mxu1 %v550_v27 }
  0x1c   :  { %494 = vmatpush3.bf16.msra.mxu0 %v551_v28 }
  0x1d   :  { %516 = vmatpush3.bf16.msra.mxu1 %v552_v29  ;;  %495 = vmatprep.subr.bf16.mxu0 %v553_v30 }
  0x1e   :  { %517 = vmatprep.subr.bf16.mxu1 %v554_v32 }
  0x20   :  { %496 = vmatpush3.bf16.msra.mxu0 %v555_v34 }
  0x21   :  { %518 = vmatpush3.bf16.msra.mxu1 %v556_v36 }
  0x23   :  { %391 = vmatmul.mubr.bf16.vlgmr.msra.gmra.mrb[0].mxu0 %v91_v7 }
  0x24   :  { %431 = vmatmul.mubr.bf16.vlgmr.msra.gmra.mrb[0].mxu1 %v93_v9 }
  0xf6   :  { %v497_v10 = vpop.f32.mrb[0].mxu0 }
  0xf7   :  { %v519_v11 = vpop.f32.mrb[0].mxu1  ;;  %v498_v13 = vpop.f32.mrb[1].mxu0 }
  0xf8   :  { %v499_v14 = vadd.f32 %v498_v13, %v497_v10  ;;  %v520_v15 = vpop.f32.mrb[1].mxu1  ;;  %v500_v16 = vpop.f32.mrb[2].mxu0 }
  0xf9   :  { %v521_v17 = vadd.f32 %v520_v15, %v519_v11  ;;  %v522_v18 = vpop.f32.mrb[2].mxu1  ;;  %v501_v19 = vpop.f32.mrb[3].mxu0 }
  0xfa   :  { %v393_v20 = vadd.f32 %v499_v14, %v448_v12  ;;  %v523_v21 = vpop.f32.mrb[3].mxu1 }
  0xfc   :  { %v433_v22 = vadd.f32 %v521_v17, %v393_v20 }
  0xfe   :  { %v438_v23 = vsub.f32 0.0, %v433_v22 }
 0x100   :  { %v439_v24 = vmul.f32 1.442695, %v438_v23 }
 0x102   :  { %557 = vpow2.f32 %v439_v24 }
 0x10c   :  { %v558_v25 = vpop.eup %557 }
 0x10d   :  { %v441_v26 = vadd.f32 1.0, %v558_v25 }
 0x10f   :  { %559 = vrcp.f32 %v441_v26 }
 0x119   :  { %v560_v27 = vpop.eup %559 }
 0x11a   :  { %443 = vst [vmem:[%s710_s5] sm:$0xff] %v560_v27 }

// kernel: discriminator_forward.8
= control target key start
LH: loop header
LB: loop body
LE: loop exit
PB: predicated region body
PF: predicated region fallthrough
CT: control target
= control target key end

     0   :  { %v76_v37 = vlaneseq  ;;  %s14440_s3 = inlined_call_operand.vmem [shape: bf16[4096,512], index: 3, kind: input, shape index: {}]   ;;  %s14441_s0 = inlined_call_operand.vmem [shape: bf16[8,4096], index: 0, kind: input, shape index: {}]   ;;  %s14442_s1 = inlined_call_operand.vmem [shape: f32[1,4096], index: 1, kind: input, shape index: {}]   ;;  %s14443_s2 = inlined_call_operand.vmem [shape: f32[1,4096], index: 2, kind: input, shape index: {}]   ;;  %s14444_s4 = inlined_call_operand.vmem [shape: bf16[8,512], index: 4, kind: output, shape index: {0}]   ;;  %s14445_s5 = inlined_call_operand.vmem [shape: f32[1,512], index: 5, kind: output, shape index: {1}]   ;;  %s14446_s6 = inlined_call_operand.vmem [shape: f32[1,512], index: 6, kind: output, shape index: {2}]  }
   0x1   :  { %v9423_v0 = vld [vmem:[%s14440_s3 + $0x4] ss:$16 sps:$4 sm:$0xff]   ;;  %v9425_v1 = vld [vmem:[%s14440_s3 + $0xc] ss:$16 sps:$4 sm:$0xff]   ;;  %v9427_v2 = vld [vmem:[%s14440_s3] ss:$16 sps:$4 sm:$0xff]  }
   0x2   :  { %6740 = vmatprep.subr.bf16.mxu0 %v9423_v0  ;;  %v9428_v3 = vld [vmem:[%s14440_s3 + $0x8] ss:$16 sps:$4 sm:$0xff]   ;;  %7396 = vmatprep.subr.bf16.mxu1 %v9425_v1  ;;  %v9429_v4 = vld [vmem:[%s14440_s3 + $0x24] ss:$16 sps:$4 sm:$0xff]   ;;  %v9431_v5 = vld [vmem:[%s14440_s3 + $0x2c] ss:$16 sps:$4 sm:$0xff]  }
   0x3   :  { %6741 = vmatpush1.bf16.msra.mxu0 %v9427_v2  ;;  %7397 = vmatpush1.bf16.msra.mxu1 %v9428_v3  ;;  %v9433_v6 = vld [vmem:[%s14440_s3 + $0x20] ss:$16 sps:$4 sm:$0xff]   ;;  %v9434_v7 = vld [vmem:[%s14440_s3 + $0x28] ss:$16 sps:$4 sm:$0xff]   ;;  %v9435_v8 = vld [vmem:[%s14440_s3 + $0x44] ss:$16 sps:$4 sm:$0xff]  }
   0x4   :  { %6742 = vmatprep.subr.bf16.mxu0 %v9429_v4  ;;  %7398 = vmatprep.subr.bf16.mxu1 %v9431_v5  ;;  %v9437_v9 = vld [vmem:[%s14440_s3 + $0x4c] ss:$16 sps:$4 sm:$0xff]   ;;  %v9439_v10 = vld [vmem:[%s14440_s3 + $0x40] ss:$16 sps:$4 sm:$0xff]   ;;  %v9440_v11 = vld [vmem:[%s14440_s3 + $0x48] ss:$16 sps:$4 sm:$0xff]  }
   0x5   :  { %v9441_v12 = vld [vmem:[%s14440_s3 + $0x64] ss:$16 sps:$4 sm:$0xff]   ;;  %v9443_v13 = vld [vmem:[%s14440_s3 + $0x6c] ss:$16 sps:$4 sm:$0xff]   ;;  %v9445_v14 = vld [vmem:[%s14440_s3 + $0x60] ss:$16 sps:$4 sm:$0xff]  }
   0x6   :  { %v9446_v15 = vld [vmem:[%s14440_s3 + $0x68] ss:$16 sps:$4 sm:$0xff]   ;;  %v9447_v16 = vld [vmem:[%s14440_s3 + $0x84] ss:$16 sps:$4 sm:$0xff]   ;;  %v9449_v17 = vld [vmem:[%s14440_s3 + $0x8c] ss:$16 sps:$4 sm:$0xff]  }
   0x7   :  { %6743 = vmatpush1.bf16.msra.mxu0 %v9433_v6  ;;  %7399 = vmatpush1.bf16.msra.mxu1 %v9434_v7  ;;  %v9451_v18 = vld [vmem:[%s14440_s3 + $0x80] ss:$16 sps:$4 sm:$0xff]   ;;  %v9452_v19 = vld [vmem:[%s14440_s3 + $0x88] ss:$16 sps:$4 sm:$0xff]   ;;  %v9453_v20 = vld [vmem:[%s14440_s3 + $0xa4] ss:$16 sps:$4 sm:$0xff]  }
   0x8   :  { %6744 = vmatprep.subr.bf16.mxu0 %v9435_v8  ;;  %7400 = vmatprep.subr.bf16.mxu1 %v9437_v9  ;;  %v9455_v21 = vld [vmem:[%s14440_s3 + $0xac] ss:$16 sps:$4 sm:$0xff]   ;;  %v9457_v22 = vld [vmem:[%s14440_s3 + $0xa0] ss:$16 sps:$4 sm:$0xff]   ;;  %v9458_v23 = vld [vmem:[%s14440_s3 + $0xa8] ss:$16 sps:$4 sm:$0xff]  }
   0x9   :  { %v9459_v24 = vld [vmem:[%s14440_s3 + $0xc4] ss:$16 sps:$4 sm:$0xff]   ;;  %v9461_v25 = vld [vmem:[%s14440_s3 + $0xcc] ss:$16 sps:$4 sm:$0xff]   ;;  %v9463_v26 = vld [vmem:[%s14440_s3 + $0xc0] ss:$16 sps:$4 sm:$0xff]  }
   0xa   :  { %v9464_v27 = vld [vmem:[%s14440_s3 + $0xc8] ss:$16 sps:$4 sm:$0xff]   ;;  %v9465_v28 = vld [vmem:[%s14440_s3 + $0xe4] ss:$16 sps:$4 sm:$0xff]   ;;  %v9467_v29 = vld [vmem:[%s14440_s3 + $0xec] ss:$16 sps:$4 sm:$0xff]  }
   0xb   :  { %6745 = vmatpush1.bf16.msra.mxu0 %v9439_v10  ;;  %7401 = vmatpush1.bf16.msra.mxu1 %v9440_v11  ;;  %v9469_v30 = vld [vmem:[%s14440_s3 + $0xe0] ss:$16 sps:$4 sm:$0xff]   ;;  %v9470_v31 = vld [vmem:[%s14440_s3 + $0xe8] ss:$16 sps:$4 sm:$0xff]   ;;  %v9471_v32 = vld [vmem:[%s14440_s3 + $0x104] ss:$16 sps:$4 sm:$0xff]  }
   0xc   :  { %6746 = vmatprep.subr.bf16.mxu0 %v9441_v12  ;;  %7402 = vmatprep.subr.bf16.mxu1 %v9443_v13  ;;  %v9473_v33 = vld [vmem:[%s14440_s3 + $0x10c] ss:$16 sps:$4 sm:$0xff]   ;;  %v9475_v34 = vld [vmem:[%s14440_s3 + $0x100] ss:$16 sps:$4 sm:$0xff]   ;;  %v9476_v35 = vld [vmem:[%s14440_s3 + $0x108] ss:$16 sps:$4 sm:$0xff]  }
   0xd   :  { %v9477_v36 = vld [vmem:[%s14440_s3 + $0x124] ss:$16 sps:$4 sm:$0xff]   ;;  %v9479_v38 = vld [vmem:[%s14440_s3 + $0x12c] ss:$16 sps:$4 sm:$0xff]   ;;  %v9481_v39 = vld [vmem:[%s14440_s3 + $0x120] ss:$16 sps:$4 sm:$0xff]  }
   0xe   :  { %v9482_v40 = vld [vmem:[%s14440_s3 + $0x128] ss:$16 sps:$4 sm:$0xff]   ;;  %v9483_v41 = vld [vmem:[%s14440_s3 + $0x144] ss:$16 sps:$4 sm:$0xff]   ;;  %v11129_v42 = vshrl.u32 %v76_v37, 7 }
   0xf   :  { %6747 = vmatpush1.bf16.msra.mxu0 %v9445_v14  ;;  %7403 = vmatpush1.bf16.msra.mxu1 %v9446_v15  ;;  %v9485_v43 = vld [vmem:[%s14440_s3 + $0x14c] ss:$16 sps:$4 sm:$0xff]   ;;  %v9487_v44 = vld [vmem:[%s14440_s3 + $0x140] ss:$16 sps:$4 sm:$0xff]   ;;  %v9488_v45 = vld [vmem:[%s14440_s3 + $0x148] ss:$16 sps:$4 sm:$0xff]  }
  0x10   :  { %6748 = vmatprep.subr.bf16.mxu0 %v9447_v16  ;;  %7404 = vmatprep.subr.bf16.mxu1 %v9449_v17  ;;  %v9489_v46 = vld [vmem:[%s14440_s3 + $0x164] ss:$16 sps:$4 sm:$0xff]   ;;  %v11144_v47 = vsub.s32 1, %v11129_v42  ;;  %v11147_v48 = vsub.s32 0, %v11129_v42  ;;  %v9491_v49 = vld [vmem:[%s14440_s3 + $0x16c] ss:$16 sps:$4 sm:$0xff]  }
  0x11   :  { %v9493_v50 = vld [vmem:[%s14440_s3 + $0x160] ss:$16 sps:$4 sm:$0xff]   ;;  %v9494_v55 = vld [vmem:[%s14440_s3 + $0x168] ss:$16 sps:$4 sm:$0xff]   ;;  %v9495_v56 = vld [vmem:[%s14440_s3 + $0x184] ss:$16 sps:$4 sm:$0xff]  }
  0x12   :  { %v20_v51 = vld [vmem:[%s14441_s0] sm:$0xff]  ;;  %v9497_v61 = vld [vmem:[%s14440_s3 + $0x18c] ss:$16 sps:$4 sm:$0xff]   ;;  %v9500_v0 = vld [vmem:[%s14440_s3 + $0x188] ss:$16 sps:$4 sm:$0xff]  }
  0x13   :  { %6749 = vmatpush1.bf16.msra.mxu0 %v9451_v18  ;;  %7405 = vmatpush1.bf16.msra.mxu1 %v9452_v19  ;;  %v37_v52 = vunpack.c.h.bf16 %v20_v51  ;;  %v11161_v53 = vld [vmem:[%s14442_s1] sm:$0xff]  ;;  %v36_v57 = vunpack.c.l.bf16 %v20_v51  ;;  %v9503_v5 = vld [vmem:[%s14440_s3 + $0x1ac] ss:$16 sps:$4 sm:$0xff]   ;;  %v9506_v8 = vld [vmem:[%s14440_s3 + $0x1a8] ss:$16 sps:$4 sm:$0xff]  }
  0x14   :  { %6750 = vmatprep.subr.bf16.mxu0 %v9453_v20  ;;  %7406 = vmatprep.subr.bf16.mxu1 %v9455_v21  ;;  %v11166_v54 = vld [vmem:[%s14443_s2] sm:$0xff]  ;;  %v83_v58 = vrot.slane %v11161_v53, %v11144_v47  ;;  %v79_v60 = vrot.slane %v11161_v53, %v11147_v48  ;;  %v9509_v12 = vld [vmem:[%s14440_s3 + $0x1cc] ss:$16 sps:$4 sm:$0xff]   ;;  %v9512_v15 = vld [vmem:[%s14440_s3 + $0x1c8] ss:$16 sps:$4 sm:$0xff]  }
  0x15   :  { %v283_v59 = vrot.slane %v11166_v54, %v11144_v47  ;;  %v9499_v63 = vld [vmem:[%s14440_s3 + $0x180] ss:$16 sps:$4 sm:$0xff]   ;;  %v9501_v1 = vld [vmem:[%s14440_s3 + $0x1a4] ss:$16 sps:$4 sm:$0xff]   ;;  %v279_v4 = vrot.slane %v11166_v54, %v11147_v48  ;;  %v9515_v18 = vld [vmem:[%s14440_s3 + $0x1ec] ss:$16 sps:$4 sm:$0xff]  }
  0x16   :  { %v237_v62 = vmul.f32 %v83_v58, %v37_v52  ;;  %v236_v3 = vmul.f32 %v79_v60, %v36_v57  ;;  %v9505_v7 = vld [vmem:[%s14440_s3 + $0x1a0] ss:$16 sps:$4 sm:$0xff]   ;;  %v9507_v11 = vld [vmem:[%s14440_s3 + $0x1c4] ss:$16 sps:$4 sm:$0xff]   ;;  %v9518_v20 = vld [vmem:[%s14440_s3 + $0x1e8] ss:$16 sps:$4 sm:$0xff]  }
  0x17   :  { %6751 = vmatpush1.bf16.msra.mxu0 %v9457_v22  ;;  %7407 = vmatpush1.bf16.msra.mxu1 %v9458_v23  ;;  %v9511_v14 = vld [vmem:[%s14440_s3 + $0x1c0] ss:$16 sps:$4 sm:$0xff]   ;;  %v9513_v17 = vld [vmem:[%s14440_s3 + $0x1e4] ss:$16 sps:$4 sm:$0xff]   ;;  %v9524_v23 = vld [vmem:[%s14440_s3 + $0x20c] ss:$16 sps:$4 sm:$0xff]  }
  0x18   :  { %6752 = vmatprep.subr.bf16.mxu0 %v9459_v24  ;;  %7408 = vmatprep.subr.bf16.mxu1 %v9461_v25  ;;  %v437_v2 = vadd.f32 %v283_v59, %v237_v62  ;;  %v436_v10 = vadd.f32 %v279_v4, %v236_v3  ;;  %v9517_v19 = vld [vmem:[%s14440_s3 + $0x1e0] ss:$16 sps:$4 sm:$0xff]   ;;  %v9521_v22 = vld [vmem:[%s14440_s3 + $0x204] ss:$16 sps:$4 sm:$0xff]   ;;  %v9552_v51 = vld [vmem:[%s14440_s3 + $0x2a8] ss:$16 sps:$4 sm:$0xff]  }
  0x19   :  { %v9519_v25 = vld [vmem:[%s14440_s3 + $0x200] ss:$16 sps:$4 sm:$0xff]   ;;  %v9557_v52 = vld [vmem:[%s14440_s3 + $0x2c4] ss:$16 sps:$4 sm:$0xff]   ;;  %v11316_v58 = vld [vmem:[%s14441_s0 + $0x8] sm:$0xff] }
  0x1a   :  { %vm469_vm0 = vcmp.gt.f32.partialorder %v437_v2, 0.0  ;;  %v501_v6 = vmul.f32 0.2, %v437_v2  ;;  %v500_v16 = vmul.f32 0.2, %v436_v10  ;;  %vm468_vm1 = vcmp.gt.f32.partialorder %v436_v10, 0.0 }
  0x1b   :  { %6753 = vmatpush1.bf16.msra.mxu0 %v9463_v26  ;;  %7409 = vmatpush1.bf16.msra.mxu1 %v9464_v27  ;;  %v9522_v26 = vld [vmem:[%s14440_s3 + $0x208] ss:$16 sps:$4 sm:$0xff]   ;;  %v9527_v27 = vld [vmem:[%s14440_s3 + $0x224] ss:$16 sps:$4 sm:$0xff]   ;;  %v9555_v57 = vld [vmem:[%s14440_s3 + $0x2c0] ss:$16 sps:$4 sm:$0xff]  }
  0x1c   :  { %6754 = vmatprep.subr.bf16.mxu0 %v9465_v28  ;;  %7410 = vmatprep.subr.bf16.mxu1 %v9467_v29  ;;  %v533_v9 = vsel %vm469_vm0, %v437_v2, %v501_v6  ;;  %v532_v21 = vsel %vm468_vm1, %v436_v10, %v500_v16  ;;  %v9530_v28 = vld [vmem:[%s14440_s3 + $0x22c] ss:$16 sps:$4 sm:$0xff]   ;;  %v9525_v29 = vld [vmem:[%s14440_s3 + $0x220] ss:$16 sps:$4 sm:$0xff]   ;;  %v9558_v59 = vld [vmem:[%s14440_s3 + $0x2c8] ss:$16 sps:$4 sm:$0xff]  }
  0x1d   :  { %v565_v13 = vpack.c.bf16 %v533_v9, %v533_v9  ;;  %v564_v24 = vpack.c.bf16 %v532_v21, %v532_v21  ;;  %v9563_v60 = vld [vmem:[%s14440_s3 + $0x2e4] ss:$16 sps:$4 sm:$0xff]   ;;  %v9564_v2 = vld [vmem:[%s14440_s3 + $0x2e8] ss:$16 sps:$4 sm:$0xff]   ;;  %v9584_v16 = vld [vmem:[%s14440_s3 + $0x34c] ss:$16 sps:$4 sm:$0xff]  }
  0x1e   :  { %v9569_v3 = vld [vmem:[%s14440_s3 + $0x304] ss:$16 sps:$4 sm:$0xff]   ;;  %v9590_v21 = vld [vmem:[%s14440_s3 + $0x36c] ss:$16 sps:$4 sm:$0xff]  }
  0x1f   :  { %6755 = vmatpush1.bf16.msra.mxu0 %v9469_v30  ;;  %7411 = vmatpush1.bf16.msra.mxu1 %v9470_v31  ;;  %v9528_v30 = vld [vmem:[%s14440_s3 + $0x228] ss:$16 sps:$4 sm:$0xff]   ;;  %v9533_v31 = vld [vmem:[%s14440_s3 + $0x244] ss:$16 sps:$4 sm:$0xff]  }
  0x20   :  { %6756 = vmatprep.subr.bf16.mxu0 %v9471_v32  ;;  %7412 = vmatprep.subr.bf16.mxu1 %v9473_v33  ;;  %v9536_v32 = vld [vmem:[%s14440_s3 + $0x24c] ss:$16 sps:$4 sm:$0xff]   ;;  %v9531_v33 = vld [vmem:[%s14440_s3 + $0x240] ss:$16 sps:$4 sm:$0xff]   ;;  %v9575_v10 = vld [vmem:[%s14440_s3 + $0x324] ss:$16 sps:$4 sm:$0xff]  }
  0x21   :  { %6772 = vmatprep.mubr.bf16.mxu0 %v565_v13  ;;  %7428 = vmatprep.mubr.bf16.mxu1 %v565_v13  ;;  %v9573_v13 = vld [vmem:[%s14440_s3 + $0x320] ss:$16 sps:$4 sm:$0xff]  }
  0x23   :  { %6757 = vmatpush1.bf16.msra.mxu0 %v9475_v34  ;;  %7413 = vmatpush1.bf16.msra.mxu1 %v9476_v35  ;;  %v9534_v34 = vld [vmem:[%s14440_s3 + $0x248] ss:$16 sps:$4 sm:$0xff]   ;;  %v9539_v35 = vld [vmem:[%s14440_s3 + $0x264] ss:$16 sps:$4 sm:$0xff]  }
  0x24   :  { %6758 = vmatprep.subr.bf16.mxu0 %v9477_v36  ;;  %7414 = vmatprep.subr.bf16.mxu1 %v9479_v38  ;;  %v9542_v36 = vld [vmem:[%s14440_s3 + $0x26c] ss:$16 sps:$4 sm:$0xff]   ;;  %v9537_v38 = vld [vmem:[%s14440_s3 + $0x260] ss:$16 sps:$4 sm:$0xff]  }
  0x27   :  { %6759 = vmatpush1.bf16.msra.mxu0 %v9481_v39  ;;  %7415 = vmatpush1.bf16.msra.mxu1 %v9482_v40  ;;  %v9540_v39 = vld [vmem:[%s14440_s3 + $0x268] ss:$16 sps:$4 sm:$0xff]   ;;  %v9545_v40 = vld [vmem:[%s14440_s3 + $0x284] ss:$16 sps:$4 sm:$0xff]  }
  0x28   :  { %6760 = vmatprep.subr.bf16.mxu0 %v9483_v41  ;;  %7416 = vmatprep.subr.bf16.mxu1 %v9485_v43  ;;  %v9548_v41 = vld [vmem:[%s14440_s3 + $0x28c] ss:$16 sps:$4 sm:$0xff]   ;;  %v9543_v43 = vld [vmem:[%s14440_s3 + $0x280] ss:$16 sps:$4 sm:$0xff]  }
  0x2b   :  { %6761 = vmatpush1.bf16.msra.mxu0 %v9487_v44  ;;  %7417 = vmatpush1.bf16.msra.mxu1 %v9488_v45  ;;  %v9546_v44 = vld [vmem:[%s14440_s3 + $0x288] ss:$16 sps:$4 sm:$0xff]   ;;  %v9551_v45 = vld [vmem:[%s14440_s3 + $0x2a4] ss:$16 sps:$4 sm:$0xff]  }
  0x2c   :  { %6762 = vmatprep.subr.bf16.mxu0 %v9489_v46  ;;  %7418 = vmatprep.subr.bf16.mxu1 %v9491_v49  ;;  %v9554_v46 = vld [vmem:[%s14440_s3 + $0x2ac] ss:$16 sps:$4 sm:$0xff]   ;;  %v11294_v49 = vsub.s32 3, %v11129_v42 }
  0x2e   :  { %v291_v62 = vrot.slane %v11166_v54, %v11294_v49 }
  0x2f   :  { %6763 = vmatpush1.bf16.msra.mxu0 %v9493_v50  ;;  %7419 = vmatpush1.bf16.msra.mxu1 %v9494_v55  ;;  %v9549_v50 = vld [vmem:[%s14440_s3 + $0x2a0] ss:$16 sps:$4 sm:$0xff]   ;;  %v9560_v55 = vld [vmem:[%s14440_s3 + $0x2cc] ss:$16 sps:$4 sm:$0xff]  }
  0x30   :  { %6764 = vmatprep.subr.bf16.mxu0 %v9495_v56  ;;  %7420 = vmatprep.subr.bf16.mxu1 %v9497_v61  ;;  %v91_v56 = vrot.slane %v11161_v53, %v11294_v49  ;;  %v39_v61 = vunpack.c.h.bf16 %v11316_v58 }
  0x33   :  { %6765 = vmatpush1.bf16.msra.mxu0 %v9499_v63  ;;  %7421 = vmatpush1.bf16.msra.mxu1 %v9500_v0  ;;  %v9566_v63 = vld [vmem:[%s14440_s3 + $0x2ec] ss:$16 sps:$4 sm:$0xff]   ;;  %v239_v0 = vmul.f32 %v91_v56, %v39_v61  ;;  %v11447_v56 = vsub.s32 5, %v11129_v42 }
  0x34   :  { %6766 = vmatprep.subr.bf16.mxu0 %v9501_v1  ;;  %7422 = vmatprep.subr.bf16.mxu1 %v9503_v5  ;;  %v9561_v1 = vld [vmem:[%s14440_s3 + $0x2e0] ss:$16 sps:$4 sm:$0xff]   ;;  %v9572_v5 = vld [vmem:[%s14440_s3 + $0x30c] ss:$16 sps:$4 sm:$0xff]  }
  0x35   :  { %v439_v4 = vadd.f32 %v291_v62, %v239_v0  ;;  %v9626_v61 = vld [vmem:[%s14440_s3 + $0x42c] ss:$16 sps:$4 sm:$0xff]   ;;  %v99_v62 = vrot.slane %v11161_v53, %v11447_v56  ;;  %v11469_v0 = vld [vmem:[%s14441_s0 + $0x10] sm:$0xff] }
  0x37   :  { %6767 = vmatpush1.bf16.msra.mxu0 %v9505_v7  ;;  %7423 = vmatpush1.bf16.msra.mxu1 %v9506_v8  ;;  %vm471_vm2 = vcmp.gt.f32.partialorder %v439_v4, 0.0  ;;  %v503_v6 = vmul.f32 0.2, %v439_v4  ;;  %v9567_v7 = vld [vmem:[%s14440_s3 + $0x300] ss:$16 sps:$4 sm:$0xff]  }
  0x38   :  { %6768 = vmatprep.subr.bf16.mxu0 %v9507_v11  ;;  %7424 = vmatprep.subr.bf16.mxu1 %v9509_v12  ;;  %v9570_v8 = vld [vmem:[%s14440_s3 + $0x308] ss:$16 sps:$4 sm:$0xff]   ;;  %v9578_v11 = vld [vmem:[%s14440_s3 + $0x32c] ss:$16 sps:$4 sm:$0xff]  }
  0x39   :  { %v535_v9 = vsel %vm471_vm2, %v439_v4, %v503_v6  ;;  %v299_v4 = vrot.slane %v11166_v54, %v11447_v56 }
  0x3a   :  { %v567_v12 = vpack.c.bf16 %v535_v9, %v535_v9 }
  0x3b   :  { %6769 = vmatpush1.bf16.msra.mxu0 %v9511_v14  ;;  %7425 = vmatpush1.bf16.msra.mxu1 %v9512_v15  ;;  %v9576_v14 = vld [vmem:[%s14440_s3 + $0x328] ss:$16 sps:$4 sm:$0xff]   ;;  %v9581_v15 = vld [vmem:[%s14440_s3 + $0x344] ss:$16 sps:$4 sm:$0xff]  }
  0x3c   :  { %6770 = vmatprep.subr.bf16.mxu0 %v9513_v17  ;;  %7426 = vmatprep.subr.bf16.mxu1 %v9515_v18  ;;  %v9579_v17 = vld [vmem:[%s14440_s3 + $0x340] ss:$16 sps:$4 sm:$0xff]   ;;  %v9582_v18 = vld [vmem:[%s14440_s3 + $0x348] ss:$16 sps:$4 sm:$0xff]  }
  0x3f   :  { %6771 = vmatpush1.bf16.msra.mxu0 %v9517_v19  ;;  %7427 = vmatpush1.bf16.msra.mxu1 %v9518_v20  ;;  %v11373_v19 = vsub.s32 2, %v11129_v42  ;;  %v9587_v20 = vld [vmem:[%s14440_s3 + $0x364] ss:$16 sps:$4 sm:$0xff]  }
  0x40   :  { %6781 = vmatprep.subr.bf16.mxu0 %v9521_v22  ;;  %7437 = vmatprep.subr.bf16.mxu1 %v9524_v23  ;;  %v9585_v22 = vld [vmem:[%s14440_s3 + $0x360] ss:$16 sps:$4 sm:$0xff]   ;;  %v9588_v23 = vld [vmem:[%s14440_s3 + $0x368] ss:$16 sps:$4 sm:$0xff]  }
  0x42   :  { %6773 = vmatmul.mubr.bf16.vlgmr.msra.gmra.mrb[0].mxu0 %v564_v24  ;;  %7429 = vmatmul.mubr.bf16.vlgmr.msra.gmra.mrb[0].mxu1 %v564_v24  ;;  %v38_v24 = vunpack.c.l.bf16 %v11316_v58  ;;  %v9615_v58 = vld [vmem:[%s14440_s3 + $0x400] ss:$16 sps:$4 sm:$0xff]  }
  0x43   :  { %6782 = vmatpush1.bf16.msra.mxu0 %v9519_v25  ;;  %7438 = vmatpush1.bf16.msra.mxu1 %v9522_v26  ;;  %v87_v25 = vrot.slane %v11161_v53, %v11373_v19  ;;  %v9593_v26 = vld [vmem:[%s14440_s3 + $0x384] ss:$16 sps:$4 sm:$0xff]  }
  0x44   :  { %6783 = vmatprep.subr.bf16.mxu0 %v9527_v27  ;;  %7439 = vmatprep.subr.bf16.mxu1 %v9530_v28  ;;  %v9596_v27 = vld [vmem:[%s14440_s3 + $0x38c] ss:$16 sps:$4 sm:$0xff]   ;;  %v9591_v28 = vld [vmem:[%s14440_s3 + $0x380] ss:$16 sps:$4 sm:$0xff]  }
  0x45   :  { %6813 = vmatprep.mubr.bf16.mxu0 %v567_v12  ;;  %7469 = vmatprep.mubr.bf16.mxu1 %v567_v12  ;;  %v9633_v12 = vld [vmem:[%s14440_s3 + $0x460] ss:$16 sps:$4 sm:$0xff]  }
  0x47   :  { %6784 = vmatpush1.bf16.msra.mxu0 %v9525_v29  ;;  %7440 = vmatpush1.bf16.msra.mxu1 %v9528_v30  ;;  %v9594_v29 = vld [vmem:[%s14440_s3 + $0x388] ss:$16 sps:$4 sm:$0xff]   ;;  %v238_v30 = vmul.f32 %v87_v25, %v38_v24  ;;  %v9653_v25 = vld [vmem:[%s14440_s3 + $0x4c4] ss:$16 sps:$4 sm:$0xff]  }
  0x48   :  { %6785 = vmatprep.subr.bf16.mxu0 %v9533_v31  ;;  %7441 = vmatprep.subr.bf16.mxu1 %v9536_v32  ;;  %v287_v31 = vrot.slane %v11166_v54, %v11373_v19  ;;  %v9599_v32 = vld [vmem:[%s14440_s3 + $0x3a4] ss:$16 sps:$4 sm:$0xff]   ;;  %v9648_v24 = vld [vmem:[%s14440_s3 + $0x4a8] ss:$16 sps:$4 sm:$0xff]  }
  0x49   :  { %v9635_v54 = vld [vmem:[%s14440_s3 + $0x464] ss:$16 sps:$4 sm:$0xff]  }
  0x4b   :  { %6786 = vmatpush1.bf16.msra.mxu0 %v9531_v33  ;;  %7442 = vmatpush1.bf16.msra.mxu1 %v9534_v34  ;;  %v9602_v33 = vld [vmem:[%s14440_s3 + $0x3ac] ss:$16 sps:$4 sm:$0xff]   ;;  %v9597_v34 = vld [vmem:[%s14440_s3 + $0x3a0] ss:$16 sps:$4 sm:$0xff]  }
  0x4c   :  { %6787 = vmatprep.subr.bf16.mxu0 %v9539_v35  ;;  %7443 = vmatprep.subr.bf16.mxu1 %v9542_v36  ;;  %v9600_v35 = vld [vmem:[%s14440_s3 + $0x3a8] ss:$16 sps:$4 sm:$0xff]   ;;  %v438_v36 = vadd.f32 %v287_v31, %v238_v30  ;;  %v9662_v30 = vld [vmem:[%s14440_s3 + $0x4ec] ss:$16 sps:$4 sm:$0xff]   ;;  %v9657_v31 = vld [vmem:[%s14440_s3 + $0x4e0] ss:$16 sps:$4 sm:$0xff]  }
  0x4e   :  { %vm470_vm3 = vcmp.gt.f32.partialorder %v438_v36, 0.0 }
  0x4f   :  { %6788 = vmatpush1.bf16.msra.mxu0 %v9537_v38  ;;  %7444 = vmatpush1.bf16.msra.mxu1 %v9540_v39  ;;  %v9605_v38 = vld [vmem:[%s14440_s3 + $0x3c4] ss:$16 sps:$4 sm:$0xff]   ;;  %v9608_v39 = vld [vmem:[%s14440_s3 + $0x3cc] ss:$16 sps:$4 sm:$0xff]  }
  0x50   :  { %6789 = vmatprep.subr.bf16.mxu0 %v9545_v40  ;;  %7445 = vmatprep.subr.bf16.mxu1 %v9548_v41  ;;  %v9603_v40 = vld [vmem:[%s14440_s3 + $0x3c0] ss:$16 sps:$4 sm:$0xff]   ;;  %v9606_v41 = vld [vmem:[%s14440_s3 + $0x3c8] ss:$16 sps:$4 sm:$0xff]  }
  0x53   :  { %6790 = vmatpush1.bf16.msra.mxu0 %v9543_v43  ;;  %7446 = vmatpush1.bf16.msra.mxu1 %v9546_v44  ;;  %v502_v43 = vmul.f32 0.2, %v438_v36  ;;  %v9611_v44 = vld [vmem:[%s14440_s3 + $0x3e4] ss:$16 sps:$4 sm:$0xff]  }
  0x54   :  { %6791 = vmatprep.subr.bf16.mxu0 %v9551_v45  ;;  %7447 = vmatprep.subr.bf16.mxu1 %v9554_v46  ;;  %v9614_v45 = vld [vmem:[%s14440_s3 + $0x3ec] ss:$16 sps:$4 sm:$0xff]   ;;  %v9609_v46 = vld [vmem:[%s14440_s3 + $0x3e0] ss:$16 sps:$4 sm:$0xff]  }
  0x57   :  { %6792 = vmatpush1.bf16.msra.mxu0 %v9549_v50  ;;  %7448 = vmatpush1.bf16.msra.mxu1 %v9552_v51  ;;  %v9612_v50 = vld [vmem:[%s14440_s3 + $0x3e8] ss:$16 sps:$4 sm:$0xff]   ;;  %v534_v51 = vsel %vm470_vm3, %v438_v36, %v502_v43  ;;  %v9677_v43 = vld [vmem:[%s14440_s3 + $0x544] ss:$16 sps:$4 sm:$0xff]  }
  0x58   :  { %6793 = vmatprep.subr.bf16.mxu0 %v9557_v52  ;;  %7449 = vmatprep.subr.bf16.mxu1 %v9560_v55  ;;  %v9617_v52 = vld [vmem:[%s14440_s3 + $0x404] ss:$16 sps:$4 sm:$0xff]   ;;  %v9620_v55 = vld [vmem:[%s14440_s3 + $0x40c] ss:$16 sps:$4 sm:$0xff]   ;;  %v9666_v36 = vld [vmem:[%s14440_s3 + $0x508] ss:$16 sps:$4 sm:$0xff]  }
  0x5b   :  { %6794 = vmatpush1.bf16.msra.mxu0 %v9555_v57  ;;  %7450 = vmatpush1.bf16.msra.mxu1 %v9558_v59  ;;  %v566_v57 = vpack.c.bf16 %v534_v51, %v534_v51  ;;  %v9618_v59 = vld [vmem:[%s14440_s3 + $0x408] ss:$16 sps:$4 sm:$0xff]   ;;  %v9683_v51 = vld [vmem:[%s14440_s3 + $0x564] ss:$16 sps:$4 sm:$0xff]  }
  0x5c   :  { %6795 = vmatprep.subr.bf16.mxu0 %v9563_v60  ;;  %7451 = vmatprep.subr.bf16.mxu1 %v9566_v63  ;;  %v9623_v60 = vld [vmem:[%s14440_s3 + $0x424] ss:$16 sps:$4 sm:$0xff]   ;;  %v9621_v63 = vld [vmem:[%s14440_s3 + $0x420] ss:$16 sps:$4 sm:$0xff]  }
  0x5f   :  { %6796 = vmatpush1.bf16.msra.mxu0 %v9561_v1  ;;  %7452 = vmatpush1.bf16.msra.mxu1 %v9564_v2  ;;  %v9624_v1 = vld [vmem:[%s14440_s3 + $0x428] ss:$16 sps:$4 sm:$0xff]   ;;  %v9629_v2 = vld [vmem:[%s14440_s3 + $0x444] ss:$16 sps:$4 sm:$0xff]  }
  0x60   :  { %6797 = vmatprep.subr.bf16.mxu0 %v9569_v3  ;;  %7453 = vmatprep.subr.bf16.mxu1 %v9572_v5  ;;  %v41_v3 = vunpack.c.h.bf16 %v11469_v0  ;;  %v9632_v5 = vld [vmem:[%s14440_s3 + $0x44c] ss:$16 sps:$4 sm:$0xff]  }
  0x62   :  { %v241_v6 = vmul.f32 %v99_v62, %v41_v3  ;;  %v9692_v62 = vld [vmem:[%s14440_s3 + $0x58c] ss:$16 sps:$4 sm:$0xff]   ;;  %v9695_v3 = vld [vmem:[%s14440_s3 + $0x5a4] ss:$16 sps:$4 sm:$0xff]  }
  0x63   :  { %6798 = vmatpush1.bf16.msra.mxu0 %v9567_v7  ;;  %7454 = vmatpush1.bf16.msra.mxu1 %v9570_v8  ;;  %v9627_v7 = vld [vmem:[%s14440_s3 + $0x440] ss:$16 sps:$4 sm:$0xff]   ;;  %v9630_v8 = vld [vmem:[%s14440_s3 + $0x448] ss:$16 sps:$4 sm:$0xff]  }
  0x64   :  { %6799 = vmatprep.subr.bf16.mxu0 %v9575_v10  ;;  %7455 = vmatprep.subr.bf16.mxu1 %v9578_v11  ;;  %v441_v9 = vadd.f32 %v299_v4, %v241_v6  ;;  %v9638_v10 = vld [vmem:[%s14440_s3 + $0x46c] ss:$16 sps:$4 sm:$0xff]  }
  0x66   :  { %vm473_vm4 = vcmp.gt.f32.partialorder %v441_v9, 0.0  ;;  %v505_v11 = vmul.f32 0.2, %v441_v9 }
  0x67   :  { %6800 = vmatpush1.bf16.msra.mxu0 %v9573_v13  ;;  %7456 = vmatpush1.bf16.msra.mxu1 %v9576_v14  ;;  %v9636_v13 = vld [vmem:[%s14440_s3 + $0x468] ss:$16 sps:$4 sm:$0xff]  }
  0x68   :  { %6801 = vmatprep.subr.bf16.mxu0 %v9581_v15  ;;  %7457 = vmatprep.subr.bf16.mxu1 %v9584_v16  ;;  %v537_v14 = vsel %vm473_vm4, %v441_v9, %v505_v11  ;;  %v9641_v15 = vld [vmem:[%s14440_s3 + $0x484] ss:$16 sps:$4 sm:$0xff]   ;;  %v9644_v16 = vld [vmem:[%s14440_s3 + $0x48c] ss:$16 sps:$4 sm:$0xff]   ;;  %v9696_v11 = vld [vmem:[%s14440_s3 + $0x5a8] ss:$16 sps:$4 sm:$0xff]  }
  0x6b   :  { %6802 = vmatpush1.bf16.msra.mxu0 %v9579_v17  ;;  %7458 = vmatpush1.bf16.msra.mxu1 %v9582_v18  ;;  %v569_v17 = vpack.c.bf16 %v537_v14, %v537_v14  ;;  %v9639_v18 = vld [vmem:[%s14440_s3 + $0x480] ss:$16 sps:$4 sm:$0xff]   ;;  %v9704_v14 = vld [vmem:[%s14440_s3 + $0x5cc] ss:$16 sps:$4 sm:$0xff]  }
  0x6c   :  { %6803 = vmatprep.subr.bf16.mxu0 %v9587_v20  ;;  %7459 = vmatprep.subr.bf16.mxu1 %v9590_v21  ;;  %v9642_v20 = vld [vmem:[%s14440_s3 + $0x488] ss:$16 sps:$4 sm:$0xff]   ;;  %v9647_v21 = vld [vmem:[%s14440_s3 + $0x4a4] ss:$16 sps:$4 sm:$0xff]  }
  0x6f   :  { %6804 = vmatpush1.bf16.msra.mxu0 %v9585_v22  ;;  %7460 = vmatpush1.bf16.msra.mxu1 %v9588_v23  ;;  %v9650_v22 = vld [vmem:[%s14440_s3 + $0x4ac] ss:$16 sps:$4 sm:$0xff]   ;;  %v9645_v23 = vld [vmem:[%s14440_s3 + $0x4a0] ss:$16 sps:$4 sm:$0xff]  }
  0x70   :  { %6805 = vmatprep.subr.bf16.mxu0 %v9593_v26  ;;  %7461 = vmatprep.subr.bf16.mxu1 %v9596_v27  ;;  %v9656_v26 = vld [vmem:[%s14440_s3 + $0x4cc] ss:$16 sps:$4 sm:$0xff]   ;;  %v9651_v27 = vld [vmem:[%s14440_s3 + $0x4c0] ss:$16 sps:$4 sm:$0xff]  }
  0x73   :  { %6806 = vmatpush1.bf16.msra.mxu0 %v9591_v28  ;;  %7462 = vmatpush1.bf16.msra.mxu1 %v9594_v29  ;;  %v9654_v28 = vld [vmem:[%s14440_s3 + $0x4c8] ss:$16 sps:$4 sm:$0xff]   ;;  %v9659_v29 = vld [vmem:[%s14440_s3 + $0x4e4] ss:$16 sps:$4 sm:$0xff]  }
  0x74   :  { %6807 = vmatprep.subr.bf16.mxu0 %v9599_v32  ;;  %7463 = vmatprep.subr.bf16.mxu1 %v9602_v33  ;;  %v9660_v32 = vld [vmem:[%s14440_s3 + $0x4e8] ss:$16 sps:$4 sm:$0xff]   ;;  %v9665_v33 = vld [vmem:[%s14440_s3 + $0x504] ss:$16 sps:$4 sm:$0xff]  }
  0x77   :  { %6808 = vmatpush1.bf16.msra.mxu0 %v9597_v34  ;;  %7464 = vmatpush1.bf16.msra.mxu1 %v9600_v35  ;;  %v9668_v34 = vld [vmem:[%s14440_s3 + $0x50c] ss:$16 sps:$4 sm:$0xff]   ;;  %v9663_v35 = vld [vmem:[%s14440_s3 + $0x500] ss:$16 sps:$4 sm:$0xff]  }
  0x78   :  { %6809 = vmatprep.subr.bf16.mxu0 %v9605_v38  ;;  %7465 = vmatprep.subr.bf16.mxu1 %v9608_v39  ;;  %v9671_v38 = vld [vmem:[%s14440_s3 + $0x524] ss:$16 sps:$4 sm:$0xff]   ;;  %v9674_v39 = vld [vmem:[%s14440_s3 + $0x52c] ss:$16 sps:$4 sm:$0xff]  }
  0x7b   :  { %6810 = vmatpush1.bf16.msra.mxu0 %v9603_v40  ;;  %7466 = vmatpush1.bf16.msra.mxu1 %v9606_v41  ;;  %v9669_v40 = vld [vmem:[%s14440_s3 + $0x520] ss:$16 sps:$4 sm:$0xff]   ;;  %v9672_v41 = vld [vmem:[%s14440_s3 + $0x528] ss:$16 sps:$4 sm:$0xff]  }
  0x7c   :  { %6811 = vmatprep.subr.bf16.mxu0 %v9611_v44  ;;  %7467 = vmatprep.subr.bf16.mxu1 %v9614_v45  ;;  %v9680_v44 = vld [vmem:[%s14440_s3 + $0x54c] ss:$16 sps:$4 sm:$0xff]   ;;  %v9675_v45 = vld [vmem:[%s14440_s3 + $0x540] ss:$16 sps:$4 sm:$0xff]  }
  0x7f   :  { %6812 = vmatpush1.bf16.msra.mxu0 %v9609_v46  ;;  %7468 = vmatpush1.bf16.msra.mxu1 %v9612_v50  ;;  %v9678_v46 = vld [vmem:[%s14440_s3 + $0x548] ss:$16 sps:$4 sm:$0xff]   ;;  %v11586_v50 = vsub.s32 4, %v11129_v42 }
  0x80   :  { %6822 = vmatprep.subr.bf16.mxu0 %v9617_v52  ;;  %7478 = vmatprep.subr.bf16.mxu1 %v9620_v55  ;;  %v9686_v52 = vld [vmem:[%s14440_s3 + $0x56c] ss:$16 sps:$4 sm:$0xff]   ;;  %v11595_v55 = vsub.s32 7, %v11129_v42 }
  0x82   :  { %6814 = vmatmul.mubr.bf16.vlgmr.msra.gmra.mrb[0].mxu0 %v566_v57  ;;  %7470 = vmatmul.mubr.bf16.vlgmr.msra.gmra.mrb[0].mxu1 %v566_v57  ;;  %v9681_v57 = vld [vmem:[%s14440_s3 + $0x560] ss:$16 sps:$4 sm:$0xff]  }
  0x83   :  { %6823 = vmatpush1.bf16.msra.mxu0 %v9615_v58  ;;  %7479 = vmatpush1.bf16.msra.mxu1 %v9618_v59  ;;  %v9684_v58 = vld [vmem:[%s14440_s3 + $0x568] ss:$16 sps:$4 sm:$0xff]   ;;  %v40_v59 = vunpack.c.l.bf16 %v11469_v0 }
  0x84   :  { %6824 = vmatprep.subr.bf16.mxu0 %v9623_v60  ;;  %7480 = vmatprep.subr.bf16.mxu1 %v9626_v61  ;;  %v95_v60 = vrot.slane %v11161_v53, %v11586_v50  ;;  %v9689_v61 = vld [vmem:[%s14440_s3 + $0x584] ss:$16 sps:$4 sm:$0xff]   ;;  %v11618_v0 = vld [vmem:[%s14441_s0 + $0x18] sm:$0xff] }
  0x85   :  { %6854 = vmatprep.mubr.bf16.mxu0 %v569_v17  ;;  %7510 = vmatprep.mubr.bf16.mxu1 %v569_v17  ;;  %v11623_v53 = vld [vmem:[%s14442_s1] sm:$0xff]  ;;  %v9702_v17 = vld [vmem:[%s14440_s3 + $0x5c8] ss:$16 sps:$4 sm:$0xff]  }
  0x86   :  { %v240_v4 = vmul.f32 %v95_v60, %v40_v59  ;;  %v9743_v59 = vld [vmem:[%s14440_s3 + $0x6a4] ss:$16 sps:$4 sm:$0xff]   ;;  %v9746_v60 = vld [vmem:[%s14440_s3 + $0x6ac] ss:$16 sps:$4 sm:$0xff]  }
  0x87   :  { %6825 = vmatpush1.bf16.msra.mxu0 %v9621_v63  ;;  %7481 = vmatpush1.bf16.msra.mxu1 %v9624_v1  ;;  %v9687_v63 = vld [vmem:[%s14440_s3 + $0x580] ss:$16 sps:$4 sm:$0xff]   ;;  %v107_v1 = vrot.slane %v11623_v53, %v11595_v55 }
  0x88   :  { %6826 = vmatprep.subr.bf16.mxu0 %v9629_v2  ;;  %7482 = vmatprep.subr.bf16.mxu1 %v9632_v5  ;;  %v9690_v2 = vld [vmem:[%s14440_s3 + $0x588] ss:$16 sps:$4 sm:$0xff]   ;;  %v11636_v5 = vld [vmem:[%s14443_s2] sm:$0xff] }
  0x89   :  { %v295_v6 = vrot.slane %v11636_v5, %v11586_v50 }
  0x8b   :  { %6827 = vmatpush1.bf16.msra.mxu0 %v9627_v7  ;;  %7483 = vmatpush1.bf16.msra.mxu1 %v9630_v8  ;;  %v43_v7 = vunpack.c.h.bf16 %v11618_v0  ;;  %v9698_v8 = vld [vmem:[%s14440_s3 + $0x5ac] ss:$16 sps:$4 sm:$0xff]  }
  0x8c   :  { %6828 = vmatprep.subr.bf16.mxu0 %v9635_v54  ;;  %7484 = vmatprep.subr.bf16.mxu1 %v9638_v10  ;;  %v9693_v54 = vld [vmem:[%s14440_s3 + $0x5a0] ss:$16 sps:$4 sm:$0xff]   ;;  %v307_v10 = vrot.slane %v11636_v5, %v11595_v55 }
  0x8d   :  { %v243_v9 = vmul.f32 %v107_v1, %v43_v7  ;;  %v9752_v1 = vld [vmem:[%s14440_s3 + $0x6cc] ss:$16 sps:$4 sm:$0xff]   ;;  %v9753_v7 = vld [vmem:[%s14440_s3 + $0x6e0] ss:$16 sps:$4 sm:$0xff]  }
  0x8f   :  { %6829 = vmatpush1.bf16.msra.mxu0 %v9633_v12  ;;  %7485 = vmatpush1.bf16.msra.mxu1 %v9636_v13  ;;  %v9701_v12 = vld [vmem:[%s14440_s3 + $0x5c4] ss:$16 sps:$4 sm:$0xff]   ;;  %v440_v13 = vadd.f32 %v295_v6, %v240_v4  ;;  %v9758_v6 = vld [vmem:[%s14440_s3 + $0x6ec] ss:$16 sps:$4 sm:$0xff]  }
  0x90   :  { %6830 = vmatprep.subr.bf16.mxu0 %v9641_v15  ;;  %7486 = vmatprep.subr.bf16.mxu1 %v9644_v16  ;;  %v9699_v15 = vld [vmem:[%s14440_s3 + $0x5c0] ss:$16 sps:$4 sm:$0xff]   ;;  %v443_v16 = vadd.f32 %v307_v10, %v243_v9  ;;  %v9755_v4 = vld [vmem:[%s14440_s3 + $0x6e4] ss:$16 sps:$4 sm:$0xff]   ;;  %v9764_v9 = vld [vmem:[%s14440_s3 + $0x70c] ss:$16 sps:$4 sm:$0xff]  }
  0x91   :  { %vm472_vm5 = vcmp.gt.f32.partialorder %v440_v13, 0.0  ;;  %v9759_v10 = vld [vmem:[%s14440_s3 + $0x700] ss:$16 sps:$4 sm:$0xff]  }
  0x92   :  { %vm475_vm6 = vcmp.gt.f32.partialorder %v443_v16, 0.0 }
  0x93   :  { %6831 = vmatpush1.bf16.msra.mxu0 %v9639_v18  ;;  %7487 = vmatpush1.bf16.msra.mxu1 %v9642_v20  ;;  %v504_v18 = vmul.f32 0.2, %v440_v13  ;;  %v9707_v20 = vld [vmem:[%s14440_s3 + $0x5e4] ss:$16 sps:$4 sm:$0xff]  }
  0x94   :  { %6832 = vmatprep.subr.bf16.mxu0 %v9647_v21  ;;  %7488 = vmatprep.subr.bf16.mxu1 %v9650_v22  ;;  %v9710_v21 = vld [vmem:[%s14440_s3 + $0x5ec] ss:$16 sps:$4 sm:$0xff]   ;;  %v507_v22 = vmul.f32 0.2, %v443_v16 }
  0x97   :  { %6833 = vmatpush1.bf16.msra.mxu0 %v9645_v23  ;;  %7489 = vmatpush1.bf16.msra.mxu1 %v9648_v24  ;;  %v9705_v23 = vld [vmem:[%s14440_s3 + $0x5e0] ss:$16 sps:$4 sm:$0xff]   ;;  %v9708_v24 = vld [vmem:[%s14440_s3 + $0x5e8] ss:$16 sps:$4 sm:$0xff]  }
  0x98   :  { %6834 = vmatprep.subr.bf16.mxu0 %v9653_v25  ;;  %7490 = vmatprep.subr.bf16.mxu1 %v9656_v26  ;;  %v536_v25 = vsel %vm472_vm5, %v440_v13, %v504_v18  ;;  %v9713_v26 = vld [vmem:[%s14440_s3 + $0x604] ss:$16 sps:$4 sm:$0xff]   ;;  %v9770_v13 = vld [vmem:[%s14440_s3 + $0x72c] ss:$16 sps:$4 sm:$0xff]   ;;  %v9771_v18 = vld [vmem:[%s14440_s3 + $0x740] ss:$16 sps:$4 sm:$0xff]  }
  0x9b   :  { %6835 = vmatpush1.bf16.msra.mxu0 %v9651_v27  ;;  %7491 = vmatpush1.bf16.msra.mxu1 %v9654_v28  ;;  %v9716_v27 = vld [vmem:[%s14440_s3 + $0x60c] ss:$16 sps:$4 sm:$0xff]   ;;  %v568_v28 = vpack.c.bf16 %v536_v25, %v536_v25  ;;  %v9780_v25 = vld [vmem:[%s14440_s3 + $0x768] ss:$16 sps:$4 sm:$0xff]  }
  0x9c   :  { %6836 = vmatprep.subr.bf16.mxu0 %v9659_v29  ;;  %7492 = vmatprep.subr.bf16.mxu1 %v9662_v30  ;;  %v539_v29 = vsel %vm475_vm6, %v443_v16, %v507_v22  ;;  %v9711_v30 = vld [vmem:[%s14440_s3 + $0x600] ss:$16 sps:$4 sm:$0xff]   ;;  %v9773_v16 = vld [vmem:[%s14440_s3 + $0x744] ss:$16 sps:$4 sm:$0xff]   ;;  %v11812_v22 = vsub.s32 6, %v11129_v42 }
  0x9f   :  { %6837 = vmatpush1.bf16.msra.mxu0 %v9657_v31  ;;  %7493 = vmatpush1.bf16.msra.mxu1 %v9660_v32  ;;  %v9714_v31 = vld [vmem:[%s14440_s3 + $0x608] ss:$16 sps:$4 sm:$0xff]   ;;  %v9719_v32 = vld [vmem:[%s14440_s3 + $0x624] ss:$16 sps:$4 sm:$0xff]  }
  0xa0   :  { %6838 = vmatprep.subr.bf16.mxu0 %v9665_v33  ;;  %7494 = vmatprep.subr.bf16.mxu1 %v9668_v34  ;;  %v9722_v33 = vld [vmem:[%s14440_s3 + $0x62c] ss:$16 sps:$4 sm:$0xff]   ;;  %v571_v34 = vpack.c.bf16 %v539_v29, %v539_v29  ;;  %v103_v29 = vrot.slane %v11623_v53, %v11812_v22  ;;  %v9791_v53 = vld [vmem:[%s14440_s3 + $0x7a4] ss:$16 sps:$4 sm:$0xff]  }
  0xa3   :  { %6839 = vmatpush1.bf16.msra.mxu0 %v9663_v35  ;;  %7495 = vmatpush1.bf16.msra.mxu1 %v9666_v36  ;;  %v9717_v35 = vld [vmem:[%s14440_s3 + $0x620] ss:$16 sps:$4 sm:$0xff]   ;;  %v9720_v36 = vld [vmem:[%s14440_s3 + $0x628] ss:$16 sps:$4 sm:$0xff]  }
  0xa4   :  { %6840 = vmatprep.subr.bf16.mxu0 %v9671_v38  ;;  %7496 = vmatprep.subr.bf16.mxu1 %v9674_v39  ;;  %v9725_v38 = vld [vmem:[%s14440_s3 + $0x644] ss:$16 sps:$4 sm:$0xff]   ;;  %v9728_v39 = vld [vmem:[%s14440_s3 + $0x64c] ss:$16 sps:$4 sm:$0xff]  }
  0xa7   :  { %6841 = vmatpush1.bf16.msra.mxu0 %v9669_v40  ;;  %7497 = vmatpush1.bf16.msra.mxu1 %v9672_v41  ;;  %v9723_v40 = vld [vmem:[%s14440_s3 + $0x640] ss:$16 sps:$4 sm:$0xff]   ;;  %v9726_v41 = vld [vmem:[%s14440_s3 + $0x648] ss:$16 sps:$4 sm:$0xff]  }
  0xa8   :  { %6842 = vmatprep.subr.bf16.mxu0 %v9677_v43  ;;  %7498 = vmatprep.subr.bf16.mxu1 %v9680_v44  ;;  %v9731_v43 = vld [vmem:[%s14440_s3 + $0x664] ss:$16 sps:$4 sm:$0xff]   ;;  %v9734_v44 = vld [vmem:[%s14440_s3 + $0x66c] ss:$16 sps:$4 sm:$0xff]  }
  0xab   :  { %6843 = vmatpush1.bf16.msra.mxu0 %v9675_v45  ;;  %7499 = vmatpush1.bf16.msra.mxu1 %v9678_v46  ;;  %v9729_v45 = vld [vmem:[%s14440_s3 + $0x660] ss:$16 sps:$4 sm:$0xff]   ;;  %v9732_v46 = vld [vmem:[%s14440_s3 + $0x668] ss:$16 sps:$4 sm:$0xff]  }
  0xac   :  { %6844 = vmatprep.subr.bf16.mxu0 %v9683_v51  ;;  %7500 = vmatprep.subr.bf16.mxu1 %v9686_v52  ;;  %v9737_v51 = vld [vmem:[%s14440_s3 + $0x684] ss:$16 sps:$4 sm:$0xff]   ;;  %v9740_v52 = vld [vmem:[%s14440_s3 + $0x68c] ss:$16 sps:$4 sm:$0xff]  }
  0xaf   :  { %6845 = vmatpush1.bf16.msra.mxu0 %v9681_v57  ;;  %7501 = vmatpush1.bf16.msra.mxu1 %v9684_v58  ;;  %v9735_v57 = vld [vmem:[%s14440_s3 + $0x680] ss:$16 sps:$4 sm:$0xff]   ;;  %v9738_v58 = vld [vmem:[%s14440_s3 + $0x688] ss:$16 sps:$4 sm:$0xff]  }
  0xb0   :  { %6846 = vmatprep.subr.bf16.mxu0 %v9689_v61  ;;  %7502 = vmatprep.subr.bf16.mxu1 %v9692_v62  ;;  %v9741_v61 = vld [vmem:[%s14440_s3 + $0x6a0] ss:$16 sps:$4 sm:$0xff]   ;;  %v9744_v62 = vld [vmem:[%s14440_s3 + $0x6a8] ss:$16 sps:$4 sm:$0xff]  }
  0xb3   :  { %6847 = vmatpush1.bf16.msra.mxu0 %v9687_v63  ;;  %7503 = vmatpush1.bf16.msra.mxu1 %v9690_v2  ;;  %v9749_v63 = vld [vmem:[%s14440_s3 + $0x6c4] ss:$16 sps:$4 sm:$0xff]   ;;  %v9747_v2 = vld [vmem:[%s14440_s3 + $0x6c0] ss:$16 sps:$4 sm:$0xff]  }
  0xb4   :  { %6848 = vmatprep.subr.bf16.mxu0 %v9695_v3  ;;  %7504 = vmatprep.subr.bf16.mxu1 %v9698_v8  ;;  %v9750_v3 = vld [vmem:[%s14440_s3 + $0x6c8] ss:$16 sps:$4 sm:$0xff]  }
  0xb5   :  { %v9756_v8 = vld [vmem:[%s14440_s3 + $0x6e8] ss:$16 sps:$4 sm:$0xff]  }
  0xb7   :  { %6849 = vmatpush1.bf16.msra.mxu0 %v9693_v54  ;;  %7505 = vmatpush1.bf16.msra.mxu1 %v9696_v11  ;;  %v9761_v54 = vld [vmem:[%s14440_s3 + $0x704] ss:$16 sps:$4 sm:$0xff]   ;;  %v9762_v11 = vld [vmem:[%s14440_s3 + $0x708] ss:$16 sps:$4 sm:$0xff]  }
  0xb8   :  { %6850 = vmatprep.subr.bf16.mxu0 %v9701_v12  ;;  %7506 = vmatprep.subr.bf16.mxu1 %v9704_v14  ;;  %v9767_v12 = vld [vmem:[%s14440_s3 + $0x724] ss:$16 sps:$4 sm:$0xff]   ;;  %v9765_v14 = vld [vmem:[%s14440_s3 + $0x720] ss:$16 sps:$4 sm:$0xff]  }
  0xbb   :  { %6851 = vmatpush1.bf16.msra.mxu0 %v9699_v15  ;;  %7507 = vmatpush1.bf16.msra.mxu1 %v9702_v17  ;;  %v9768_v15 = vld [vmem:[%s14440_s3 + $0x728] ss:$16 sps:$4 sm:$0xff]   ;;  %v9776_v17 = vld [vmem:[%s14440_s3 + $0x74c] ss:$16 sps:$4 sm:$0xff]  }
  0xbc   :  { %6852 = vmatprep.subr.bf16.mxu0 %v9707_v20  ;;  %7508 = vmatprep.subr.bf16.mxu1 %v9710_v21  ;;  %v9774_v20 = vld [vmem:[%s14440_s3 + $0x748] ss:$16 sps:$4 sm:$0xff]   ;;  %v9779_v21 = vld [vmem:[%s14440_s3 + $0x764] ss:$16 sps:$4 sm:$0xff]  }
  0xbf   :  { %6853 = vmatpush1.bf16.msra.mxu0 %v9705_v23  ;;  %7509 = vmatpush1.bf16.msra.mxu1 %v9708_v24  ;;  %v9782_v23 = vld [vmem:[%s14440_s3 + $0x76c] ss:$16 sps:$4 sm:$0xff]   ;;  %v9777_v24 = vld [vmem:[%s14440_s3 + $0x760] ss:$16 sps:$4 sm:$0xff]  }
  0xc0   :  { %6863 = vmatprep.subr.bf16.mxu0 %v9713_v26  ;;  %7519 = vmatprep.subr.bf16.mxu1 %v9716_v27  ;;  %v9785_v26 = vld [vmem:[%s14440_s3 + $0x784] ss:$16 sps:$4 sm:$0xff]  }
  0xc1   :  { %v11829_v27 = vld [vmem:[%s14441_s0 + $0x20] sm:$0xff] }
  0xc2   :  { %6855 = vmatmul.mubr.bf16.vlgmr.msra.gmra.mrb[0].mxu0 %v568_v28  ;;  %7511 = vmatmul.mubr.bf16.vlgmr.msra.gmra.mrb[0].mxu1 %v568_v28  ;;  %v42_v28 = vunpack.c.l.bf16 %v11618_v0  ;;  %v9786_v0 = vld [vmem:[%s14440_s3 + $0x788] ss:$16 sps:$4 sm:$0xff]  }
  0xc3   :  { %6864 = vmatpush1.bf16.msra.mxu0 %v9711_v30  ;;  %7520 = vmatpush1.bf16.msra.mxu1 %v9714_v31  ;;  %v11837_v30 = vld [vmem:[%s14442_s1 + $0x8] sm:$0xff] }
  0xc4   :  { %6865 = vmatprep.subr.bf16.mxu0 %v9719_v32  ;;  %7521 = vmatprep.subr.bf16.mxu1 %v9722_v33  ;;  %v9788_v31 = vld [vmem:[%s14440_s3 + $0x78c] ss:$16 sps:$4 sm:$0xff]   ;;  %v9783_v32 = vld [vmem:[%s14440_s3 + $0x780] ss:$16 sps:$4 sm:$0xff]   ;;  %v45_v33 = vunpack.c.h.bf16 %v11829_v27 }
  0xc5   :  { %6895 = vmatprep.mubr.bf16.mxu0 %v571_v34  ;;  %7551 = vmatprep.mubr.bf16.mxu1 %v571_v34  ;;  %v115_v34 = vrot.slane %v11837_v30, %v11144_v47 }
  0xc7   :  { %6866 = vmatpush1.bf16.msra.mxu0 %v9717_v35  ;;  %7522 = vmatpush1.bf16.msra.mxu1 %v9720_v36  ;;  %v242_v35 = vmul.f32 %v103_v29, %v42_v28  ;;  %v303_v36 = vrot.slane %v11636_v5, %v11812_v22  ;;  %v245_v5 = vmul.f32 %v115_v34, %v45_v33  ;;  %v9839_v28 = vld [vmem:[%s14440_s3 + $0x8a4] ss:$16 sps:$4 sm:$0xff]   ;;  %v9842_v29 = vld [vmem:[%s14440_s3 + $0x8ac] ss:$16 sps:$4 sm:$0xff]   ;;  %v9843_v33 = vld [vmem:[%s14440_s3 + $0x8c0] ss:$16 sps:$4 sm:$0xff]  }
  0xc8   :  { %6867 = vmatprep.subr.bf16.mxu0 %v9725_v38  ;;  %7523 = vmatprep.subr.bf16.mxu1 %v9728_v39  ;;  %v11859_v38 = vld [vmem:[%s14443_s2 + $0x8] sm:$0xff] }
  0xc9   :  { %v9794_v39 = vld [vmem:[%s14440_s3 + $0x7ac] ss:$16 sps:$4 sm:$0xff]   ;;  %v9846_v34 = vld [vmem:[%s14440_s3 + $0x8c8] ss:$16 sps:$4 sm:$0xff]  }
  0xcb   :  { %6868 = vmatpush1.bf16.msra.mxu0 %v9723_v40  ;;  %7524 = vmatpush1.bf16.msra.mxu1 %v9726_v41  ;;  %v9789_v40 = vld [vmem:[%s14440_s3 + $0x7a0] ss:$16 sps:$4 sm:$0xff]   ;;  %v9792_v41 = vld [vmem:[%s14440_s3 + $0x7a8] ss:$16 sps:$4 sm:$0xff]  }
  0xcc   :  { %6869 = vmatprep.subr.bf16.mxu0 %v9731_v43  ;;  %7525 = vmatprep.subr.bf16.mxu1 %v9734_v44  ;;  %v315_v43 = vrot.slane %v11859_v38, %v11144_v47  ;;  %v9797_v44 = vld [vmem:[%s14440_s3 + $0x7c4] ss:$16 sps:$4 sm:$0xff]  }
  0xcf   :  { %6870 = vmatpush1.bf16.msra.mxu0 %v9729_v45  ;;  %7526 = vmatpush1.bf16.msra.mxu1 %v9732_v46  ;;  %v442_v45 = vadd.f32 %v303_v36, %v242_v35  ;;  %v9800_v46 = vld [vmem:[%s14440_s3 + $0x7cc] ss:$16 sps:$4 sm:$0xff]   ;;  %v9851_v35 = vld [vmem:[%s14440_s3 + $0x8e4] ss:$16 sps:$4 sm:$0xff]  }
  0xd0   :  { %6871 = vmatprep.subr.bf16.mxu0 %v9737_v51  ;;  %7527 = vmatprep.subr.bf16.mxu1 %v9740_v52  ;;  %v9795_v51 = vld [vmem:[%s14440_s3 + $0x7c0] ss:$16 sps:$4 sm:$0xff]   ;;  %v9798_v52 = vld [vmem:[%s14440_s3 + $0x7c8] ss:$16 sps:$4 sm:$0xff]   ;;  %v9854_v36 = vld [vmem:[%s14440_s3 + $0x8ec] ss:$16 sps:$4 sm:$0xff]  }
  0xd1   :  { %vm474_vm7 = vcmp.gt.f32.partialorder %v442_v45, 0.0 }
  0xd3   :  { %6872 = vmatpush1.bf16.msra.mxu0 %v9735_v57  ;;  %7528 = vmatpush1.bf16.msra.mxu1 %v9738_v58  ;;  %v445_v57 = vadd.f32 %v315_v43, %v245_v5  ;;  %v9803_v58 = vld [vmem:[%s14440_s3 + $0x7e4] ss:$16 sps:$4 sm:$0xff]   ;;  %v9860_v5 = vld [vmem:[%s14440_s3 + $0x90c] ss:$16 sps:$4 sm:$0xff]   ;;  %v9855_v43 = vld [vmem:[%s14440_s3 + $0x900] ss:$16 sps:$4 sm:$0xff]  }
  0xd4   :  { %6873 = vmatprep.subr.bf16.mxu0 %v9743_v59  ;;  %7529 = vmatprep.subr.bf16.mxu1 %v9746_v60  ;;  %v506_v59 = vmul.f32 0.2, %v442_v45  ;;  %v9806_v60 = vld [vmem:[%s14440_s3 + $0x7ec] ss:$16 sps:$4 sm:$0xff]  }
  0xd5   :  { %vm477_vm8 = vcmp.gt.f32.partialorder %v445_v57, 0.0 }
  0xd7   :  { %6874 = vmatpush1.bf16.msra.mxu0 %v9741_v61  ;;  %7530 = vmatpush1.bf16.msra.mxu1 %v9744_v62  ;;  %v9801_v61 = vld [vmem:[%s14440_s3 + $0x7e0] ss:$16 sps:$4 sm:$0xff]   ;;  %v9804_v62 = vld [vmem:[%s14440_s3 + $0x7e8] ss:$16 sps:$4 sm:$0xff]  }
  0xd8   :  { %6875 = vmatprep.subr.bf16.mxu0 %v9749_v63  ;;  %7531 = vmatprep.subr.bf16.mxu1 %v9752_v1  ;;  %v509_v63 = vmul.f32 0.2, %v445_v57  ;;  %v9809_v1 = vld [vmem:[%s14440_s3 + $0x804] ss:$16 sps:$4 sm:$0xff]  }
  0xdb   :  { %6876 = vmatpush1.bf16.msra.mxu0 %v9747_v2  ;;  %7532 = vmatpush1.bf16.msra.mxu1 %v9750_v3  ;;  %v538_v2 = vsel %vm474_vm7, %v442_v45, %v506_v59  ;;  %v9812_v3 = vld [vmem:[%s14440_s3 + $0x80c] ss:$16 sps:$4 sm:$0xff]   ;;  %v9863_v45 = vld [vmem:[%s14440_s3 + $0x924] ss:$16 sps:$4 sm:$0xff]   ;;  %v9867_v59 = vld [vmem:[%s14440_s3 + $0x940] ss:$16 sps:$4 sm:$0xff]  }
  0xdc   :  { %6877 = vmatprep.subr.bf16.mxu0 %v9755_v4  ;;  %7533 = vmatprep.subr.bf16.mxu1 %v9758_v6  ;;  %v9807_v4 = vld [vmem:[%s14440_s3 + $0x800] ss:$16 sps:$4 sm:$0xff]   ;;  %v9810_v6 = vld [vmem:[%s14440_s3 + $0x808] ss:$16 sps:$4 sm:$0xff]  }
  0xdf   :  { %6878 = vmatpush1.bf16.msra.mxu0 %v9753_v7  ;;  %7534 = vmatpush1.bf16.msra.mxu1 %v9756_v8  ;;  %v570_v7 = vpack.c.bf16 %v538_v2, %v538_v2  ;;  %v541_v8 = vsel %vm477_vm8, %v445_v57, %v509_v63  ;;  %v9869_v57 = vld [vmem:[%s14440_s3 + $0x944] ss:$16 sps:$4 sm:$0xff]   ;;  %v9873_v63 = vld [vmem:[%s14440_s3 + $0x960] ss:$16 sps:$4 sm:$0xff]   ;;  %v44_v2 = vunpack.c.l.bf16 %v11829_v27 }
  0xe0   :  { %6879 = vmatprep.subr.bf16.mxu0 %v9761_v54  ;;  %7535 = vmatprep.subr.bf16.mxu1 %v9764_v9  ;;  %v9815_v54 = vld [vmem:[%s14440_s3 + $0x824] ss:$16 sps:$4 sm:$0xff]   ;;  %v9818_v9 = vld [vmem:[%s14440_s3 + $0x82c] ss:$16 sps:$4 sm:$0xff]  }
  0xe3   :  { %6880 = vmatpush1.bf16.msra.mxu0 %v9759_v10  ;;  %7536 = vmatpush1.bf16.msra.mxu1 %v9762_v11  ;;  %v573_v10 = vpack.c.bf16 %v541_v8, %v541_v8  ;;  %v9813_v11 = vld [vmem:[%s14440_s3 + $0x820] ss:$16 sps:$4 sm:$0xff]   ;;  %v123_v8 = vrot.slane %v11837_v30, %v11294_v49 }
  0xe4   :  { %6881 = vmatprep.subr.bf16.mxu0 %v9767_v12  ;;  %7537 = vmatprep.subr.bf16.mxu1 %v9770_v13  ;;  %v9816_v12 = vld [vmem:[%s14440_s3 + $0x828] ss:$16 sps:$4 sm:$0xff]   ;;  %v9821_v13 = vld [vmem:[%s14440_s3 + $0x844] ss:$16 sps:$4 sm:$0xff]  }
  0xe7   :  { %6882 = vmatpush1.bf16.msra.mxu0 %v9765_v14  ;;  %7538 = vmatpush1.bf16.msra.mxu1 %v9768_v15  ;;  %v9824_v14 = vld [vmem:[%s14440_s3 + $0x84c] ss:$16 sps:$4 sm:$0xff]   ;;  %v9819_v15 = vld [vmem:[%s14440_s3 + $0x840] ss:$16 sps:$4 sm:$0xff]  }
  0xe8   :  { %6883 = vmatprep.subr.bf16.mxu0 %v9773_v16  ;;  %7539 = vmatprep.subr.bf16.mxu1 %v9776_v17  ;;  %v9822_v16 = vld [vmem:[%s14440_s3 + $0x848] ss:$16 sps:$4 sm:$0xff]   ;;  %v9827_v17 = vld [vmem:[%s14440_s3 + $0x864] ss:$16 sps:$4 sm:$0xff]  }
  0xeb   :  { %6884 = vmatpush1.bf16.msra.mxu0 %v9771_v18  ;;  %7540 = vmatpush1.bf16.msra.mxu1 %v9774_v20  ;;  %v9830_v18 = vld [vmem:[%s14440_s3 + $0x86c] ss:$16 sps:$4 sm:$0xff]   ;;  %v9825_v20 = vld [vmem:[%s14440_s3 + $0x860] ss:$16 sps:$4 sm:$0xff]  }
  0xec   :  { %6885 = vmatprep.subr.bf16.mxu0 %v9779_v21  ;;  %7541 = vmatprep.subr.bf16.mxu1 %v9782_v23  ;;  %v9828_v21 = vld [vmem:[%s14440_s3 + $0x868] ss:$16 sps:$4 sm:$0xff]   ;;  %v9833_v23 = vld [vmem:[%s14440_s3 + $0x884] ss:$16 sps:$4 sm:$0xff]  }
  0xef   :  { %6886 = vmatpush1.bf16.msra.mxu0 %v9777_v24  ;;  %7542 = vmatpush1.bf16.msra.mxu1 %v9780_v25  ;;  %v9836_v24 = vld [vmem:[%s14440_s3 + $0x88c] ss:$16 sps:$4 sm:$0xff]   ;;  %v9831_v25 = vld [vmem:[%s14440_s3 + $0x880] ss:$16 sps:$4 sm:$0xff]  }
  0xf0   :  { %6887 = vmatprep.subr.bf16.mxu0 %v9785_v26  ;;  %7543 = vmatprep.subr.bf16.mxu1 %v9788_v31  ;;  %v9834_v26 = vld [vmem:[%s14440_s3 + $0x888] ss:$16 sps:$4 sm:$0xff]   ;;  %v9837_v31 = vld [vmem:[%s14440_s3 + $0x8a0] ss:$16 sps:$4 sm:$0xff]  }
  0xf3   :  { %6888 = vmatpush1.bf16.msra.mxu0 %v9783_v32  ;;  %7544 = vmatpush1.bf16.msra.mxu1 %v9786_v0  ;;  %v9840_v32 = vld [vmem:[%s14440_s3 + $0x8a8] ss:$16 sps:$4 sm:$0xff]   ;;  %v9845_v0 = vld [vmem:[%s14440_s3 + $0x8c4] ss:$16 sps:$4 sm:$0xff]  }
  0xf4   :  { %6889 = vmatprep.subr.bf16.mxu0 %v9791_v53  ;;  %7545 = vmatprep.subr.bf16.mxu1 %v9794_v39  ;;  %v9848_v53 = vld [vmem:[%s14440_s3 + $0x8cc] ss:$16 sps:$4 sm:$0xff]   ;;  %v9849_v39 = vld [vmem:[%s14440_s3 + $0x8e0] ss:$16 sps:$4 sm:$0xff]  }
  0xf7   :  { %6890 = vmatpush1.bf16.msra.mxu0 %v9789_v40  ;;  %7546 = vmatpush1.bf16.msra.mxu1 %v9792_v41  ;;  %v9852_v40 = vld [vmem:[%s14440_s3 + $0x8e8] ss:$16 sps:$4 sm:$0xff]   ;;  %v9857_v41 = vld [vmem:[%s14440_s3 + $0x904] ss:$16 sps:$4 sm:$0xff]  }
  0xf8   :  { %6891 = vmatprep.subr.bf16.mxu0 %v9797_v44  ;;  %7547 = vmatprep.subr.bf16.mxu1 %v9800_v46  ;;  %v9858_v44 = vld [vmem:[%s14440_s3 + $0x908] ss:$16 sps:$4 sm:$0xff]   ;;  %v9866_v46 = vld [vmem:[%s14440_s3 + $0x92c] ss:$16 sps:$4 sm:$0xff]  }
  0xfb   :  { %6892 = vmatpush1.bf16.msra.mxu0 %v9795_v51  ;;  %7548 = vmatpush1.bf16.msra.mxu1 %v9798_v52  ;;  %v9861_v51 = vld [vmem:[%s14440_s3 + $0x920] ss:$16 sps:$4 sm:$0xff]   ;;  %v9864_v52 = vld [vmem:[%s14440_s3 + $0x928] ss:$16 sps:$4 sm:$0xff]  }
  0xfc   :  { %6893 = vmatprep.subr.bf16.mxu0 %v9803_v58  ;;  %7549 = vmatprep.subr.bf16.mxu1 %v9806_v60  ;;  %v9872_v58 = vld [vmem:[%s14440_s3 + $0x94c] ss:$16 sps:$4 sm:$0xff]   ;;  %v9870_v60 = vld [vmem:[%s14440_s3 + $0x948] ss:$16 sps:$4 sm:$0xff]  }
  0xff   :  { %6894 = vmatpush1.bf16.msra.mxu0 %v9801_v61  ;;  %7550 = vmatpush1.bf16.msra.mxu1 %v9804_v62  ;;  %v9875_v61 = vld [vmem:[%s14440_s3 + $0x964] ss:$16 sps:$4 sm:$0xff]   ;;  %v9878_v62 = vld [vmem:[%s14440_s3 + $0x96c] ss:$16 sps:$4 sm:$0xff]  }
 0x100   :  { %6904 = vmatprep.subr.bf16.mxu0 %v9809_v1  ;;  %7560 = vmatprep.subr.bf16.mxu1 %v9812_v3  ;;  %v9876_v1 = vld [vmem:[%s14440_s3 + $0x968] ss:$16 sps:$4 sm:$0xff]   ;;  %v111_v3 = vrot.slane %v11837_v30, %v11147_v48  ;;  %v9887_v30 = vld [vmem:[%s14440_s3 + $0x9a4] ss:$16 sps:$4 sm:$0xff]  }
 0x102   :  { %6896 = vmatmul.mubr.bf16.vlgmr.msra.gmra.mrb[0].mxu0 %v570_v7  ;;  %7552 = vmatmul.mubr.bf16.vlgmr.msra.gmra.mrb[0].mxu1 %v570_v7  ;;  %v9884_v7 = vld [vmem:[%s14440_s3 + $0x98c] ss:$16 sps:$4 sm:$0xff]  }
 0x103   :  { %6905 = vmatpush1.bf16.msra.mxu0 %v9807_v4  ;;  %7561 = vmatpush1.bf16.msra.mxu1 %v9810_v6  ;;  %v12046_v4 = vld [vmem:[%s14441_s0 + $0x28] sm:$0xff]  ;;  %v9881_v6 = vld [vmem:[%s14440_s3 + $0x984] ss:$16 sps:$4 sm:$0xff]  }
 0x104   :  { %6906 = vmatprep.subr.bf16.mxu0 %v9815_v54  ;;  %7562 = vmatprep.subr.bf16.mxu1 %v9818_v9  ;;  %v47_v27 = vunpack.c.h.bf16 %v12046_v4  ;;  %v9879_v54 = vld [vmem:[%s14440_s3 + $0x980] ss:$16 sps:$4 sm:$0xff]   ;;  %v9882_v9 = vld [vmem:[%s14440_s3 + $0x988] ss:$16 sps:$4 sm:$0xff]  }
 0x105   :  { %6936 = vmatprep.mubr.bf16.mxu0 %v573_v10  ;;  %7592 = vmatprep.mubr.bf16.mxu1 %v573_v10  ;;  %v244_v10 = vmul.f32 %v111_v3, %v44_v2  ;;  %v9938_v2 = vld [vmem:[%s14440_s3 + $0xaac] ss:$16 sps:$4 sm:$0xff]   ;;  %v9933_v3 = vld [vmem:[%s14440_s3 + $0xaa0] ss:$16 sps:$4 sm:$0xff]  }
 0x107   :  { %6907 = vmatpush1.bf16.msra.mxu0 %v9813_v11  ;;  %7563 = vmatpush1.bf16.msra.mxu1 %v9816_v12  ;;  %v311_v11 = vrot.slane %v11859_v38, %v11147_v48  ;;  %v9890_v12 = vld [vmem:[%s14440_s3 + $0x9ac] ss:$16 sps:$4 sm:$0xff]  }
 0x108   :  { %6908 = vmatprep.subr.bf16.mxu0 %v9821_v13  ;;  %7564 = vmatprep.subr.bf16.mxu1 %v9824_v14  ;;  %v247_v13 = vmul.f32 %v123_v8, %v47_v27  ;;  %v323_v14 = vrot.slane %v11859_v38, %v11294_v49  ;;  %v9896_v38 = vld [vmem:[%s14440_s3 + $0x9cc] ss:$16 sps:$4 sm:$0xff]   ;;  %v9939_v8 = vld [vmem:[%s14440_s3 + $0xac0] ss:$16 sps:$4 sm:$0xff]  }
 0x109   :  { %v9944_v27 = vld [vmem:[%s14440_s3 + $0xacc] ss:$16 sps:$4 sm:$0xff]  }
 0x10b   :  { %6909 = vmatpush1.bf16.msra.mxu0 %v9819_v15  ;;  %7565 = vmatpush1.bf16.msra.mxu1 %v9822_v16  ;;  %v9885_v15 = vld [vmem:[%s14440_s3 + $0x9a0] ss:$16 sps:$4 sm:$0xff]   ;;  %v9888_v16 = vld [vmem:[%s14440_s3 + $0x9a8] ss:$16 sps:$4 sm:$0xff]  }
 0x10c   :  { %6910 = vmatprep.subr.bf16.mxu0 %v9827_v17  ;;  %7566 = vmatprep.subr.bf16.mxu1 %v9830_v18  ;;  %v444_v17 = vadd.f32 %v311_v11, %v244_v10  ;;  %v9893_v18 = vld [vmem:[%s14440_s3 + $0x9c4] ss:$16 sps:$4 sm:$0xff]   ;;  %v9950_v10 = vld [vmem:[%s14440_s3 + $0xaec] ss:$16 sps:$4 sm:$0xff]   ;;  %v9945_v11 = vld [vmem:[%s14440_s3 + $0xae0] ss:$16 sps:$4 sm:$0xff]  }
 0x10e   :  { %vm476_vm9 = vcmp.gt.f32.partialorder %v444_v17, 0.0 }
 0x10f   :  { %6911 = vmatpush1.bf16.msra.mxu0 %v9825_v20  ;;  %7567 = vmatpush1.bf16.msra.mxu1 %v9828_v21  ;;  %v9891_v20 = vld [vmem:[%s14440_s3 + $0x9c0] ss:$16 sps:$4 sm:$0xff]   ;;  %v447_v21 = vadd.f32 %v323_v14, %v247_v13  ;;  %v9956_v13 = vld [vmem:[%s14440_s3 + $0xb0c] ss:$16 sps:$4 sm:$0xff]  }
 0x110   :  { %6912 = vmatprep.subr.bf16.mxu0 %v9833_v23  ;;  %7568 = vmatprep.subr.bf16.mxu1 %v9836_v24  ;;  %v9894_v23 = vld [vmem:[%s14440_s3 + $0x9c8] ss:$16 sps:$4 sm:$0xff]   ;;  %v508_v24 = vmul.f32 0.2, %v444_v17  ;;  %v9951_v14 = vld [vmem:[%s14440_s3 + $0xb00] ss:$16 sps:$4 sm:$0xff]  }
 0x111   :  { %vm479_vm10 = vcmp.gt.f32.partialorder %v447_v21, 0.0 }
 0x113   :  { %6913 = vmatpush1.bf16.msra.mxu0 %v9831_v25  ;;  %7569 = vmatpush1.bf16.msra.mxu1 %v9834_v26  ;;  %v9899_v25 = vld [vmem:[%s14440_s3 + $0x9e4] ss:$16 sps:$4 sm:$0xff]   ;;  %v9902_v26 = vld [vmem:[%s14440_s3 + $0x9ec] ss:$16 sps:$4 sm:$0xff]  }
 0x114   :  { %6914 = vmatprep.subr.bf16.mxu0 %v9839_v28  ;;  %7570 = vmatprep.subr.bf16.mxu1 %v9842_v29  ;;  %v511_v28 = vmul.f32 0.2, %v447_v21  ;;  %v9897_v29 = vld [vmem:[%s14440_s3 + $0x9e0] ss:$16 sps:$4 sm:$0xff]  }
 0x117   :  { %6915 = vmatpush1.bf16.msra.mxu0 %v9837_v31  ;;  %7571 = vmatpush1.bf16.msra.mxu1 %v9840_v32  ;;  %v9900_v31 = vld [vmem:[%s14440_s3 + $0x9e8] ss:$16 sps:$4 sm:$0xff]   ;;  %v540_v32 = vsel %vm476_vm9, %v444_v17, %v508_v24  ;;  %v9962_v17 = vld [vmem:[%s14440_s3 + $0xb2c] ss:$16 sps:$4 sm:$0xff]  }
 0x118   :  { %6916 = vmatprep.subr.bf16.mxu0 %v9845_v0  ;;  %7572 = vmatprep.subr.bf16.mxu1 %v9848_v53  ;;  %v9905_v0 = vld [vmem:[%s14440_s3 + $0xa04] ss:$16 sps:$4 sm:$0xff]   ;;  %v9908_v53 = vld [vmem:[%s14440_s3 + $0xa0c] ss:$16 sps:$4 sm:$0xff]   ;;  %v9966_v24 = vld [vmem:[%s14440_s3 + $0xb48] ss:$16 sps:$4 sm:$0xff]  }
 0x11b   :  { %6917 = vmatpush1.bf16.msra.mxu0 %v9843_v33  ;;  %7573 = vmatpush1.bf16.msra.mxu1 %v9846_v34  ;;  %v572_v33 = vpack.c.bf16 %v540_v32, %v540_v32  ;;  %v543_v34 = vsel %vm479_vm10, %v447_v21, %v511_v28  ;;  %v9968_v21 = vld [vmem:[%s14440_s3 + $0xb4c] ss:$16 sps:$4 sm:$0xff]   ;;  %v9969_v28 = vld [vmem:[%s14440_s3 + $0xb60] ss:$16 sps:$4 sm:$0xff]  }
 0x11c   :  { %6918 = vmatprep.subr.bf16.mxu0 %v9851_v35  ;;  %7574 = vmatprep.subr.bf16.mxu1 %v9854_v36  ;;  %v9903_v35 = vld [vmem:[%s14440_s3 + $0xa00] ss:$16 sps:$4 sm:$0xff]   ;;  %v9906_v36 = vld [vmem:[%s14440_s3 + $0xa08] ss:$16 sps:$4 sm:$0xff]  }
 0x11d   :  { %v12251_v32 = vld [vmem:[%s14442_s1 + $0x8] sm:$0xff] }
 0x11f   :  { %6919 = vmatpush1.bf16.msra.mxu0 %v9849_v39  ;;  %7575 = vmatpush1.bf16.msra.mxu1 %v9852_v40  ;;  %v9911_v39 = vld [vmem:[%s14440_s3 + $0xa24] ss:$16 sps:$4 sm:$0xff]   ;;  %v9914_v40 = vld [vmem:[%s14440_s3 + $0xa2c] ss:$16 sps:$4 sm:$0xff]  }
 0x120   :  { %6920 = vmatprep.subr.bf16.mxu0 %v9857_v41  ;;  %7576 = vmatprep.subr.bf16.mxu1 %v9860_v5  ;;  %v575_v41 = vpack.c.bf16 %v543_v34, %v543_v34  ;;  %v9909_v5 = vld [vmem:[%s14440_s3 + $0xa20] ss:$16 sps:$4 sm:$0xff]  }
 0x123   :  { %6921 = vmatpush1.bf16.msra.mxu0 %v9855_v43  ;;  %7577 = vmatpush1.bf16.msra.mxu1 %v9858_v44  ;;  %v9912_v43 = vld [vmem:[%s14440_s3 + $0xa28] ss:$16 sps:$4 sm:$0xff]   ;;  %v9917_v44 = vld [vmem:[%s14440_s3 + $0xa44] ss:$16 sps:$4 sm:$0xff]  }
 0x124   :  { %6922 = vmatprep.subr.bf16.mxu0 %v9863_v45  ;;  %7578 = vmatprep.subr.bf16.mxu1 %v9866_v46  ;;  %v9920_v45 = vld [vmem:[%s14440_s3 + $0xa4c] ss:$16 sps:$4 sm:$0xff]   ;;  %v9915_v46 = vld [vmem:[%s14440_s3 + $0xa40] ss:$16 sps:$4 sm:$0xff]  }
 0x127   :  { %6923 = vmatpush1.bf16.msra.mxu0 %v9861_v51  ;;  %7579 = vmatpush1.bf16.msra.mxu1 %v9864_v52  ;;  %v9918_v51 = vld [vmem:[%s14440_s3 + $0xa48] ss:$16 sps:$4 sm:$0xff]   ;;  %v9923_v52 = vld [vmem:[%s14440_s3 + $0xa64] ss:$16 sps:$4 sm:$0xff]  }
 0x128   :  { %6924 = vmatprep.subr.bf16.mxu0 %v9869_v57  ;;  %7580 = vmatprep.subr.bf16.mxu1 %v9872_v58  ;;  %v9926_v57 = vld [vmem:[%s14440_s3 + $0xa6c] ss:$16 sps:$4 sm:$0xff]   ;;  %v9921_v58 = vld [vmem:[%s14440_s3 + $0xa60] ss:$16 sps:$4 sm:$0xff]  }
 0x12b   :  { %6925 = vmatpush1.bf16.msra.mxu0 %v9867_v59  ;;  %7581 = vmatpush1.bf16.msra.mxu1 %v9870_v60  ;;  %v9924_v59 = vld [vmem:[%s14440_s3 + $0xa68] ss:$16 sps:$4 sm:$0xff]   ;;  %v9929_v60 = vld [vmem:[%s14440_s3 + $0xa84] ss:$16 sps:$4 sm:$0xff]  }
 0x12c   :  { %6926 = vmatprep.subr.bf16.mxu0 %v9875_v61  ;;  %7582 = vmatprep.subr.bf16.mxu1 %v9878_v62  ;;  %v9932_v61 = vld [vmem:[%s14440_s3 + $0xa8c] ss:$16 sps:$4 sm:$0xff]   ;;  %v9927_v62 = vld [vmem:[%s14440_s3 + $0xa80] ss:$16 sps:$4 sm:$0xff]  }
 0x12f   :  { %6927 = vmatpush1.bf16.msra.mxu0 %v9873_v63  ;;  %7583 = vmatpush1.bf16.msra.mxu1 %v9876_v1  ;;  %v9930_v63 = vld [vmem:[%s14440_s3 + $0xa88] ss:$16 sps:$4 sm:$0xff]   ;;  %v9935_v1 = vld [vmem:[%s14440_s3 + $0xaa4] ss:$16 sps:$4 sm:$0xff]  }
 0x130   :  { %6928 = vmatprep.subr.bf16.mxu0 %v9881_v6  ;;  %7584 = vmatprep.subr.bf16.mxu1 %v9884_v7  ;;  %v9936_v6 = vld [vmem:[%s14440_s3 + $0xaa8] ss:$16 sps:$4 sm:$0xff]   ;;  %v9941_v7 = vld [vmem:[%s14440_s3 + $0xac4] ss:$16 sps:$4 sm:$0xff]  }
 0x133   :  { %6929 = vmatpush1.bf16.msra.mxu0 %v9879_v54  ;;  %7585 = vmatpush1.bf16.msra.mxu1 %v9882_v9  ;;  %v9942_v54 = vld [vmem:[%s14440_s3 + $0xac8] ss:$16 sps:$4 sm:$0xff]   ;;  %v9947_v9 = vld [vmem:[%s14440_s3 + $0xae4] ss:$16 sps:$4 sm:$0xff]  }
 0x134   :  { %6930 = vmatprep.subr.bf16.mxu0 %v9887_v30  ;;  %7586 = vmatprep.subr.bf16.mxu1 %v9890_v12  ;;  %v9948_v30 = vld [vmem:[%s14440_s3 + $0xae8] ss:$16 sps:$4 sm:$0xff]   ;;  %v9953_v12 = vld [vmem:[%s14440_s3 + $0xb04] ss:$16 sps:$4 sm:$0xff]  }
 0x137   :  { %6931 = vmatpush1.bf16.msra.mxu0 %v9885_v15  ;;  %7587 = vmatpush1.bf16.msra.mxu1 %v9888_v16  ;;  %v9954_v15 = vld [vmem:[%s14440_s3 + $0xb08] ss:$16 sps:$4 sm:$0xff]   ;;  %v9959_v16 = vld [vmem:[%s14440_s3 + $0xb24] ss:$16 sps:$4 sm:$0xff]  }
 0x138   :  { %6932 = vmatprep.subr.bf16.mxu0 %v9893_v18  ;;  %7588 = vmatprep.subr.bf16.mxu1 %v9896_v38  ;;  %v9957_v18 = vld [vmem:[%s14440_s3 + $0xb20] ss:$16 sps:$4 sm:$0xff]   ;;  %v9960_v38 = vld [vmem:[%s14440_s3 + $0xb28] ss:$16 sps:$4 sm:$0xff]  }
 0x13b   :  { %6933 = vmatpush1.bf16.msra.mxu0 %v9891_v20  ;;  %7589 = vmatpush1.bf16.msra.mxu1 %v9894_v23  ;;  %v9965_v20 = vld [vmem:[%s14440_s3 + $0xb44] ss:$16 sps:$4 sm:$0xff]   ;;  %v9963_v23 = vld [vmem:[%s14440_s3 + $0xb40] ss:$16 sps:$4 sm:$0xff]  }
 0x13c   :  { %6934 = vmatprep.subr.bf16.mxu0 %v9899_v25  ;;  %7590 = vmatprep.subr.bf16.mxu1 %v9902_v26  ;;  %v9971_v25 = vld [vmem:[%s14440_s3 + $0xb64] ss:$16 sps:$4 sm:$0xff]   ;;  %v9974_v26 = vld [vmem:[%s14440_s3 + $0xb6c] ss:$16 sps:$4 sm:$0xff]  }
 0x13f   :  { %6935 = vmatpush1.bf16.msra.mxu0 %v9897_v29  ;;  %7591 = vmatpush1.bf16.msra.mxu1 %v9900_v31  ;;  %v9972_v29 = vld [vmem:[%s14440_s3 + $0xb68] ss:$16 sps:$4 sm:$0xff]   ;;  %v46_v31 = vunpack.c.l.bf16 %v12046_v4  ;;  %v9980_v4 = vld [vmem:[%s14440_s3 + $0xb8c] ss:$16 sps:$4 sm:$0xff]  }
 0x140   :  { %6945 = vmatprep.subr.bf16.mxu0 %v9905_v0  ;;  %7601 = vmatprep.subr.bf16.mxu1 %v9908_v53  ;;  %v119_v0 = vrot.slane %v12251_v32, %v11373_v19  ;;  %v12258_v53 = vld [vmem:[%s14441_s0 + $0x30] sm:$0xff] }
 0x141   :  { %v49_v34 = vunpack.c.h.bf16 %v12258_v53 }
 0x142   :  { %6937 = vmatmul.mubr.bf16.vlgmr.msra.gmra.mrb[0].mxu0 %v572_v33  ;;  %7593 = vmatmul.mubr.bf16.vlgmr.msra.gmra.mrb[0].mxu1 %v572_v33  ;;  %v9977_v33 = vld [vmem:[%s14440_s3 + $0xb84] ss:$16 sps:$4 sm:$0xff]  }
 0x143   :  { %6946 = vmatpush1.bf16.msra.mxu0 %v9903_v35  ;;  %7602 = vmatpush1.bf16.msra.mxu1 %v9906_v36  ;;  %v131_v35 = vrot.slane %v12251_v32, %v11447_v56  ;;  %v9975_v36 = vld [vmem:[%s14440_s3 + $0xb80] ss:$16 sps:$4 sm:$0xff]  }
 0x144   :  { %6947 = vmatprep.subr.bf16.mxu0 %v9911_v39  ;;  %7603 = vmatprep.subr.bf16.mxu1 %v9914_v40  ;;  %v9978_v39 = vld [vmem:[%s14440_s3 + $0xb88] ss:$16 sps:$4 sm:$0xff]   ;;  %v246_v40 = vmul.f32 %v119_v0, %v46_v31  ;;  %v10031_v0 = vld [vmem:[%s14440_s3 + $0xca4] ss:$16 sps:$4 sm:$0xff]  }
 0x145   :  { %6977 = vmatprep.mubr.bf16.mxu0 %v575_v41  ;;  %7633 = vmatprep.mubr.bf16.mxu1 %v575_v41  ;;  %v12278_v41 = vld [vmem:[%s14443_s2 + $0x8] sm:$0xff] }
 0x146   :  { %v10026_v31 = vld [vmem:[%s14440_s3 + $0xc88] ss:$16 sps:$4 sm:$0xff]  }
 0x147   :  { %6948 = vmatpush1.bf16.msra.mxu0 %v9909_v5  ;;  %7604 = vmatpush1.bf16.msra.mxu1 %v9912_v43  ;;  %v319_v5 = vrot.slane %v12278_v41, %v11373_v19  ;;  %v9983_v43 = vld [vmem:[%s14440_s3 + $0xba4] ss:$16 sps:$4 sm:$0xff]  }
 0x148   :  { %6949 = vmatprep.subr.bf16.mxu0 %v9917_v44  ;;  %7605 = vmatprep.subr.bf16.mxu1 %v9920_v45  ;;  %v9986_v44 = vld [vmem:[%s14440_s3 + $0xbac] ss:$16 sps:$4 sm:$0xff]   ;;  %v249_v45 = vmul.f32 %v131_v35, %v49_v34  ;;  %v10032_v34 = vld [vmem:[%s14440_s3 + $0xca8] ss:$16 sps:$4 sm:$0xff]   ;;  %v10037_v35 = vld [vmem:[%s14440_s3 + $0xcc4] ss:$16 sps:$4 sm:$0xff]  }
 0x14b   :  { %6950 = vmatpush1.bf16.msra.mxu0 %v9915_v46  ;;  %7606 = vmatpush1.bf16.msra.mxu1 %v9918_v51  ;;  %v331_v46 = vrot.slane %v12278_v41, %v11447_v56  ;;  %v9981_v51 = vld [vmem:[%s14440_s3 + $0xba0] ss:$16 sps:$4 sm:$0xff]  }
 0x14c   :  { %6951 = vmatprep.subr.bf16.mxu0 %v9923_v52  ;;  %7607 = vmatprep.subr.bf16.mxu1 %v9926_v57  ;;  %v9984_v52 = vld [vmem:[%s14440_s3 + $0xba8] ss:$16 sps:$4 sm:$0xff]   ;;  %v446_v57 = vadd.f32 %v319_v5, %v246_v40  ;;  %v10043_v5 = vld [vmem:[%s14440_s3 + $0xce4] ss:$16 sps:$4 sm:$0xff]  }
 0x14d   :  { %v10038_v40 = vld [vmem:[%s14440_s3 + $0xcc8] ss:$16 sps:$4 sm:$0xff]  }
 0x14e   :  { %vm478_vm11 = vcmp.gt.f32.partialorder %v446_v57, 0.0 }
 0x14f   :  { %6952 = vmatpush1.bf16.msra.mxu0 %v9921_v58  ;;  %7608 = vmatpush1.bf16.msra.mxu1 %v9924_v59  ;;  %v9989_v58 = vld [vmem:[%s14440_s3 + $0xbc4] ss:$16 sps:$4 sm:$0xff]   ;;  %v9992_v59 = vld [vmem:[%s14440_s3 + $0xbcc] ss:$16 sps:$4 sm:$0xff]  }
 0x150   :  { %6953 = vmatprep.subr.bf16.mxu0 %v9929_v60  ;;  %7609 = vmatprep.subr.bf16.mxu1 %v9932_v61  ;;  %v9987_v60 = vld [vmem:[%s14440_s3 + $0xbc0] ss:$16 sps:$4 sm:$0xff]   ;;  %v449_v61 = vadd.f32 %v331_v46, %v249_v45  ;;  %v10044_v45 = vld [vmem:[%s14440_s3 + $0xce8] ss:$16 sps:$4 sm:$0xff]   ;;  %v10049_v46 = vld [vmem:[%s14440_s3 + $0xd04] ss:$16 sps:$4 sm:$0xff]  }
 0x152   :  { %vm481_vm12 = vcmp.gt.f32.partialorder %v449_v61, 0.0 }
 0x153   :  { %6954 = vmatpush1.bf16.msra.mxu0 %v9927_v62  ;;  %7610 = vmatpush1.bf16.msra.mxu1 %v9930_v63  ;;  %v9990_v62 = vld [vmem:[%s14440_s3 + $0xbc8] ss:$16 sps:$4 sm:$0xff]   ;;  %v510_v63 = vmul.f32 0.2, %v446_v57 }
 0x154   :  { %6955 = vmatprep.subr.bf16.mxu0 %v9935_v1  ;;  %7611 = vmatprep.subr.bf16.mxu1 %v9938_v2  ;;  %v9995_v1 = vld [vmem:[%s14440_s3 + $0xbe4] ss:$16 sps:$4 sm:$0xff]   ;;  %v9998_v2 = vld [vmem:[%s14440_s3 + $0xbec] ss:$16 sps:$4 sm:$0xff]  }
 0x157   :  { %6956 = vmatpush1.bf16.msra.mxu0 %v9933_v3  ;;  %7612 = vmatpush1.bf16.msra.mxu1 %v9936_v6  ;;  %v513_v3 = vmul.f32 0.2, %v449_v61  ;;  %v9993_v6 = vld [vmem:[%s14440_s3 + $0xbe0] ss:$16 sps:$4 sm:$0xff]  }
 0x158   :  { %6957 = vmatprep.subr.bf16.mxu0 %v9941_v7  ;;  %7613 = vmatprep.subr.bf16.mxu1 %v9944_v27  ;;  %v9996_v7 = vld [vmem:[%s14440_s3 + $0xbe8] ss:$16 sps:$4 sm:$0xff]   ;;  %v542_v27 = vsel %vm478_vm11, %v446_v57, %v510_v63  ;;  %v10064_v63 = vld [vmem:[%s14440_s3 + $0xd4c] ss:$16 sps:$4 sm:$0xff]  }
 0x159   :  { %v10050_v57 = vld [vmem:[%s14440_s3 + $0xd08] ss:$16 sps:$4 sm:$0xff]  }
 0x15b   :  { %6958 = vmatpush1.bf16.msra.mxu0 %v9939_v8  ;;  %7614 = vmatpush1.bf16.msra.mxu1 %v9942_v54  ;;  %v10001_v8 = vld [vmem:[%s14440_s3 + $0xc04] ss:$16 sps:$4 sm:$0xff]   ;;  %v10004_v54 = vld [vmem:[%s14440_s3 + $0xc0c] ss:$16 sps:$4 sm:$0xff]  }
 0x15c   :  { %6959 = vmatprep.subr.bf16.mxu0 %v9947_v9  ;;  %7615 = vmatprep.subr.bf16.mxu1 %v9950_v10  ;;  %v574_v9 = vpack.c.bf16 %v542_v27, %v542_v27  ;;  %v545_v10 = vsel %vm481_vm12, %v449_v61, %v513_v3  ;;  %v10056_v61 = vld [vmem:[%s14440_s3 + $0xd28] ss:$16 sps:$4 sm:$0xff]   ;;  %v10067_v3 = vld [vmem:[%s14440_s3 + $0xd64] ss:$16 sps:$4 sm:$0xff]  }
 0x15d   :  { %v10068_v27 = vld [vmem:[%s14440_s3 + $0xd68] ss:$16 sps:$4 sm:$0xff]  }
 0x15f   :  { %6960 = vmatpush1.bf16.msra.mxu0 %v9945_v11  ;;  %7616 = vmatpush1.bf16.msra.mxu1 %v9948_v30  ;;  %v9999_v11 = vld [vmem:[%s14440_s3 + $0xc00] ss:$16 sps:$4 sm:$0xff]   ;;  %v10002_v30 = vld [vmem:[%s14440_s3 + $0xc08] ss:$16 sps:$4 sm:$0xff]  }
 0x160   :  { %6961 = vmatprep.subr.bf16.mxu0 %v9953_v12  ;;  %7617 = vmatprep.subr.bf16.mxu1 %v9956_v13  ;;  %v10007_v12 = vld [vmem:[%s14440_s3 + $0xc24] ss:$16 sps:$4 sm:$0xff]   ;;  %v10010_v13 = vld [vmem:[%s14440_s3 + $0xc2c] ss:$16 sps:$4 sm:$0xff]  }
 0x163   :  { %6962 = vmatpush1.bf16.msra.mxu0 %v9951_v14  ;;  %7618 = vmatpush1.bf16.msra.mxu1 %v9954_v15  ;;  %v577_v14 = vpack.c.bf16 %v545_v10, %v545_v10  ;;  %v10005_v15 = vld [vmem:[%s14440_s3 + $0xc20] ss:$16 sps:$4 sm:$0xff]   ;;  %v10073_v10 = vld [vmem:[%s14440_s3 + $0xd84] ss:$16 sps:$4 sm:$0xff]  }
 0x164   :  { %6963 = vmatprep.subr.bf16.mxu0 %v9959_v16  ;;  %7619 = vmatprep.subr.bf16.mxu1 %v9962_v17  ;;  %v10008_v16 = vld [vmem:[%s14440_s3 + $0xc28] ss:$16 sps:$4 sm:$0xff]   ;;  %v10013_v17 = vld [vmem:[%s14440_s3 + $0xc44] ss:$16 sps:$4 sm:$0xff]  }
 0x167   :  { %6964 = vmatpush1.bf16.msra.mxu0 %v9957_v18  ;;  %7620 = vmatpush1.bf16.msra.mxu1 %v9960_v38  ;;  %v10016_v18 = vld [vmem:[%s14440_s3 + $0xc4c] ss:$16 sps:$4 sm:$0xff]   ;;  %v10011_v38 = vld [vmem:[%s14440_s3 + $0xc40] ss:$16 sps:$4 sm:$0xff]  }
 0x168   :  { %6965 = vmatprep.subr.bf16.mxu0 %v9965_v20  ;;  %7621 = vmatprep.subr.bf16.mxu1 %v9968_v21  ;;  %v10014_v20 = vld [vmem:[%s14440_s3 + $0xc48] ss:$16 sps:$4 sm:$0xff]   ;;  %v10019_v21 = vld [vmem:[%s14440_s3 + $0xc64] ss:$16 sps:$4 sm:$0xff]  }
 0x16b   :  { %6966 = vmatpush1.bf16.msra.mxu0 %v9963_v23  ;;  %7622 = vmatpush1.bf16.msra.mxu1 %v9966_v24  ;;  %v10022_v23 = vld [vmem:[%s14440_s3 + $0xc6c] ss:$16 sps:$4 sm:$0xff]   ;;  %v10017_v24 = vld [vmem:[%s14440_s3 + $0xc60] ss:$16 sps:$4 sm:$0xff]  }
 0x16c   :  { %6967 = vmatprep.subr.bf16.mxu0 %v9971_v25  ;;  %7623 = vmatprep.subr.bf16.mxu1 %v9974_v26  ;;  %v10020_v25 = vld [vmem:[%s14440_s3 + $0xc68] ss:$16 sps:$4 sm:$0xff]   ;;  %v10025_v26 = vld [vmem:[%s14440_s3 + $0xc84] ss:$16 sps:$4 sm:$0xff]  }
 0x16f   :  { %6968 = vmatpush1.bf16.msra.mxu0 %v9969_v28  ;;  %7624 = vmatpush1.bf16.msra.mxu1 %v9972_v29  ;;  %v10028_v28 = vld [vmem:[%s14440_s3 + $0xc8c] ss:$16 sps:$4 sm:$0xff]   ;;  %v10023_v29 = vld [vmem:[%s14440_s3 + $0xc80] ss:$16 sps:$4 sm:$0xff]  }
 0x170   :  { %6969 = vmatprep.subr.bf16.mxu0 %v9977_v33  ;;  %7625 = vmatprep.subr.bf16.mxu1 %v9980_v4  ;;  %v10034_v33 = vld [vmem:[%s14440_s3 + $0xcac] ss:$16 sps:$4 sm:$0xff]   ;;  %v10029_v4 = vld [vmem:[%s14440_s3 + $0xca0] ss:$16 sps:$4 sm:$0xff]  }
 0x173   :  { %6970 = vmatpush1.bf16.msra.mxu0 %v9975_v36  ;;  %7626 = vmatpush1.bf16.msra.mxu1 %v9978_v39  ;;  %v10040_v36 = vld [vmem:[%s14440_s3 + $0xccc] ss:$16 sps:$4 sm:$0xff]   ;;  %v10035_v39 = vld [vmem:[%s14440_s3 + $0xcc0] ss:$16 sps:$4 sm:$0xff]  }
 0x174   :  { %6971 = vmatprep.subr.bf16.mxu0 %v9983_v43  ;;  %7627 = vmatprep.subr.bf16.mxu1 %v9986_v44  ;;  %v10046_v43 = vld [vmem:[%s14440_s3 + $0xcec] ss:$16 sps:$4 sm:$0xff]   ;;  %v10041_v44 = vld [vmem:[%s14440_s3 + $0xce0] ss:$16 sps:$4 sm:$0xff]  }
 0x177   :  { %6972 = vmatpush1.bf16.msra.mxu0 %v9981_v51  ;;  %7628 = vmatpush1.bf16.msra.mxu1 %v9984_v52  ;;  %v10052_v51 = vld [vmem:[%s14440_s3 + $0xd0c] ss:$16 sps:$4 sm:$0xff]   ;;  %v10047_v52 = vld [vmem:[%s14440_s3 + $0xd00] ss:$16 sps:$4 sm:$0xff]  }
 0x178   :  { %6973 = vmatprep.subr.bf16.mxu0 %v9989_v58  ;;  %7629 = vmatprep.subr.bf16.mxu1 %v9992_v59  ;;  %v10055_v58 = vld [vmem:[%s14440_s3 + $0xd24] ss:$16 sps:$4 sm:$0xff]   ;;  %v10058_v59 = vld [vmem:[%s14440_s3 + $0xd2c] ss:$16 sps:$4 sm:$0xff]  }
 0x17b   :  { %6974 = vmatpush1.bf16.msra.mxu0 %v9987_v60  ;;  %7630 = vmatpush1.bf16.msra.mxu1 %v9990_v62  ;;  %v10053_v60 = vld [vmem:[%s14440_s3 + $0xd20] ss:$16 sps:$4 sm:$0xff]   ;;  %v10061_v62 = vld [vmem:[%s14440_s3 + $0xd44] ss:$16 sps:$4 sm:$0xff]  }
 0x17c   :  { %6975 = vmatprep.subr.bf16.mxu0 %v9995_v1  ;;  %7631 = vmatprep.subr.bf16.mxu1 %v9998_v2  ;;  %v10059_v1 = vld [vmem:[%s14440_s3 + $0xd40] ss:$16 sps:$4 sm:$0xff]   ;;  %v10062_v2 = vld [vmem:[%s14440_s3 + $0xd48] ss:$16 sps:$4 sm:$0xff]  }
 0x17f   :  { %6976 = vmatpush1.bf16.msra.mxu0 %v9993_v6  ;;  %7632 = vmatpush1.bf16.msra.mxu1 %v9996_v7  ;;  %v10070_v6 = vld [vmem:[%s14440_s3 + $0xd6c] ss:$16 sps:$4 sm:$0xff]   ;;  %v10065_v7 = vld [vmem:[%s14440_s3 + $0xd60] ss:$16 sps:$4 sm:$0xff]  }
 0x180   :  { %6986 = vmatprep.subr.bf16.mxu0 %v10001_v8  ;;  %7642 = vmatprep.subr.bf16.mxu1 %v10004_v54  ;;  %v48_v8 = vunpack.c.l.bf16 %v12258_v53  ;;  %v127_v54 = vrot.slane %v12251_v32, %v11586_v50 }
 0x182   :  { %6978 = vmatmul.mubr.bf16.vlgmr.msra.gmra.mrb[0].mxu0 %v574_v9  ;;  %7634 = vmatmul.mubr.bf16.vlgmr.msra.gmra.mrb[0].mxu1 %v574_v9  ;;  %v12470_v9 = vld [vmem:[%s14441_s0 + $0x38] sm:$0xff] }
 0x183   :  { %6987 = vmatpush1.bf16.msra.mxu0 %v9999_v11  ;;  %7643 = vmatpush1.bf16.msra.mxu1 %v10002_v30  ;;  %v10076_v11 = vld [vmem:[%s14440_s3 + $0xd8c] ss:$16 sps:$4 sm:$0xff]   ;;  %v51_v53 = vunpack.c.h.bf16 %v12470_v9  ;;  %v139_v30 = vrot.slane %v12251_v32, %v11595_v55  ;;  %v10079_v32 = vld [vmem:[%s14440_s3 + $0xda4] ss:$16 sps:$4 sm:$0xff]  }
 0x184   :  { %6988 = vmatprep.subr.bf16.mxu0 %v10007_v12  ;;  %7644 = vmatprep.subr.bf16.mxu1 %v10010_v13  ;;  %v10071_v12 = vld [vmem:[%s14440_s3 + $0xd80] ss:$16 sps:$4 sm:$0xff]   ;;  %v10074_v13 = vld [vmem:[%s14440_s3 + $0xd88] ss:$16 sps:$4 sm:$0xff]  }
 0x185   :  { %7018 = vmatprep.mubr.bf16.mxu0 %v577_v14  ;;  %7674 = vmatprep.mubr.bf16.mxu1 %v577_v14  ;;  %v248_v14 = vmul.f32 %v127_v54, %v48_v8  ;;  %v10130_v8 = vld [vmem:[%s14440_s3 + $0xeac] ss:$16 sps:$4 sm:$0xff]   ;;  %v10125_v54 = vld [vmem:[%s14440_s3 + $0xea0] ss:$16 sps:$4 sm:$0xff]  }
 0x187   :  { %6989 = vmatpush1.bf16.msra.mxu0 %v10005_v15  ;;  %7645 = vmatpush1.bf16.msra.mxu1 %v10008_v16  ;;  %v327_v15 = vrot.slane %v12278_v41, %v11586_v50  ;;  %v10082_v16 = vld [vmem:[%s14440_s3 + $0xdac] ss:$16 sps:$4 sm:$0xff]  }
 0x188   :  { %6990 = vmatprep.subr.bf16.mxu0 %v10013_v17  ;;  %7646 = vmatprep.subr.bf16.mxu1 %v10016_v18  ;;  %v251_v17 = vmul.f32 %v139_v30, %v51_v53  ;;  %v339_v18 = vrot.slane %v12278_v41, %v11595_v55  ;;  %v10088_v41 = vld [vmem:[%s14440_s3 + $0xdcc] ss:$16 sps:$4 sm:$0xff]   ;;  %v10131_v30 = vld [vmem:[%s14440_s3 + $0xec0] ss:$16 sps:$4 sm:$0xff]  }
 0x189   :  { %v10136_v53 = vld [vmem:[%s14440_s3 + $0xecc] ss:$16 sps:$4 sm:$0xff]  }
 0x18b   :  { %6991 = vmatpush1.bf16.msra.mxu0 %v10011_v38  ;;  %7647 = vmatpush1.bf16.msra.mxu1 %v10014_v20  ;;  %v10077_v38 = vld [vmem:[%s14440_s3 + $0xda0] ss:$16 sps:$4 sm:$0xff]   ;;  %v10080_v20 = vld [vmem:[%s14440_s3 + $0xda8] ss:$16 sps:$4 sm:$0xff]  }
 0x18c   :  { %6992 = vmatprep.subr.bf16.mxu0 %v10019_v21  ;;  %7648 = vmatprep.subr.bf16.mxu1 %v10022_v23  ;;  %v448_v21 = vadd.f32 %v327_v15, %v248_v14  ;;  %v10085_v23 = vld [vmem:[%s14440_s3 + $0xdc4] ss:$16 sps:$4 sm:$0xff]   ;;  %v10142_v14 = vld [vmem:[%s14440_s3 + $0xeec] ss:$16 sps:$4 sm:$0xff]   ;;  %v10137_v15 = vld [vmem:[%s14440_s3 + $0xee0] ss:$16 sps:$4 sm:$0xff]  }
 0x18e   :  { %vm480_vm13 = vcmp.gt.f32.partialorder %v448_v21, 0.0 }
 0x18f   :  { %6993 = vmatpush1.bf16.msra.mxu0 %v10017_v24  ;;  %7649 = vmatpush1.bf16.msra.mxu1 %v10020_v25  ;;  %v10083_v24 = vld [vmem:[%s14440_s3 + $0xdc0] ss:$16 sps:$4 sm:$0xff]   ;;  %v451_v25 = vadd.f32 %v339_v18, %v251_v17  ;;  %v10148_v17 = vld [vmem:[%s14440_s3 + $0xf0c] ss:$16 sps:$4 sm:$0xff]  }
 0x190   :  { %6994 = vmatprep.subr.bf16.mxu0 %v10025_v26  ;;  %7650 = vmatprep.subr.bf16.mxu1 %v10028_v28  ;;  %v10086_v26 = vld [vmem:[%s14440_s3 + $0xdc8] ss:$16 sps:$4 sm:$0xff]   ;;  %v512_v28 = vmul.f32 0.2, %v448_v21  ;;  %v10143_v18 = vld [vmem:[%s14440_s3 + $0xf00] ss:$16 sps:$4 sm:$0xff]  }
 0x191   :  { %vm483_vm14 = vcmp.gt.f32.partialorder %v451_v25, 0.0 }
 0x193   :  { %6995 = vmatpush1.bf16.msra.mxu0 %v10023_v29  ;;  %7651 = vmatpush1.bf16.msra.mxu1 %v10026_v31  ;;  %v10091_v29 = vld [vmem:[%s14440_s3 + $0xde4] ss:$16 sps:$4 sm:$0xff]   ;;  %v10094_v31 = vld [vmem:[%s14440_s3 + $0xdec] ss:$16 sps:$4 sm:$0xff]  }
 0x194   :  { %6996 = vmatprep.subr.bf16.mxu0 %v10031_v0  ;;  %7652 = vmatprep.subr.bf16.mxu1 %v10034_v33  ;;  %v515_v0 = vmul.f32 0.2, %v451_v25  ;;  %v10089_v33 = vld [vmem:[%s14440_s3 + $0xde0] ss:$16 sps:$4 sm:$0xff]  }
 0x197   :  { %6997 = vmatpush1.bf16.msra.mxu0 %v10029_v4  ;;  %7653 = vmatpush1.bf16.msra.mxu1 %v10032_v34  ;;  %v10092_v4 = vld [vmem:[%s14440_s3 + $0xde8] ss:$16 sps:$4 sm:$0xff]   ;;  %v544_v34 = vsel %vm480_vm13, %v448_v21, %v512_v28  ;;  %v10154_v21 = vld [vmem:[%s14440_s3 + $0xf2c] ss:$16 sps:$4 sm:$0xff]  }
 0x198   :  { %6998 = vmatprep.subr.bf16.mxu0 %v10037_v35  ;;  %7654 = vmatprep.subr.bf16.mxu1 %v10040_v36  ;;  %v10097_v35 = vld [vmem:[%s14440_s3 + $0xe04] ss:$16 sps:$4 sm:$0xff]   ;;  %v10100_v36 = vld [vmem:[%s14440_s3 + $0xe0c] ss:$16 sps:$4 sm:$0xff]   ;;  %v10158_v28 = vld [vmem:[%s14440_s3 + $0xf48] ss:$16 sps:$4 sm:$0xff]  }
 0x19b   :  { %6999 = vmatpush1.bf16.msra.mxu0 %v10035_v39  ;;  %7655 = vmatpush1.bf16.msra.mxu1 %v10038_v40  ;;  %v576_v39 = vpack.c.bf16 %v544_v34, %v544_v34  ;;  %v547_v40 = vsel %vm483_vm14, %v451_v25, %v515_v0  ;;  %v10160_v25 = vld [vmem:[%s14440_s3 + $0xf4c] ss:$16 sps:$4 sm:$0xff]   ;;  %v10161_v0 = vld [vmem:[%s14440_s3 + $0xf60] ss:$16 sps:$4 sm:$0xff]  }
 0x19c   :  { %7000 = vmatprep.subr.bf16.mxu0 %v10043_v5  ;;  %7656 = vmatprep.subr.bf16.mxu1 %v10046_v43  ;;  %v10095_v5 = vld [vmem:[%s14440_s3 + $0xe00] ss:$16 sps:$4 sm:$0xff]   ;;  %v10098_v43 = vld [vmem:[%s14440_s3 + $0xe08] ss:$16 sps:$4 sm:$0xff]  }
 0x19d   :  { %v10963_v34 = vld [vmem:[%s14442_s1 + $0x8] sm:$0xff] }
 0x19f   :  { %7001 = vmatpush1.bf16.msra.mxu0 %v10041_v44  ;;  %7657 = vmatpush1.bf16.msra.mxu1 %v10044_v45  ;;  %v10103_v44 = vld [vmem:[%s14440_s3 + $0xe24] ss:$16 sps:$4 sm:$0xff]   ;;  %v10106_v45 = vld [vmem:[%s14440_s3 + $0xe2c] ss:$16 sps:$4 sm:$0xff]  }
 0x1a0   :  { %7002 = vmatprep.subr.bf16.mxu0 %v10049_v46  ;;  %7658 = vmatprep.subr.bf16.mxu1 %v10052_v51  ;;  %v579_v46 = vpack.c.bf16 %v547_v40, %v547_v40  ;;  %v10101_v51 = vld [vmem:[%s14440_s3 + $0xe20] ss:$16 sps:$4 sm:$0xff]   ;;  %v10172_v40 = vld [vmem:[%s14440_s3 + $0xf8c] ss:$16 sps:$4 sm:$0xff]  }
 0x1a3   :  { %7003 = vmatpush1.bf16.msra.mxu0 %v10047_v52  ;;  %7659 = vmatpush1.bf16.msra.mxu1 %v10050_v57  ;;  %v10104_v52 = vld [vmem:[%s14440_s3 + $0xe28] ss:$16 sps:$4 sm:$0xff]   ;;  %v10109_v57 = vld [vmem:[%s14440_s3 + $0xe44] ss:$16 sps:$4 sm:$0xff]  }
 0x1a4   :  { %7004 = vmatprep.subr.bf16.mxu0 %v10055_v58  ;;  %7660 = vmatprep.subr.bf16.mxu1 %v10058_v59  ;;  %v10112_v58 = vld [vmem:[%s14440_s3 + $0xe4c] ss:$16 sps:$4 sm:$0xff]   ;;  %v10107_v59 = vld [vmem:[%s14440_s3 + $0xe40] ss:$16 sps:$4 sm:$0xff]  }
 0x1a7   :  { %7005 = vmatpush1.bf16.msra.mxu0 %v10053_v60  ;;  %7661 = vmatpush1.bf16.msra.mxu1 %v10056_v61  ;;  %v10110_v60 = vld [vmem:[%s14440_s3 + $0xe48] ss:$16 sps:$4 sm:$0xff]   ;;  %v10115_v61 = vld [vmem:[%s14440_s3 + $0xe64] ss:$16 sps:$4 sm:$0xff]  }
 0x1a8   :  { %7006 = vmatprep.subr.bf16.mxu0 %v10061_v62  ;;  %7662 = vmatprep.subr.bf16.mxu1 %v10064_v63  ;;  %v10118_v62 = vld [vmem:[%s14440_s3 + $0xe6c] ss:$16 sps:$4 sm:$0xff]   ;;  %v10113_v63 = vld [vmem:[%s14440_s3 + $0xe60] ss:$16 sps:$4 sm:$0xff]  }
 0x1ab   :  { %7007 = vmatpush1.bf16.msra.mxu0 %v10059_v1  ;;  %7663 = vmatpush1.bf16.msra.mxu1 %v10062_v2  ;;  %v10116_v1 = vld [vmem:[%s14440_s3 + $0xe68] ss:$16 sps:$4 sm:$0xff]   ;;  %v10121_v2 = vld [vmem:[%s14440_s3 + $0xe84] ss:$16 sps:$4 sm:$0xff]  }
 0x1ac   :  { %7008 = vmatprep.subr.bf16.mxu0 %v10067_v3  ;;  %7664 = vmatprep.subr.bf16.mxu1 %v10070_v6  ;;  %v10124_v3 = vld [vmem:[%s14440_s3 + $0xe8c] ss:$16 sps:$4 sm:$0xff]   ;;  %v10119_v6 = vld [vmem:[%s14440_s3 + $0xe80] ss:$16 sps:$4 sm:$0xff]  }
 0x1af   :  { %7009 = vmatpush1.bf16.msra.mxu0 %v10065_v7  ;;  %7665 = vmatpush1.bf16.msra.mxu1 %v10068_v27  ;;  %v10122_v7 = vld [vmem:[%s14440_s3 + $0xe88] ss:$16 sps:$4 sm:$0xff]   ;;  %v10127_v27 = vld [vmem:[%s14440_s3 + $0xea4] ss:$16 sps:$4 sm:$0xff]  }
 0x1b0   :  { %7010 = vmatprep.subr.bf16.mxu0 %v10073_v10  ;;  %7666 = vmatprep.subr.bf16.mxu1 %v10076_v11  ;;  %v10128_v10 = vld [vmem:[%s14440_s3 + $0xea8] ss:$16 sps:$4 sm:$0xff]   ;;  %v10133_v11 = vld [vmem:[%s14440_s3 + $0xec4] ss:$16 sps:$4 sm:$0xff]  }
 0x1b3   :  { %7011 = vmatpush1.bf16.msra.mxu0 %v10071_v12  ;;  %7667 = vmatpush1.bf16.msra.mxu1 %v10074_v13  ;;  %v10134_v12 = vld [vmem:[%s14440_s3 + $0xec8] ss:$16 sps:$4 sm:$0xff]   ;;  %v10139_v13 = vld [vmem:[%s14440_s3 + $0xee4] ss:$16 sps:$4 sm:$0xff]  }
 0x1b4   :  { %7012 = vmatprep.subr.bf16.mxu0 %v10079_v32  ;;  %7668 = vmatprep.subr.bf16.mxu1 %v10082_v16  ;;  %v10140_v32 = vld [vmem:[%s14440_s3 + $0xee8] ss:$16 sps:$4 sm:$0xff]   ;;  %v10145_v16 = vld [vmem:[%s14440_s3 + $0xf04] ss:$16 sps:$4 sm:$0xff]  }
 0x1b7   :  { %7013 = vmatpush1.bf16.msra.mxu0 %v10077_v38  ;;  %7669 = vmatpush1.bf16.msra.mxu1 %v10080_v20  ;;  %v10146_v38 = vld [vmem:[%s14440_s3 + $0xf08] ss:$16 sps:$4 sm:$0xff]   ;;  %v10151_v20 = vld [vmem:[%s14440_s3 + $0xf24] ss:$16 sps:$4 sm:$0xff]  }
 0x1b8   :  { %7014 = vmatprep.subr.bf16.mxu0 %v10085_v23  ;;  %7670 = vmatprep.subr.bf16.mxu1 %v10088_v41  ;;  %v10149_v23 = vld [vmem:[%s14440_s3 + $0xf20] ss:$16 sps:$4 sm:$0xff]   ;;  %v10152_v41 = vld [vmem:[%s14440_s3 + $0xf28] ss:$16 sps:$4 sm:$0xff]  }
 0x1bb   :  { %7015 = vmatpush1.bf16.msra.mxu0 %v10083_v24  ;;  %7671 = vmatpush1.bf16.msra.mxu1 %v10086_v26  ;;  %v10157_v24 = vld [vmem:[%s14440_s3 + $0xf44] ss:$16 sps:$4 sm:$0xff]   ;;  %v10155_v26 = vld [vmem:[%s14440_s3 + $0xf40] ss:$16 sps:$4 sm:$0xff]  }
 0x1bc   :  { %7016 = vmatprep.subr.bf16.mxu0 %v10091_v29  ;;  %7672 = vmatprep.subr.bf16.mxu1 %v10094_v31  ;;  %v10163_v29 = vld [vmem:[%s14440_s3 + $0xf64] ss:$16 sps:$4 sm:$0xff]   ;;  %v10166_v31 = vld [vmem:[%s14440_s3 + $0xf6c] ss:$16 sps:$4 sm:$0xff]  }
 0x1bf   :  { %7017 = vmatpush1.bf16.msra.mxu0 %v10089_v33  ;;  %7673 = vmatpush1.bf16.msra.mxu1 %v10092_v4  ;;  %v10164_v33 = vld [vmem:[%s14440_s3 + $0xf68] ss:$16 sps:$4 sm:$0xff]   ;;  %v50_v4 = vunpack.c.l.bf16 %v12470_v9  ;;  %v10169_v9 = vld [vmem:[%s14440_s3 + $0xf84] ss:$16 sps:$4 sm:$0xff]  }
 0x1c0   :  { %7027 = vmatprep.subr.bf16.mxu0 %v10097_v35  ;;  %7683 = vmatprep.subr.bf16.mxu1 %v10100_v36  ;;  %v135_v35 = vrot.slane %v10963_v34, %v11812_v22  ;;  %v12679_v36 = vld [vmem:[%s14441_s0 + $0x40] sm:$0xff] }
 0x1c1   :  { %v10215_v34 = vld [vmem:[%s14440_s3 + $0x1080] ss:$16 sps:$4 sm:$0xff]  }
 0x1c2   :  { %7019 = vmatmul.mubr.bf16.vlgmr.msra.gmra.mrb[0].mxu0 %v576_v39  ;;  %7675 = vmatmul.mubr.bf16.vlgmr.msra.gmra.mrb[0].mxu1 %v576_v39  ;;  %v12684_v39 = vld [vmem:[%s14442_s1 + $0x10] sm:$0xff] }
 0x1c3   :  { %7028 = vmatpush1.bf16.msra.mxu0 %v10095_v5  ;;  %7684 = vmatpush1.bf16.msra.mxu1 %v10098_v43  ;;  %v10167_v5 = vld [vmem:[%s14440_s3 + $0xf80] ss:$16 sps:$4 sm:$0xff]   ;;  %v53_v43 = vunpack.c.h.bf16 %v12679_v36 }
 0x1c4   :  { %7029 = vmatprep.subr.bf16.mxu0 %v10103_v44  ;;  %7685 = vmatprep.subr.bf16.mxu1 %v10106_v45  ;;  %v147_v44 = vrot.slane %v12684_v39, %v11144_v47  ;;  %v10170_v45 = vld [vmem:[%s14440_s3 + $0xf88] ss:$16 sps:$4 sm:$0xff]  }
 0x1c5   :  { %7059 = vmatprep.mubr.bf16.mxu0 %v579_v46  ;;  %7715 = vmatprep.mubr.bf16.mxu1 %v579_v46  ;;  %v250_v46 = vmul.f32 %v135_v35, %v50_v4  ;;  %v10220_v4 = vld [vmem:[%s14440_s3 + $0x108c] ss:$16 sps:$4 sm:$0xff]   ;;  %v10218_v35 = vld [vmem:[%s14440_s3 + $0x1088] ss:$16 sps:$4 sm:$0xff]  }
 0x1c7   :  { %7030 = vmatpush1.bf16.msra.mxu0 %v10101_v51  ;;  %7686 = vmatpush1.bf16.msra.mxu1 %v10104_v52  ;;  %v10964_v51 = vld [vmem:[%s14443_s2 + $0x8] sm:$0xff] }
 0x1c8   :  { %7031 = vmatprep.subr.bf16.mxu0 %v10109_v57  ;;  %7687 = vmatprep.subr.bf16.mxu1 %v10112_v58  ;;  %v335_v52 = vrot.slane %v10964_v51, %v11812_v22  ;;  %v12708_v57 = vld [vmem:[%s14443_s2 + $0x10] sm:$0xff]  ;;  %v10230_v51 = vld [vmem:[%s14440_s3 + $0x10c8] ss:$16 sps:$4 sm:$0xff]  }
 0x1c9   :  { %v10175_v58 = vld [vmem:[%s14440_s3 + $0xfa4] ss:$16 sps:$4 sm:$0xff]  }
 0x1cb   :  { %7032 = vmatpush1.bf16.msra.mxu0 %v10107_v59  ;;  %7688 = vmatpush1.bf16.msra.mxu1 %v10110_v60  ;;  %v10178_v59 = vld [vmem:[%s14440_s3 + $0xfac] ss:$16 sps:$4 sm:$0xff]   ;;  %v253_v60 = vmul.f32 %v147_v44, %v53_v43  ;;  %v10224_v43 = vld [vmem:[%s14440_s3 + $0x10a8] ss:$16 sps:$4 sm:$0xff]   ;;  %v10229_v44 = vld [vmem:[%s14440_s3 + $0x10c4] ss:$16 sps:$4 sm:$0xff]  }
 0x1cc   :  { %7033 = vmatprep.subr.bf16.mxu0 %v10115_v61  ;;  %7689 = vmatprep.subr.bf16.mxu1 %v10118_v62  ;;  %v347_v61 = vrot.slane %v12708_v57, %v11144_v47  ;;  %v10173_v62 = vld [vmem:[%s14440_s3 + $0xfa0] ss:$16 sps:$4 sm:$0xff]  }
 0x1cf   :  { %7034 = vmatpush1.bf16.msra.mxu0 %v10113_v63  ;;  %7690 = vmatpush1.bf16.msra.mxu1 %v10116_v1  ;;  %v10176_v63 = vld [vmem:[%s14440_s3 + $0xfa8] ss:$16 sps:$4 sm:$0xff]   ;;  %v450_v1 = vadd.f32 %v335_v52, %v250_v46  ;;  %v10227_v46 = vld [vmem:[%s14440_s3 + $0x10c0] ss:$16 sps:$4 sm:$0xff]   ;;  %v10235_v52 = vld [vmem:[%s14440_s3 + $0x10e4] ss:$16 sps:$4 sm:$0xff]  }
 0x1d0   :  { %7035 = vmatprep.subr.bf16.mxu0 %v10121_v2  ;;  %7691 = vmatprep.subr.bf16.mxu1 %v10124_v3  ;;  %v10181_v2 = vld [vmem:[%s14440_s3 + $0xfc4] ss:$16 sps:$4 sm:$0xff]   ;;  %v10184_v3 = vld [vmem:[%s14440_s3 + $0xfcc] ss:$16 sps:$4 sm:$0xff]  }
 0x1d1   :  { %vm482_vm15 = vcmp.gt.f32.partialorder %v450_v1, 0.0 }
 0x1d3   :  { %7036 = vmatpush1.bf16.msra.mxu0 %v10119_v6  ;;  %7692 = vmatpush1.bf16.msra.mxu1 %v10122_v7  ;;  %v10179_v6 = vld [vmem:[%s14440_s3 + $0xfc0] ss:$16 sps:$4 sm:$0xff]   ;;  %v453_v7 = vadd.f32 %v347_v61, %v253_v60  ;;  %v10236_v60 = vld [vmem:[%s14440_s3 + $0x10e8] ss:$16 sps:$4 sm:$0xff]   ;;  %v10241_v61 = vld [vmem:[%s14440_s3 + $0x1104] ss:$16 sps:$4 sm:$0xff]  }
 0x1d4   :  { %7037 = vmatprep.subr.bf16.mxu0 %v10127_v27  ;;  %7693 = vmatprep.subr.bf16.mxu1 %v10130_v8  ;;  %v10182_v27 = vld [vmem:[%s14440_s3 + $0xfc8] ss:$16 sps:$4 sm:$0xff]   ;;  %v514_v8 = vmul.f32 0.2, %v450_v1 }
 0x1d5   :  { %vm485_vm0 = vcmp.gt.f32.partialorder %v453_v7, 0.0 }
 0x1d7   :  { %7038 = vmatpush1.bf16.msra.mxu0 %v10125_v54  ;;  %7694 = vmatpush1.bf16.msra.mxu1 %v10128_v10  ;;  %v10187_v54 = vld [vmem:[%s14440_s3 + $0xfe4] ss:$16 sps:$4 sm:$0xff]   ;;  %v10190_v10 = vld [vmem:[%s14440_s3 + $0xfec] ss:$16 sps:$4 sm:$0xff]  }
 0x1d8   :  { %7039 = vmatprep.subr.bf16.mxu0 %v10133_v11  ;;  %7695 = vmatprep.subr.bf16.mxu1 %v10136_v53  ;;  %v517_v11 = vmul.f32 0.2, %v453_v7  ;;  %v10185_v53 = vld [vmem:[%s14440_s3 + $0xfe0] ss:$16 sps:$4 sm:$0xff]  }
 0x1db   :  { %7040 = vmatpush1.bf16.msra.mxu0 %v10131_v30  ;;  %7696 = vmatpush1.bf16.msra.mxu1 %v10134_v12  ;;  %v10188_v30 = vld [vmem:[%s14440_s3 + $0xfe8] ss:$16 sps:$4 sm:$0xff]   ;;  %v546_v12 = vsel %vm482_vm15, %v450_v1, %v514_v8  ;;  %v10256_v8 = vld [vmem:[%s14440_s3 + $0x114c] ss:$16 sps:$4 sm:$0xff]  }
 0x1dc   :  { %7041 = vmatprep.subr.bf16.mxu0 %v10139_v13  ;;  %7697 = vmatprep.subr.bf16.mxu1 %v10142_v14  ;;  %v10193_v13 = vld [vmem:[%s14440_s3 + $0x1004] ss:$16 sps:$4 sm:$0xff]   ;;  %v10196_v14 = vld [vmem:[%s14440_s3 + $0x100c] ss:$16 sps:$4 sm:$0xff]   ;;  %v10242_v1 = vld [vmem:[%s14440_s3 + $0x1108] ss:$16 sps:$4 sm:$0xff]  }
 0x1df   :  { %7042 = vmatpush1.bf16.msra.mxu0 %v10137_v15  ;;  %7698 = vmatpush1.bf16.msra.mxu1 %v10140_v32  ;;  %v578_v15 = vpack.c.bf16 %v546_v12, %v546_v12  ;;  %v549_v32 = vsel %vm485_vm0, %v453_v7, %v517_v11  ;;  %v10248_v7 = vld [vmem:[%s14440_s3 + $0x1128] ss:$16 sps:$4 sm:$0xff]   ;;  %v10259_v11 = vld [vmem:[%s14440_s3 + $0x1164] ss:$16 sps:$4 sm:$0xff]   ;;  %vm8157_vm0 = vcmp.lt.s32.totalorder %v76_v37, 512 }
 0x1e0   :  { %7043 = vmatprep.subr.bf16.mxu0 %v10145_v16  ;;  %7699 = vmatprep.subr.bf16.mxu1 %v10148_v17  ;;  %v10191_v16 = vld [vmem:[%s14440_s3 + $0x1000] ss:$16 sps:$4 sm:$0xff]   ;;  %v10194_v17 = vld [vmem:[%s14440_s3 + $0x1008] ss:$16 sps:$4 sm:$0xff]  }
 0x1e1   :  { %v10260_v12 = vld [vmem:[%s14440_s3 + $0x1168] ss:$16 sps:$4 sm:$0xff]  }
 0x1e3   :  { %7044 = vmatpush1.bf16.msra.mxu0 %v10143_v18  ;;  %7700 = vmatpush1.bf16.msra.mxu1 %v10146_v38  ;;  %v10199_v18 = vld [vmem:[%s14440_s3 + $0x1024] ss:$16 sps:$4 sm:$0xff]   ;;  %v10202_v38 = vld [vmem:[%s14440_s3 + $0x102c] ss:$16 sps:$4 sm:$0xff]  }
 0x1e4   :  { %7045 = vmatprep.subr.bf16.mxu0 %v10151_v20  ;;  %7701 = vmatprep.subr.bf16.mxu1 %v10154_v21  ;;  %v581_v20 = vpack.c.bf16 %v549_v32, %v549_v32  ;;  %v10197_v21 = vld [vmem:[%s14440_s3 + $0x1020] ss:$16 sps:$4 sm:$0xff]   ;;  %v10265_v32 = vld [vmem:[%s14440_s3 + $0x1184] ss:$16 sps:$4 sm:$0xff]  }
 0x1e7   :  { %7046 = vmatpush1.bf16.msra.mxu0 %v10149_v23  ;;  %7702 = vmatpush1.bf16.msra.mxu1 %v10152_v41  ;;  %v10200_v23 = vld [vmem:[%s14440_s3 + $0x1028] ss:$16 sps:$4 sm:$0xff]   ;;  %v10205_v41 = vld [vmem:[%s14440_s3 + $0x1044] ss:$16 sps:$4 sm:$0xff]  }
 0x1e8   :  { %7047 = vmatprep.subr.bf16.mxu0 %v10157_v24  ;;  %7703 = vmatprep.subr.bf16.mxu1 %v10160_v25  ;;  %v10208_v24 = vld [vmem:[%s14440_s3 + $0x104c] ss:$16 sps:$4 sm:$0xff]   ;;  %v10203_v25 = vld [vmem:[%s14440_s3 + $0x1040] ss:$16 sps:$4 sm:$0xff]  }
 0x1eb   :  { %7048 = vmatpush1.bf16.msra.mxu0 %v10155_v26  ;;  %7704 = vmatpush1.bf16.msra.mxu1 %v10158_v28  ;;  %v10206_v26 = vld [vmem:[%s14440_s3 + $0x1048] ss:$16 sps:$4 sm:$0xff]   ;;  %v10211_v28 = vld [vmem:[%s14440_s3 + $0x1064] ss:$16 sps:$4 sm:$0xff]  }
 0x1ec   :  { %7049 = vmatprep.subr.bf16.mxu0 %v10163_v29  ;;  %7705 = vmatprep.subr.bf16.mxu1 %v10166_v31  ;;  %v10214_v29 = vld [vmem:[%s14440_s3 + $0x106c] ss:$16 sps:$4 sm:$0xff]   ;;  %v10209_v31 = vld [vmem:[%s14440_s3 + $0x1060] ss:$16 sps:$4 sm:$0xff]  }
 0x1ef   :  { %7050 = vmatpush1.bf16.msra.mxu0 %v10161_v0  ;;  %7706 = vmatpush1.bf16.msra.mxu1 %v10164_v33  ;;  %v10212_v0 = vld [vmem:[%s14440_s3 + $0x1068] ss:$16 sps:$4 sm:$0xff]   ;;  %v10217_v33 = vld [vmem:[%s14440_s3 + $0x1084] ss:$16 sps:$4 sm:$0xff]  }
 0x1f0   :  { %7051 = vmatprep.subr.bf16.mxu0 %v10169_v9  ;;  %7707 = vmatprep.subr.bf16.mxu1 %v10172_v40  ;;  %v10223_v9 = vld [vmem:[%s14440_s3 + $0x10a4] ss:$16 sps:$4 sm:$0xff]   ;;  %v10226_v40 = vld [vmem:[%s14440_s3 + $0x10ac] ss:$16 sps:$4 sm:$0xff]  }
 0x1f3   :  { %7052 = vmatpush1.bf16.msra.mxu0 %v10167_v5  ;;  %7708 = vmatpush1.bf16.msra.mxu1 %v10170_v45  ;;  %v10221_v5 = vld [vmem:[%s14440_s3 + $0x10a0] ss:$16 sps:$4 sm:$0xff]   ;;  %v10232_v45 = vld [vmem:[%s14440_s3 + $0x10cc] ss:$16 sps:$4 sm:$0xff]  }
 0x1f4   :  { %7053 = vmatprep.subr.bf16.mxu0 %v10175_v58  ;;  %7709 = vmatprep.subr.bf16.mxu1 %v10178_v59  ;;  %v10238_v58 = vld [vmem:[%s14440_s3 + $0x10ec] ss:$16 sps:$4 sm:$0xff]   ;;  %v10233_v59 = vld [vmem:[%s14440_s3 + $0x10e0] ss:$16 sps:$4 sm:$0xff]  }
 0x1f7   :  { %7054 = vmatpush1.bf16.msra.mxu0 %v10173_v62  ;;  %7710 = vmatpush1.bf16.msra.mxu1 %v10176_v63  ;;  %v10244_v62 = vld [vmem:[%s14440_s3 + $0x110c] ss:$16 sps:$4 sm:$0xff]   ;;  %v10239_v63 = vld [vmem:[%s14440_s3 + $0x1100] ss:$16 sps:$4 sm:$0xff]  }
 0x1f8   :  { %7055 = vmatprep.subr.bf16.mxu0 %v10181_v2  ;;  %7711 = vmatprep.subr.bf16.mxu1 %v10184_v3  ;;  %v10247_v2 = vld [vmem:[%s14440_s3 + $0x1124] ss:$16 sps:$4 sm:$0xff]   ;;  %v10250_v3 = vld [vmem:[%s14440_s3 + $0x112c] ss:$16 sps:$4 sm:$0xff]  }
 0x1fb   :  { %7056 = vmatpush1.bf16.msra.mxu0 %v10179_v6  ;;  %7712 = vmatpush1.bf16.msra.mxu1 %v10182_v27  ;;  %v10245_v6 = vld [vmem:[%s14440_s3 + $0x1120] ss:$16 sps:$4 sm:$0xff]   ;;  %v10253_v27 = vld [vmem:[%s14440_s3 + $0x1144] ss:$16 sps:$4 sm:$0xff]  }
 0x1fc   :  { %7057 = vmatprep.subr.bf16.mxu0 %v10187_v54  ;;  %7713 = vmatprep.subr.bf16.mxu1 %v10190_v10  ;;  %v10251_v54 = vld [vmem:[%s14440_s3 + $0x1140] ss:$16 sps:$4 sm:$0xff]   ;;  %v10254_v10 = vld [vmem:[%s14440_s3 + $0x1148] ss:$16 sps:$4 sm:$0xff]  }
 0x1ff   :  { %7058 = vmatpush1.bf16.msra.mxu0 %v10185_v53  ;;  %7714 = vmatpush1.bf16.msra.mxu1 %v10188_v30  ;;  %v10262_v53 = vld [vmem:[%s14440_s3 + $0x116c] ss:$16 sps:$4 sm:$0xff]   ;;  %v10257_v30 = vld [vmem:[%s14440_s3 + $0x1160] ss:$16 sps:$4 sm:$0xff]  }
 0x200   :  { %7068 = vmatprep.subr.bf16.mxu0 %v10193_v13  ;;  %7724 = vmatprep.subr.bf16.mxu1 %v10196_v14  ;;  %v52_v13 = vunpack.c.l.bf16 %v12679_v36  ;;  %v143_v14 = vrot.slane %v12684_v39, %v11147_v48 }
 0x202   :  { %7060 = vmatmul.mubr.bf16.vlgmr.msra.gmra.mrb[0].mxu0 %v578_v15  ;;  %7716 = vmatmul.mubr.bf16.vlgmr.msra.gmra.mrb[0].mxu1 %v578_v15  ;;  %v12898_v15 = vld [vmem:[%s14441_s0 + $0x48] sm:$0xff] }
 0x203   :  { %7069 = vmatpush1.bf16.msra.mxu0 %v10191_v16  ;;  %7725 = vmatpush1.bf16.msra.mxu1 %v10194_v17  ;;  %v10268_v16 = vld [vmem:[%s14440_s3 + $0x118c] ss:$16 sps:$4 sm:$0xff]   ;;  %v55_v36 = vunpack.c.h.bf16 %v12898_v15  ;;  %v155_v17 = vrot.slane %v12684_v39, %v11294_v49 }
 0x204   :  { %7070 = vmatprep.subr.bf16.mxu0 %v10199_v18  ;;  %7726 = vmatprep.subr.bf16.mxu1 %v10202_v38  ;;  %v10263_v18 = vld [vmem:[%s14440_s3 + $0x1180] ss:$16 sps:$4 sm:$0xff]   ;;  %v10266_v38 = vld [vmem:[%s14440_s3 + $0x1188] ss:$16 sps:$4 sm:$0xff]  }
 0x205   :  { %7100 = vmatprep.mubr.bf16.mxu0 %v581_v20  ;;  %7756 = vmatprep.mubr.bf16.mxu1 %v581_v20  ;;  %v252_v20 = vmul.f32 %v143_v14, %v52_v13  ;;  %v10314_v13 = vld [vmem:[%s14440_s3 + $0x1288] ss:$16 sps:$4 sm:$0xff]   ;;  %v10319_v14 = vld [vmem:[%s14440_s3 + $0x12a4] ss:$16 sps:$4 sm:$0xff]  }
 0x207   :  { %7071 = vmatpush1.bf16.msra.mxu0 %v10197_v21  ;;  %7727 = vmatpush1.bf16.msra.mxu1 %v10200_v23  ;;  %v343_v21 = vrot.slane %v12708_v57, %v11147_v48  ;;  %v10271_v23 = vld [vmem:[%s14440_s3 + $0x11a4] ss:$16 sps:$4 sm:$0xff]  }
 0x208   :  { %7072 = vmatprep.subr.bf16.mxu0 %v10205_v41  ;;  %7728 = vmatprep.subr.bf16.mxu1 %v10208_v24  ;;  %v10274_v41 = vld [vmem:[%s14440_s3 + $0x11ac] ss:$16 sps:$4 sm:$0xff]   ;;  %v255_v24 = vmul.f32 %v155_v17, %v55_v36  ;;  %v10320_v36 = vld [vmem:[%s14440_s3 + $0x12a8] ss:$16 sps:$4 sm:$0xff]   ;;  %v10325_v17 = vld [vmem:[%s14440_s3 + $0x12c4] ss:$16 sps:$4 sm:$0xff]  }
 0x20b   :  { %7073 = vmatpush1.bf16.msra.mxu0 %v10203_v25  ;;  %7729 = vmatpush1.bf16.msra.mxu1 %v10206_v26  ;;  %v355_v25 = vrot.slane %v12708_v57, %v11294_v49  ;;  %v10269_v26 = vld [vmem:[%s14440_s3 + $0x11a0] ss:$16 sps:$4 sm:$0xff]  }
 0x20c   :  { %7074 = vmatprep.subr.bf16.mxu0 %v10211_v28  ;;  %7730 = vmatprep.subr.bf16.mxu1 %v10214_v29  ;;  %v10272_v28 = vld [vmem:[%s14440_s3 + $0x11a8] ss:$16 sps:$4 sm:$0xff]   ;;  %v452_v29 = vadd.f32 %v343_v21, %v252_v20  ;;  %v10331_v21 = vld [vmem:[%s14440_s3 + $0x12e4] ss:$16 sps:$4 sm:$0xff]  }
 0x20d   :  { %v10326_v20 = vld [vmem:[%s14440_s3 + $0x12c8] ss:$16 sps:$4 sm:$0xff]  }
 0x20e   :  { %vm484_vm1 = vcmp.gt.f32.partialorder %v452_v29, 0.0 }
 0x20f   :  { %7075 = vmatpush1.bf16.msra.mxu0 %v10209_v31  ;;  %7731 = vmatpush1.bf16.msra.mxu1 %v10212_v0  ;;  %v10277_v31 = vld [vmem:[%s14440_s3 + $0x11c4] ss:$16 sps:$4 sm:$0xff]   ;;  %v10280_v0 = vld [vmem:[%s14440_s3 + $0x11cc] ss:$16 sps:$4 sm:$0xff]  }
 0x210   :  { %7076 = vmatprep.subr.bf16.mxu0 %v10217_v33  ;;  %7732 = vmatprep.subr.bf16.mxu1 %v10220_v4  ;;  %v10275_v33 = vld [vmem:[%s14440_s3 + $0x11c0] ss:$16 sps:$4 sm:$0xff]   ;;  %v455_v4 = vadd.f32 %v355_v25, %v255_v24  ;;  %v10332_v24 = vld [vmem:[%s14440_s3 + $0x12e8] ss:$16 sps:$4 sm:$0xff]   ;;  %v10337_v25 = vld [vmem:[%s14440_s3 + $0x1304] ss:$16 sps:$4 sm:$0xff]  }
 0x212   :  { %vm487_vm2 = vcmp.gt.f32.partialorder %v455_v4, 0.0 }
 0x213   :  { %7077 = vmatpush1.bf16.msra.mxu0 %v10215_v34  ;;  %7733 = vmatpush1.bf16.msra.mxu1 %v10218_v35  ;;  %v10278_v34 = vld [vmem:[%s14440_s3 + $0x11c8] ss:$16 sps:$4 sm:$0xff]   ;;  %v516_v35 = vmul.f32 0.2, %v452_v29 }
 0x214   :  { %7078 = vmatprep.subr.bf16.mxu0 %v10223_v9  ;;  %7734 = vmatprep.subr.bf16.mxu1 %v10226_v40  ;;  %v10283_v9 = vld [vmem:[%s14440_s3 + $0x11e4] ss:$16 sps:$4 sm:$0xff]   ;;  %v10286_v40 = vld [vmem:[%s14440_s3 + $0x11ec] ss:$16 sps:$4 sm:$0xff]  }
 0x217   :  { %7079 = vmatpush1.bf16.msra.mxu0 %v10221_v5  ;;  %7735 = vmatpush1.bf16.msra.mxu1 %v10224_v43  ;;  %v519_v5 = vmul.f32 0.2, %v455_v4  ;;  %v10281_v43 = vld [vmem:[%s14440_s3 + $0x11e0] ss:$16 sps:$4 sm:$0xff]  }
 0x218   :  { %7080 = vmatprep.subr.bf16.mxu0 %v10229_v44  ;;  %7736 = vmatprep.subr.bf16.mxu1 %v10232_v45  ;;  %v10284_v44 = vld [vmem:[%s14440_s3 + $0x11e8] ss:$16 sps:$4 sm:$0xff]   ;;  %v548_v45 = vsel %vm484_vm1, %v452_v29, %v516_v35  ;;  %v10352_v35 = vld [vmem:[%s14440_s3 + $0x134c] ss:$16 sps:$4 sm:$0xff]  }
 0x219   :  { %v10338_v29 = vld [vmem:[%s14440_s3 + $0x1308] ss:$16 sps:$4 sm:$0xff]  }
 0x21b   :  { %7081 = vmatpush1.bf16.msra.mxu0 %v10227_v46  ;;  %7737 = vmatpush1.bf16.msra.mxu1 %v10230_v51  ;;  %v10289_v46 = vld [vmem:[%s14440_s3 + $0x1204] ss:$16 sps:$4 sm:$0xff]   ;;  %v10292_v51 = vld [vmem:[%s14440_s3 + $0x120c] ss:$16 sps:$4 sm:$0xff]  }
 0x21c   :  { %7082 = vmatprep.subr.bf16.mxu0 %v10235_v52  ;;  %7738 = vmatprep.subr.bf16.mxu1 %v10238_v58  ;;  %v580_v52 = vpack.c.bf16 %v548_v45, %v548_v45  ;;  %v551_v58 = vsel %vm487_vm2, %v455_v4, %v519_v5  ;;  %v10344_v4 = vld [vmem:[%s14440_s3 + $0x1328] ss:$16 sps:$4 sm:$0xff]   ;;  %v10355_v5 = vld [vmem:[%s14440_s3 + $0x1364] ss:$16 sps:$4 sm:$0xff]  }
 0x21d   :  { %v10356_v45 = vld [vmem:[%s14440_s3 + $0x1368] ss:$16 sps:$4 sm:$0xff]  }
 0x21f   :  { %7083 = vmatpush1.bf16.msra.mxu0 %v10233_v59  ;;  %7739 = vmatpush1.bf16.msra.mxu1 %v10236_v60  ;;  %v10287_v59 = vld [vmem:[%s14440_s3 + $0x1200] ss:$16 sps:$4 sm:$0xff]   ;;  %v10290_v60 = vld [vmem:[%s14440_s3 + $0x1208] ss:$16 sps:$4 sm:$0xff]  }
 0x220   :  { %7084 = vmatprep.subr.bf16.mxu0 %v10241_v61  ;;  %7740 = vmatprep.subr.bf16.mxu1 %v10244_v62  ;;  %v10295_v61 = vld [vmem:[%s14440_s3 + $0x1224] ss:$16 sps:$4 sm:$0xff]   ;;  %v10298_v62 = vld [vmem:[%s14440_s3 + $0x122c] ss:$16 sps:$4 sm:$0xff]  }
 0x223   :  { %7085 = vmatpush1.bf16.msra.mxu0 %v10239_v63  ;;  %7741 = vmatpush1.bf16.msra.mxu1 %v10242_v1  ;;  %v583_v63 = vpack.c.bf16 %v551_v58, %v551_v58  ;;  %v10293_v1 = vld [vmem:[%s14440_s3 + $0x1220] ss:$16 sps:$4 sm:$0xff]   ;;  %v10361_v58 = vld [vmem:[%s14440_s3 + $0x1384] ss:$16 sps:$4 sm:$0xff]  }
 0x224   :  { %7086 = vmatprep.subr.bf16.mxu0 %v10247_v2  ;;  %7742 = vmatprep.subr.bf16.mxu1 %v10250_v3  ;;  %v10296_v2 = vld [vmem:[%s14440_s3 + $0x1228] ss:$16 sps:$4 sm:$0xff]   ;;  %v10301_v3 = vld [vmem:[%s14440_s3 + $0x1244] ss:$16 sps:$4 sm:$0xff]  }
 0x227   :  { %7087 = vmatpush1.bf16.msra.mxu0 %v10245_v6  ;;  %7743 = vmatpush1.bf16.msra.mxu1 %v10248_v7  ;;  %v10304_v6 = vld [vmem:[%s14440_s3 + $0x124c] ss:$16 sps:$4 sm:$0xff]   ;;  %v10299_v7 = vld [vmem:[%s14440_s3 + $0x1240] ss:$16 sps:$4 sm:$0xff]  }
 0x228   :  { %7088 = vmatprep.subr.bf16.mxu0 %v10253_v27  ;;  %7744 = vmatprep.subr.bf16.mxu1 %v10256_v8  ;;  %v10302_v27 = vld [vmem:[%s14440_s3 + $0x1248] ss:$16 sps:$4 sm:$0xff]   ;;  %v10307_v8 = vld [vmem:[%s14440_s3 + $0x1264] ss:$16 sps:$4 sm:$0xff]  }
 0x22b   :  { %7089 = vmatpush1.bf16.msra.mxu0 %v10251_v54  ;;  %7745 = vmatpush1.bf16.msra.mxu1 %v10254_v10  ;;  %v10310_v54 = vld [vmem:[%s14440_s3 + $0x126c] ss:$16 sps:$4 sm:$0xff]   ;;  %v10305_v10 = vld [vmem:[%s14440_s3 + $0x1260] ss:$16 sps:$4 sm:$0xff]  }
 0x22c   :  { %7090 = vmatprep.subr.bf16.mxu0 %v10259_v11  ;;  %7746 = vmatprep.subr.bf16.mxu1 %v10262_v53  ;;  %v10308_v11 = vld [vmem:[%s14440_s3 + $0x1268] ss:$16 sps:$4 sm:$0xff]   ;;  %v10313_v53 = vld [vmem:[%s14440_s3 + $0x1284] ss:$16 sps:$4 sm:$0xff]  }
 0x22f   :  { %7091 = vmatpush1.bf16.msra.mxu0 %v10257_v30  ;;  %7747 = vmatpush1.bf16.msra.mxu1 %v10260_v12  ;;  %v10316_v30 = vld [vmem:[%s14440_s3 + $0x128c] ss:$16 sps:$4 sm:$0xff]   ;;  %v10311_v12 = vld [vmem:[%s14440_s3 + $0x1280] ss:$16 sps:$4 sm:$0xff]  }
 0x230   :  { %7092 = vmatprep.subr.bf16.mxu0 %v10265_v32  ;;  %7748 = vmatprep.subr.bf16.mxu1 %v10268_v16  ;;  %v10322_v32 = vld [vmem:[%s14440_s3 + $0x12ac] ss:$16 sps:$4 sm:$0xff]   ;;  %v10317_v16 = vld [vmem:[%s14440_s3 + $0x12a0] ss:$16 sps:$4 sm:$0xff]  }
 0x233   :  { %7093 = vmatpush1.bf16.msra.mxu0 %v10263_v18  ;;  %7749 = vmatpush1.bf16.msra.mxu1 %v10266_v38  ;;  %v10328_v18 = vld [vmem:[%s14440_s3 + $0x12cc] ss:$16 sps:$4 sm:$0xff]   ;;  %v10323_v38 = vld [vmem:[%s14440_s3 + $0x12c0] ss:$16 sps:$4 sm:$0xff]  }
 0x234   :  { %7094 = vmatprep.subr.bf16.mxu0 %v10271_v23  ;;  %7750 = vmatprep.subr.bf16.mxu1 %v10274_v41  ;;  %v10334_v23 = vld [vmem:[%s14440_s3 + $0x12ec] ss:$16 sps:$4 sm:$0xff]   ;;  %v10329_v41 = vld [vmem:[%s14440_s3 + $0x12e0] ss:$16 sps:$4 sm:$0xff]  }
 0x237   :  { %7095 = vmatpush1.bf16.msra.mxu0 %v10269_v26  ;;  %7751 = vmatpush1.bf16.msra.mxu1 %v10272_v28  ;;  %v10340_v26 = vld [vmem:[%s14440_s3 + $0x130c] ss:$16 sps:$4 sm:$0xff]   ;;  %v10335_v28 = vld [vmem:[%s14440_s3 + $0x1300] ss:$16 sps:$4 sm:$0xff]  }
 0x238   :  { %7096 = vmatprep.subr.bf16.mxu0 %v10277_v31  ;;  %7752 = vmatprep.subr.bf16.mxu1 %v10280_v0  ;;  %v10343_v31 = vld [vmem:[%s14440_s3 + $0x1324] ss:$16 sps:$4 sm:$0xff]   ;;  %v10346_v0 = vld [vmem:[%s14440_s3 + $0x132c] ss:$16 sps:$4 sm:$0xff]  }
 0x23b   :  { %7097 = vmatpush1.bf16.msra.mxu0 %v10275_v33  ;;  %7753 = vmatpush1.bf16.msra.mxu1 %v10278_v34  ;;  %v10341_v33 = vld [vmem:[%s14440_s3 + $0x1320] ss:$16 sps:$4 sm:$0xff]   ;;  %v10349_v34 = vld [vmem:[%s14440_s3 + $0x1344] ss:$16 sps:$4 sm:$0xff]  }
 0x23c   :  { %7098 = vmatprep.subr.bf16.mxu0 %v10283_v9  ;;  %7754 = vmatprep.subr.bf16.mxu1 %v10286_v40  ;;  %v10347_v9 = vld [vmem:[%s14440_s3 + $0x1340] ss:$16 sps:$4 sm:$0xff]   ;;  %v10350_v40 = vld [vmem:[%s14440_s3 + $0x1348] ss:$16 sps:$4 sm:$0xff]  }
 0x23f   :  { %7099 = vmatpush1.bf16.msra.mxu0 %v10281_v43  ;;  %7755 = vmatpush1.bf16.msra.mxu1 %v10284_v44  ;;  %v10358_v43 = vld [vmem:[%s14440_s3 + $0x136c] ss:$16 sps:$4 sm:$0xff]   ;;  %v10353_v44 = vld [vmem:[%s14440_s3 + $0x1360] ss:$16 sps:$4 sm:$0xff]  }
 0x240   :  { %7109 = vmatprep.subr.bf16.mxu0 %v10289_v46  ;;  %7765 = vmatprep.subr.bf16.mxu1 %v10292_v51  ;;  %v54_v46 = vunpack.c.l.bf16 %v12898_v15  ;;  %v151_v51 = vrot.slane %v12684_v39, %v11373_v19 }
 0x242   :  { %7101 = vmatmul.mubr.bf16.vlgmr.msra.gmra.mrb[0].mxu0 %v580_v52  ;;  %7757 = vmatmul.mubr.bf16.vlgmr.msra.gmra.mrb[0].mxu1 %v580_v52  ;;  %v13105_v52 = vld [vmem:[%s14441_s0 + $0x50] sm:$0xff] }
 0x243   :  { %7110 = vmatpush1.bf16.msra.mxu0 %v10287_v59  ;;  %7766 = vmatpush1.bf16.msra.mxu1 %v10290_v60  ;;  %v10364_v59 = vld [vmem:[%s14440_s3 + $0x138c] ss:$16 sps:$4 sm:$0xff]   ;;  %v57_v15 = vunpack.c.h.bf16 %v13105_v52  ;;  %v163_v60 = vrot.slane %v12684_v39, %v11447_v56  ;;  %v10367_v39 = vld [vmem:[%s14440_s3 + $0x13a4] ss:$16 sps:$4 sm:$0xff]  }
 0x244   :  { %7111 = vmatprep.subr.bf16.mxu0 %v10295_v61  ;;  %7767 = vmatprep.subr.bf16.mxu1 %v10298_v62  ;;  %v10359_v61 = vld [vmem:[%s14440_s3 + $0x1380] ss:$16 sps:$4 sm:$0xff]   ;;  %v10362_v62 = vld [vmem:[%s14440_s3 + $0x1388] ss:$16 sps:$4 sm:$0xff]  }
 0x245   :  { %7141 = vmatprep.mubr.bf16.mxu0 %v583_v63  ;;  %7797 = vmatprep.mubr.bf16.mxu1 %v583_v63  ;;  %v254_v63 = vmul.f32 %v151_v51, %v54_v46  ;;  %v10418_v46 = vld [vmem:[%s14440_s3 + $0x14ac] ss:$16 sps:$4 sm:$0xff]   ;;  %v10413_v51 = vld [vmem:[%s14440_s3 + $0x14a0] ss:$16 sps:$4 sm:$0xff]  }
 0x247   :  { %7112 = vmatpush1.bf16.msra.mxu0 %v10293_v1  ;;  %7768 = vmatpush1.bf16.msra.mxu1 %v10296_v2  ;;  %v351_v1 = vrot.slane %v12708_v57, %v11373_v19  ;;  %v10370_v2 = vld [vmem:[%s14440_s3 + $0x13ac] ss:$16 sps:$4 sm:$0xff]  }
 0x248   :  { %7113 = vmatprep.subr.bf16.mxu0 %v10301_v3  ;;  %7769 = vmatprep.subr.bf16.mxu1 %v10304_v6  ;;  %v257_v3 = vmul.f32 %v163_v60, %v57_v15  ;;  %v363_v6 = vrot.slane %v12708_v57, %v11447_v56  ;;  %v10376_v57 = vld [vmem:[%s14440_s3 + $0x13cc] ss:$16 sps:$4 sm:$0xff]   ;;  %v10419_v60 = vld [vmem:[%s14440_s3 + $0x14c0] ss:$16 sps:$4 sm:$0xff]  }
 0x249   :  { %v10424_v15 = vld [vmem:[%s14440_s3 + $0x14cc] ss:$16 sps:$4 sm:$0xff]  }
 0x24b   :  { %7114 = vmatpush1.bf16.msra.mxu0 %v10299_v7  ;;  %7770 = vmatpush1.bf16.msra.mxu1 %v10302_v27  ;;  %v10365_v7 = vld [vmem:[%s14440_s3 + $0x13a0] ss:$16 sps:$4 sm:$0xff]   ;;  %v10368_v27 = vld [vmem:[%s14440_s3 + $0x13a8] ss:$16 sps:$4 sm:$0xff]  }
 0x24c   :  { %7115 = vmatprep.subr.bf16.mxu0 %v10307_v8  ;;  %7771 = vmatprep.subr.bf16.mxu1 %v10310_v54  ;;  %v454_v8 = vadd.f32 %v351_v1, %v254_v63  ;;  %v10373_v54 = vld [vmem:[%s14440_s3 + $0x13c4] ss:$16 sps:$4 sm:$0xff]   ;;  %v10430_v63 = vld [vmem:[%s14440_s3 + $0x14ec] ss:$16 sps:$4 sm:$0xff]   ;;  %v10425_v1 = vld [vmem:[%s14440_s3 + $0x14e0] ss:$16 sps:$4 sm:$0xff]  }
 0x24e   :  { %vm486_vm3 = vcmp.gt.f32.partialorder %v454_v8, 0.0 }
 0x24f   :  { %7116 = vmatpush1.bf16.msra.mxu0 %v10305_v10  ;;  %7772 = vmatpush1.bf16.msra.mxu1 %v10308_v11  ;;  %v457_v10 = vadd.f32 %v363_v6, %v257_v3  ;;  %v10371_v11 = vld [vmem:[%s14440_s3 + $0x13c0] ss:$16 sps:$4 sm:$0xff]   ;;  %v10436_v3 = vld [vmem:[%s14440_s3 + $0x150c] ss:$16 sps:$4 sm:$0xff]  }
 0x250   :  { %7117 = vmatprep.subr.bf16.mxu0 %v10313_v53  ;;  %7773 = vmatprep.subr.bf16.mxu1 %v10316_v30  ;;  %v10374_v53 = vld [vmem:[%s14440_s3 + $0x13c8] ss:$16 sps:$4 sm:$0xff]   ;;  %v518_v30 = vmul.f32 0.2, %v454_v8  ;;  %v10431_v6 = vld [vmem:[%s14440_s3 + $0x1500] ss:$16 sps:$4 sm:$0xff]  }
 0x251   :  { %vm489_vm4 = vcmp.gt.f32.partialorder %v457_v10, 0.0 }
 0x253   :  { %7118 = vmatpush1.bf16.msra.mxu0 %v10311_v12  ;;  %7774 = vmatpush1.bf16.msra.mxu1 %v10314_v13  ;;  %v10379_v12 = vld [vmem:[%s14440_s3 + $0x13e4] ss:$16 sps:$4 sm:$0xff]   ;;  %v10382_v13 = vld [vmem:[%s14440_s3 + $0x13ec] ss:$16 sps:$4 sm:$0xff]  }
 0x254   :  { %7119 = vmatprep.subr.bf16.mxu0 %v10319_v14  ;;  %7775 = vmatprep.subr.bf16.mxu1 %v10322_v32  ;;  %v521_v14 = vmul.f32 0.2, %v457_v10  ;;  %v10377_v32 = vld [vmem:[%s14440_s3 + $0x13e0] ss:$16 sps:$4 sm:$0xff]  }
 0x257   :  { %7120 = vmatpush1.bf16.msra.mxu0 %v10317_v16  ;;  %7776 = vmatpush1.bf16.msra.mxu1 %v10320_v36  ;;  %v10380_v16 = vld [vmem:[%s14440_s3 + $0x13e8] ss:$16 sps:$4 sm:$0xff]   ;;  %v550_v36 = vsel %vm486_vm3, %v454_v8, %v518_v30  ;;  %v10442_v8 = vld [vmem:[%s14440_s3 + $0x152c] ss:$16 sps:$4 sm:$0xff]  }
 0x258   :  { %7121 = vmatprep.subr.bf16.mxu0 %v10325_v17  ;;  %7777 = vmatprep.subr.bf16.mxu1 %v10328_v18  ;;  %v10385_v17 = vld [vmem:[%s14440_s3 + $0x1404] ss:$16 sps:$4 sm:$0xff]   ;;  %v10388_v18 = vld [vmem:[%s14440_s3 + $0x140c] ss:$16 sps:$4 sm:$0xff]   ;;  %v10446_v30 = vld [vmem:[%s14440_s3 + $0x1548] ss:$16 sps:$4 sm:$0xff]  }
 0x25b   :  { %7122 = vmatpush1.bf16.msra.mxu0 %v10323_v38  ;;  %7778 = vmatpush1.bf16.msra.mxu1 %v10326_v20  ;;  %v582_v38 = vpack.c.bf16 %v550_v36, %v550_v36  ;;  %v553_v20 = vsel %vm489_vm4, %v457_v10, %v521_v14  ;;  %v10445_v10 = vld [vmem:[%s14440_s3 + $0x1544] ss:$16 sps:$4 sm:$0xff]   ;;  %v10449_v14 = vld [vmem:[%s14440_s3 + $0x1560] ss:$16 sps:$4 sm:$0xff]  }
 0x25c   :  { %7123 = vmatprep.subr.bf16.mxu0 %v10331_v21  ;;  %7779 = vmatprep.subr.bf16.mxu1 %v10334_v23  ;;  %v10383_v21 = vld [vmem:[%s14440_s3 + $0x1400] ss:$16 sps:$4 sm:$0xff]   ;;  %v10386_v23 = vld [vmem:[%s14440_s3 + $0x1408] ss:$16 sps:$4 sm:$0xff]  }
 0x25d   :  { %v13310_v36 = vld [vmem:[%s14442_s1 + $0x10] sm:$0xff] }
 0x25f   :  { %7124 = vmatpush1.bf16.msra.mxu0 %v10329_v41  ;;  %7780 = vmatpush1.bf16.msra.mxu1 %v10332_v24  ;;  %v10391_v41 = vld [vmem:[%s14440_s3 + $0x1424] ss:$16 sps:$4 sm:$0xff]   ;;  %v10394_v24 = vld [vmem:[%s14440_s3 + $0x142c] ss:$16 sps:$4 sm:$0xff]  }
 0x260   :  { %7125 = vmatprep.subr.bf16.mxu0 %v10337_v25  ;;  %7781 = vmatprep.subr.bf16.mxu1 %v10340_v26  ;;  %v585_v25 = vpack.c.bf16 %v553_v20, %v553_v20  ;;  %v10389_v26 = vld [vmem:[%s14440_s3 + $0x1420] ss:$16 sps:$4 sm:$0xff]  }
 0x263   :  { %7126 = vmatpush1.bf16.msra.mxu0 %v10335_v28  ;;  %7782 = vmatpush1.bf16.msra.mxu1 %v10338_v29  ;;  %v10392_v28 = vld [vmem:[%s14440_s3 + $0x1428] ss:$16 sps:$4 sm:$0xff]   ;;  %v10397_v29 = vld [vmem:[%s14440_s3 + $0x1444] ss:$16 sps:$4 sm:$0xff]  }
 0x264   :  { %7127 = vmatprep.subr.bf16.mxu0 %v10343_v31  ;;  %7783 = vmatprep.subr.bf16.mxu1 %v10346_v0  ;;  %v10400_v31 = vld [vmem:[%s14440_s3 + $0x144c] ss:$16 sps:$4 sm:$0xff]   ;;  %v10395_v0 = vld [vmem:[%s14440_s3 + $0x1440] ss:$16 sps:$4 sm:$0xff]  }
 0x267   :  { %7128 = vmatpush1.bf16.msra.mxu0 %v10341_v33  ;;  %7784 = vmatpush1.bf16.msra.mxu1 %v10344_v4  ;;  %v10398_v33 = vld [vmem:[%s14440_s3 + $0x1448] ss:$16 sps:$4 sm:$0xff]   ;;  %v10403_v4 = vld [vmem:[%s14440_s3 + $0x1464] ss:$16 sps:$4 sm:$0xff]  }
 0x268   :  { %7129 = vmatprep.subr.bf16.mxu0 %v10349_v34  ;;  %7785 = vmatprep.subr.bf16.mxu1 %v10352_v35  ;;  %v10406_v34 = vld [vmem:[%s14440_s3 + $0x146c] ss:$16 sps:$4 sm:$0xff]   ;;  %v10401_v35 = vld [vmem:[%s14440_s3 + $0x1460] ss:$16 sps:$4 sm:$0xff]  }
 0x26b   :  { %7130 = vmatpush1.bf16.msra.mxu0 %v10347_v9  ;;  %7786 = vmatpush1.bf16.msra.mxu1 %v10350_v40  ;;  %v10404_v9 = vld [vmem:[%s14440_s3 + $0x1468] ss:$16 sps:$4 sm:$0xff]   ;;  %v10409_v40 = vld [vmem:[%s14440_s3 + $0x1484] ss:$16 sps:$4 sm:$0xff]  }
 0x26c   :  { %7131 = vmatprep.subr.bf16.mxu0 %v10355_v5  ;;  %7787 = vmatprep.subr.bf16.mxu1 %v10358_v43  ;;  %v10412_v5 = vld [vmem:[%s14440_s3 + $0x148c] ss:$16 sps:$4 sm:$0xff]   ;;  %v10407_v43 = vld [vmem:[%s14440_s3 + $0x1480] ss:$16 sps:$4 sm:$0xff]  }
 0x26f   :  { %7132 = vmatpush1.bf16.msra.mxu0 %v10353_v44  ;;  %7788 = vmatpush1.bf16.msra.mxu1 %v10356_v45  ;;  %v10410_v44 = vld [vmem:[%s14440_s3 + $0x1488] ss:$16 sps:$4 sm:$0xff]   ;;  %v10415_v45 = vld [vmem:[%s14440_s3 + $0x14a4] ss:$16 sps:$4 sm:$0xff]  }
 0x270   :  { %7133 = vmatprep.subr.bf16.mxu0 %v10361_v58  ;;  %7789 = vmatprep.subr.bf16.mxu1 %v10364_v59  ;;  %v10416_v58 = vld [vmem:[%s14440_s3 + $0x14a8] ss:$16 sps:$4 sm:$0xff]   ;;  %v10421_v59 = vld [vmem:[%s14440_s3 + $0x14c4] ss:$16 sps:$4 sm:$0xff]  }
 0x273   :  { %7134 = vmatpush1.bf16.msra.mxu0 %v10359_v61  ;;  %7790 = vmatpush1.bf16.msra.mxu1 %v10362_v62  ;;  %v10422_v61 = vld [vmem:[%s14440_s3 + $0x14c8] ss:$16 sps:$4 sm:$0xff]   ;;  %v10427_v62 = vld [vmem:[%s14440_s3 + $0x14e4] ss:$16 sps:$4 sm:$0xff]  }
 0x274   :  { %7135 = vmatprep.subr.bf16.mxu0 %v10367_v39  ;;  %7791 = vmatprep.subr.bf16.mxu1 %v10370_v2  ;;  %v10428_v39 = vld [vmem:[%s14440_s3 + $0x14e8] ss:$16 sps:$4 sm:$0xff]   ;;  %v10433_v2 = vld [vmem:[%s14440_s3 + $0x1504] ss:$16 sps:$4 sm:$0xff]  }
 0x277   :  { %7136 = vmatpush1.bf16.msra.mxu0 %v10365_v7  ;;  %7792 = vmatpush1.bf16.msra.mxu1 %v10368_v27  ;;  %v10434_v7 = vld [vmem:[%s14440_s3 + $0x1508] ss:$16 sps:$4 sm:$0xff]   ;;  %v10439_v27 = vld [vmem:[%s14440_s3 + $0x1524] ss:$16 sps:$4 sm:$0xff]  }
 0x278   :  { %7137 = vmatprep.subr.bf16.mxu0 %v10373_v54  ;;  %7793 = vmatprep.subr.bf16.mxu1 %v10376_v57  ;;  %v10437_v54 = vld [vmem:[%s14440_s3 + $0x1520] ss:$16 sps:$4 sm:$0xff]   ;;  %v10440_v57 = vld [vmem:[%s14440_s3 + $0x1528] ss:$16 sps:$4 sm:$0xff]  }
 0x27b   :  { %7138 = vmatpush1.bf16.msra.mxu0 %v10371_v11  ;;  %7794 = vmatpush1.bf16.msra.mxu1 %v10374_v53  ;;  %v10448_v11 = vld [vmem:[%s14440_s3 + $0x154c] ss:$16 sps:$4 sm:$0xff]   ;;  %v10443_v53 = vld [vmem:[%s14440_s3 + $0x1540] ss:$16 sps:$4 sm:$0xff]  }
 0x27c   :  { %7139 = vmatprep.subr.bf16.mxu0 %v10379_v12  ;;  %7795 = vmatprep.subr.bf16.mxu1 %v10382_v13  ;;  %v10451_v12 = vld [vmem:[%s14440_s3 + $0x1564] ss:$16 sps:$4 sm:$0xff]   ;;  %v10454_v13 = vld [vmem:[%s14440_s3 + $0x156c] ss:$16 sps:$4 sm:$0xff]  }
 0x27f   :  { %7140 = vmatpush1.bf16.msra.mxu0 %v10377_v32  ;;  %7796 = vmatpush1.bf16.msra.mxu1 %v10380_v16  ;;  %v10452_v32 = vld [vmem:[%s14440_s3 + $0x1568] ss:$16 sps:$4 sm:$0xff]   ;;  %v56_v16 = vunpack.c.l.bf16 %v13105_v52  ;;  %v10460_v52 = vld [vmem:[%s14440_s3 + $0x158c] ss:$16 sps:$4 sm:$0xff]  }
 0x280   :  { %7150 = vmatprep.subr.bf16.mxu0 %v10385_v17  ;;  %7806 = vmatprep.subr.bf16.mxu1 %v10388_v18  ;;  %v159_v17 = vrot.slane %v13310_v36, %v11586_v50  ;;  %v13317_v18 = vld [vmem:[%s14441_s0 + $0x58] sm:$0xff] }
 0x281   :  { %v59_v20 = vunpack.c.h.bf16 %v13317_v18 }
 0x282   :  { %7142 = vmatmul.mubr.bf16.vlgmr.msra.gmra.mrb[0].mxu0 %v582_v38  ;;  %7798 = vmatmul.mubr.bf16.vlgmr.msra.gmra.mrb[0].mxu1 %v582_v38  ;;  %v10457_v38 = vld [vmem:[%s14440_s3 + $0x1584] ss:$16 sps:$4 sm:$0xff]  }
 0x283   :  { %7151 = vmatpush1.bf16.msra.mxu0 %v10383_v21  ;;  %7807 = vmatpush1.bf16.msra.mxu1 %v10386_v23  ;;  %v171_v21 = vrot.slane %v13310_v36, %v11595_v55  ;;  %v10455_v23 = vld [vmem:[%s14440_s3 + $0x1580] ss:$16 sps:$4 sm:$0xff]  }
 0x284   :  { %7152 = vmatprep.subr.bf16.mxu0 %v10391_v41  ;;  %7808 = vmatprep.subr.bf16.mxu1 %v10394_v24  ;;  %v10458_v41 = vld [vmem:[%s14440_s3 + $0x1588] ss:$16 sps:$4 sm:$0xff]   ;;  %v256_v24 = vmul.f32 %v159_v17, %v56_v16  ;;  %v10511_v17 = vld [vmem:[%s14440_s3 + $0x16a4] ss:$16 sps:$4 sm:$0xff]  }
 0x285   :  { %7182 = vmatprep.mubr.bf16.mxu0 %v585_v25  ;;  %7838 = vmatprep.mubr.bf16.mxu1 %v585_v25  ;;  %v13337_v25 = vld [vmem:[%s14443_s2 + $0x10] sm:$0xff]  ;;  %v10506_v16 = vld [vmem:[%s14440_s3 + $0x1688] ss:$16 sps:$4 sm:$0xff]  }
 0x287   :  { %7153 = vmatpush1.bf16.msra.mxu0 %v10389_v26  ;;  %7809 = vmatpush1.bf16.msra.mxu1 %v10392_v28  ;;  %v359_v26 = vrot.slane %v13337_v25, %v11586_v50  ;;  %v10463_v28 = vld [vmem:[%s14440_s3 + $0x15a4] ss:$16 sps:$4 sm:$0xff]  }
 0x288   :  { %7154 = vmatprep.subr.bf16.mxu0 %v10397_v29  ;;  %7810 = vmatprep.subr.bf16.mxu1 %v10400_v31  ;;  %v10466_v29 = vld [vmem:[%s14440_s3 + $0x15ac] ss:$16 sps:$4 sm:$0xff]   ;;  %v259_v31 = vmul.f32 %v171_v21, %v59_v20  ;;  %v10512_v20 = vld [vmem:[%s14440_s3 + $0x16a8] ss:$16 sps:$4 sm:$0xff]   ;;  %v10517_v21 = vld [vmem:[%s14440_s3 + $0x16c4] ss:$16 sps:$4 sm:$0xff]  }
 0x28b   :  { %7155 = vmatpush1.bf16.msra.mxu0 %v10395_v0  ;;  %7811 = vmatpush1.bf16.msra.mxu1 %v10398_v33  ;;  %v371_v0 = vrot.slane %v13337_v25, %v11595_v55  ;;  %v10461_v33 = vld [vmem:[%s14440_s3 + $0x15a0] ss:$16 sps:$4 sm:$0xff]  }
 0x28c   :  { %7156 = vmatprep.subr.bf16.mxu0 %v10403_v4  ;;  %7812 = vmatprep.subr.bf16.mxu1 %v10406_v34  ;;  %v10464_v4 = vld [vmem:[%s14440_s3 + $0x15a8] ss:$16 sps:$4 sm:$0xff]   ;;  %v456_v34 = vadd.f32 %v359_v26, %v256_v24  ;;  %v10523_v26 = vld [vmem:[%s14440_s3 + $0x16e4] ss:$16 sps:$4 sm:$0xff]  }
 0x28d   :  { %v10518_v24 = vld [vmem:[%s14440_s3 + $0x16c8] ss:$16 sps:$4 sm:$0xff]  }
 0x28e   :  { %vm488_vm5 = vcmp.gt.f32.partialorder %v456_v34, 0.0 }
 0x28f   :  { %7157 = vmatpush1.bf16.msra.mxu0 %v10401_v35  ;;  %7813 = vmatpush1.bf16.msra.mxu1 %v10404_v9  ;;  %v10469_v35 = vld [vmem:[%s14440_s3 + $0x15c4] ss:$16 sps:$4 sm:$0xff]   ;;  %v10472_v9 = vld [vmem:[%s14440_s3 + $0x15cc] ss:$16 sps:$4 sm:$0xff]  }
 0x290   :  { %7158 = vmatprep.subr.bf16.mxu0 %v10409_v40  ;;  %7814 = vmatprep.subr.bf16.mxu1 %v10412_v5  ;;  %v459_v40 = vadd.f32 %v371_v0, %v259_v31  ;;  %v10467_v5 = vld [vmem:[%s14440_s3 + $0x15c0] ss:$16 sps:$4 sm:$0xff]   ;;  %v10524_v31 = vld [vmem:[%s14440_s3 + $0x16e8] ss:$16 sps:$4 sm:$0xff]   ;;  %v10529_v0 = vld [vmem:[%s14440_s3 + $0x1704] ss:$16 sps:$4 sm:$0xff]  }
 0x292   :  { %vm491_vm6 = vcmp.gt.f32.partialorder %v459_v40, 0.0 }
 0x293   :  { %7159 = vmatpush1.bf16.msra.mxu0 %v10407_v43  ;;  %7815 = vmatpush1.bf16.msra.mxu1 %v10410_v44  ;;  %v10470_v43 = vld [vmem:[%s14440_s3 + $0x15c8] ss:$16 sps:$4 sm:$0xff]   ;;  %v520_v44 = vmul.f32 0.2, %v456_v34 }
 0x294   :  { %7160 = vmatprep.subr.bf16.mxu0 %v10415_v45  ;;  %7816 = vmatprep.subr.bf16.mxu1 %v10418_v46  ;;  %v10475_v45 = vld [vmem:[%s14440_s3 + $0x15e4] ss:$16 sps:$4 sm:$0xff]   ;;  %v10478_v46 = vld [vmem:[%s14440_s3 + $0x15ec] ss:$16 sps:$4 sm:$0xff]  }
 0x297   :  { %7161 = vmatpush1.bf16.msra.mxu0 %v10413_v51  ;;  %7817 = vmatpush1.bf16.msra.mxu1 %v10416_v58  ;;  %v523_v51 = vmul.f32 0.2, %v459_v40  ;;  %v10473_v58 = vld [vmem:[%s14440_s3 + $0x15e0] ss:$16 sps:$4 sm:$0xff]  }
 0x298   :  { %7162 = vmatprep.subr.bf16.mxu0 %v10421_v59  ;;  %7818 = vmatprep.subr.bf16.mxu1 %v10424_v15  ;;  %v10476_v59 = vld [vmem:[%s14440_s3 + $0x15e8] ss:$16 sps:$4 sm:$0xff]   ;;  %v552_v15 = vsel %vm488_vm5, %v456_v34, %v520_v44  ;;  %v10544_v44 = vld [vmem:[%s14440_s3 + $0x174c] ss:$16 sps:$4 sm:$0xff]  }
 0x299   :  { %v10530_v34 = vld [vmem:[%s14440_s3 + $0x1708] ss:$16 sps:$4 sm:$0xff]  }
 0x29b   :  { %7163 = vmatpush1.bf16.msra.mxu0 %v10419_v60  ;;  %7819 = vmatpush1.bf16.msra.mxu1 %v10422_v61  ;;  %v10481_v60 = vld [vmem:[%s14440_s3 + $0x1604] ss:$16 sps:$4 sm:$0xff]   ;;  %v10484_v61 = vld [vmem:[%s14440_s3 + $0x160c] ss:$16 sps:$4 sm:$0xff]  }
 0x29c   :  { %7164 = vmatprep.subr.bf16.mxu0 %v10427_v62  ;;  %7820 = vmatprep.subr.bf16.mxu1 %v10430_v63  ;;  %v584_v62 = vpack.c.bf16 %v552_v15, %v552_v15  ;;  %v555_v63 = vsel %vm491_vm6, %v459_v40, %v523_v51  ;;  %v10533_v40 = vld [vmem:[%s14440_s3 + $0x1720] ss:$16 sps:$4 sm:$0xff]   ;;  %v10547_v51 = vld [vmem:[%s14440_s3 + $0x1764] ss:$16 sps:$4 sm:$0xff]   ;;  %v10548_v15 = vld [vmem:[%s14440_s3 + $0x1768] ss:$16 sps:$4 sm:$0xff]  }
 0x29f   :  { %7165 = vmatpush1.bf16.msra.mxu0 %v10425_v1  ;;  %7821 = vmatpush1.bf16.msra.mxu1 %v10428_v39  ;;  %v10479_v1 = vld [vmem:[%s14440_s3 + $0x1600] ss:$16 sps:$4 sm:$0xff]   ;;  %v10482_v39 = vld [vmem:[%s14440_s3 + $0x1608] ss:$16 sps:$4 sm:$0xff]  }
 0x2a0   :  { %7166 = vmatprep.subr.bf16.mxu0 %v10433_v2  ;;  %7822 = vmatprep.subr.bf16.mxu1 %v10436_v3  ;;  %v10487_v2 = vld [vmem:[%s14440_s3 + $0x1624] ss:$16 sps:$4 sm:$0xff]   ;;  %v10490_v3 = vld [vmem:[%s14440_s3 + $0x162c] ss:$16 sps:$4 sm:$0xff]  }
 0x2a3   :  { %7167 = vmatpush1.bf16.msra.mxu0 %v10431_v6  ;;  %7823 = vmatpush1.bf16.msra.mxu1 %v10434_v7  ;;  %v587_v6 = vpack.c.bf16 %v555_v63, %v555_v63  ;;  %v10485_v7 = vld [vmem:[%s14440_s3 + $0x1620] ss:$16 sps:$4 sm:$0xff]   ;;  %v13534_v63 = vld [vmem:[%s14442_s1 + $0x18] sm:$0xff] }
 0x2a4   :  { %7168 = vmatprep.subr.bf16.mxu0 %v10439_v27  ;;  %7824 = vmatprep.subr.bf16.mxu1 %v10442_v8  ;;  %v10488_v27 = vld [vmem:[%s14440_s3 + $0x1628] ss:$16 sps:$4 sm:$0xff]   ;;  %v10493_v8 = vld [vmem:[%s14440_s3 + $0x1644] ss:$16 sps:$4 sm:$0xff]  }
 0x2a7   :  { %7169 = vmatpush1.bf16.msra.mxu0 %v10437_v54  ;;  %7825 = vmatpush1.bf16.msra.mxu1 %v10440_v57  ;;  %v10496_v54 = vld [vmem:[%s14440_s3 + $0x164c] ss:$16 sps:$4 sm:$0xff]   ;;  %v10491_v57 = vld [vmem:[%s14440_s3 + $0x1640] ss:$16 sps:$4 sm:$0xff]  }
 0x2a8   :  { %7170 = vmatprep.subr.bf16.mxu0 %v10445_v10  ;;  %7826 = vmatprep.subr.bf16.mxu1 %v10448_v11  ;;  %v10494_v10 = vld [vmem:[%s14440_s3 + $0x1648] ss:$16 sps:$4 sm:$0xff]   ;;  %v10499_v11 = vld [vmem:[%s14440_s3 + $0x1664] ss:$16 sps:$4 sm:$0xff]  }
 0x2ab   :  { %7171 = vmatpush1.bf16.msra.mxu0 %v10443_v53  ;;  %7827 = vmatpush1.bf16.msra.mxu1 %v10446_v30  ;;  %v10502_v53 = vld [vmem:[%s14440_s3 + $0x166c] ss:$16 sps:$4 sm:$0xff]   ;;  %v10497_v30 = vld [vmem:[%s14440_s3 + $0x1660] ss:$16 sps:$4 sm:$0xff]  }
 0x2ac   :  { %7172 = vmatprep.subr.bf16.mxu0 %v10451_v12  ;;  %7828 = vmatprep.subr.bf16.mxu1 %v10454_v13  ;;  %v10500_v12 = vld [vmem:[%s14440_s3 + $0x1668] ss:$16 sps:$4 sm:$0xff]   ;;  %v10505_v13 = vld [vmem:[%s14440_s3 + $0x1684] ss:$16 sps:$4 sm:$0xff]  }
 0x2af   :  { %7173 = vmatpush1.bf16.msra.mxu0 %v10449_v14  ;;  %7829 = vmatpush1.bf16.msra.mxu1 %v10452_v32  ;;  %v10508_v14 = vld [vmem:[%s14440_s3 + $0x168c] ss:$16 sps:$4 sm:$0xff]   ;;  %v10503_v32 = vld [vmem:[%s14440_s3 + $0x1680] ss:$16 sps:$4 sm:$0xff]  }
 0x2b0   :  { %7174 = vmatprep.subr.bf16.mxu0 %v10457_v38  ;;  %7830 = vmatprep.subr.bf16.mxu1 %v10460_v52  ;;  %v10514_v38 = vld [vmem:[%s14440_s3 + $0x16ac] ss:$16 sps:$4 sm:$0xff]   ;;  %v10509_v52 = vld [vmem:[%s14440_s3 + $0x16a0] ss:$16 sps:$4 sm:$0xff]  }
 0x2b3   :  { %7175 = vmatpush1.bf16.msra.mxu0 %v10455_v23  ;;  %7831 = vmatpush1.bf16.msra.mxu1 %v10458_v41  ;;  %v10520_v23 = vld [vmem:[%s14440_s3 + $0x16cc] ss:$16 sps:$4 sm:$0xff]   ;;  %v10515_v41 = vld [vmem:[%s14440_s3 + $0x16c0] ss:$16 sps:$4 sm:$0xff]  }
 0x2b4   :  { %7176 = vmatprep.subr.bf16.mxu0 %v10463_v28  ;;  %7832 = vmatprep.subr.bf16.mxu1 %v10466_v29  ;;  %v10526_v28 = vld [vmem:[%s14440_s3 + $0x16ec] ss:$16 sps:$4 sm:$0xff]   ;;  %v10521_v29 = vld [vmem:[%s14440_s3 + $0x16e0] ss:$16 sps:$4 sm:$0xff]  }
 0x2b7   :  { %7177 = vmatpush1.bf16.msra.mxu0 %v10461_v33  ;;  %7833 = vmatpush1.bf16.msra.mxu1 %v10464_v4  ;;  %v10532_v33 = vld [vmem:[%s14440_s3 + $0x170c] ss:$16 sps:$4 sm:$0xff]   ;;  %v10527_v4 = vld [vmem:[%s14440_s3 + $0x1700] ss:$16 sps:$4 sm:$0xff]  }
 0x2b8   :  { %7178 = vmatprep.subr.bf16.mxu0 %v10469_v35  ;;  %7834 = vmatprep.subr.bf16.mxu1 %v10472_v9  ;;  %v10535_v35 = vld [vmem:[%s14440_s3 + $0x1724] ss:$16 sps:$4 sm:$0xff]   ;;  %v10538_v9 = vld [vmem:[%s14440_s3 + $0x172c] ss:$16 sps:$4 sm:$0xff]  }
 0x2bb   :  { %7179 = vmatpush1.bf16.msra.mxu0 %v10467_v5  ;;  %7835 = vmatpush1.bf16.msra.mxu1 %v10470_v43  ;;  %v10536_v5 = vld [vmem:[%s14440_s3 + $0x1728] ss:$16 sps:$4 sm:$0xff]   ;;  %v10541_v43 = vld [vmem:[%s14440_s3 + $0x1744] ss:$16 sps:$4 sm:$0xff]  }
 0x2bc   :  { %7180 = vmatprep.subr.bf16.mxu0 %v10475_v45  ;;  %7836 = vmatprep.subr.bf16.mxu1 %v10478_v46  ;;  %v10539_v45 = vld [vmem:[%s14440_s3 + $0x1740] ss:$16 sps:$4 sm:$0xff]   ;;  %v10542_v46 = vld [vmem:[%s14440_s3 + $0x1748] ss:$16 sps:$4 sm:$0xff]  }
 0x2bf   :  { %7181 = vmatpush1.bf16.msra.mxu0 %v10473_v58  ;;  %7837 = vmatpush1.bf16.msra.mxu1 %v10476_v59  ;;  %v10550_v58 = vld [vmem:[%s14440_s3 + $0x176c] ss:$16 sps:$4 sm:$0xff]   ;;  %v10545_v59 = vld [vmem:[%s14440_s3 + $0x1760] ss:$16 sps:$4 sm:$0xff]  }
 0x2c0   :  { %7191 = vmatprep.subr.bf16.mxu0 %v10481_v60  ;;  %7847 = vmatprep.subr.bf16.mxu1 %v10484_v61  ;;  %v58_v60 = vunpack.c.l.bf16 %v13317_v18  ;;  %v167_v61 = vrot.slane %v13310_v36, %v11812_v22  ;;  %v10556_v36 = vld [vmem:[%s14440_s3 + $0x178c] ss:$16 sps:$4 sm:$0xff]  }
 0x2c2   :  { %7183 = vmatmul.mubr.bf16.vlgmr.msra.gmra.mrb[0].mxu0 %v584_v62  ;;  %7839 = vmatmul.mubr.bf16.vlgmr.msra.gmra.mrb[0].mxu1 %v584_v62  ;;  %v13529_v62 = vld [vmem:[%s14441_s0 + $0x60] sm:$0xff] }
 0x2c3   :  { %7192 = vmatpush1.bf16.msra.mxu0 %v10479_v1  ;;  %7848 = vmatpush1.bf16.msra.mxu1 %v10482_v39  ;;  %v10553_v1 = vld [vmem:[%s14440_s3 + $0x1784] ss:$16 sps:$4 sm:$0xff]   ;;  %v61_v18 = vunpack.c.h.bf16 %v13529_v62  ;;  %v179_v39 = vrot.slane %v13534_v63, %v11144_v47 }
 0x2c4   :  { %7193 = vmatprep.subr.bf16.mxu0 %v10487_v2  ;;  %7849 = vmatprep.subr.bf16.mxu1 %v10490_v3  ;;  %v10551_v2 = vld [vmem:[%s14440_s3 + $0x1780] ss:$16 sps:$4 sm:$0xff]   ;;  %v10554_v3 = vld [vmem:[%s14440_s3 + $0x1788] ss:$16 sps:$4 sm:$0xff]  }
 0x2c5   :  { %7223 = vmatprep.mubr.bf16.mxu0 %v587_v6  ;;  %7879 = vmatprep.mubr.bf16.mxu1 %v587_v6  ;;  %v258_v6 = vmul.f32 %v167_v61, %v58_v60  ;;  %v10607_v60 = vld [vmem:[%s14440_s3 + $0x18a4] ss:$16 sps:$4 sm:$0xff]   ;;  %v10610_v61 = vld [vmem:[%s14440_s3 + $0x18ac] ss:$16 sps:$4 sm:$0xff]  }
 0x2c7   :  { %7194 = vmatpush1.bf16.msra.mxu0 %v10485_v7  ;;  %7850 = vmatpush1.bf16.msra.mxu1 %v10488_v27  ;;  %v367_v7 = vrot.slane %v13337_v25, %v11812_v22  ;;  %v13556_v27 = vld [vmem:[%s14443_s2 + $0x18] sm:$0xff]  ;;  %v10557_v25 = vld [vmem:[%s14440_s3 + $0x17a0] ss:$16 sps:$4 sm:$0xff]  }
 0x2c8   :  { %7195 = vmatprep.subr.bf16.mxu0 %v10493_v8  ;;  %7851 = vmatprep.subr.bf16.mxu1 %v10496_v54  ;;  %v10559_v8 = vld [vmem:[%s14440_s3 + $0x17a4] ss:$16 sps:$4 sm:$0xff]   ;;  %v10562_v54 = vld [vmem:[%s14440_s3 + $0x17ac] ss:$16 sps:$4 sm:$0xff]  }
 0x2cb   :  { %7196 = vmatpush1.bf16.msra.mxu0 %v10491_v57  ;;  %7852 = vmatpush1.bf16.msra.mxu1 %v10494_v10  ;;  %v261_v57 = vmul.f32 %v179_v39, %v61_v18  ;;  %v379_v10 = vrot.slane %v13556_v27, %v11144_v47  ;;  %v10568_v47 = vld [vmem:[%s14440_s3 + $0x17cc] ss:$16 sps:$4 sm:$0xff]   ;;  %v10613_v18 = vld [vmem:[%s14440_s3 + $0x18c4] ss:$16 sps:$4 sm:$0xff]  }
 0x2cc   :  { %7197 = vmatprep.subr.bf16.mxu0 %v10499_v11  ;;  %7853 = vmatprep.subr.bf16.mxu1 %v10502_v53  ;;  %v10560_v11 = vld [vmem:[%s14440_s3 + $0x17a8] ss:$16 sps:$4 sm:$0xff]   ;;  %v458_v53 = vadd.f32 %v367_v7, %v258_v6  ;;  %v10616_v39 = vld [vmem:[%s14440_s3 + $0x18cc] ss:$16 sps:$4 sm:$0xff]   ;;  %v10619_v6 = vld [vmem:[%s14440_s3 + $0x18e4] ss:$16 sps:$4 sm:$0xff]  }
 0x2cd   :  { %v10622_v7 = vld [vmem:[%s14440_s3 + $0x18ec] ss:$16 sps:$4 sm:$0xff]  }
 0x2ce   :  { %vm490_vm7 = vcmp.gt.f32.partialorder %v458_v53, 0.0 }
 0x2cf   :  { %7198 = vmatpush1.bf16.msra.mxu0 %v10497_v30  ;;  %7854 = vmatpush1.bf16.msra.mxu1 %v10500_v12  ;;  %v10565_v30 = vld [vmem:[%s14440_s3 + $0x17c4] ss:$16 sps:$4 sm:$0xff]   ;;  %v461_v12 = vadd.f32 %v379_v10, %v261_v57  ;;  %v10628_v10 = vld [vmem:[%s14440_s3 + $0x190c] ss:$16 sps:$4 sm:$0xff]  }
 0x2d0   :  { %7199 = vmatprep.subr.bf16.mxu0 %v10505_v13  ;;  %7855 = vmatprep.subr.bf16.mxu1 %v10508_v14  ;;  %v10563_v13 = vld [vmem:[%s14440_s3 + $0x17c0] ss:$16 sps:$4 sm:$0xff]   ;;  %v10566_v14 = vld [vmem:[%s14440_s3 + $0x17c8] ss:$16 sps:$4 sm:$0xff]   ;;  %v10625_v57 = vld [vmem:[%s14440_s3 + $0x1904] ss:$16 sps:$4 sm:$0xff]  }
 0x2d1   :  { %vm493_vm8 = vcmp.gt.f32.partialorder %v461_v12, 0.0 }
 0x2d3   :  { %7200 = vmatpush1.bf16.msra.mxu0 %v10503_v32  ;;  %7856 = vmatpush1.bf16.msra.mxu1 %v10506_v16  ;;  %v522_v32 = vmul.f32 0.2, %v458_v53  ;;  %v10571_v16 = vld [vmem:[%s14440_s3 + $0x17e4] ss:$16 sps:$4 sm:$0xff]  }
 0x2d4   :  { %7201 = vmatprep.subr.bf16.mxu0 %v10511_v17  ;;  %7857 = vmatprep.subr.bf16.mxu1 %v10514_v38  ;;  %v10574_v17 = vld [vmem:[%s14440_s3 + $0x17ec] ss:$16 sps:$4 sm:$0xff]   ;;  %v525_v38 = vmul.f32 0.2, %v461_v12 }
 0x2d7   :  { %7202 = vmatpush1.bf16.msra.mxu0 %v10509_v52  ;;  %7858 = vmatpush1.bf16.msra.mxu1 %v10512_v20  ;;  %v10569_v52 = vld [vmem:[%s14440_s3 + $0x17e0] ss:$16 sps:$4 sm:$0xff]   ;;  %v10572_v20 = vld [vmem:[%s14440_s3 + $0x17e8] ss:$16 sps:$4 sm:$0xff]  }
 0x2d8   :  { %7203 = vmatprep.subr.bf16.mxu0 %v10517_v21  ;;  %7859 = vmatprep.subr.bf16.mxu1 %v10520_v23  ;;  %v554_v21 = vsel %vm490_vm7, %v458_v53, %v522_v32  ;;  %v10577_v23 = vld [vmem:[%s14440_s3 + $0x1804] ss:$16 sps:$4 sm:$0xff]   ;;  %v10635_v32 = vld [vmem:[%s14440_s3 + $0x1940] ss:$16 sps:$4 sm:$0xff]  }
 0x2d9   :  { %v10631_v53 = vld [vmem:[%s14440_s3 + $0x1924] ss:$16 sps:$4 sm:$0xff]  }
 0x2db   :  { %7204 = vmatpush1.bf16.msra.mxu0 %v10515_v41  ;;  %7860 = vmatpush1.bf16.msra.mxu1 %v10518_v24  ;;  %v10580_v41 = vld [vmem:[%s14440_s3 + $0x180c] ss:$16 sps:$4 sm:$0xff]   ;;  %v586_v24 = vpack.c.bf16 %v554_v21, %v554_v21  ;;  %v60_v21 = vunpack.c.l.bf16 %v13529_v62 }
 0x2dc   :  { %7205 = vmatprep.subr.bf16.mxu0 %v10523_v26  ;;  %7861 = vmatprep.subr.bf16.mxu1 %v10526_v28  ;;  %v557_v26 = vsel %vm493_vm8, %v461_v12, %v525_v38  ;;  %v10575_v28 = vld [vmem:[%s14440_s3 + $0x1800] ss:$16 sps:$4 sm:$0xff]   ;;  %v10632_v12 = vld [vmem:[%s14440_s3 + $0x1928] ss:$16 sps:$4 sm:$0xff]   ;;  %v10646_v38 = vld [vmem:[%s14440_s3 + $0x196c] ss:$16 sps:$4 sm:$0xff]  }
 0x2df   :  { %7206 = vmatpush1.bf16.msra.mxu0 %v10521_v29  ;;  %7862 = vmatpush1.bf16.msra.mxu1 %v10524_v31  ;;  %v10578_v29 = vld [vmem:[%s14440_s3 + $0x1808] ss:$16 sps:$4 sm:$0xff]   ;;  %v10583_v31 = vld [vmem:[%s14440_s3 + $0x1824] ss:$16 sps:$4 sm:$0xff]  }
 0x2e0   :  { %7207 = vmatprep.subr.bf16.mxu0 %v10529_v0  ;;  %7863 = vmatprep.subr.bf16.mxu1 %v10532_v33  ;;  %v10586_v0 = vld [vmem:[%s14440_s3 + $0x182c] ss:$16 sps:$4 sm:$0xff]   ;;  %v589_v33 = vpack.c.bf16 %v557_v26, %v557_v26 }
 0x2e1   :  { %v10652_v26 = vld [vmem:[%s14440_s3 + $0x198c] ss:$16 sps:$4 sm:$0xff]  }
 0x2e3   :  { %7208 = vmatpush1.bf16.msra.mxu0 %v10527_v4  ;;  %7864 = vmatpush1.bf16.msra.mxu1 %v10530_v34  ;;  %v10581_v4 = vld [vmem:[%s14440_s3 + $0x1820] ss:$16 sps:$4 sm:$0xff]   ;;  %v10584_v34 = vld [vmem:[%s14440_s3 + $0x1828] ss:$16 sps:$4 sm:$0xff]  }
 0x2e4   :  { %7209 = vmatprep.subr.bf16.mxu0 %v10535_v35  ;;  %7865 = vmatprep.subr.bf16.mxu1 %v10538_v9  ;;  %v10589_v35 = vld [vmem:[%s14440_s3 + $0x1844] ss:$16 sps:$4 sm:$0xff]   ;;  %v10592_v9 = vld [vmem:[%s14440_s3 + $0x184c] ss:$16 sps:$4 sm:$0xff]  }
 0x2e7   :  { %7210 = vmatpush1.bf16.msra.mxu0 %v10533_v40  ;;  %7866 = vmatpush1.bf16.msra.mxu1 %v10536_v5  ;;  %v10587_v40 = vld [vmem:[%s14440_s3 + $0x1840] ss:$16 sps:$4 sm:$0xff]   ;;  %v10590_v5 = vld [vmem:[%s14440_s3 + $0x1848] ss:$16 sps:$4 sm:$0xff]  }
 0x2e8   :  { %7211 = vmatprep.subr.bf16.mxu0 %v10541_v43  ;;  %7867 = vmatprep.subr.bf16.mxu1 %v10544_v44  ;;  %v10595_v43 = vld [vmem:[%s14440_s3 + $0x1864] ss:$16 sps:$4 sm:$0xff]   ;;  %v10598_v44 = vld [vmem:[%s14440_s3 + $0x186c] ss:$16 sps:$4 sm:$0xff]  }
 0x2eb   :  { %7212 = vmatpush1.bf16.msra.mxu0 %v10539_v45  ;;  %7868 = vmatpush1.bf16.msra.mxu1 %v10542_v46  ;;  %v10593_v45 = vld [vmem:[%s14440_s3 + $0x1860] ss:$16 sps:$4 sm:$0xff]   ;;  %v10596_v46 = vld [vmem:[%s14440_s3 + $0x1868] ss:$16 sps:$4 sm:$0xff]  }
 0x2ec   :  { %7213 = vmatprep.subr.bf16.mxu0 %v10547_v51  ;;  %7869 = vmatprep.subr.bf16.mxu1 %v10550_v58  ;;  %v10601_v51 = vld [vmem:[%s14440_s3 + $0x1884] ss:$16 sps:$4 sm:$0xff]   ;;  %v10604_v58 = vld [vmem:[%s14440_s3 + $0x188c] ss:$16 sps:$4 sm:$0xff]  }
 0x2ef   :  { %7214 = vmatpush1.bf16.msra.mxu0 %v10545_v59  ;;  %7870 = vmatpush1.bf16.msra.mxu1 %v10548_v15  ;;  %v10599_v59 = vld [vmem:[%s14440_s3 + $0x1880] ss:$16 sps:$4 sm:$0xff]   ;;  %v10602_v15 = vld [vmem:[%s14440_s3 + $0x1888] ss:$16 sps:$4 sm:$0xff]  }
 0x2f0   :  { %7215 = vmatprep.subr.bf16.mxu0 %v10553_v1  ;;  %7871 = vmatprep.subr.bf16.mxu1 %v10556_v36  ;;  %v10605_v1 = vld [vmem:[%s14440_s3 + $0x18a0] ss:$16 sps:$4 sm:$0xff]   ;;  %v10608_v36 = vld [vmem:[%s14440_s3 + $0x18a8] ss:$16 sps:$4 sm:$0xff]  }
 0x2f3   :  { %7216 = vmatpush1.bf16.msra.mxu0 %v10551_v2  ;;  %7872 = vmatpush1.bf16.msra.mxu1 %v10554_v3  ;;  %v10611_v2 = vld [vmem:[%s14440_s3 + $0x18c0] ss:$16 sps:$4 sm:$0xff]   ;;  %v10614_v3 = vld [vmem:[%s14440_s3 + $0x18c8] ss:$16 sps:$4 sm:$0xff]  }
 0x2f4   :  { %7217 = vmatprep.subr.bf16.mxu0 %v10559_v8  ;;  %7873 = vmatprep.subr.bf16.mxu1 %v10562_v54  ;;  %v10617_v8 = vld [vmem:[%s14440_s3 + $0x18e0] ss:$16 sps:$4 sm:$0xff]   ;;  %v10620_v54 = vld [vmem:[%s14440_s3 + $0x18e8] ss:$16 sps:$4 sm:$0xff]  }
 0x2f7   :  { %7218 = vmatpush1.bf16.msra.mxu0 %v10557_v25  ;;  %7874 = vmatpush1.bf16.msra.mxu1 %v10560_v11  ;;  %v10623_v25 = vld [vmem:[%s14440_s3 + $0x1900] ss:$16 sps:$4 sm:$0xff]   ;;  %v10626_v11 = vld [vmem:[%s14440_s3 + $0x1908] ss:$16 sps:$4 sm:$0xff]  }
 0x2f8   :  { %7219 = vmatprep.subr.bf16.mxu0 %v10565_v30  ;;  %7875 = vmatprep.subr.bf16.mxu1 %v10568_v47  ;;  %v10634_v30 = vld [vmem:[%s14440_s3 + $0x192c] ss:$16 sps:$4 sm:$0xff]   ;;  %v10629_v47 = vld [vmem:[%s14440_s3 + $0x1920] ss:$16 sps:$4 sm:$0xff]  }
 0x2fb   :  { %7220 = vmatpush1.bf16.msra.mxu0 %v10563_v13  ;;  %7876 = vmatpush1.bf16.msra.mxu1 %v10566_v14  ;;  %v10637_v13 = vld [vmem:[%s14440_s3 + $0x1944] ss:$16 sps:$4 sm:$0xff]   ;;  %v10640_v14 = vld [vmem:[%s14440_s3 + $0x194c] ss:$16 sps:$4 sm:$0xff]  }
 0x2fc   :  { %7221 = vmatprep.subr.bf16.mxu0 %v10571_v16  ;;  %7877 = vmatprep.subr.bf16.mxu1 %v10574_v17  ;;  %v10638_v16 = vld [vmem:[%s14440_s3 + $0x1948] ss:$16 sps:$4 sm:$0xff]   ;;  %v10643_v17 = vld [vmem:[%s14440_s3 + $0x1964] ss:$16 sps:$4 sm:$0xff]  }
 0x2ff   :  { %7222 = vmatpush1.bf16.msra.mxu0 %v10569_v52  ;;  %7878 = vmatpush1.bf16.msra.mxu1 %v10572_v20  ;;  %v10641_v52 = vld [vmem:[%s14440_s3 + $0x1960] ss:$16 sps:$4 sm:$0xff]   ;;  %v10644_v20 = vld [vmem:[%s14440_s3 + $0x1968] ss:$16 sps:$4 sm:$0xff]  }
 0x300   :  { %7232 = vmatprep.subr.bf16.mxu0 %v10577_v23  ;;  %7888 = vmatprep.subr.bf16.mxu1 %v10580_v41  ;;  %v175_v23 = vrot.slane %v13534_v63, %v11147_v48  ;;  %v13746_v41 = vld [vmem:[%s14441_s0 + $0x68] sm:$0xff] }
 0x301   :  { %v63_v62 = vunpack.c.h.bf16 %v13746_v41 }
 0x302   :  { %7224 = vmatmul.mubr.bf16.vlgmr.msra.gmra.mrb[0].mxu0 %v586_v24  ;;  %7880 = vmatmul.mubr.bf16.vlgmr.msra.gmra.mrb[0].mxu1 %v586_v24  ;;  %v10649_v24 = vld [vmem:[%s14440_s3 + $0x1984] ss:$16 sps:$4 sm:$0xff]  }
 0x303   :  { %7233 = vmatpush1.bf16.msra.mxu0 %v10575_v28  ;;  %7889 = vmatpush1.bf16.msra.mxu1 %v10578_v29  ;;  %v187_v28 = vrot.slane %v13534_v63, %v11294_v49  ;;  %v10647_v29 = vld [vmem:[%s14440_s3 + $0x1980] ss:$16 sps:$4 sm:$0xff]  }
 0x304   :  { %7234 = vmatprep.subr.bf16.mxu0 %v10583_v31  ;;  %7890 = vmatprep.subr.bf16.mxu1 %v10586_v0  ;;  %v10650_v31 = vld [vmem:[%s14440_s3 + $0x1988] ss:$16 sps:$4 sm:$0xff]   ;;  %v260_v0 = vmul.f32 %v175_v23, %v60_v21  ;;  %v10701_v21 = vld [vmem:[%s14440_s3 + $0x1aa0] ss:$16 sps:$4 sm:$0xff]  }
 0x305   :  { %7264 = vmatprep.mubr.bf16.mxu0 %v589_v33  ;;  %7920 = vmatprep.mubr.bf16.mxu1 %v589_v33  ;;  %v375_v33 = vrot.slane %v13556_v27, %v11147_v48  ;;  %v10653_v48 = vld [vmem:[%s14440_s3 + $0x19a0] ss:$16 sps:$4 sm:$0xff]   ;;  %v10704_v23 = vld [vmem:[%s14440_s3 + $0x1aa8] ss:$16 sps:$4 sm:$0xff]  }
 0x307   :  { %7235 = vmatpush1.bf16.msra.mxu0 %v10581_v4  ;;  %7891 = vmatpush1.bf16.msra.mxu1 %v10584_v34  ;;  %v10655_v4 = vld [vmem:[%s14440_s3 + $0x19a4] ss:$16 sps:$4 sm:$0xff]   ;;  %v10658_v34 = vld [vmem:[%s14440_s3 + $0x19ac] ss:$16 sps:$4 sm:$0xff]  }
 0x308   :  { %7236 = vmatprep.subr.bf16.mxu0 %v10589_v35  ;;  %7892 = vmatprep.subr.bf16.mxu1 %v10592_v9  ;;  %v263_v35 = vmul.f32 %v187_v28, %v63_v62  ;;  %v387_v9 = vrot.slane %v13556_v27, %v11294_v49  ;;  %v10664_v49 = vld [vmem:[%s14440_s3 + $0x19cc] ss:$16 sps:$4 sm:$0xff]   ;;  %v10707_v62 = vld [vmem:[%s14440_s3 + $0x1ac0] ss:$16 sps:$4 sm:$0xff]   ;;  %v10710_v28 = vld [vmem:[%s14440_s3 + $0x1ac8] ss:$16 sps:$4 sm:$0xff]  }
 0x30b   :  { %7237 = vmatpush1.bf16.msra.mxu0 %v10587_v40  ;;  %7893 = vmatpush1.bf16.msra.mxu1 %v10590_v5  ;;  %v10656_v40 = vld [vmem:[%s14440_s3 + $0x19a8] ss:$16 sps:$4 sm:$0xff]   ;;  %v460_v5 = vadd.f32 %v375_v33, %v260_v0  ;;  %v10713_v0 = vld [vmem:[%s14440_s3 + $0x1ae0] ss:$16 sps:$4 sm:$0xff]  }
 0x30c   :  { %7238 = vmatprep.subr.bf16.mxu0 %v10595_v43  ;;  %7894 = vmatprep.subr.bf16.mxu1 %v10598_v44  ;;  %v10661_v43 = vld [vmem:[%s14440_s3 + $0x19c4] ss:$16 sps:$4 sm:$0xff]   ;;  %v463_v44 = vadd.f32 %v387_v9, %v263_v35  ;;  %v10716_v33 = vld [vmem:[%s14440_s3 + $0x1ae8] ss:$16 sps:$4 sm:$0xff]   ;;  %v10719_v35 = vld [vmem:[%s14440_s3 + $0x1b00] ss:$16 sps:$4 sm:$0xff]  }
 0x30d   :  { %vm492_vm9 = vcmp.gt.f32.partialorder %v460_v5, 0.0  ;;  %v10722_v9 = vld [vmem:[%s14440_s3 + $0x1b08] ss:$16 sps:$4 sm:$0xff]  }
 0x30e   :  { %vm495_vm10 = vcmp.gt.f32.partialorder %v463_v44, 0.0 }
 0x30f   :  { %7239 = vmatpush1.bf16.msra.mxu0 %v10593_v45  ;;  %7895 = vmatpush1.bf16.msra.mxu1 %v10596_v46  ;;  %v10659_v45 = vld [vmem:[%s14440_s3 + $0x19c0] ss:$16 sps:$4 sm:$0xff]   ;;  %v10662_v46 = vld [vmem:[%s14440_s3 + $0x19c8] ss:$16 sps:$4 sm:$0xff]  }
 0x310   :  { %7240 = vmatprep.subr.bf16.mxu0 %v10601_v51  ;;  %7896 = vmatprep.subr.bf16.mxu1 %v10604_v58  ;;  %v524_v51 = vmul.f32 0.2, %v460_v5  ;;  %v10667_v58 = vld [vmem:[%s14440_s3 + $0x19e4] ss:$16 sps:$4 sm:$0xff]  }
 0x313   :  { %7241 = vmatpush1.bf16.msra.mxu0 %v10599_v59  ;;  %7897 = vmatpush1.bf16.msra.mxu1 %v10602_v15  ;;  %v10670_v59 = vld [vmem:[%s14440_s3 + $0x19ec] ss:$16 sps:$4 sm:$0xff]   ;;  %v527_v15 = vmul.f32 0.2, %v463_v44 }
 0x314   :  { %7242 = vmatprep.subr.bf16.mxu0 %v10607_v60  ;;  %7898 = vmatprep.subr.bf16.mxu1 %v10610_v61  ;;  %v10665_v60 = vld [vmem:[%s14440_s3 + $0x19e0] ss:$16 sps:$4 sm:$0xff]   ;;  %v10668_v61 = vld [vmem:[%s14440_s3 + $0x19e8] ss:$16 sps:$4 sm:$0xff]  }
 0x317   :  { %7243 = vmatpush1.bf16.msra.mxu0 %v10605_v1  ;;  %7899 = vmatpush1.bf16.msra.mxu1 %v10608_v36  ;;  %v556_v1 = vsel %vm492_vm9, %v460_v5, %v524_v51  ;;  %v10673_v36 = vld [vmem:[%s14440_s3 + $0x1a04] ss:$16 sps:$4 sm:$0xff]   ;;  %v10725_v5 = vld [vmem:[%s14440_s3 + $0x1b20] ss:$16 sps:$4 sm:$0xff]  }
 0x318   :  { %7244 = vmatprep.subr.bf16.mxu0 %v10613_v18  ;;  %7900 = vmatprep.subr.bf16.mxu1 %v10616_v39  ;;  %v10676_v18 = vld [vmem:[%s14440_s3 + $0x1a0c] ss:$16 sps:$4 sm:$0xff]   ;;  %v588_v39 = vpack.c.bf16 %v556_v1, %v556_v1  ;;  %v10739_v51 = vld [vmem:[%s14440_s3 + $0x1b64] ss:$16 sps:$4 sm:$0xff]  }
 0x319   :  { %v13953_v1 = vld [vmem:[%s14441_s0 + $0x70] sm:$0xff] }
 0x31b   :  { %7245 = vmatpush1.bf16.msra.mxu0 %v10611_v2  ;;  %7901 = vmatpush1.bf16.msra.mxu1 %v10614_v3  ;;  %v559_v2 = vsel %vm495_vm10, %v463_v44, %v527_v15  ;;  %v10671_v3 = vld [vmem:[%s14440_s3 + $0x1a00] ss:$16 sps:$4 sm:$0xff]   ;;  %v10736_v44 = vld [vmem:[%s14440_s3 + $0x1b4c] ss:$16 sps:$4 sm:$0xff]   ;;  %v10740_v15 = vld [vmem:[%s14440_s3 + $0x1b68] ss:$16 sps:$4 sm:$0xff]  }
 0x31c   :  { %7246 = vmatprep.subr.bf16.mxu0 %v10619_v6  ;;  %7902 = vmatprep.subr.bf16.mxu1 %v10622_v7  ;;  %v10674_v6 = vld [vmem:[%s14440_s3 + $0x1a08] ss:$16 sps:$4 sm:$0xff]   ;;  %v10679_v7 = vld [vmem:[%s14440_s3 + $0x1a24] ss:$16 sps:$4 sm:$0xff]  }
 0x31f   :  { %7247 = vmatpush1.bf16.msra.mxu0 %v10617_v8  ;;  %7903 = vmatpush1.bf16.msra.mxu1 %v10620_v54  ;;  %v10682_v8 = vld [vmem:[%s14440_s3 + $0x1a2c] ss:$16 sps:$4 sm:$0xff]   ;;  %v591_v54 = vpack.c.bf16 %v559_v2, %v559_v2  ;;  %v10743_v2 = vld [vmem:[%s14440_s3 + $0x1b80] ss:$16 sps:$4 sm:$0xff]  }
 0x320   :  { %7248 = vmatprep.subr.bf16.mxu0 %v10625_v57  ;;  %7904 = vmatprep.subr.bf16.mxu1 %v10628_v10  ;;  %v10677_v57 = vld [vmem:[%s14440_s3 + $0x1a20] ss:$16 sps:$4 sm:$0xff]   ;;  %v10680_v10 = vld [vmem:[%s14440_s3 + $0x1a28] ss:$16 sps:$4 sm:$0xff]  }
 0x323   :  { %7249 = vmatpush1.bf16.msra.mxu0 %v10623_v25  ;;  %7905 = vmatpush1.bf16.msra.mxu1 %v10626_v11  ;;  %v10685_v25 = vld [vmem:[%s14440_s3 + $0x1a44] ss:$16 sps:$4 sm:$0xff]   ;;  %v10688_v11 = vld [vmem:[%s14440_s3 + $0x1a4c] ss:$16 sps:$4 sm:$0xff]  }
 0x324   :  { %7250 = vmatprep.subr.bf16.mxu0 %v10631_v53  ;;  %7906 = vmatprep.subr.bf16.mxu1 %v10634_v30  ;;  %v10683_v53 = vld [vmem:[%s14440_s3 + $0x1a40] ss:$16 sps:$4 sm:$0xff]   ;;  %v10686_v30 = vld [vmem:[%s14440_s3 + $0x1a48] ss:$16 sps:$4 sm:$0xff]  }
 0x327   :  { %7251 = vmatpush1.bf16.msra.mxu0 %v10629_v47  ;;  %7907 = vmatpush1.bf16.msra.mxu1 %v10632_v12  ;;  %v10691_v47 = vld [vmem:[%s14440_s3 + $0x1a64] ss:$16 sps:$4 sm:$0xff]   ;;  %v10694_v12 = vld [vmem:[%s14440_s3 + $0x1a6c] ss:$16 sps:$4 sm:$0xff]  }
 0x328   :  { %7252 = vmatprep.subr.bf16.mxu0 %v10637_v13  ;;  %7908 = vmatprep.subr.bf16.mxu1 %v10640_v14  ;;  %v10689_v13 = vld [vmem:[%s14440_s3 + $0x1a60] ss:$16 sps:$4 sm:$0xff]   ;;  %v10692_v14 = vld [vmem:[%s14440_s3 + $0x1a68] ss:$16 sps:$4 sm:$0xff]  }
 0x32b   :  { %7253 = vmatpush1.bf16.msra.mxu0 %v10635_v32  ;;  %7909 = vmatpush1.bf16.msra.mxu1 %v10638_v16  ;;  %v10697_v32 = vld [vmem:[%s14440_s3 + $0x1a84] ss:$16 sps:$4 sm:$0xff]   ;;  %v10700_v16 = vld [vmem:[%s14440_s3 + $0x1a8c] ss:$16 sps:$4 sm:$0xff]  }
 0x32c   :  { %7254 = vmatprep.subr.bf16.mxu0 %v10643_v17  ;;  %7910 = vmatprep.subr.bf16.mxu1 %v10646_v38  ;;  %v10695_v17 = vld [vmem:[%s14440_s3 + $0x1a80] ss:$16 sps:$4 sm:$0xff]   ;;  %v10698_v38 = vld [vmem:[%s14440_s3 + $0x1a88] ss:$16 sps:$4 sm:$0xff]  }
 0x32f   :  { %7255 = vmatpush1.bf16.msra.mxu0 %v10641_v52  ;;  %7911 = vmatpush1.bf16.msra.mxu1 %v10644_v20  ;;  %v10703_v52 = vld [vmem:[%s14440_s3 + $0x1aa4] ss:$16 sps:$4 sm:$0xff]   ;;  %v10706_v20 = vld [vmem:[%s14440_s3 + $0x1aac] ss:$16 sps:$4 sm:$0xff]  }
 0x330   :  { %7256 = vmatprep.subr.bf16.mxu0 %v10649_v24  ;;  %7912 = vmatprep.subr.bf16.mxu1 %v10652_v26  ;;  %v10709_v24 = vld [vmem:[%s14440_s3 + $0x1ac4] ss:$16 sps:$4 sm:$0xff]   ;;  %v10712_v26 = vld [vmem:[%s14440_s3 + $0x1acc] ss:$16 sps:$4 sm:$0xff]  }
 0x333   :  { %7257 = vmatpush1.bf16.msra.mxu0 %v10647_v29  ;;  %7913 = vmatpush1.bf16.msra.mxu1 %v10650_v31  ;;  %v10715_v29 = vld [vmem:[%s14440_s3 + $0x1ae4] ss:$16 sps:$4 sm:$0xff]   ;;  %v10718_v31 = vld [vmem:[%s14440_s3 + $0x1aec] ss:$16 sps:$4 sm:$0xff]  }
 0x334   :  { %7258 = vmatprep.subr.bf16.mxu0 %v10655_v4  ;;  %7914 = vmatprep.subr.bf16.mxu1 %v10658_v34  ;;  %v10721_v4 = vld [vmem:[%s14440_s3 + $0x1b04] ss:$16 sps:$4 sm:$0xff]   ;;  %v10724_v34 = vld [vmem:[%s14440_s3 + $0x1b0c] ss:$16 sps:$4 sm:$0xff]  }
 0x337   :  { %7259 = vmatpush1.bf16.msra.mxu0 %v10653_v48  ;;  %7915 = vmatpush1.bf16.msra.mxu1 %v10656_v40  ;;  %v10727_v48 = vld [vmem:[%s14440_s3 + $0x1b24] ss:$16 sps:$4 sm:$0xff]   ;;  %v10730_v40 = vld [vmem:[%s14440_s3 + $0x1b2c] ss:$16 sps:$4 sm:$0xff]  }
 0x338   :  { %7260 = vmatprep.subr.bf16.mxu0 %v10661_v43  ;;  %7916 = vmatprep.subr.bf16.mxu1 %v10664_v49  ;;  %v10728_v43 = vld [vmem:[%s14440_s3 + $0x1b28] ss:$16 sps:$4 sm:$0xff]   ;;  %v10733_v49 = vld [vmem:[%s14440_s3 + $0x1b44] ss:$16 sps:$4 sm:$0xff]  }
 0x33b   :  { %7261 = vmatpush1.bf16.msra.mxu0 %v10659_v45  ;;  %7917 = vmatpush1.bf16.msra.mxu1 %v10662_v46  ;;  %v10731_v45 = vld [vmem:[%s14440_s3 + $0x1b40] ss:$16 sps:$4 sm:$0xff]   ;;  %v10734_v46 = vld [vmem:[%s14440_s3 + $0x1b48] ss:$16 sps:$4 sm:$0xff]  }
 0x33c   :  { %7262 = vmatprep.subr.bf16.mxu0 %v10667_v58  ;;  %7918 = vmatprep.subr.bf16.mxu1 %v10670_v59  ;;  %v10742_v58 = vld [vmem:[%s14440_s3 + $0x1b6c] ss:$16 sps:$4 sm:$0xff]   ;;  %v10737_v59 = vld [vmem:[%s14440_s3 + $0x1b60] ss:$16 sps:$4 sm:$0xff]  }
 0x33f   :  { %7263 = vmatpush1.bf16.msra.mxu0 %v10665_v60  ;;  %7919 = vmatpush1.bf16.msra.mxu1 %v10668_v61  ;;  %v62_v60 = vunpack.c.l.bf16 %v13746_v41  ;;  %v183_v61 = vrot.slane %v13534_v63, %v11373_v19  ;;  %v65_v41 = vunpack.c.h.bf16 %v13953_v1 }
 0x340   :  { %7273 = vmatprep.subr.bf16.mxu0 %v10673_v36  ;;  %7929 = vmatprep.subr.bf16.mxu1 %v10676_v18  ;;  %v10745_v36 = vld [vmem:[%s14440_s3 + $0x1b84] ss:$16 sps:$4 sm:$0xff]   ;;  %v10748_v18 = vld [vmem:[%s14440_s3 + $0x1b8c] ss:$16 sps:$4 sm:$0xff]  }
 0x342   :  { %7265 = vmatmul.mubr.bf16.vlgmr.msra.gmra.mrb[0].mxu0 %v588_v39  ;;  %7921 = vmatmul.mubr.bf16.vlgmr.msra.gmra.mrb[0].mxu1 %v588_v39  ;;  %v195_v39 = vrot.slane %v13534_v63, %v11447_v56 }
 0x343   :  { %7274 = vmatpush1.bf16.msra.mxu0 %v10671_v3  ;;  %7930 = vmatpush1.bf16.msra.mxu1 %v10674_v6  ;;  %v10746_v3 = vld [vmem:[%s14440_s3 + $0x1b88] ss:$16 sps:$4 sm:$0xff]   ;;  %v262_v6 = vmul.f32 %v183_v61, %v62_v60  ;;  %v10805_v60 = vld [vmem:[%s14440_s3 + $0x1cc4] ss:$16 sps:$4 sm:$0xff]   ;;  %v10808_v61 = vld [vmem:[%s14440_s3 + $0x1ccc] ss:$16 sps:$4 sm:$0xff]  }
 0x344   :  { %7275 = vmatprep.subr.bf16.mxu0 %v10679_v7  ;;  %7931 = vmatprep.subr.bf16.mxu1 %v10682_v8  ;;  %v383_v7 = vrot.slane %v13556_v27, %v11373_v19  ;;  %v10751_v8 = vld [vmem:[%s14440_s3 + $0x1ba4] ss:$16 sps:$4 sm:$0xff]   ;;  %v10749_v19 = vld [vmem:[%s14440_s3 + $0x1ba0] ss:$16 sps:$4 sm:$0xff]  }
 0x345   :  { %7305 = vmatprep.mubr.bf16.mxu0 %v591_v54  ;;  %7961 = vmatprep.mubr.bf16.mxu1 %v591_v54  ;;  %v10754_v54 = vld [vmem:[%s14440_s3 + $0x1bac] ss:$16 sps:$4 sm:$0xff]  }
 0x347   :  { %7276 = vmatpush1.bf16.msra.mxu0 %v10677_v57  ;;  %7932 = vmatpush1.bf16.msra.mxu1 %v10680_v10  ;;  %v265_v57 = vmul.f32 %v195_v39, %v65_v41  ;;  %v395_v10 = vrot.slane %v13556_v27, %v11447_v56  ;;  %v10760_v56 = vld [vmem:[%s14440_s3 + $0x1bcc] ss:$16 sps:$4 sm:$0xff]   ;;  %v10811_v41 = vld [vmem:[%s14440_s3 + $0x1ce4] ss:$16 sps:$4 sm:$0xff]  }
 0x348   :  { %7277 = vmatprep.subr.bf16.mxu0 %v10685_v25  ;;  %7933 = vmatprep.subr.bf16.mxu1 %v10688_v11  ;;  %v10752_v25 = vld [vmem:[%s14440_s3 + $0x1ba8] ss:$16 sps:$4 sm:$0xff]   ;;  %v462_v11 = vadd.f32 %v383_v7, %v262_v6  ;;  %v10814_v39 = vld [vmem:[%s14440_s3 + $0x1cec] ss:$16 sps:$4 sm:$0xff]   ;;  %v10817_v6 = vld [vmem:[%s14440_s3 + $0x1d04] ss:$16 sps:$4 sm:$0xff]  }
 0x349   :  { %v10820_v7 = vld [vmem:[%s14440_s3 + $0x1d0c] ss:$16 sps:$4 sm:$0xff]  }
 0x34a   :  { %vm494_vm11 = vcmp.gt.f32.partialorder %v462_v11, 0.0 }
 0x34b   :  { %7278 = vmatpush1.bf16.msra.mxu0 %v10683_v53  ;;  %7934 = vmatpush1.bf16.msra.mxu1 %v10686_v30  ;;  %v10757_v53 = vld [vmem:[%s14440_s3 + $0x1bc4] ss:$16 sps:$4 sm:$0xff]   ;;  %v465_v30 = vadd.f32 %v395_v10, %v265_v57  ;;  %v10826_v10 = vld [vmem:[%s14440_s3 + $0x1d2c] ss:$16 sps:$4 sm:$0xff]  }
 0x34c   :  { %7279 = vmatprep.subr.bf16.mxu0 %v10691_v47  ;;  %7935 = vmatprep.subr.bf16.mxu1 %v10694_v12  ;;  %v10755_v47 = vld [vmem:[%s14440_s3 + $0x1bc0] ss:$16 sps:$4 sm:$0xff]   ;;  %v10758_v12 = vld [vmem:[%s14440_s3 + $0x1bc8] ss:$16 sps:$4 sm:$0xff]   ;;  %v10823_v57 = vld [vmem:[%s14440_s3 + $0x1d24] ss:$16 sps:$4 sm:$0xff]  }
 0x34d   :  { %vm497_vm12 = vcmp.gt.f32.partialorder %v465_v30, 0.0 }
 0x34f   :  { %7280 = vmatpush1.bf16.msra.mxu0 %v10689_v13  ;;  %7936 = vmatpush1.bf16.msra.mxu1 %v10692_v14  ;;  %v526_v13 = vmul.f32 0.2, %v462_v11  ;;  %v10763_v14 = vld [vmem:[%s14440_s3 + $0x1be4] ss:$16 sps:$4 sm:$0xff]  }
 0x350   :  { %7281 = vmatprep.subr.bf16.mxu0 %v10697_v32  ;;  %7937 = vmatprep.subr.bf16.mxu1 %v10700_v16  ;;  %v10766_v32 = vld [vmem:[%s14440_s3 + $0x1bec] ss:$16 sps:$4 sm:$0xff]   ;;  %v529_v16 = vmul.f32 0.2, %v465_v30 }
 0x353   :  { %7282 = vmatpush1.bf16.msra.mxu0 %v10695_v17  ;;  %7938 = vmatpush1.bf16.msra.mxu1 %v10698_v38  ;;  %v10761_v17 = vld [vmem:[%s14440_s3 + $0x1be0] ss:$16 sps:$4 sm:$0xff]   ;;  %v10764_v38 = vld [vmem:[%s14440_s3 + $0x1be8] ss:$16 sps:$4 sm:$0xff]  }
 0x354   :  { %7283 = vmatprep.subr.bf16.mxu0 %v10703_v52  ;;  %7939 = vmatprep.subr.bf16.mxu1 %v10706_v20  ;;  %v558_v52 = vsel %vm494_vm11, %v462_v11, %v526_v13  ;;  %v10769_v20 = vld [vmem:[%s14440_s3 + $0x1c04] ss:$16 sps:$4 sm:$0xff]   ;;  %v10833_v13 = vld [vmem:[%s14440_s3 + $0x1d60] ss:$16 sps:$4 sm:$0xff]  }
 0x355   :  { %v10829_v11 = vld [vmem:[%s14440_s3 + $0x1d44] ss:$16 sps:$4 sm:$0xff]  }
 0x357   :  { %7284 = vmatpush1.bf16.msra.mxu0 %v10701_v21  ;;  %7940 = vmatpush1.bf16.msra.mxu1 %v10704_v23  ;;  %v10772_v21 = vld [vmem:[%s14440_s3 + $0x1c0c] ss:$16 sps:$4 sm:$0xff]   ;;  %v590_v23 = vpack.c.bf16 %v558_v52, %v558_v52 }
 0x358   :  { %7285 = vmatprep.subr.bf16.mxu0 %v10709_v24  ;;  %7941 = vmatprep.subr.bf16.mxu1 %v10712_v26  ;;  %v561_v24 = vsel %vm497_vm12, %v465_v30, %v529_v16  ;;  %v10767_v26 = vld [vmem:[%s14440_s3 + $0x1c00] ss:$16 sps:$4 sm:$0xff]   ;;  %v10830_v30 = vld [vmem:[%s14440_s3 + $0x1d48] ss:$16 sps:$4 sm:$0xff]   ;;  %v191_v16 = vrot.slane %v13534_v63, %v11586_v50  ;;  %v10844_v52 = vld [vmem:[%s14440_s3 + $0x1d8c] ss:$16 sps:$4 sm:$0xff]  }
 0x35b   :  { %7286 = vmatpush1.bf16.msra.mxu0 %v10707_v62  ;;  %7942 = vmatpush1.bf16.msra.mxu1 %v10710_v28  ;;  %v10770_v62 = vld [vmem:[%s14440_s3 + $0x1c08] ss:$16 sps:$4 sm:$0xff]   ;;  %v10775_v28 = vld [vmem:[%s14440_s3 + $0x1c24] ss:$16 sps:$4 sm:$0xff]  }
 0x35c   :  { %7287 = vmatprep.subr.bf16.mxu0 %v10715_v29  ;;  %7943 = vmatprep.subr.bf16.mxu1 %v10718_v31  ;;  %v10778_v29 = vld [vmem:[%s14440_s3 + $0x1c2c] ss:$16 sps:$4 sm:$0xff]   ;;  %v593_v31 = vpack.c.bf16 %v561_v24, %v561_v24 }
 0x35f   :  { %7288 = vmatpush1.bf16.msra.mxu0 %v10713_v0  ;;  %7944 = vmatpush1.bf16.msra.mxu1 %v10716_v33  ;;  %v10773_v0 = vld [vmem:[%s14440_s3 + $0x1c20] ss:$16 sps:$4 sm:$0xff]   ;;  %v10776_v33 = vld [vmem:[%s14440_s3 + $0x1c28] ss:$16 sps:$4 sm:$0xff]  }
 0x360   :  { %7289 = vmatprep.subr.bf16.mxu0 %v10721_v4  ;;  %7945 = vmatprep.subr.bf16.mxu1 %v10724_v34  ;;  %v10781_v4 = vld [vmem:[%s14440_s3 + $0x1c44] ss:$16 sps:$4 sm:$0xff]   ;;  %v10784_v34 = vld [vmem:[%s14440_s3 + $0x1c4c] ss:$16 sps:$4 sm:$0xff]  }
 0x363   :  { %7290 = vmatpush1.bf16.msra.mxu0 %v10719_v35  ;;  %7946 = vmatpush1.bf16.msra.mxu1 %v10722_v9  ;;  %v10779_v35 = vld [vmem:[%s14440_s3 + $0x1c40] ss:$16 sps:$4 sm:$0xff]   ;;  %v10782_v9 = vld [vmem:[%s14440_s3 + $0x1c48] ss:$16 sps:$4 sm:$0xff]  }
 0x364   :  { %7291 = vmatprep.subr.bf16.mxu0 %v10727_v48  ;;  %7947 = vmatprep.subr.bf16.mxu1 %v10730_v40  ;;  %v10787_v48 = vld [vmem:[%s14440_s3 + $0x1c64] ss:$16 sps:$4 sm:$0xff]   ;;  %v10790_v40 = vld [vmem:[%s14440_s3 + $0x1c6c] ss:$16 sps:$4 sm:$0xff]  }
 0x367   :  { %7292 = vmatpush1.bf16.msra.mxu0 %v10725_v5  ;;  %7948 = vmatpush1.bf16.msra.mxu1 %v10728_v43  ;;  %v10785_v5 = vld [vmem:[%s14440_s3 + $0x1c60] ss:$16 sps:$4 sm:$0xff]   ;;  %v10788_v43 = vld [vmem:[%s14440_s3 + $0x1c68] ss:$16 sps:$4 sm:$0xff]  }
 0x368   :  { %7293 = vmatprep.subr.bf16.mxu0 %v10733_v49  ;;  %7949 = vmatprep.subr.bf16.mxu1 %v10736_v44  ;;  %v10793_v49 = vld [vmem:[%s14440_s3 + $0x1c84] ss:$16 sps:$4 sm:$0xff]   ;;  %v10796_v44 = vld [vmem:[%s14440_s3 + $0x1c8c] ss:$16 sps:$4 sm:$0xff]  }
 0x36b   :  { %7294 = vmatpush1.bf16.msra.mxu0 %v10731_v45  ;;  %7950 = vmatpush1.bf16.msra.mxu1 %v10734_v46  ;;  %v10791_v45 = vld [vmem:[%s14440_s3 + $0x1c80] ss:$16 sps:$4 sm:$0xff]   ;;  %v10794_v46 = vld [vmem:[%s14440_s3 + $0x1c88] ss:$16 sps:$4 sm:$0xff]  }
 0x36c   :  { %7295 = vmatprep.subr.bf16.mxu0 %v10739_v51  ;;  %7951 = vmatprep.subr.bf16.mxu1 %v10742_v58  ;;  %v10799_v51 = vld [vmem:[%s14440_s3 + $0x1ca4] ss:$16 sps:$4 sm:$0xff]   ;;  %v10802_v58 = vld [vmem:[%s14440_s3 + $0x1cac] ss:$16 sps:$4 sm:$0xff]  }
 0x36f   :  { %7296 = vmatpush1.bf16.msra.mxu0 %v10737_v59  ;;  %7952 = vmatpush1.bf16.msra.mxu1 %v10740_v15  ;;  %v10797_v59 = vld [vmem:[%s14440_s3 + $0x1ca0] ss:$16 sps:$4 sm:$0xff]   ;;  %v10800_v15 = vld [vmem:[%s14440_s3 + $0x1ca8] ss:$16 sps:$4 sm:$0xff]  }
 0x370   :  { %7297 = vmatprep.subr.bf16.mxu0 %v10745_v36  ;;  %7953 = vmatprep.subr.bf16.mxu1 %v10748_v18  ;;  %v10803_v36 = vld [vmem:[%s14440_s3 + $0x1cc0] ss:$16 sps:$4 sm:$0xff]   ;;  %v10806_v18 = vld [vmem:[%s14440_s3 + $0x1cc8] ss:$16 sps:$4 sm:$0xff]  }
 0x373   :  { %7298 = vmatpush1.bf16.msra.mxu0 %v10743_v2  ;;  %7954 = vmatpush1.bf16.msra.mxu1 %v10746_v3  ;;  %v10809_v2 = vld [vmem:[%s14440_s3 + $0x1ce0] ss:$16 sps:$4 sm:$0xff]   ;;  %v10812_v3 = vld [vmem:[%s14440_s3 + $0x1ce8] ss:$16 sps:$4 sm:$0xff]  }
 0x374   :  { %7299 = vmatprep.subr.bf16.mxu0 %v10751_v8  ;;  %7955 = vmatprep.subr.bf16.mxu1 %v10754_v54  ;;  %v10815_v8 = vld [vmem:[%s14440_s3 + $0x1d00] ss:$16 sps:$4 sm:$0xff]   ;;  %v10818_v54 = vld [vmem:[%s14440_s3 + $0x1d08] ss:$16 sps:$4 sm:$0xff]  }
 0x377   :  { %7300 = vmatpush1.bf16.msra.mxu0 %v10749_v19  ;;  %7956 = vmatpush1.bf16.msra.mxu1 %v10752_v25  ;;  %v10821_v19 = vld [vmem:[%s14440_s3 + $0x1d20] ss:$16 sps:$4 sm:$0xff]   ;;  %v10824_v25 = vld [vmem:[%s14440_s3 + $0x1d28] ss:$16 sps:$4 sm:$0xff]  }
 0x378   :  { %7301 = vmatprep.subr.bf16.mxu0 %v10757_v53  ;;  %7957 = vmatprep.subr.bf16.mxu1 %v10760_v56  ;;  %v10832_v53 = vld [vmem:[%s14440_s3 + $0x1d4c] ss:$16 sps:$4 sm:$0xff]   ;;  %v10827_v56 = vld [vmem:[%s14440_s3 + $0x1d40] ss:$16 sps:$4 sm:$0xff]  }
 0x37b   :  { %7302 = vmatpush1.bf16.msra.mxu0 %v10755_v47  ;;  %7958 = vmatpush1.bf16.msra.mxu1 %v10758_v12  ;;  %v10835_v47 = vld [vmem:[%s14440_s3 + $0x1d64] ss:$16 sps:$4 sm:$0xff]   ;;  %v10838_v12 = vld [vmem:[%s14440_s3 + $0x1d6c] ss:$16 sps:$4 sm:$0xff]  }
 0x37c   :  { %7303 = vmatprep.subr.bf16.mxu0 %v10763_v14  ;;  %7959 = vmatprep.subr.bf16.mxu1 %v10766_v32  ;;  %v10836_v14 = vld [vmem:[%s14440_s3 + $0x1d68] ss:$16 sps:$4 sm:$0xff]   ;;  %v64_v32 = vunpack.c.l.bf16 %v13953_v1 }
 0x37e   :  { %v264_v24 = vmul.f32 %v191_v16, %v64_v32  ;;  %v10907_v32 = vld [vmem:[%s14440_s3 + $0x1ee4] ss:$16 sps:$4 sm:$0xff]   ;;  %v10910_v16 = vld [vmem:[%s14440_s3 + $0x1eec] ss:$16 sps:$4 sm:$0xff]  }
 0x37f   :  { %7304 = vmatpush1.bf16.msra.mxu0 %v10761_v17  ;;  %7960 = vmatpush1.bf16.msra.mxu1 %v10764_v38  ;;  %v14160_v17 = vld [vmem:[%s14441_s0 + $0x78] sm:$0xff]  ;;  %v10841_v38 = vld [vmem:[%s14440_s3 + $0x1d84] ss:$16 sps:$4 sm:$0xff]  }
 0x380   :  { %7314 = vmatprep.subr.bf16.mxu0 %v10769_v20  ;;  %7970 = vmatprep.subr.bf16.mxu1 %v10772_v21  ;;  %v67_v1 = vunpack.c.h.bf16 %v14160_v17  ;;  %v203_v20 = vrot.slane %v13534_v63, %v11595_v55  ;;  %v10839_v21 = vld [vmem:[%s14440_s3 + $0x1d80] ss:$16 sps:$4 sm:$0xff]   ;;  %v10847_v63 = vld [vmem:[%s14440_s3 + $0x1da4] ss:$16 sps:$4 sm:$0xff]  }
 0x382   :  { %7306 = vmatmul.mubr.bf16.vlgmr.msra.gmra.mrb[0].mxu0 %v590_v23  ;;  %7962 = vmatmul.mubr.bf16.vlgmr.msra.gmra.mrb[0].mxu1 %v590_v23  ;;  %v10842_v23 = vld [vmem:[%s14440_s3 + $0x1d88] ss:$16 sps:$4 sm:$0xff]  }
 0x383   :  { %7315 = vmatpush1.bf16.msra.mxu0 %v10767_v26  ;;  %7971 = vmatpush1.bf16.msra.mxu1 %v10770_v62  ;;  %v391_v26 = vrot.slane %v13556_v27, %v11586_v50  ;;  %v10850_v62 = vld [vmem:[%s14440_s3 + $0x1dac] ss:$16 sps:$4 sm:$0xff]   ;;  %v10845_v50 = vld [vmem:[%s14440_s3 + $0x1da0] ss:$16 sps:$4 sm:$0xff]  }
 0x384   :  { %7316 = vmatprep.subr.bf16.mxu0 %v10775_v28  ;;  %7972 = vmatprep.subr.bf16.mxu1 %v10778_v29  ;;  %v267_v28 = vmul.f32 %v203_v20, %v67_v1  ;;  %v403_v29 = vrot.slane %v13556_v27, %v11595_v55  ;;  %v10856_v55 = vld [vmem:[%s14440_s3 + $0x1dcc] ss:$16 sps:$4 sm:$0xff]   ;;  %v10913_v1 = vld [vmem:[%s14440_s3 + $0x1f04] ss:$16 sps:$4 sm:$0xff]  }
 0x385   :  { %7346 = vmatprep.mubr.bf16.mxu0 %v593_v31  ;;  %8002 = vmatprep.mubr.bf16.mxu1 %v593_v31  ;;  %v10848_v31 = vld [vmem:[%s14440_s3 + $0x1da8] ss:$16 sps:$4 sm:$0xff]   ;;  %v10916_v20 = vld [vmem:[%s14440_s3 + $0x1f0c] ss:$16 sps:$4 sm:$0xff]  }
 0x386   :  { %v467_v27 = vadd.f32 %v403_v29, %v267_v28  ;;  %v10925_v28 = vld [vmem:[%s14440_s3 + $0x1f44] ss:$16 sps:$4 sm:$0xff]   ;;  %v10928_v29 = vld [vmem:[%s14440_s3 + $0x1f4c] ss:$16 sps:$4 sm:$0xff]  }
 0x387   :  { %7317 = vmatpush1.bf16.msra.mxu0 %v10773_v0  ;;  %7973 = vmatpush1.bf16.msra.mxu1 %v10776_v33  ;;  %v464_v0 = vadd.f32 %v391_v26, %v264_v24  ;;  %v10853_v33 = vld [vmem:[%s14440_s3 + $0x1dc4] ss:$16 sps:$4 sm:$0xff]   ;;  %v10922_v26 = vld [vmem:[%s14440_s3 + $0x1f2c] ss:$16 sps:$4 sm:$0xff]  }
 0x388   :  { %7318 = vmatprep.subr.bf16.mxu0 %v10781_v4  ;;  %7974 = vmatprep.subr.bf16.mxu1 %v10784_v34  ;;  %v10851_v4 = vld [vmem:[%s14440_s3 + $0x1dc0] ss:$16 sps:$4 sm:$0xff]   ;;  %v10854_v34 = vld [vmem:[%s14440_s3 + $0x1dc8] ss:$16 sps:$4 sm:$0xff]   ;;  %vm499_vm14 = vcmp.gt.f32.partialorder %v467_v27, 0.0 }
 0x389   :  { %vm496_vm13 = vcmp.gt.f32.partialorder %v464_v0, 0.0  ;;  %v10919_v24 = vld [vmem:[%s14440_s3 + $0x1f24] ss:$16 sps:$4 sm:$0xff]  }
 0x38b   :  { %7319 = vmatpush1.bf16.msra.mxu0 %v10779_v35  ;;  %7975 = vmatpush1.bf16.msra.mxu1 %v10782_v9  ;;  %v528_v35 = vmul.f32 0.2, %v464_v0  ;;  %v10859_v9 = vld [vmem:[%s14440_s3 + $0x1de4] ss:$16 sps:$4 sm:$0xff]  }
 0x38c   :  { %7320 = vmatprep.subr.bf16.mxu0 %v10787_v48  ;;  %7976 = vmatprep.subr.bf16.mxu1 %v10790_v40  ;;  %v10862_v48 = vld [vmem:[%s14440_s3 + $0x1dec] ss:$16 sps:$4 sm:$0xff]   ;;  %v531_v40 = vmul.f32 0.2, %v467_v27 }
 0x38f   :  { %7321 = vmatpush1.bf16.msra.mxu0 %v10785_v5  ;;  %7977 = vmatpush1.bf16.msra.mxu1 %v10788_v43  ;;  %v10857_v5 = vld [vmem:[%s14440_s3 + $0x1de0] ss:$16 sps:$4 sm:$0xff]   ;;  %v10860_v43 = vld [vmem:[%s14440_s3 + $0x1de8] ss:$16 sps:$4 sm:$0xff]  }
 0x390   :  { %7322 = vmatprep.subr.bf16.mxu0 %v10793_v49  ;;  %7978 = vmatprep.subr.bf16.mxu1 %v10796_v44  ;;  %v560_v49 = vsel %vm496_vm13, %v464_v0, %v528_v35  ;;  %v10865_v44 = vld [vmem:[%s14440_s3 + $0x1e04] ss:$16 sps:$4 sm:$0xff]  }
 0x391   :  { %v10931_v0 = vld [vmem:[%s14440_s3 + $0x1f64] ss:$16 sps:$4 sm:$0xff]  }
 0x393   :  { %7323 = vmatpush1.bf16.msra.mxu0 %v10791_v45  ;;  %7979 = vmatpush1.bf16.msra.mxu1 %v10794_v46  ;;  %v10868_v45 = vld [vmem:[%s14440_s3 + $0x1e0c] ss:$16 sps:$4 sm:$0xff]   ;;  %v592_v46 = vpack.c.bf16 %v560_v49, %v560_v49 }
 0x394   :  { %7324 = vmatprep.subr.bf16.mxu0 %v10799_v51  ;;  %7980 = vmatprep.subr.bf16.mxu1 %v10802_v58  ;;  %v563_v51 = vsel %vm499_vm14, %v467_v27, %v531_v40  ;;  %v10863_v58 = vld [vmem:[%s14440_s3 + $0x1e00] ss:$16 sps:$4 sm:$0xff]   ;;  %v10932_v27 = vld [vmem:[%s14440_s3 + $0x1f68] ss:$16 sps:$4 sm:$0xff]  }
 0x395   :  { %v10938_v40 = vld [vmem:[%s14440_s3 + $0x1f88] ss:$16 sps:$4 sm:$0xff]  }
 0x397   :  { %7325 = vmatpush1.bf16.msra.mxu0 %v10797_v59  ;;  %7981 = vmatpush1.bf16.msra.mxu1 %v10800_v15  ;;  %v10866_v59 = vld [vmem:[%s14440_s3 + $0x1e08] ss:$16 sps:$4 sm:$0xff]   ;;  %v10871_v15 = vld [vmem:[%s14440_s3 + $0x1e24] ss:$16 sps:$4 sm:$0xff]  }
 0x398   :  { %7326 = vmatprep.subr.bf16.mxu0 %v10805_v60  ;;  %7982 = vmatprep.subr.bf16.mxu1 %v10808_v61  ;;  %v10874_v60 = vld [vmem:[%s14440_s3 + $0x1e2c] ss:$16 sps:$4 sm:$0xff]   ;;  %v595_v61 = vpack.c.bf16 %v563_v51, %v563_v51 }
 0x39b   :  { %7327 = vmatpush1.bf16.msra.mxu0 %v10803_v36  ;;  %7983 = vmatpush1.bf16.msra.mxu1 %v10806_v18  ;;  %v10869_v36 = vld [vmem:[%s14440_s3 + $0x1e20] ss:$16 sps:$4 sm:$0xff]   ;;  %v10872_v18 = vld [vmem:[%s14440_s3 + $0x1e28] ss:$16 sps:$4 sm:$0xff]  }
 0x39c   :  { %7328 = vmatprep.subr.bf16.mxu0 %v10811_v41  ;;  %7984 = vmatprep.subr.bf16.mxu1 %v10814_v39  ;;  %v10877_v41 = vld [vmem:[%s14440_s3 + $0x1e44] ss:$16 sps:$4 sm:$0xff]   ;;  %v10880_v39 = vld [vmem:[%s14440_s3 + $0x1e4c] ss:$16 sps:$4 sm:$0xff]  }
 0x39f   :  { %7329 = vmatpush1.bf16.msra.mxu0 %v10809_v2  ;;  %7985 = vmatpush1.bf16.msra.mxu1 %v10812_v3  ;;  %v10875_v2 = vld [vmem:[%s14440_s3 + $0x1e40] ss:$16 sps:$4 sm:$0xff]   ;;  %v10878_v3 = vld [vmem:[%s14440_s3 + $0x1e48] ss:$16 sps:$4 sm:$0xff]  }
 0x3a0   :  { %7330 = vmatprep.subr.bf16.mxu0 %v10817_v6  ;;  %7986 = vmatprep.subr.bf16.mxu1 %v10820_v7  ;;  %v10883_v6 = vld [vmem:[%s14440_s3 + $0x1e64] ss:$16 sps:$4 sm:$0xff]   ;;  %v10886_v7 = vld [vmem:[%s14440_s3 + $0x1e6c] ss:$16 sps:$4 sm:$0xff]  }
 0x3a3   :  { %7331 = vmatpush1.bf16.msra.mxu0 %v10815_v8  ;;  %7987 = vmatpush1.bf16.msra.mxu1 %v10818_v54  ;;  %v10881_v8 = vld [vmem:[%s14440_s3 + $0x1e60] ss:$16 sps:$4 sm:$0xff]   ;;  %v10884_v54 = vld [vmem:[%s14440_s3 + $0x1e68] ss:$16 sps:$4 sm:$0xff]  }
 0x3a4   :  { %7332 = vmatprep.subr.bf16.mxu0 %v10823_v57  ;;  %7988 = vmatprep.subr.bf16.mxu1 %v10826_v10  ;;  %v10889_v57 = vld [vmem:[%s14440_s3 + $0x1e84] ss:$16 sps:$4 sm:$0xff]   ;;  %v10892_v10 = vld [vmem:[%s14440_s3 + $0x1e8c] ss:$16 sps:$4 sm:$0xff]  }
 0x3a7   :  { %7333 = vmatpush1.bf16.msra.mxu0 %v10821_v19  ;;  %7989 = vmatpush1.bf16.msra.mxu1 %v10824_v25  ;;  %v10887_v19 = vld [vmem:[%s14440_s3 + $0x1e80] ss:$16 sps:$4 sm:$0xff]   ;;  %v10890_v25 = vld [vmem:[%s14440_s3 + $0x1e88] ss:$16 sps:$4 sm:$0xff]  }
 0x3a8   :  { %7334 = vmatprep.subr.bf16.mxu0 %v10829_v11  ;;  %7990 = vmatprep.subr.bf16.mxu1 %v10832_v53  ;;  %v10895_v11 = vld [vmem:[%s14440_s3 + $0x1ea4] ss:$16 sps:$4 sm:$0xff]   ;;  %v10898_v53 = vld [vmem:[%s14440_s3 + $0x1eac] ss:$16 sps:$4 sm:$0xff]  }
 0x3ab   :  { %7335 = vmatpush1.bf16.msra.mxu0 %v10827_v56  ;;  %7991 = vmatpush1.bf16.msra.mxu1 %v10830_v30  ;;  %v10893_v56 = vld [vmem:[%s14440_s3 + $0x1ea0] ss:$16 sps:$4 sm:$0xff]   ;;  %v10896_v30 = vld [vmem:[%s14440_s3 + $0x1ea8] ss:$16 sps:$4 sm:$0xff]  }
 0x3ac   :  { %7336 = vmatprep.subr.bf16.mxu0 %v10835_v47  ;;  %7992 = vmatprep.subr.bf16.mxu1 %v10838_v12  ;;  %v10901_v47 = vld [vmem:[%s14440_s3 + $0x1ec4] ss:$16 sps:$4 sm:$0xff]   ;;  %v10904_v12 = vld [vmem:[%s14440_s3 + $0x1ecc] ss:$16 sps:$4 sm:$0xff]  }
 0x3af   :  { %7337 = vmatpush1.bf16.msra.mxu0 %v10833_v13  ;;  %7993 = vmatpush1.bf16.msra.mxu1 %v10836_v14  ;;  %v10899_v13 = vld [vmem:[%s14440_s3 + $0x1ec0] ss:$16 sps:$4 sm:$0xff]   ;;  %v10902_v14 = vld [vmem:[%s14440_s3 + $0x1ec8] ss:$16 sps:$4 sm:$0xff]  }
 0x3b0   :  { %7338 = vmatprep.subr.bf16.mxu0 %v10841_v38  ;;  %7994 = vmatprep.subr.bf16.mxu1 %v10844_v52  ;;  %v10905_v38 = vld [vmem:[%s14440_s3 + $0x1ee0] ss:$16 sps:$4 sm:$0xff]   ;;  %v10908_v52 = vld [vmem:[%s14440_s3 + $0x1ee8] ss:$16 sps:$4 sm:$0xff]  }
 0x3b3   :  { %7339 = vmatpush1.bf16.msra.mxu0 %v10839_v21  ;;  %7995 = vmatpush1.bf16.msra.mxu1 %v10842_v23  ;;  %v10911_v21 = vld [vmem:[%s14440_s3 + $0x1f00] ss:$16 sps:$4 sm:$0xff]   ;;  %v10914_v23 = vld [vmem:[%s14440_s3 + $0x1f08] ss:$16 sps:$4 sm:$0xff]  }
 0x3b4   :  { %7340 = vmatprep.subr.bf16.mxu0 %v10847_v63  ;;  %7996 = vmatprep.subr.bf16.mxu1 %v10850_v62  ;;  %v10917_v63 = vld [vmem:[%s14440_s3 + $0x1f20] ss:$16 sps:$4 sm:$0xff]   ;;  %v10920_v62 = vld [vmem:[%s14440_s3 + $0x1f28] ss:$16 sps:$4 sm:$0xff]  }
 0x3b7   :  { %7341 = vmatpush1.bf16.msra.mxu0 %v10845_v50  ;;  %7997 = vmatpush1.bf16.msra.mxu1 %v10848_v31  ;;  %v10923_v50 = vld [vmem:[%s14440_s3 + $0x1f40] ss:$16 sps:$4 sm:$0xff]   ;;  %v10926_v31 = vld [vmem:[%s14440_s3 + $0x1f48] ss:$16 sps:$4 sm:$0xff]  }
 0x3b8   :  { %7342 = vmatprep.subr.bf16.mxu0 %v10853_v33  ;;  %7998 = vmatprep.subr.bf16.mxu1 %v10856_v55  ;;  %v10934_v33 = vld [vmem:[%s14440_s3 + $0x1f6c] ss:$16 sps:$4 sm:$0xff]   ;;  %v10929_v55 = vld [vmem:[%s14440_s3 + $0x1f60] ss:$16 sps:$4 sm:$0xff]  }
 0x3bb   :  { %7343 = vmatpush1.bf16.msra.mxu0 %v10851_v4  ;;  %7999 = vmatpush1.bf16.msra.mxu1 %v10854_v34  ;;  %v66_v4 = vunpack.c.l.bf16 %v14160_v17  ;;  %v10967_v34 = vld [vmem:[%s14442_s1 + $0x18] sm:$0xff]  ;;  %v10935_v17 = vld [vmem:[%s14440_s3 + $0x1f80] ss:$16 sps:$4 sm:$0xff]  }
 0x3bc   :  { %7344 = vmatprep.subr.bf16.mxu0 %v10859_v9  ;;  %8000 = vmatprep.subr.bf16.mxu1 %v10862_v48  ;;  %v199_v35 = vrot.slane %v10967_v34, %v11812_v22  ;;  %v10937_v9 = vld [vmem:[%s14440_s3 + $0x1f84] ss:$16 sps:$4 sm:$0xff]   ;;  %v10940_v48 = vld [vmem:[%s14440_s3 + $0x1f8c] ss:$16 sps:$4 sm:$0xff]  }
 0x3bf   :  { %7345 = vmatpush1.bf16.msra.mxu0 %v10857_v5  ;;  %8001 = vmatpush1.bf16.msra.mxu1 %v10860_v43  ;;  %v266_v5 = vmul.f32 %v199_v35, %v66_v4  ;;  %v10968_v43 = vld [vmem:[%s14443_s2 + $0x18] sm:$0xff] }
 0x3c0   :  { %7355 = vmatprep.subr.bf16.mxu0 %v10865_v44  ;;  %8011 = vmatprep.subr.bf16.mxu1 %v10868_v45  ;;  %v399_v49 = vrot.slane %v10968_v43, %v11812_v22  ;;  %v10943_v44 = vld [vmem:[%s14440_s3 + $0x1fa4] ss:$16 sps:$4 sm:$0xff]   ;;  %v10946_v45 = vld [vmem:[%s14440_s3 + $0x1fac] ss:$16 sps:$4 sm:$0xff]   ;;  %v10944_v22 = vld [vmem:[%s14440_s3 + $0x1fa8] ss:$16 sps:$4 sm:$0xff]  }
 0x3c2   :  { %7347 = vmatmul.mubr.bf16.vlgmr.msra.gmra.mrb[0].mxu0 %v592_v46  ;;  %8003 = vmatmul.mubr.bf16.vlgmr.msra.gmra.mrb[0].mxu1 %v592_v46  ;;  %v10941_v46 = vld [vmem:[%s14440_s3 + $0x1fa0] ss:$16 sps:$4 sm:$0xff]   ;;  %v466_v51 = vadd.f32 %v399_v49, %v266_v5 }
 0x3c3   :  { %7356 = vmatpush1.bf16.msra.mxu0 %v10863_v58  ;;  %8012 = vmatpush1.bf16.msra.mxu1 %v10866_v59  ;;  %v10949_v58 = vld [vmem:[%s14440_s3 + $0x1fc4] ss:$16 sps:$4 sm:$0xff]   ;;  %v10952_v59 = vld [vmem:[%s14440_s3 + $0x1fcc] ss:$16 sps:$4 sm:$0xff]  }
 0x3c4   :  { %7357 = vmatprep.subr.bf16.mxu0 %v10871_v15  ;;  %8013 = vmatprep.subr.bf16.mxu1 %v10874_v60  ;;  %v10947_v15 = vld [vmem:[%s14440_s3 + $0x1fc0] ss:$16 sps:$4 sm:$0xff]   ;;  %v10950_v60 = vld [vmem:[%s14440_s3 + $0x1fc8] ss:$16 sps:$4 sm:$0xff]   ;;  %vm498_vm15 = vcmp.gt.f32.partialorder %v466_v51, 0.0 }
 0x3c5   :  { %7387 = vmatprep.mubr.bf16.mxu0 %v595_v61  ;;  %8043 = vmatprep.mubr.bf16.mxu1 %v595_v61  ;;  %v530_v61 = vmul.f32 0.2, %v466_v51 }
 0x3c7   :  { %7358 = vmatpush1.bf16.msra.mxu0 %v10869_v36  ;;  %8014 = vmatpush1.bf16.msra.mxu1 %v10872_v18  ;;  %v10955_v36 = vld [vmem:[%s14440_s3 + $0x1fe4] ss:$16 sps:$4 sm:$0xff]   ;;  %v10958_v18 = vld [vmem:[%s14440_s3 + $0x1fec] ss:$16 sps:$4 sm:$0xff]  }
 0x3c8   :  { %7359 = vmatprep.subr.bf16.mxu0 %v10877_v41  ;;  %8015 = vmatprep.subr.bf16.mxu1 %v10880_v39  ;;  %v10953_v41 = vld [vmem:[%s14440_s3 + $0x1fe0] ss:$16 sps:$4 sm:$0xff]   ;;  %v10956_v39 = vld [vmem:[%s14440_s3 + $0x1fe8] ss:$16 sps:$4 sm:$0xff]  }
 0x3cb   :  { %7360 = vmatpush1.bf16.msra.mxu0 %v10875_v2  ;;  %8016 = vmatpush1.bf16.msra.mxu1 %v10878_v3  ;;  %v562_v2 = vsel %vm498_vm15, %v466_v51, %v530_v61 }
 0x3cc   :  { %7361 = vmatprep.subr.bf16.mxu0 %v10883_v6  ;;  %8017 = vmatprep.subr.bf16.mxu1 %v10886_v7  ;;  %v594_v3 = vpack.c.bf16 %v562_v2, %v562_v2  ;;  %v10969_v6 = vmov 1966171168  }
 0x3cd   :  { %v8133_v7 = vunpack.c.l.s4 %v10969_v6 }
 0x3cf   :  { %7362 = vmatpush1.bf16.msra.mxu0 %v10881_v8  ;;  %8018 = vmatpush1.bf16.msra.mxu1 %v10884_v54  ;;  %v8134_v8 = vunpack.c.0.s8 %v8133_v7 }
 0x3d0   :  { %7363 = vmatprep.subr.bf16.mxu0 %v10889_v57  ;;  %8019 = vmatprep.subr.bf16.mxu1 %v10892_v10 }
 0x3d1   :  { %v14419_v10 = vsub.s32 %v8134_v8, %v11129_v42 }
 0x3d3   :  { %7364 = vmatpush1.bf16.msra.mxu0 %v10887_v19  ;;  %8020 = vmatpush1.bf16.msra.mxu1 %v10890_v25 }
 0x3d4   :  { %7365 = vmatprep.subr.bf16.mxu0 %v10895_v11  ;;  %8021 = vmatprep.subr.bf16.mxu1 %v10898_v53 }
 0x3d7   :  { %7366 = vmatpush1.bf16.msra.mxu0 %v10893_v56  ;;  %8022 = vmatpush1.bf16.msra.mxu1 %v10896_v30 }
 0x3d8   :  { %7367 = vmatprep.subr.bf16.mxu0 %v10901_v47  ;;  %8023 = vmatprep.subr.bf16.mxu1 %v10904_v12 }
 0x3db   :  { %7368 = vmatpush1.bf16.msra.mxu0 %v10899_v13  ;;  %8024 = vmatpush1.bf16.msra.mxu1 %v10902_v14 }
 0x3dc   :  { %7369 = vmatprep.subr.bf16.mxu0 %v10907_v32  ;;  %8025 = vmatprep.subr.bf16.mxu1 %v10910_v16 }
 0x3df   :  { %7370 = vmatpush1.bf16.msra.mxu0 %v10905_v38  ;;  %8026 = vmatpush1.bf16.msra.mxu1 %v10908_v52 }
 0x3e0   :  { %7371 = vmatprep.subr.bf16.mxu0 %v10913_v1  ;;  %8027 = vmatprep.subr.bf16.mxu1 %v10916_v20 }
 0x3e3   :  { %7372 = vmatpush1.bf16.msra.mxu0 %v10911_v21  ;;  %8028 = vmatpush1.bf16.msra.mxu1 %v10914_v23 }
 0x3e4   :  { %7373 = vmatprep.subr.bf16.mxu0 %v10919_v24  ;;  %8029 = vmatprep.subr.bf16.mxu1 %v10922_v26 }
 0x3e7   :  { %7374 = vmatpush1.bf16.msra.mxu0 %v10917_v63  ;;  %8030 = vmatpush1.bf16.msra.mxu1 %v10920_v62 }
 0x3e8   :  { %7375 = vmatprep.subr.bf16.mxu0 %v10925_v28  ;;  %8031 = vmatprep.subr.bf16.mxu1 %v10928_v29 }
 0x3eb   :  { %7376 = vmatpush1.bf16.msra.mxu0 %v10923_v50  ;;  %8032 = vmatpush1.bf16.msra.mxu1 %v10926_v31 }
 0x3ec   :  { %7377 = vmatprep.subr.bf16.mxu0 %v10931_v0  ;;  %8033 = vmatprep.subr.bf16.mxu1 %v10934_v33 }
 0x3ef   :  { %7378 = vmatpush1.bf16.msra.mxu0 %v10929_v55  ;;  %8034 = vmatpush1.bf16.msra.mxu1 %v10932_v27 }
 0x3f0   :  { %7379 = vmatprep.subr.bf16.mxu0 %v10937_v9  ;;  %8035 = vmatprep.subr.bf16.mxu1 %v10940_v48 }
 0x3f3   :  { %7380 = vmatpush1.bf16.msra.mxu0 %v10935_v17  ;;  %8036 = vmatpush1.bf16.msra.mxu1 %v10938_v40 }
 0x3f4   :  { %7381 = vmatprep.subr.bf16.mxu0 %v10943_v44  ;;  %8037 = vmatprep.subr.bf16.mxu1 %v10946_v45 }
 0x3f7   :  { %7382 = vmatpush1.bf16.msra.mxu0 %v10941_v46  ;;  %8038 = vmatpush1.bf16.msra.mxu1 %v10944_v22 }
 0x3f8   :  { %7383 = vmatprep.subr.bf16.mxu0 %v10949_v58  ;;  %8039 = vmatprep.subr.bf16.mxu1 %v10952_v59 }
 0x3fb   :  { %7384 = vmatpush1.bf16.msra.mxu0 %v10947_v15  ;;  %8040 = vmatpush1.bf16.msra.mxu1 %v10950_v60 }
 0x3fc   :  { %7385 = vmatprep.subr.bf16.mxu0 %v10955_v36  ;;  %8041 = vmatprep.subr.bf16.mxu1 %v10958_v18 }
 0x3ff   :  { %7386 = vmatpush1.bf16.msra.mxu0 %v10953_v41  ;;  %8042 = vmatpush1.bf16.msra.mxu1 %v10956_v39 }
 0x402   :  { %7388 = vmatmul.mubr.bf16.vlgmr.msra.gmra.mrb[0].mxu0 %v594_v3  ;;  %8044 = vmatmul.mubr.bf16.vlgmr.msra.gmra.mrb[0].mxu1 %v594_v3 }
 0x4d5   :  { %v7389_v54 = vpop.f32.mrb[0].mxu0  ;;  %v8045_v57 = vpop.f32.mrb[0].mxu1 }
 0x4d6   :  { %v8070_v19 = vrot.slane %v7389_v54, 4  ;;  %v8094_v25 = vmul.f32 %v7389_v54, %v7389_v54  ;;  %v8082_v11 = vrot.slane %v8045_v57, 4  ;;  %v8096_v53 = vmul.f32 %v8045_v57, %v8045_v57  ;;  %v7391_v56 = vpop.f32.mrb[1].mxu0  ;;  %v8047_v30 = vpop.f32.mrb[1].mxu1 }
 0x4d7   :  { %v9300_v47 = vpack.c.bf16 %v7391_v56, %v7389_v54  ;;  %v8076_v12 = vrot.slane %v7391_v56, 4  ;;  %v8095_v13 = vmul.f32 %v7391_v56, %v7391_v56  ;;  %v9301_v14 = vpack.c.bf16 %v8047_v30, %v8045_v57  ;;  %v7393_v32 = vpop.f32.mrb[2].mxu0  ;;  %v8049_v16 = vpop.f32.mrb[2].mxu1 }
 0x4d8   :  { %v8071_v38 = vadd.f32 %v8070_v19, %v7389_v54  ;;  %v8098_v52 = vrot.slane %v8094_v25, 4  ;;  %v8083_v1 = vadd.f32 %v8082_v11, %v8045_v57  ;;  %v8110_v20 = vrot.slane %v8096_v53, 4  ;;  %v7394_v21 = vpop.f32.mrb[3].mxu0  ;;  %v8050_v23 = vpop.f32.mrb[3].mxu1 }
 0x4d9   :  { %8068 = vst [vmem:[%s14444_s4] sm:$0xff] %v9300_v47  ;;  %v8077_v42 = vadd.f32 %v8076_v12, %v7391_v56  ;;  %v8104_v24 = vrot.slane %v8095_v13, 4  ;;  %8069 = vst [vmem:[%s14444_s4 + $0x8] sm:$0xff] %v9301_v14  ;;  %v8088_v26 = vrot.slane %v8047_v30, 4  ;;  %v8097_v63 = vmul.f32 %v8047_v30, %v8047_v30 }
 0x4da   :  { %v8072_v62 = vrot.slane %v8071_v38, 2  ;;  %v8099_v28 = vadd.f32 %v8098_v52, %v8094_v25  ;;  %v8084_v29 = vrot.slane %v8083_v1, 2  ;;  %v8111_v50 = vadd.f32 %v8110_v20, %v8096_v53 }
 0x4db   :  { %v8078_v31 = vrot.slane %v8077_v42, 2  ;;  %v8105_v0 = vadd.f32 %v8104_v24, %v8095_v13  ;;  %v8089_v33 = vadd.f32 %v8088_v26, %v8047_v30  ;;  %v8116_v55 = vrot.slane %v8097_v63, 4 }
 0x4dc   :  { %v8073_v27 = vadd.f32 %v8072_v62, %v8071_v38  ;;  %v8100_v4 = vrot.slane %v8099_v28, 2  ;;  %v8085_v34 = vadd.f32 %v8084_v29, %v8083_v1  ;;  %v8112_v35 = vrot.slane %v8111_v50, 2 }
 0x4dd   :  { %v8079_v9 = vadd.f32 %v8078_v31, %v8077_v42  ;;  %v8106_v48 = vrot.slane %v8105_v0, 2  ;;  %v8090_v17 = vrot.slane %v8089_v33, 2  ;;  %v8117_v40 = vadd.f32 %v8116_v55, %v8097_v63 }
 0x4de   :  { %v8074_v5 = vrot.slane %v8073_v27, 1  ;;  %v8101_v43 = vadd.f32 %v8100_v4, %v8099_v28  ;;  %v8086_v49 = vrot.slane %v8085_v34, 1  ;;  %v8113_v44 = vadd.f32 %v8112_v35, %v8111_v50 }
 0x4df   :  { %v8080_v45 = vrot.slane %v8079_v9, 1  ;;  %v8107_v46 = vadd.f32 %v8106_v48, %v8105_v0  ;;  %v8091_v22 = vadd.f32 %v8090_v17, %v8089_v33  ;;  %v8118_v51 = vrot.slane %v8117_v40, 2 }
 0x4e0   :  { %v8075_v58 = vadd.f32 %v8074_v5, %v8073_v27  ;;  %v8102_v59 = vrot.slane %v8101_v43, 1  ;;  %v8087_v15 = vadd.f32 %v8086_v49, %v8085_v34  ;;  %v8114_v60 = vrot.slane %v8113_v44, 1 }
 0x4e1   :  { %v8081_v61 = vadd.f32 %v8080_v45, %v8079_v9  ;;  %v8108_v36 = vrot.slane %v8107_v46, 1  ;;  %v8092_v18 = vrot.slane %v8091_v22, 1  ;;  %v8119_v41 = vadd.f32 %v8118_v51, %v8117_v40 }
 0x4e2   :  { %v8103_v39 = vadd.f32 %v8102_v59, %v8101_v43  ;;  %v8115_v2 = vadd.f32 %v8114_v60, %v8113_v44 }
 0x4e3   :  { %v8109_v3 = vadd.f32 %v8108_v36, %v8107_v46  ;;  %v8130_v6 = vcombine.low %v8075_v58, %v8081_v61  ;;  %v8093_v7 = vadd.f32 %v8092_v18, %v8091_v22  ;;  %v8120_v8 = vrot.slane %v8119_v41, 1 }
 0x4e5   :  { %v8138_v54 = vrot.slane %v8130_v6, %v14419_v10  ;;  %v8164_v57 = vcombine.low %v8103_v39, %v8109_v3  ;;  %v8121_v19 = vadd.f32 %v8120_v8, %v8119_v41  ;;  %v8131_v25 = vcombine.low %v8087_v15, %v8093_v7 }
 0x4e7   :  { %v8172_v11 = vrot.slane %v8164_v57, %v14419_v10  ;;  %v8145_v53 = vrot.slane %v8131_v25, %v14419_v10  ;;  %v8165_v56 = vcombine.low %v8115_v2, %v8121_v19 }
 0x4e9   :  { %v8146_v30 = vcombine.low %v8138_v54, %v8145_v53  ;;  %v8179_v47 = vrot.slane %v8165_v56, %v14419_v10 }
 0x4eb   :  { %v8153_v12 = vrot.slane %v8146_v30, %v14419_v10  ;;  %v8180_v13 = vcombine.low %v8172_v11, %v8179_v47 }
 0x4ed   :  { %8159 = vst.msk [vmem:[%s14445_s5] sm:$0xf] %vm8157_vm0, %v8153_v12  ;;  %v8187_v14 = vrot.slane %v8180_v13, %v14419_v10 }
 0x4ef   :  { %8189 = vst.msk [vmem:[%s14446_s6] sm:$0xf] %vm8157_vm0, %v8187_v14 }

</bundles_post_ra>
